<compile_context>
chip_gen: v7x
topology: tpu7x:2x2x1
jax: 0.10.0
libtpu: 0.0.40
codegen_flags: <defaults>
</compile_context>

<pallas_src>
import functools

import jax
import jax.numpy as jnp
from jax.experimental import pallas as pl
from jax.experimental.pallas import tpu as pltpu


def _layer_kernel(w_ref, b_ref, x_ref, h_out_ref, c_out_ref,
                  h_scr, c_scr, pad_scr, *, in_ch, H, W):
    """One fused ConvLSTM layer: grid = (B, T), T carried via VMEM scratch.

    w_ref   : (4*cin*9,)  flat conv weights, SMEM (torch layout (4, cin, 3, 3))
    b_ref   : (4,)        conv bias, SMEM (gate order i, f, o, g)
    x_ref   : (1, 1, in_ch, H, W) this layer's input frame x_t      (VMEM)
    h_out_ref : (1, 1, H, W)  h_t written every timestep
    c_out_ref : (1, H, W)     resident over T; holds c_T at the end
    h_scr, c_scr : (H, W)     recurrent state carried across the T axis
    pad_scr : (H+2, W+2)      zero-bordered plane for in-kernel 'same' padding
    """
    cin = in_ch + 1                      # input channels + hidden (=1)
    t = pl.program_id(1)

    @pl.when(t == 0)
    def _init():
        # Fresh recurrent state per batch element; pad border must be zero.
        h_scr[...] = jnp.zeros_like(h_scr)
        c_scr[...] = jnp.zeros_like(c_scr)
        pad_scr[...] = jnp.zeros_like(pad_scr)

    h_prev = h_scr[...]                  # (H, W)
    c_prev = c_scr[...]                  # (H, W)

    # Gate accumulators (i, f, o, g), seeded with the conv bias.
    acc = [jnp.full((H, W), b_ref[k], dtype=jnp.float32) for k in range(4)]

    for c in range(cin):
        # Combined [x_t ; h_{t-1}] channel c (no materialized concat needed).
        plane = x_ref[0, 0, c] if c < in_ch else h_prev          # (H, W)

        # In-kernel 'same' zero padding: overwrite interior, border stays 0.
        pad_scr[pl.ds(1, H), pl.ds(1, W)] = plane
        pp = pad_scr[...]                                        # (H+2, W+2)

        # 9 shifted taps, computed once and shared by all 4 gates.
        taps = [pp[dy:dy + H, dx:dx + W] for dy in range(3) for dx in range(3)]

        for k in range(4):               # i, f, o, g
            base = (k * cin + c) * 9     # ((k*cin + c)*3 + dy)*3 + dx
            p0 = (w_ref[base + 0] * taps[0] + w_ref[base + 1] * taps[1]
                  + w_ref[base + 2] * taps[2])
            p1 = (w_ref[base + 3] * taps[3] + w_ref[base + 4] * taps[4]
                  + w_ref[base + 5] * taps[5])
            p2 = (w_ref[base + 6] * taps[6] + w_ref[base + 7] * taps[7]
                  + w_ref[base + 8] * taps[8])
            acc[k] = acc[k] + (p0 + p1 + p2)

    i_g = jax.nn.sigmoid(acc[0])
    f_g = jax.nn.sigmoid(acc[1])
    o_g = jax.nn.sigmoid(acc[2])
    g_g = jnp.tanh(acc[3])

    c_next = f_g * c_prev + i_g * g_g
    h_next = o_g * jnp.tanh(c_next)

    h_scr[...] = h_next
    c_scr[...] = c_next
    h_out_ref[0, 0] = h_next             # streamed per-timestep output
    c_out_ref[0] = c_next                # resident block -> final value is c_T


@functools.lru_cache(maxsize=None)
def _make_layer(in_ch, B, T, H, W):
    """Build the fused pallas_call for one ConvLSTM layer (hidden_dim=1)."""
    kernel = functools.partial(_layer_kernel, in_ch=in_ch, H=H, W=W)

    grid_spec = pltpu.PrefetchScalarGridSpec(
        num_scalar_prefetch=0,
        grid=(B, T),
        in_specs=[
            pl.BlockSpec(memory_space=pltpu.MemorySpace.SMEM),    # flat weights
            pl.BlockSpec(memory_space=pltpu.MemorySpace.SMEM),    # bias (4,)
            pl.BlockSpec((1, 1, in_ch, H, W),
                         lambda b, t: (b, t, 0, 0, 0)),           # x_t
        ],
        out_specs=[
            pl.BlockSpec((1, 1, H, W), lambda b, t: (b, t, 0, 0)),  # h_t
            pl.BlockSpec((1, H, W), lambda b, t: (b, 0, 0)),        # c (revisit)
        ],
        scratch_shapes=[
            pltpu.VMEM((H, W), jnp.float32),          # h carry
            pltpu.VMEM((H, W), jnp.float32),          # c carry
            pltpu.VMEM((H + 2, W + 2), jnp.float32),  # zero-padded plane
        ],
    )

    return pl.pallas_call(
        kernel,
        out_shape=(
            jax.ShapeDtypeStruct((B, T, H, W), jnp.float32),
            jax.ShapeDtypeStruct((B, H, W), jnp.float32),
        ),
        grid_spec=grid_spec,
        compiler_params=pltpu.CompilerParams(
            dimension_semantics=("parallel", "arbitrary")),
    )


def init_convlstm_params(key, input_dim, hidden_dim, num_layers, kernel_size=3):
    """Deterministic init, shapes match nn.Conv2d(cin, 4*hidden, 3, padding=1)."""
    params = []
    for layer in range(num_layers):
        cin = (input_dim if layer == 0 else hidden_dim) + hidden_dim
        key, kw, kb = jax.random.split(key, 3)
        fan_in = cin * kernel_size * kernel_size
        bound = 1.0 / jnp.sqrt(fan_in)
        w = jax.random.uniform(kw, (4 * hidden_dim, cin, kernel_size, kernel_size),
                               jnp.float32, -bound, bound)
        b = jax.random.uniform(kb, (4 * hidden_dim,), jnp.float32, -bound, bound)
        params.append((w.reshape(-1), b))     # flatten weights for SMEM
    return params


def nano_lstm_forward(x, params, hidden_dim=1):
    """ConvLSTM forward (batch_first, return_all_layers=False).

    x : (B, T, C, H, W) float32
    Returns (layer_output_list, last_state_list) like the PyTorch ConvLSTM:
      layer_output_list = [ (B, T, hidden, H, W) ]   # last layer only
      last_state_list   = [ (h_T, c_T) ]             # each (B, hidden, H, W)
    """
    assert hidden_dim == 1, "kernel is specialized to hidden_dim=1 (NANO_LSTM)"
    B, T, C, H, W = x.shape
    cur = x.astype(jnp.float32)                       # (B, T, in_ch, H, W)
    c_last = None
    for (w_flat, b) in params:
        in_ch = cur.shape[2]
        layer = _make_layer(in_ch, B, T, H, W)
        h_seq, c_last = layer(w_flat, b, cur)         # (B,T,H,W), (B,H,W)
        cur = h_seq[:, :, None, :, :]                 # (B, T, 1, H, W)
    h_last = cur[:, -1]                               # (B, 1, H, W)
    return [cur], [(h_last, c_last[:, None, :, :])]


def _ref_convlstm_forward(x, params):
    """Pure-JAX (XLA) reference of the same ConvLSTM, for verification."""
    B, T, C, H, W = x.shape
    cur = x.astype(jnp.float32)
    h = c = None
    for (w_flat, b) in params:
        in_ch = cur.shape[2]
        cin = in_ch + 1
        w = w_flat.reshape(4, cin, 3, 3)
        h = jnp.zeros((B, 1, H, W), jnp.float32)
        c = jnp.zeros((B, 1, H, W), jnp.float32)
        outs = []
        for t in range(T):
            comb = jnp.concatenate([cur[:, t], h], axis=1)          # (B,cin,H,W)
            combp = jnp.pad(comb, ((0, 0), (0, 0), (1, 1), (1, 1)))
            conv = jnp.zeros((B, 4, H, W), jnp.float32)
            for dy in range(3):
                for dx in range(3):
                    conv = conv + jnp.einsum(
                        'bchw,kc->bkhw',
                        combp[:, :, dy:dy + H, dx:dx + W], w[:, :, dy, dx])
            conv = conv + b[None, :, None, None]
            i = jax.nn.sigmoid(conv[:, 0:1])
            f = jax.nn.sigmoid(conv[:, 1:2])
            o = jax.nn.sigmoid(conv[:, 2:3])
            g = jnp.tanh(conv[:, 3:4])
            c = f * c + i * g
            h = o * jnp.tanh(c)
            outs.append(h)
        cur = jnp.stack(outs, axis=1)
    return cur, h, c


if __name__ == "__main__":
    # Small shapes consistent with the module: 4 input channels, hidden=1,
    # 3x3 kernel, 8 layers (original 512x512 spatial size shrunk to 16x16).
    B, T, C, H, W = 2, 4, 4, 16, 16
    NUM_LAYERS, HIDDEN = 8, 1

    key = jax.random.PRNGKey(0)
    key, kx = jax.random.split(key)
    x = jax.random.normal(kx, (B, T, C, H, W), jnp.float32)
    params = init_convlstm_params(key, input_dim=C, hidden_dim=HIDDEN,
                                  num_layers=NUM_LAYERS)

    fwd = jax.jit(nano_lstm_forward)
    layer_outputs, last_states = fwd(x, params)
    out = layer_outputs[0]            # (B, T, 1, H, W)
    h_T, c_T = last_states[0]

    jax.block_until_ready(out)
    jax.block_until_ready(h_T)
    jax.block_until_ready(c_T)

    assert out.shape == (B, T, HIDDEN, H, W)
    assert h_T.shape == (B, HIDDEN, H, W) and c_T.shape == (B, HIDDEN, H, W)
    assert bool(jnp.all(jnp.isfinite(out)))

    # Numerical check against a pure-JAX reference of the same ConvLSTM.
    ref_out, ref_h, ref_c = _ref_convlstm_forward(x, params)
    assert bool(jnp.allclose(out, ref_out, atol=1e-4, rtol=1e-4))
    assert bool(jnp.allclose(h_T, ref_h, atol=1e-4, rtol=1e-4))
    assert bool(jnp.allclose(c_T, ref_c, atol=1e-4, rtol=1e-4))

    # TODO(synk): training-only machinery (SSIM loss, Adam/RMSprop/WGAN loops,
    # TensorBoard, cv2/checkpoint I/O) is not part of forward() and is not ported.
    print("KERNEL_OK")
</pallas_src>

<mosaic_0001>
module attributes {stable_mosaic.version = 11 : i64} {
  func.func @_layer_kernel(%arg0: i32, %arg1: i32, %arg2: memref<72xf32, #tpu.memory_space<smem>>, %arg3: memref<4xf32, #tpu.memory_space<smem>>, %arg4: memref<1x1x1x16x16xf32, #tpu.memory_space<vmem>>, %arg5: memref<1x1x16x16xf32, #tpu.memory_space<vmem>>, %arg6: memref<1x16x16xf32, #tpu.memory_space<vmem>>, %arg7: memref<16x16xf32, #tpu.memory_space<vmem>>, %arg8: memref<16x16xf32, #tpu.memory_space<vmem>>, %arg9: memref<18x18xf32, #tpu.memory_space<vmem>>) attributes {dimension_semantics = [#tpu.dimension_semantics<parallel>, #tpu.dimension_semantics<arbitrary>], iteration_bounds = array<i64: 2, 4>, scalar_prefetch = 0 : i64, scratch_operands = 3 : i64, tpu.core_type = #tpu.core_type<tc>, window_params = [{transform_indices = @transform_0, window_bounds = array<i64: 72>}, {transform_indices = @transform_1, window_bounds = array<i64: 4>}, {transform_indices = @transform_2, window_bounds = array<i64: 1, 1, 1, 16, 16>}, {transform_indices = @transform_3, window_bounds = array<i64: 1, 1, 16, 16>}, {transform_indices = @transform_4, window_bounds = array<i64: 1, 16, 16>}]} {
    %c0_i32 = arith.constant 0 : i32
    %0 = arith.cmpi eq, %arg1, %c0_i32 : i32
    %1 = arith.extui %0 : i1 to i32
    %c0_i32_0 = arith.constant 0 : i32
    %2 = arith.cmpi ne, %1, %c0_i32_0 : i32
    scf.if %2 {
      %cst_35 = arith.constant 0.000000e+00 : f32
      %354 = vector.broadcast %cst_35 : f32 to vector<16x16xf32>
      %c0_36 = arith.constant 0 : index
      %c0_37 = arith.constant 0 : index
      %355 = vector.load %arg7[%c0_36, %c0_37] : memref<16x16xf32, #tpu.memory_space<vmem>>, vector<16x16xf32>
      tpu.vector_store %arg7[%c0_36, %c0_37], %354 {strides = array<i32>} : memref<16x16xf32, #tpu.memory_space<vmem>>, vector<16x16xf32>,
      %cst_38 = arith.constant 0.000000e+00 : f32
      %356 = vector.broadcast %cst_38 : f32 to vector<16x16xf32>
      %c0_39 = arith.constant 0 : index
      %c0_40 = arith.constant 0 : index
      %357 = vector.load %arg8[%c0_39, %c0_40] : memref<16x16xf32, #tpu.memory_space<vmem>>, vector<16x16xf32>
      tpu.vector_store %arg8[%c0_39, %c0_40], %356 {strides = array<i32>} : memref<16x16xf32, #tpu.memory_space<vmem>>, vector<16x16xf32>,
      %cst_41 = arith.constant 0.000000e+00 : f32
      %358 = vector.broadcast %cst_41 : f32 to vector<18x18xf32>
      %c0_42 = arith.constant 0 : index
      %c0_43 = arith.constant 0 : index
      %359 = vector.load %arg9[%c0_42, %c0_43] : memref<18x18xf32, #tpu.memory_space<vmem>>, vector<18x18xf32>
      tpu.vector_store %arg9[%c0_42, %c0_43], %358 {strides = array<i32>} : memref<18x18xf32, #tpu.memory_space<vmem>>, vector<18x18xf32>,
    } else {
    }
    %c0 = arith.constant 0 : index
    %c0_1 = arith.constant 0 : index
    %3 = vector.load %arg7[%c0, %c0_1] : memref<16x16xf32, #tpu.memory_space<vmem>>, vector<16x16xf32>
    %c0_2 = arith.constant 0 : index
    %c0_3 = arith.constant 0 : index
    %4 = vector.load %arg8[%c0_2, %c0_3] : memref<16x16xf32, #tpu.memory_space<vmem>>, vector<16x16xf32>
    %c0_4 = arith.constant 0 : index
    %5 = memref.load %arg3[%c0_4] : memref<4xf32, #tpu.memory_space<smem>>
    %6 = vector.broadcast %5 : f32 to vector<16x16xf32>
    %c1 = arith.constant 1 : index
    %7 = memref.load %arg3[%c1] : memref<4xf32, #tpu.memory_space<smem>>
    %8 = vector.broadcast %7 : f32 to vector<16x16xf32>
    %c2 = arith.constant 2 : index
    %9 = memref.load %arg3[%c2] : memref<4xf32, #tpu.memory_space<smem>>
    %10 = vector.broadcast %9 : f32 to vector<16x16xf32>
    %c3 = arith.constant 3 : index
    %11 = memref.load %arg3[%c3] : memref<4xf32, #tpu.memory_space<smem>>
    %12 = vector.broadcast %11 : f32 to vector<16x16xf32>
    %c0_5 = arith.constant 0 : index
    %c0_6 = arith.constant 0 : index
    %c0_7 = arith.constant 0 : index
    %c0_8 = arith.constant 0 : index
    %c0_9 = arith.constant 0 : index
    %13 = vector.load %arg4[%c0_5, %c0_6, %c0_7, %c0_8, %c0_9] : memref<1x1x1x16x16xf32, #tpu.memory_space<vmem>>, vector<1x1x1x16x16xf32>
    %14 = vector.shape_cast %13 : vector<1x1x1x16x16xf32> to vector<16x16xf32>
    %c1_10 = arith.constant 1 : index
    %c1_11 = arith.constant 1 : index
    %15 = vector.load %arg9[%c1_10, %c1_11] : memref<18x18xf32, #tpu.memory_space<vmem>>, vector<16x16xf32>
    tpu.vector_store %arg9[%c1_10, %c1_11], %14 {strides = array<i32>} : memref<18x18xf32, #tpu.memory_space<vmem>>, vector<16x16xf32>,
    %c0_12 = arith.constant 0 : index
    %c0_13 = arith.constant 0 : index
    %16 = vector.load %arg9[%c0_12, %c0_13] : memref<18x18xf32, #tpu.memory_space<vmem>>, vector<18x18xf32>
    %17 = vector.extract_strided_slice %16 {offsets = [0, 0], sizes = [16, 16], strides = [1, 1]} : vector<18x18xf32> to vector<16x16xf32>
    %18 = vector.extract_strided_slice %16 {offsets = [0, 1], sizes = [16, 16], strides = [1, 1]} : vector<18x18xf32> to vector<16x16xf32>
    %19 = vector.extract_strided_slice %16 {offsets = [0, 2], sizes = [16, 16], strides = [1, 1]} : vector<18x18xf32> to vector<16x16xf32>
    %20 = vector.extract_strided_slice %16 {offsets = [1, 0], sizes = [16, 16], strides = [1, 1]} : vector<18x18xf32> to vector<16x16xf32>
    %21 = vector.extract_strided_slice %16 {offsets = [1, 1], sizes = [16, 16], strides = [1, 1]} : vector<18x18xf32> to vector<16x16xf32>
    %22 = vector.extract_strided_slice %16 {offsets = [1, 2], sizes = [16, 16], strides = [1, 1]} : vector<18x18xf32> to vector<16x16xf32>
    %23 = vector.extract_strided_slice %16 {offsets = [2, 0], sizes = [16, 16], strides = [1, 1]} : vector<18x18xf32> to vector<16x16xf32>
    %24 = vector.extract_strided_slice %16 {offsets = [2, 1], sizes = [16, 16], strides = [1, 1]} : vector<18x18xf32> to vector<16x16xf32>
    %25 = vector.extract_strided_slice %16 {offsets = [2, 2], sizes = [16, 16], strides = [1, 1]} : vector<18x18xf32> to vector<16x16xf32>
    %c0_14 = arith.constant 0 : index
    %26 = memref.load %arg2[%c0_14] : memref<72xf32, #tpu.memory_space<smem>>
    %27 = vector.broadcast %26 : f32 to vector<16x16xf32>
    %28 = arith.mulf %27, %17 : vector<16x16xf32>
    %c1_15 = arith.constant 1 : index
    %29 = memref.load %arg2[%c1_15] : memref<72xf32, #tpu.memory_space<smem>>
    %30 = vector.broadcast %29 : f32 to vector<16x16xf32>
    %31 = arith.mulf %30, %18 : vector<16x16xf32>
    %32 = arith.addf %28, %31 : vector<16x16xf32>
    %c2_16 = arith.constant 2 : index
    %33 = memref.load %arg2[%c2_16] : memref<72xf32, #tpu.memory_space<smem>>
    %34 = vector.broadcast %33 : f32 to vector<16x16xf32>
    %35 = arith.mulf %34, %19 : vector<16x16xf32>
    %36 = arith.addf %32, %35 : vector<16x16xf32>
    %c3_17 = arith.constant 3 : index
    %37 = memref.load %arg2[%c3_17] : memref<72xf32, #tpu.memory_space<smem>>
    %38 = vector.broadcast %37 : f32 to vector<16x16xf32>
    %39 = arith.mulf %38, %20 : vector<16x16xf32>
    %c4 = arith.constant 4 : index
    %40 = memref.load %arg2[%c4] : memref<72xf32, #tpu.memory_space<smem>>
    %41 = vector.broadcast %40 : f32 to vector<16x16xf32>
    %42 = arith.mulf %41, %21 : vector<16x16xf32>
    %43 = arith.addf %39, %42 : vector<16x16xf32>
    %c5 = arith.constant 5 : index
    %44 = memref.load %arg2[%c5] : memref<72xf32, #tpu.memory_space<smem>>
    %45 = vector.broadcast %44 : f32 to vector<16x16xf32>
    %46 = arith.mulf %45, %22 : vector<16x16xf32>
    %47 = arith.addf %43, %46 : vector<16x16xf32>
    %c6 = arith.constant 6 : index
    %48 = memref.load %arg2[%c6] : memref<72xf32, #tpu.memory_space<smem>>
    %49 = vector.broadcast %48 : f32 to vector<16x16xf32>
    %50 = arith.mulf %49, %23 : vector<16x16xf32>
    %c7 = arith.constant 7 : index
    %51 = memref.load %arg2[%c7] : memref<72xf32, #tpu.memory_space<smem>>
    %52 = vector.broadcast %51 : f32 to vector<16x16xf32>
    %53 = arith.mulf %52, %24 : vector<16x16xf32>
    %54 = arith.addf %50, %53 : vector<16x16xf32>
    %c8 = arith.constant 8 : index
    %55 = memref.load %arg2[%c8] : memref<72xf32, #tpu.memory_space<smem>>
    %56 = vector.broadcast %55 : f32 to vector<16x16xf32>
    %57 = arith.mulf %56, %25 : vector<16x16xf32>
    %58 = arith.addf %54, %57 : vector<16x16xf32>
    %59 = arith.addf %36, %47 : vector<16x16xf32>
    %60 = arith.addf %59, %58 : vector<16x16xf32>
    %61 = arith.addf %6, %60 : vector<16x16xf32>
    %c18 = arith.constant 18 : index
    %62 = memref.load %arg2[%c18] : memref<72xf32, #tpu.memory_space<smem>>
    %63 = vector.broadcast %62 : f32 to vector<16x16xf32>
    %64 = arith.mulf %63, %17 : vector<16x16xf32>
    %c19 = arith.constant 19 : index
    %65 = memref.load %arg2[%c19] : memref<72xf32, #tpu.memory_space<smem>>
    %66 = vector.broadcast %65 : f32 to vector<16x16xf32>
    %67 = arith.mulf %66, %18 : vector<16x16xf32>
    %68 = arith.addf %64, %67 : vector<16x16xf32>
    %c20 = arith.constant 20 : index
    %69 = memref.load %arg2[%c20] : memref<72xf32, #tpu.memory_space<smem>>
    %70 = vector.broadcast %69 : f32 to vector<16x16xf32>
    %71 = arith.mulf %70, %19 : vector<16x16xf32>
    %72 = arith.addf %68, %71 : vector<16x16xf32>
    %c21 = arith.constant 21 : index
    %73 = memref.load %arg2[%c21] : memref<72xf32, #tpu.memory_space<smem>>
    %74 = vector.broadcast %73 : f32 to vector<16x16xf32>
    %75 = arith.mulf %74, %20 : vector<16x16xf32>
    %c22 = arith.constant 22 : index
    %76 = memref.load %arg2[%c22] : memref<72xf32, #tpu.memory_space<smem>>
    %77 = vector.broadcast %76 : f32 to vector<16x16xf32>
    %78 = arith.mulf %77, %21 : vector<16x16xf32>
    %79 = arith.addf %75, %78 : vector<16x16xf32>
    %c23 = arith.constant 23 : index
    %80 = memref.load %arg2[%c23] : memref<72xf32, #tpu.memory_space<smem>>
    %81 = vector.broadcast %80 : f32 to vector<16x16xf32>
    %82 = arith.mulf %81, %22 : vector<16x16xf32>
    %83 = arith.addf %79, %82 : vector<16x16xf32>
    %c24 = arith.constant 24 : index
    %84 = memref.load %arg2[%c24] : memref<72xf32, #tpu.memory_space<smem>>
    %85 = vector.broadcast %84 : f32 to vector<16x16xf32>
    %86 = arith.mulf %85, %23 : vector<16x16xf32>
    %c25 = arith.constant 25 : index
    %87 = memref.load %arg2[%c25] : memref<72xf32, #tpu.memory_space<smem>>
    %88 = vector.broadcast %87 : f32 to vector<16x16xf32>
    %89 = arith.mulf %88, %24 : vector<16x16xf32>
    %90 = arith.addf %86, %89 : vector<16x16xf32>
    %c26 = arith.constant 26 : index
    %91 = memref.load %arg2[%c26] : memref<72xf32, #tpu.memory_space<smem>>
    %92 = vector.broadcast %91 : f32 to vector<16x16xf32>
    %93 = arith.mulf %92, %25 : vector<16x16xf32>
    %94 = arith.addf %90, %93 : vector<16x16xf32>
    %95 = arith.addf %72, %83 : vector<16x16xf32>
    %96 = arith.addf %95, %94 : vector<16x16xf32>
    %97 = arith.addf %8, %96 : vector<16x16xf32>
    %c36 = arith.constant 36 : index
    %98 = memref.load %arg2[%c36] : memref<72xf32, #tpu.memory_space<smem>>
    %99 = vector.broadcast %98 : f32 to vector<16x16xf32>
    %100 = arith.mulf %99, %17 : vector<16x16xf32>
    %c37 = arith.constant 37 : index
    %101 = memref.load %arg2[%c37] : memref<72xf32, #tpu.memory_space<smem>>
    %102 = vector.broadcast %101 : f32 to vector<16x16xf32>
    %103 = arith.mulf %102, %18 : vector<16x16xf32>
    %104 = arith.addf %100, %103 : vector<16x16xf32>
    %c38 = arith.constant 38 : index
    %105 = memref.load %arg2[%c38] : memref<72xf32, #tpu.memory_space<smem>>
    %106 = vector.broadcast %105 : f32 to vector<16x16xf32>
    %107 = arith.mulf %106, %19 : vector<16x16xf32>
    %108 = arith.addf %104, %107 : vector<16x16xf32>
    %c39 = arith.constant 39 : index
    %109 = memref.load %arg2[%c39] : memref<72xf32, #tpu.memory_space<smem>>
    %110 = vector.broadcast %109 : f32 to vector<16x16xf32>
    %111 = arith.mulf %110, %20 : vector<16x16xf32>
    %c40 = arith.constant 40 : index
    %112 = memref.load %arg2[%c40] : memref<72xf32, #tpu.memory_space<smem>>
    %113 = vector.broadcast %112 : f32 to vector<16x16xf32>
    %114 = arith.mulf %113, %21 : vector<16x16xf32>
    %115 = arith.addf %111, %114 : vector<16x16xf32>
    %c41 = arith.constant 41 : index
    %116 = memref.load %arg2[%c41] : memref<72xf32, #tpu.memory_space<smem>>
    %117 = vector.broadcast %116 : f32 to vector<16x16xf32>
    %118 = arith.mulf %117, %22 : vector<16x16xf32>
    %119 = arith.addf %115, %118 : vector<16x16xf32>
    %c42 = arith.constant 42 : index
    %120 = memref.load %arg2[%c42] : memref<72xf32, #tpu.memory_space<smem>>
    %121 = vector.broadcast %120 : f32 to vector<16x16xf32>
    %122 = arith.mulf %121, %23 : vector<16x16xf32>
    %c43 = arith.constant 43 : index
    %123 = memref.load %arg2[%c43] : memref<72xf32, #tpu.memory_space<smem>>
    %124 = vector.broadcast %123 : f32 to vector<16x16xf32>
    %125 = arith.mulf %124, %24 : vector<16x16xf32>
    %126 = arith.addf %122, %125 : vector<16x16xf32>
    %c44 = arith.constant 44 : index
    %127 = memref.load %arg2[%c44] : memref<72xf32, #tpu.memory_space<smem>>
    %128 = vector.broadcast %127 : f32 to vector<16x16xf32>
    %129 = arith.mulf %128, %25 : vector<16x16xf32>
    %130 = arith.addf %126, %129 : vector<16x16xf32>
    %131 = arith.addf %108, %119 : vector<16x16xf32>
    %132 = arith.addf %131, %130 : vector<16x16xf32>
    %133 = arith.addf %10, %132 : vector<16x16xf32>
    %c54 = arith.constant 54 : index
    %134 = memref.load %arg2[%c54] : memref<72xf32, #tpu.memory_space<smem>>
    %135 = vector.broadcast %134 : f32 to vector<16x16xf32>
    %136 = arith.mulf %135, %17 : vector<16x16xf32>
    %c55 = arith.constant 55 : index
    %137 = memref.load %arg2[%c55] : memref<72xf32, #tpu.memory_space<smem>>
    %138 = vector.broadcast %137 : f32 to vector<16x16xf32>
    %139 = arith.mulf %138, %18 : vector<16x16xf32>
    %140 = arith.addf %136, %139 : vector<16x16xf32>
    %c56 = arith.constant 56 : index
    %141 = memref.load %arg2[%c56] : memref<72xf32, #tpu.memory_space<smem>>
    %142 = vector.broadcast %141 : f32 to vector<16x16xf32>
    %143 = arith.mulf %142, %19 : vector<16x16xf32>
    %144 = arith.addf %140, %143 : vector<16x16xf32>
    %c57 = arith.constant 57 : index
    %145 = memref.load %arg2[%c57] : memref<72xf32, #tpu.memory_space<smem>>
    %146 = vector.broadcast %145 : f32 to vector<16x16xf32>
    %147 = arith.mulf %146, %20 : vector<16x16xf32>
    %c58 = arith.constant 58 : index
    %148 = memref.load %arg2[%c58] : memref<72xf32, #tpu.memory_space<smem>>
    %149 = vector.broadcast %148 : f32 to vector<16x16xf32>
    %150 = arith.mulf %149, %21 : vector<16x16xf32>
    %151 = arith.addf %147, %150 : vector<16x16xf32>
    %c59 = arith.constant 59 : index
    %152 = memref.load %arg2[%c59] : memref<72xf32, #tpu.memory_space<smem>>
    %153 = vector.broadcast %152 : f32 to vector<16x16xf32>
    %154 = arith.mulf %153, %22 : vector<16x16xf32>
    %155 = arith.addf %151, %154 : vector<16x16xf32>
    %c60 = arith.constant 60 : index
    %156 = memref.load %arg2[%c60] : memref<72xf32, #tpu.memory_space<smem>>
    %157 = vector.broadcast %156 : f32 to vector<16x16xf32>
    %158 = arith.mulf %157, %23 : vector<16x16xf32>
    %c61 = arith.constant 61 : index
    %159 = memref.load %arg2[%c61] : memref<72xf32, #tpu.memory_space<smem>>
    %160 = vector.broadcast %159 : f32 to vector<16x16xf32>
    %161 = arith.mulf %160, %24 : vector<16x16xf32>
    %162 = arith.addf %158, %161 : vector<16x16xf32>
    %c62 = arith.constant 62 : index
    %163 = memref.load %arg2[%c62] : memref<72xf32, #tpu.memory_space<smem>>
    %164 = vector.broadcast %163 : f32 to vector<16x16xf32>
    %165 = arith.mulf %164, %25 : vector<16x16xf32>
    %166 = arith.addf %162, %165 : vector<16x16xf32>
    %167 = arith.addf %144, %155 : vector<16x16xf32>
    %168 = arith.addf %167, %166 : vector<16x16xf32>
    %169 = arith.addf %12, %168 : vector<16x16xf32>
    %c1_18 = arith.constant 1 : index
    %c1_19 = arith.constant 1 : index
    %170 = vector.load %arg9[%c1_18, %c1_19] : memref<18x18xf32, #tpu.memory_space<vmem>>, vector<16x16xf32>
    tpu.vector_store %arg9[%c1_18, %c1_19], %3 {strides = array<i32>} : memref<18x18xf32, #tpu.memory_space<vmem>>, vector<16x16xf32>,
    %c0_20 = arith.constant 0 : index
    %c0_21 = arith.constant 0 : index
    %171 = vector.load %arg9[%c0_20, %c0_21] : memref<18x18xf32, #tpu.memory_space<vmem>>, vector<18x18xf32>
    %172 = vector.extract_strided_slice %171 {offsets = [0, 0], sizes = [16, 16], strides = [1, 1]} : vector<18x18xf32> to vector<16x16xf32>
    %173 = vector.extract_strided_slice %171 {offsets = [0, 1], sizes = [16, 16], strides = [1, 1]} : vector<18x18xf32> to vector<16x16xf32>
    %174 = vector.extract_strided_slice %171 {offsets = [0, 2], sizes = [16, 16], strides = [1, 1]} : vector<18x18xf32> to vector<16x16xf32>
    %175 = vector.extract_strided_slice %171 {offsets = [1, 0], sizes = [16, 16], strides = [1, 1]} : vector<18x18xf32> to vector<16x16xf32>
    %176 = vector.extract_strided_slice %171 {offsets = [1, 1], sizes = [16, 16], strides = [1, 1]} : vector<18x18xf32> to vector<16x16xf32>
    %177 = vector.extract_strided_slice %171 {offsets = [1, 2], sizes = [16, 16], strides = [1, 1]} : vector<18x18xf32> to vector<16x16xf32>
    %178 = vector.extract_strided_slice %171 {offsets = [2, 0], sizes = [16, 16], strides = [1, 1]} : vector<18x18xf32> to vector<16x16xf32>
    %179 = vector.extract_strided_slice %171 {offsets = [2, 1], sizes = [16, 16], strides = [1, 1]} : vector<18x18xf32> to vector<16x16xf32>
    %180 = vector.extract_strided_slice %171 {offsets = [2, 2], sizes = [16, 16], strides = [1, 1]} : vector<18x18xf32> to vector<16x16xf32>
    %c9 = arith.constant 9 : index
    %181 = memref.load %arg2[%c9] : memref<72xf32, #tpu.memory_space<smem>>
    %182 = vector.broadcast %181 : f32 to vector<16x16xf32>
    %183 = arith.mulf %182, %172 : vector<16x16xf32>
    %c10 = arith.constant 10 : index
    %184 = memref.load %arg2[%c10] : memref<72xf32, #tpu.memory_space<smem>>
    %185 = vector.broadcast %184 : f32 to vector<16x16xf32>
    %186 = arith.mulf %185, %173 : vector<16x16xf32>
    %187 = arith.addf %183, %186 : vector<16x16xf32>
    %c11 = arith.constant 11 : index
    %188 = memref.load %arg2[%c11] : memref<72xf32, #tpu.memory_space<smem>>
    %189 = vector.broadcast %188 : f32 to vector<16x16xf32>
    %190 = arith.mulf %189, %174 : vector<16x16xf32>
    %191 = arith.addf %187, %190 : vector<16x16xf32>
    %c12 = arith.constant 12 : index
    %192 = memref.load %arg2[%c12] : memref<72xf32, #tpu.memory_space<smem>>
    %193 = vector.broadcast %192 : f32 to vector<16x16xf32>
    %194 = arith.mulf %193, %175 : vector<16x16xf32>
    %c13 = arith.constant 13 : index
    %195 = memref.load %arg2[%c13] : memref<72xf32, #tpu.memory_space<smem>>
    %196 = vector.broadcast %195 : f32 to vector<16x16xf32>
    %197 = arith.mulf %196, %176 : vector<16x16xf32>
    %198 = arith.addf %194, %197 : vector<16x16xf32>
    %c14 = arith.constant 14 : index
    %199 = memref.load %arg2[%c14] : memref<72xf32, #tpu.memory_space<smem>>
    %200 = vector.broadcast %199 : f32 to vector<16x16xf32>
    %201 = arith.mulf %200, %177 : vector<16x16xf32>
    %202 = arith.addf %198, %201 : vector<16x16xf32>
    %c15 = arith.constant 15 : index
    %203 = memref.load %arg2[%c15] : memref<72xf32, #tpu.memory_space<smem>>
    %204 = vector.broadcast %203 : f32 to vector<16x16xf32>
    %205 = arith.mulf %204, %178 : vector<16x16xf32>
    %c16 = arith.constant 16 : index
    %206 = memref.load %arg2[%c16] : memref<72xf32, #tpu.memory_space<smem>>
    %207 = vector.broadcast %206 : f32 to vector<16x16xf32>
    %208 = arith.mulf %207, %179 : vector<16x16xf32>
    %209 = arith.addf %205, %208 : vector<16x16xf32>
    %c17 = arith.constant 17 : index
    %210 = memref.load %arg2[%c17] : memref<72xf32, #tpu.memory_space<smem>>
    %211 = vector.broadcast %210 : f32 to vector<16x16xf32>
    %212 = arith.mulf %211, %180 : vector<16x16xf32>
    %213 = arith.addf %209, %212 : vector<16x16xf32>
    %214 = arith.addf %191, %202 : vector<16x16xf32>
    %215 = arith.addf %214, %213 : vector<16x16xf32>
    %216 = arith.addf %61, %215 : vector<16x16xf32>
    %c27 = arith.constant 27 : index
    %217 = memref.load %arg2[%c27] : memref<72xf32, #tpu.memory_space<smem>>
    %218 = vector.broadcast %217 : f32 to vector<16x16xf32>
    %219 = arith.mulf %218, %172 : vector<16x16xf32>
    %c28 = arith.constant 28 : index
    %220 = memref.load %arg2[%c28] : memref<72xf32, #tpu.memory_space<smem>>
    %221 = vector.broadcast %220 : f32 to vector<16x16xf32>
    %222 = arith.mulf %221, %173 : vector<16x16xf32>
    %223 = arith.addf %219, %222 : vector<16x16xf32>
    %c29 = arith.constant 29 : index
    %224 = memref.load %arg2[%c29] : memref<72xf32, #tpu.memory_space<smem>>
    %225 = vector.broadcast %224 : f32 to vector<16x16xf32>
    %226 = arith.mulf %225, %174 : vector<16x16xf32>
    %227 = arith.addf %223, %226 : vector<16x16xf32>
    %c30 = arith.constant 30 : index
    %228 = memref.load %arg2[%c30] : memref<72xf32, #tpu.memory_space<smem>>
    %229 = vector.broadcast %228 : f32 to vector<16x16xf32>
    %230 = arith.mulf %229, %175 : vector<16x16xf32>
    %c31 = arith.constant 31 : index
    %231 = memref.load %arg2[%c31] : memref<72xf32, #tpu.memory_space<smem>>
    %232 = vector.broadcast %231 : f32 to vector<16x16xf32>
    %233 = arith.mulf %232, %176 : vector<16x16xf32>
    %234 = arith.addf %230, %233 : vector<16x16xf32>
    %c32 = arith.constant 32 : index
    %235 = memref.load %arg2[%c32] : memref<72xf32, #tpu.memory_space<smem>>
    %236 = vector.broadcast %235 : f32 to vector<16x16xf32>
    %237 = arith.mulf %236, %177 : vector<16x16xf32>
    %238 = arith.addf %234, %237 : vector<16x16xf32>
    %c33 = arith.constant 33 : index
    %239 = memref.load %arg2[%c33] : memref<72xf32, #tpu.memory_space<smem>>
    %240 = vector.broadcast %239 : f32 to vector<16x16xf32>
    %241 = arith.mulf %240, %178 : vector<16x16xf32>
    %c34 = arith.constant 34 : index
    %242 = memref.load %arg2[%c34] : memref<72xf32, #tpu.memory_space<smem>>
    %243 = vector.broadcast %242 : f32 to vector<16x16xf32>
    %244 = arith.mulf %243, %179 : vector<16x16xf32>
    %245 = arith.addf %241, %244 : vector<16x16xf32>
    %c35 = arith.constant 35 : index
    %246 = memref.load %arg2[%c35] : memref<72xf32, #tpu.memory_space<smem>>
    %247 = vector.broadcast %246 : f32 to vector<16x16xf32>
    %248 = arith.mulf %247, %180 : vector<16x16xf32>
    %249 = arith.addf %245, %248 : vector<16x16xf32>
    %250 = arith.addf %227, %238 : vector<16x16xf32>
    %251 = arith.addf %250, %249 : vector<16x16xf32>
    %252 = arith.addf %97, %251 : vector<16x16xf32>
    %c45 = arith.constant 45 : index
    %253 = memref.load %arg2[%c45] : memref<72xf32, #tpu.memory_space<smem>>
    %254 = vector.broadcast %253 : f32 to vector<16x16xf32>
    %255 = arith.mulf %254, %172 : vector<16x16xf32>
    %c46 = arith.constant 46 : index
    %256 = memref.load %arg2[%c46] : memref<72xf32, #tpu.memory_space<smem>>
    %257 = vector.broadcast %256 : f32 to vector<16x16xf32>
    %258 = arith.mulf %257, %173 : vector<16x16xf32>
    %259 = arith.addf %255, %258 : vector<16x16xf32>
    %c47 = arith.constant 47 : index
    %260 = memref.load %arg2[%c47] : memref<72xf32, #tpu.memory_space<smem>>
    %261 = vector.broadcast %260 : f32 to vector<16x16xf32>
    %262 = arith.mulf %261, %174 : vector<16x16xf32>
    %263 = arith.addf %259, %262 : vector<16x16xf32>
    %c48 = arith.constant 48 : index
    %264 = memref.load %arg2[%c48] : memref<72xf32, #tpu.memory_space<smem>>
    %265 = vector.broadcast %264 : f32 to vector<16x16xf32>
    %266 = arith.mulf %265, %175 : vector<16x16xf32>
    %c49 = arith.constant 49 : index
    %267 = memref.load %arg2[%c49] : memref<72xf32, #tpu.memory_space<smem>>
    %268 = vector.broadcast %267 : f32 to vector<16x16xf32>
    %269 = arith.mulf %268, %176 : vector<16x16xf32>
    %270 = arith.addf %266, %269 : vector<16x16xf32>
    %c50 = arith.constant 50 : index
    %271 = memref.load %arg2[%c50] : memref<72xf32, #tpu.memory_space<smem>>
    %272 = vector.broadcast %271 : f32 to vector<16x16xf32>
    %273 = arith.mulf %272, %177 : vector<16x16xf32>
    %274 = arith.addf %270, %273 : vector<16x16xf32>
    %c51 = arith.constant 51 : index
    %275 = memref.load %arg2[%c51] : memref<72xf32, #tpu.memory_space<smem>>
    %276 = vector.broadcast %275 : f32 to vector<16x16xf32>
    %277 = arith.mulf %276, %178 : vector<16x16xf32>
    %c52 = arith.constant 52 : index
    %278 = memref.load %arg2[%c52] : memref<72xf32, #tpu.memory_space<smem>>
    %279 = vector.broadcast %278 : f32 to vector<16x16xf32>
    %280 = arith.mulf %279, %179 : vector<16x16xf32>
    %281 = arith.addf %277, %280 : vector<16x16xf32>
    %c53 = arith.constant 53 : index
    %282 = memref.load %arg2[%c53] : memref<72xf32, #tpu.memory_space<smem>>
    %283 = vector.broadcast %282 : f32 to vector<16x16xf32>
    %284 = arith.mulf %283, %180 : vector<16x16xf32>
    %285 = arith.addf %281, %284 : vector<16x16xf32>
    %286 = arith.addf %263, %274 : vector<16x16xf32>
    %287 = arith.addf %286, %285 : vector<16x16xf32>
    %288 = arith.addf %133, %287 : vector<16x16xf32>
    %c63 = arith.constant 63 : index
    %289 = memref.load %arg2[%c63] : memref<72xf32, #tpu.memory_space<smem>>
    %290 = vector.broadcast %289 : f32 to vector<16x16xf32>
    %291 = arith.mulf %290, %172 : vector<16x16xf32>
    %c64 = arith.constant 64 : index
    %292 = memref.load %arg2[%c64] : memref<72xf32, #tpu.memory_space<smem>>
    %293 = vector.broadcast %292 : f32 to vector<16x16xf32>
    %294 = arith.mulf %293, %173 : vector<16x16xf32>
    %295 = arith.addf %291, %294 : vector<16x16xf32>
    %c65 = arith.constant 65 : index
    %296 = memref.load %arg2[%c65] : memref<72xf32, #tpu.memory_space<smem>>
    %297 = vector.broadcast %296 : f32 to vector<16x16xf32>
    %298 = arith.mulf %297, %174 : vector<16x16xf32>
    %299 = arith.addf %295, %298 : vector<16x16xf32>
    %c66 = arith.constant 66 : index
    %300 = memref.load %arg2[%c66] : memref<72xf32, #tpu.memory_space<smem>>
    %301 = vector.broadcast %300 : f32 to vector<16x16xf32>
    %302 = arith.mulf %301, %175 : vector<16x16xf32>
    %c67 = arith.constant 67 : index
    %303 = memref.load %arg2[%c67] : memref<72xf32, #tpu.memory_space<smem>>
    %304 = vector.broadcast %303 : f32 to vector<16x16xf32>
    %305 = arith.mulf %304, %176 : vector<16x16xf32>
    %306 = arith.addf %302, %305 : vector<16x16xf32>
    %c68 = arith.constant 68 : index
    %307 = memref.load %arg2[%c68] : memref<72xf32, #tpu.memory_space<smem>>
    %308 = vector.broadcast %307 : f32 to vector<16x16xf32>
    %309 = arith.mulf %308, %177 : vector<16x16xf32>
    %310 = arith.addf %306, %309 : vector<16x16xf32>
    %c69 = arith.constant 69 : index
    %311 = memref.load %arg2[%c69] : memref<72xf32, #tpu.memory_space<smem>>
    %312 = vector.broadcast %311 : f32 to vector<16x16xf32>
    %313 = arith.mulf %312, %178 : vector<16x16xf32>
    %c70 = arith.constant 70 : index
    %314 = memref.load %arg2[%c70] : memref<72xf32, #tpu.memory_space<smem>>
    %315 = vector.broadcast %314 : f32 to vector<16x16xf32>
    %316 = arith.mulf %315, %179 : vector<16x16xf32>
    %317 = arith.addf %313, %316 : vector<16x16xf32>
    %c71 = arith.constant 71 : index
    %318 = memref.load %arg2[%c71] : memref<72xf32, #tpu.memory_space<smem>>
    %319 = vector.broadcast %318 : f32 to vector<16x16xf32>
    %320 = arith.mulf %319, %180 : vector<16x16xf32>
    %321 = arith.addf %317, %320 : vector<16x16xf32>
    %322 = arith.addf %299, %310 : vector<16x16xf32>
    %323 = arith.addf %322, %321 : vector<16x16xf32>
    %324 = arith.addf %169, %323 : vector<16x16xf32>
    %325 = arith.negf %216 : vector<16x16xf32>
    %326 = math.exp %325 : vector<16x16xf32>
    %cst = arith.constant 1.000000e+00 : f32
    %327 = vector.broadcast %cst : f32 to vector<16x16xf32>
    %328 = arith.addf %327, %326 : vector<16x16xf32>
    %329 = arith.divf %327, %328 : vector<16x16xf32>
    %330 = arith.negf %252 : vector<16x16xf32>
    %331 = math.exp %330 : vector<16x16xf32>
    %cst_22 = arith.constant 1.000000e+00 : f32
    %332 = vector.broadcast %cst_22 : f32 to vector<16x16xf32>
    %333 = arith.addf %332, %331 : vector<16x16xf32>
    %334 = arith.divf %332, %333 : vector<16x16xf32>
    %335 = arith.negf %288 : vector<16x16xf32>
    %336 = math.exp %335 : vector<16x16xf32>
    %cst_23 = arith.constant 1.000000e+00 : f32
    %337 = vector.broadcast %cst_23 : f32 to vector<16x16xf32>
    %338 = arith.addf %337, %336 : vector<16x16xf32>
    %339 = arith.divf %337, %338 : vector<16x16xf32>
    %340 = math.tanh %324 : vector<16x16xf32>
    %341 = arith.mulf %334, %4 : vector<16x16xf32>
    %342 = arith.mulf %329, %340 : vector<16x16xf32>
    %343 = arith.addf %341, %342 : vector<16x16xf32>
    %344 = math.tanh %343 : vector<16x16xf32>
    %345 = arith.mulf %339, %344 : vector<16x16xf32>
    %c0_24 = arith.constant 0 : index
    %c0_25 = arith.constant 0 : index
    %346 = vector.load %arg7[%c0_24, %c0_25] : memref<16x16xf32, #tpu.memory_space<vmem>>, vector<16x16xf32>
    tpu.vector_store %arg7[%c0_24, %c0_25], %345 {strides = array<i32>} : memref<16x16xf32, #tpu.memory_space<vmem>>, vector<16x16xf32>,
    %c0_26 = arith.constant 0 : index
    %c0_27 = arith.constant 0 : index
    %347 = vector.load %arg8[%c0_26, %c0_27] : memref<16x16xf32, #tpu.memory_space<vmem>>, vector<16x16xf32>
    tpu.vector_store %arg8[%c0_26, %c0_27], %343 {strides = array<i32>} : memref<16x16xf32, #tpu.memory_space<vmem>>, vector<16x16xf32>,
    %c0_28 = arith.constant 0 : index
    %c0_29 = arith.constant 0 : index
    %c0_30 = arith.constant 0 : index
    %c0_31 = arith.constant 0 : index
    %348 = vector.load %arg5[%c0_28, %c0_29, %c0_30, %c0_31] : memref<1x1x16x16xf32, #tpu.memory_space<vmem>>, vector<1x1x16x16xf32>
    %349 = vector.shape_cast %348 : vector<1x1x16x16xf32> to vector<16x16xf32>
    %350 = vector.shape_cast %345 : vector<16x16xf32> to vector<1x1x16x16xf32>
    tpu.vector_store %arg5[%c0_28, %c0_29, %c0_30, %c0_31], %350 {strides = array<i32>} : memref<1x1x16x16xf32, #tpu.memory_space<vmem>>, vector<1x1x16x16xf32>,
    %c0_32 = arith.constant 0 : index
    %c0_33 = arith.constant 0 : index
    %c0_34 = arith.constant 0 : index
    %351 = vector.load %arg6[%c0_32, %c0_33, %c0_34] : memref<1x16x16xf32, #tpu.memory_space<vmem>>, vector<1x16x16xf32>
    %352 = vector.shape_cast %351 : vector<1x16x16xf32> to vector<16x16xf32>
    %353 = vector.shape_cast %343 : vector<16x16xf32> to vector<1x16x16xf32>
    tpu.vector_store %arg6[%c0_32, %c0_33, %c0_34], %353 {strides = array<i32>} : memref<1x16x16xf32, #tpu.memory_space<vmem>>, vector<1x16x16xf32>,
    return
  }
  func.func @transform_0(%arg0: i32, %arg1: i32) -> i32 {
    %c0_i32 = arith.constant 0 : i32
    %c0_i32_0 = arith.constant 0 : i32
    return %c0_i32 : i32
  }
  func.func @transform_1(%arg0: i32, %arg1: i32) -> i32 {
    %c0_i32 = arith.constant 0 : i32
    %c0_i32_0 = arith.constant 0 : i32
    return %c0_i32 : i32
  }
  func.func @transform_2(%arg0: i32, %arg1: i32) -> (i32, i32, i32, i32, i32) {
    %c0_i32 = arith.constant 0 : i32
    %c0_i32_0 = arith.constant 0 : i32
    %c0_i32_1 = arith.constant 0 : i32
    %c0_i32_2 = arith.constant 0 : i32
    return %arg0, %arg1, %c0_i32, %c0_i32_0, %c0_i32_1 : i32, i32, i32, i32, i32
  }
  func.func @transform_3(%arg0: i32, %arg1: i32) -> (i32, i32, i32, i32) {
    %c0_i32 = arith.constant 0 : i32
    %c0_i32_0 = arith.constant 0 : i32
    %c0_i32_1 = arith.constant 0 : i32
    return %arg0, %arg1, %c0_i32, %c0_i32_0 : i32, i32, i32, i32
  }
  func.func @transform_4(%arg0: i32, %arg1: i32) -> (i32, i32, i32) {
    %c0_i32 = arith.constant 0 : i32
    %c0_i32_0 = arith.constant 0 : i32
    %c0_i32_1 = arith.constant 0 : i32
    return %arg0, %c0_i32, %c0_i32_0 : i32, i32, i32
  }
}

module attributes {stable_mosaic.version = 11 : i64} {
  func.func @_layer_kernel(%arg0: i32, %arg1: i32, %arg2: memref<180xf32, #tpu.memory_space<smem>>, %arg3: memref<4xf32, #tpu.memory_space<smem>>, %arg4: memref<1x1x4x16x16xf32, #tpu.memory_space<vmem>>, %arg5: memref<1x1x16x16xf32, #tpu.memory_space<vmem>>, %arg6: memref<1x16x16xf32, #tpu.memory_space<vmem>>, %arg7: memref<16x16xf32, #tpu.memory_space<vmem>>, %arg8: memref<16x16xf32, #tpu.memory_space<vmem>>, %arg9: memref<18x18xf32, #tpu.memory_space<vmem>>) attributes {dimension_semantics = [#tpu.dimension_semantics<parallel>, #tpu.dimension_semantics<arbitrary>], iteration_bounds = array<i64: 2, 4>, scalar_prefetch = 0 : i64, scratch_operands = 3 : i64, tpu.core_type = #tpu.core_type<tc>, window_params = [{transform_indices = @transform_0, window_bounds = array<i64: 180>}, {transform_indices = @transform_1, window_bounds = array<i64: 4>}, {transform_indices = @transform_2, window_bounds = array<i64: 1, 1, 4, 16, 16>}, {transform_indices = @transform_3, window_bounds = array<i64: 1, 1, 16, 16>}, {transform_indices = @transform_4, window_bounds = array<i64: 1, 16, 16>}]} {
    %c0_i32 = arith.constant 0 : i32
    %0 = arith.cmpi eq, %arg1, %c0_i32 : i32
    %1 = arith.extui %0 : i1 to i32
    %c0_i32_0 = arith.constant 0 : i32
    %2 = arith.cmpi ne, %1, %c0_i32_0 : i32
    scf.if %2 {
      %cst_62 = arith.constant 0.000000e+00 : f32
      %825 = vector.broadcast %cst_62 : f32 to vector<16x16xf32>
      %c0_63 = arith.constant 0 : index
      %c0_64 = arith.constant 0 : index
      %826 = vector.load %arg7[%c0_63, %c0_64] : memref<16x16xf32, #tpu.memory_space<vmem>>, vector<16x16xf32>
      tpu.vector_store %arg7[%c0_63, %c0_64], %825 {strides = array<i32>} : memref<16x16xf32, #tpu.memory_space<vmem>>, vector<16x16xf32>,
      %cst_65 = arith.constant 0.000000e+00 : f32
      %827 = vector.broadcast %cst_65 : f32 to vector<16x16xf32>
      %c0_66 = arith.constant 0 : index
      %c0_67 = arith.constant 0 : index
      %828 = vector.load %arg8[%c0_66, %c0_67] : memref<16x16xf32, #tpu.memory_space<vmem>>, vector<16x16xf32>
      tpu.vector_store %arg8[%c0_66, %c0_67], %827 {strides = array<i32>} : memref<16x16xf32, #tpu.memory_space<vmem>>, vector<16x16xf32>,
      %cst_68 = arith.constant 0.000000e+00 : f32
      %829 = vector.broadcast %cst_68 : f32 to vector<18x18xf32>
      %c0_69 = arith.constant 0 : index
      %c0_70 = arith.constant 0 : index
      %830 = vector.load %arg9[%c0_69, %c0_70] : memref<18x18xf32, #tpu.memory_space<vmem>>, vector<18x18xf32>
      tpu.vector_store %arg9[%c0_69, %c0_70], %829 {strides = array<i32>} : memref<18x18xf32, #tpu.memory_space<vmem>>, vector<18x18xf32>,
    } else {
    }
    %c0 = arith.constant 0 : index
    %c0_1 = arith.constant 0 : index
    %3 = vector.load %arg7[%c0, %c0_1] : memref<16x16xf32, #tpu.memory_space<vmem>>, vector<16x16xf32>
    %c0_2 = arith.constant 0 : index
    %c0_3 = arith.constant 0 : index
    %4 = vector.load %arg8[%c0_2, %c0_3] : memref<16x16xf32, #tpu.memory_space<vmem>>, vector<16x16xf32>
    %c0_4 = arith.constant 0 : index
    %5 = memref.load %arg3[%c0_4] : memref<4xf32, #tpu.memory_space<smem>>
    %6 = vector.broadcast %5 : f32 to vector<16x16xf32>
    %c1 = arith.constant 1 : index
    %7 = memref.load %arg3[%c1] : memref<4xf32, #tpu.memory_space<smem>>
    %8 = vector.broadcast %7 : f32 to vector<16x16xf32>
    %c2 = arith.constant 2 : index
    %9 = memref.load %arg3[%c2] : memref<4xf32, #tpu.memory_space<smem>>
    %10 = vector.broadcast %9 : f32 to vector<16x16xf32>
    %c3 = arith.constant 3 : index
    %11 = memref.load %arg3[%c3] : memref<4xf32, #tpu.memory_space<smem>>
    %12 = vector.broadcast %11 : f32 to vector<16x16xf32>
    %c0_5 = arith.constant 0 : index
    %c0_6 = arith.constant 0 : index
    %c0_7 = arith.constant 0 : index
    %c0_8 = arith.constant 0 : index
    %c0_9 = arith.constant 0 : index
    %13 = vector.load %arg4[%c0_5, %c0_6, %c0_7, %c0_8, %c0_9] : memref<1x1x4x16x16xf32, #tpu.memory_space<vmem>>, vector<1x1x1x16x16xf32>
    %14 = vector.shape_cast %13 : vector<1x1x1x16x16xf32> to vector<16x16xf32>
    %c1_10 = arith.constant 1 : index
    %c1_11 = arith.constant 1 : index
    %15 = vector.load %arg9[%c1_10, %c1_11] : memref<18x18xf32, #tpu.memory_space<vmem>>, vector<16x16xf32>
    tpu.vector_store %arg9[%c1_10, %c1_11], %14 {strides = array<i32>} : memref<18x18xf32, #tpu.memory_space<vmem>>, vector<16x16xf32>,
    %c0_12 = arith.constant 0 : index
    %c0_13 = arith.constant 0 : index
    %16 = vector.load %arg9[%c0_12, %c0_13] : memref<18x18xf32, #tpu.memory_space<vmem>>, vector<18x18xf32>
    %17 = vector.extract_strided_slice %16 {offsets = [0, 0], sizes = [16, 16], strides = [1, 1]} : vector<18x18xf32> to vector<16x16xf32>
    %18 = vector.extract_strided_slice %16 {offsets = [0, 1], sizes = [16, 16], strides = [1, 1]} : vector<18x18xf32> to vector<16x16xf32>
    %19 = vector.extract_strided_slice %16 {offsets = [0, 2], sizes = [16, 16], strides = [1, 1]} : vector<18x18xf32> to vector<16x16xf32>
    %20 = vector.extract_strided_slice %16 {offsets = [1, 0], sizes = [16, 16], strides = [1, 1]} : vector<18x18xf32> to vector<16x16xf32>
    %21 = vector.extract_strided_slice %16 {offsets = [1, 1], sizes = [16, 16], strides = [1, 1]} : vector<18x18xf32> to vector<16x16xf32>
    %22 = vector.extract_strided_slice %16 {offsets = [1, 2], sizes = [16, 16], strides = [1, 1]} : vector<18x18xf32> to vector<16x16xf32>
    %23 = vector.extract_strided_slice %16 {offsets = [2, 0], sizes = [16, 16], strides = [1, 1]} : vector<18x18xf32> to vector<16x16xf32>
    %24 = vector.extract_strided_slice %16 {offsets = [2, 1], sizes = [16, 16], strides = [1, 1]} : vector<18x18xf32> to vector<16x16xf32>
    %25 = vector.extract_strided_slice %16 {offsets = [2, 2], sizes = [16, 16], strides = [1, 1]} : vector<18x18xf32> to vector<16x16xf32>
    %c0_14 = arith.constant 0 : index
    %26 = memref.load %arg2[%c0_14] : memref<180xf32, #tpu.memory_space<smem>>
    %27 = vector.broadcast %26 : f32 to vector<16x16xf32>
    %28 = arith.mulf %27, %17 : vector<16x16xf32>
    %c1_15 = arith.constant 1 : index
    %29 = memref.load %arg2[%c1_15] : memref<180xf32, #tpu.memory_space<smem>>
    %30 = vector.broadcast %29 : f32 to vector<16x16xf32>
    %31 = arith.mulf %30, %18 : vector<16x16xf32>
    %32 = arith.addf %28, %31 : vector<16x16xf32>
    %c2_16 = arith.constant 2 : index
    %33 = memref.load %arg2[%c2_16] : memref<180xf32, #tpu.memory_space<smem>>
    %34 = vector.broadcast %33 : f32 to vector<16x16xf32>
    %35 = arith.mulf %34, %19 : vector<16x16xf32>
    %36 = arith.addf %32, %35 : vector<16x16xf32>
    %c3_17 = arith.constant 3 : index
    %37 = memref.load %arg2[%c3_17] : memref<180xf32, #tpu.memory_space<smem>>
    %38 = vector.broadcast %37 : f32 to vector<16x16xf32>
    %39 = arith.mulf %38, %20 : vector<16x16xf32>
    %c4 = arith.constant 4 : index
    %40 = memref.load %arg2[%c4] : memref<180xf32, #tpu.memory_space<smem>>
    %41 = vector.broadcast %40 : f32 to vector<16x16xf32>
    %42 = arith.mulf %41, %21 : vector<16x16xf32>
    %43 = arith.addf %39, %42 : vector<16x16xf32>
    %c5 = arith.constant 5 : index
    %44 = memref.load %arg2[%c5] : memref<180xf32, #tpu.memory_space<smem>>
    %45 = vector.broadcast %44 : f32 to vector<16x16xf32>
    %46 = arith.mulf %45, %22 : vector<16x16xf32>
    %47 = arith.addf %43, %46 : vector<16x16xf32>
    %c6 = arith.constant 6 : index
    %48 = memref.load %arg2[%c6] : memref<180xf32, #tpu.memory_space<smem>>
    %49 = vector.broadcast %48 : f32 to vector<16x16xf32>
    %50 = arith.mulf %49, %23 : vector<16x16xf32>
    %c7 = arith.constant 7 : index
    %51 = memref.load %arg2[%c7] : memref<180xf32, #tpu.memory_space<smem>>
    %52 = vector.broadcast %51 : f32 to vector<16x16xf32>
    %53 = arith.mulf %52, %24 : vector<16x16xf32>
    %54 = arith.addf %50, %53 : vector<16x16xf32>
    %c8 = arith.constant 8 : index
    %55 = memref.load %arg2[%c8] : memref<180xf32, #tpu.memory_space<smem>>
    %56 = vector.broadcast %55 : f32 to vector<16x16xf32>
    %57 = arith.mulf %56, %25 : vector<16x16xf32>
    %58 = arith.addf %54, %57 : vector<16x16xf32>
    %59 = arith.addf %36, %47 : vector<16x16xf32>
    %60 = arith.addf %59, %58 : vector<16x16xf32>
    %61 = arith.addf %6, %60 : vector<16x16xf32>
    %c45 = arith.constant 45 : index
    %62 = memref.load %arg2[%c45] : memref<180xf32, #tpu.memory_space<smem>>
    %63 = vector.broadcast %62 : f32 to vector<16x16xf32>
    %64 = arith.mulf %63, %17 : vector<16x16xf32>
    %c46 = arith.constant 46 : index
    %65 = memref.load %arg2[%c46] : memref<180xf32, #tpu.memory_space<smem>>
    %66 = vector.broadcast %65 : f32 to vector<16x16xf32>
    %67 = arith.mulf %66, %18 : vector<16x16xf32>
    %68 = arith.addf %64, %67 : vector<16x16xf32>
    %c47 = arith.constant 47 : index
    %69 = memref.load %arg2[%c47] : memref<180xf32, #tpu.memory_space<smem>>
    %70 = vector.broadcast %69 : f32 to vector<16x16xf32>
    %71 = arith.mulf %70, %19 : vector<16x16xf32>
    %72 = arith.addf %68, %71 : vector<16x16xf32>
    %c48 = arith.constant 48 : index
    %73 = memref.load %arg2[%c48] : memref<180xf32, #tpu.memory_space<smem>>
    %74 = vector.broadcast %73 : f32 to vector<16x16xf32>
    %75 = arith.mulf %74, %20 : vector<16x16xf32>
    %c49 = arith.constant 49 : index
    %76 = memref.load %arg2[%c49] : memref<180xf32, #tpu.memory_space<smem>>
    %77 = vector.broadcast %76 : f32 to vector<16x16xf32>
    %78 = arith.mulf %77, %21 : vector<16x16xf32>
    %79 = arith.addf %75, %78 : vector<16x16xf32>
    %c50 = arith.constant 50 : index
    %80 = memref.load %arg2[%c50] : memref<180xf32, #tpu.memory_space<smem>>
    %81 = vector.broadcast %80 : f32 to vector<16x16xf32>
    %82 = arith.mulf %81, %22 : vector<16x16xf32>
    %83 = arith.addf %79, %82 : vector<16x16xf32>
    %c51 = arith.constant 51 : index
    %84 = memref.load %arg2[%c51] : memref<180xf32, #tpu.memory_space<smem>>
    %85 = vector.broadcast %84 : f32 to vector<16x16xf32>
    %86 = arith.mulf %85, %23 : vector<16x16xf32>
    %c52 = arith.constant 52 : index
    %87 = memref.load %arg2[%c52] : memref<180xf32, #tpu.memory_space<smem>>
    %88 = vector.broadcast %87 : f32 to vector<16x16xf32>
    %89 = arith.mulf %88, %24 : vector<16x16xf32>
    %90 = arith.addf %86, %89 : vector<16x16xf32>
    %c53 = arith.constant 53 : index
    %91 = memref.load %arg2[%c53] : memref<180xf32, #tpu.memory_space<smem>>
    %92 = vector.broadcast %91 : f32 to vector<16x16xf32>
    %93 = arith.mulf %92, %25 : vector<16x16xf32>
    %94 = arith.addf %90, %93 : vector<16x16xf32>
    %95 = arith.addf %72, %83 : vector<16x16xf32>
    %96 = arith.addf %95, %94 : vector<16x16xf32>
    %97 = arith.addf %8, %96 : vector<16x16xf32>
    %c90 = arith.constant 90 : index
    %98 = memref.load %arg2[%c90] : memref<180xf32, #tpu.memory_space<smem>>
    %99 = vector.broadcast %98 : f32 to vector<16x16xf32>
    %100 = arith.mulf %99, %17 : vector<16x16xf32>
    %c91 = arith.constant 91 : index
    %101 = memref.load %arg2[%c91] : memref<180xf32, #tpu.memory_space<smem>>
    %102 = vector.broadcast %101 : f32 to vector<16x16xf32>
    %103 = arith.mulf %102, %18 : vector<16x16xf32>
    %104 = arith.addf %100, %103 : vector<16x16xf32>
    %c92 = arith.constant 92 : index
    %105 = memref.load %arg2[%c92] : memref<180xf32, #tpu.memory_space<smem>>
    %106 = vector.broadcast %105 : f32 to vector<16x16xf32>
    %107 = arith.mulf %106, %19 : vector<16x16xf32>
    %108 = arith.addf %104, %107 : vector<16x16xf32>
    %c93 = arith.constant 93 : index
    %109 = memref.load %arg2[%c93] : memref<180xf32, #tpu.memory_space<smem>>
    %110 = vector.broadcast %109 : f32 to vector<16x16xf32>
    %111 = arith.mulf %110, %20 : vector<16x16xf32>
    %c94 = arith.constant 94 : index
    %112 = memref.load %arg2[%c94] : memref<180xf32, #tpu.memory_space<smem>>
    %113 = vector.broadcast %112 : f32 to vector<16x16xf32>
    %114 = arith.mulf %113, %21 : vector<16x16xf32>
    %115 = arith.addf %111, %114 : vector<16x16xf32>
    %c95 = arith.constant 95 : index
    %116 = memref.load %arg2[%c95] : memref<180xf32, #tpu.memory_space<smem>>
    %117 = vector.broadcast %116 : f32 to vector<16x16xf32>
    %118 = arith.mulf %117, %22 : vector<16x16xf32>
    %119 = arith.addf %115, %118 : vector<16x16xf32>
    %c96 = arith.constant 96 : index
    %120 = memref.load %arg2[%c96] : memref<180xf32, #tpu.memory_space<smem>>
    %121 = vector.broadcast %120 : f32 to vector<16x16xf32>
    %122 = arith.mulf %121, %23 : vector<16x16xf32>
    %c97 = arith.constant 97 : index
    %123 = memref.load %arg2[%c97] : memref<180xf32, #tpu.memory_space<smem>>
    %124 = vector.broadcast %123 : f32 to vector<16x16xf32>
    %125 = arith.mulf %124, %24 : vector<16x16xf32>
    %126 = arith.addf %122, %125 : vector<16x16xf32>
    %c98 = arith.constant 98 : index
    %127 = memref.load %arg2[%c98] : memref<180xf32, #tpu.memory_space<smem>>
    %128 = vector.broadcast %127 : f32 to vector<16x16xf32>
    %129 = arith.mulf %128, %25 : vector<16x16xf32>
    %130 = arith.addf %126, %129 : vector<16x16xf32>
    %131 = arith.addf %108, %119 : vector<16x16xf32>
    %132 = arith.addf %131, %130 : vector<16x16xf32>
    %133 = arith.addf %10, %132 : vector<16x16xf32>
    %c135 = arith.constant 135 : index
    %134 = memref.load %arg2[%c135] : memref<180xf32, #tpu.memory_space<smem>>
    %135 = vector.broadcast %134 : f32 to vector<16x16xf32>
    %136 = arith.mulf %135, %17 : vector<16x16xf32>
    %c136 = arith.constant 136 : index
    %137 = memref.load %arg2[%c136] : memref<180xf32, #tpu.memory_space<smem>>
    %138 = vector.broadcast %137 : f32 to vector<16x16xf32>
    %139 = arith.mulf %138, %18 : vector<16x16xf32>
    %140 = arith.addf %136, %139 : vector<16x16xf32>
    %c137 = arith.constant 137 : index
    %141 = memref.load %arg2[%c137] : memref<180xf32, #tpu.memory_space<smem>>
    %142 = vector.broadcast %141 : f32 to vector<16x16xf32>
    %143 = arith.mulf %142, %19 : vector<16x16xf32>
    %144 = arith.addf %140, %143 : vector<16x16xf32>
    %c138 = arith.constant 138 : index
    %145 = memref.load %arg2[%c138] : memref<180xf32, #tpu.memory_space<smem>>
    %146 = vector.broadcast %145 : f32 to vector<16x16xf32>
    %147 = arith.mulf %146, %20 : vector<16x16xf32>
    %c139 = arith.constant 139 : index
    %148 = memref.load %arg2[%c139] : memref<180xf32, #tpu.memory_space<smem>>
    %149 = vector.broadcast %148 : f32 to vector<16x16xf32>
    %150 = arith.mulf %149, %21 : vector<16x16xf32>
    %151 = arith.addf %147, %150 : vector<16x16xf32>
    %c140 = arith.constant 140 : index
    %152 = memref.load %arg2[%c140] : memref<180xf32, #tpu.memory_space<smem>>
    %153 = vector.broadcast %152 : f32 to vector<16x16xf32>
    %154 = arith.mulf %153, %22 : vector<16x16xf32>
    %155 = arith.addf %151, %154 : vector<16x16xf32>
    %c141 = arith.constant 141 : index
    %156 = memref.load %arg2[%c141] : memref<180xf32, #tpu.memory_space<smem>>
    %157 = vector.broadcast %156 : f32 to vector<16x16xf32>
    %158 = arith.mulf %157, %23 : vector<16x16xf32>
    %c142 = arith.constant 142 : index
    %159 = memref.load %arg2[%c142] : memref<180xf32, #tpu.memory_space<smem>>
    %160 = vector.broadcast %159 : f32 to vector<16x16xf32>
    %161 = arith.mulf %160, %24 : vector<16x16xf32>
    %162 = arith.addf %158, %161 : vector<16x16xf32>
    %c143 = arith.constant 143 : index
    %163 = memref.load %arg2[%c143] : memref<180xf32, #tpu.memory_space<smem>>
    %164 = vector.broadcast %163 : f32 to vector<16x16xf32>
    %165 = arith.mulf %164, %25 : vector<16x16xf32>
    %166 = arith.addf %162, %165 : vector<16x16xf32>
    %167 = arith.addf %144, %155 : vector<16x16xf32>
    %168 = arith.addf %167, %166 : vector<16x16xf32>
    %169 = arith.addf %12, %168 : vector<16x16xf32>
    %c0_18 = arith.constant 0 : index
    %c0_19 = arith.constant 0 : index
    %c1_20 = arith.constant 1 : index
    %c0_21 = arith.constant 0 : index
    %c0_22 = arith.constant 0 : index
    %170 = vector.load %arg4[%c0_18, %c0_19, %c1_20, %c0_21, %c0_22] : memref<1x1x4x16x16xf32, #tpu.memory_space<vmem>>, vector<1x1x1x16x16xf32>
    %171 = vector.shape_cast %170 : vector<1x1x1x16x16xf32> to vector<16x16xf32>
    %c1_23 = arith.constant 1 : index
    %c1_24 = arith.constant 1 : index
    %172 = vector.load %arg9[%c1_23, %c1_24] : memref<18x18xf32, #tpu.memory_space<vmem>>, vector<16x16xf32>
    tpu.vector_store %arg9[%c1_23, %c1_24], %171 {strides = array<i32>} : memref<18x18xf32, #tpu.memory_space<vmem>>, vector<16x16xf32>,
    %c0_25 = arith.constant 0 : index
    %c0_26 = arith.constant 0 : index
    %173 = vector.load %arg9[%c0_25, %c0_26] : memref<18x18xf32, #tpu.memory_space<vmem>>, vector<18x18xf32>
    %174 = vector.extract_strided_slice %173 {offsets = [0, 0], sizes = [16, 16], strides = [1, 1]} : vector<18x18xf32> to vector<16x16xf32>
    %175 = vector.extract_strided_slice %173 {offsets = [0, 1], sizes = [16, 16], strides = [1, 1]} : vector<18x18xf32> to vector<16x16xf32>
    %176 = vector.extract_strided_slice %173 {offsets = [0, 2], sizes = [16, 16], strides = [1, 1]} : vector<18x18xf32> to vector<16x16xf32>
    %177 = vector.extract_strided_slice %173 {offsets = [1, 0], sizes = [16, 16], strides = [1, 1]} : vector<18x18xf32> to vector<16x16xf32>
    %178 = vector.extract_strided_slice %173 {offsets = [1, 1], sizes = [16, 16], strides = [1, 1]} : vector<18x18xf32> to vector<16x16xf32>
    %179 = vector.extract_strided_slice %173 {offsets = [1, 2], sizes = [16, 16], strides = [1, 1]} : vector<18x18xf32> to vector<16x16xf32>
    %180 = vector.extract_strided_slice %173 {offsets = [2, 0], sizes = [16, 16], strides = [1, 1]} : vector<18x18xf32> to vector<16x16xf32>
    %181 = vector.extract_strided_slice %173 {offsets = [2, 1], sizes = [16, 16], strides = [1, 1]} : vector<18x18xf32> to vector<16x16xf32>
    %182 = vector.extract_strided_slice %173 {offsets = [2, 2], sizes = [16, 16], strides = [1, 1]} : vector<18x18xf32> to vector<16x16xf32>
    %c9 = arith.constant 9 : index
    %183 = memref.load %arg2[%c9] : memref<180xf32, #tpu.memory_space<smem>>
    %184 = vector.broadcast %183 : f32 to vector<16x16xf32>
    %185 = arith.mulf %184, %174 : vector<16x16xf32>
    %c10 = arith.constant 10 : index
    %186 = memref.load %arg2[%c10] : memref<180xf32, #tpu.memory_space<smem>>
    %187 = vector.broadcast %186 : f32 to vector<16x16xf32>
    %188 = arith.mulf %187, %175 : vector<16x16xf32>
    %189 = arith.addf %185, %188 : vector<16x16xf32>
    %c11 = arith.constant 11 : index
    %190 = memref.load %arg2[%c11] : memref<180xf32, #tpu.memory_space<smem>>
    %191 = vector.broadcast %190 : f32 to vector<16x16xf32>
    %192 = arith.mulf %191, %176 : vector<16x16xf32>
    %193 = arith.addf %189, %192 : vector<16x16xf32>
    %c12 = arith.constant 12 : index
    %194 = memref.load %arg2[%c12] : memref<180xf32, #tpu.memory_space<smem>>
    %195 = vector.broadcast %194 : f32 to vector<16x16xf32>
    %196 = arith.mulf %195, %177 : vector<16x16xf32>
    %c13 = arith.constant 13 : index
    %197 = memref.load %arg2[%c13] : memref<180xf32, #tpu.memory_space<smem>>
    %198 = vector.broadcast %197 : f32 to vector<16x16xf32>
    %199 = arith.mulf %198, %178 : vector<16x16xf32>
    %200 = arith.addf %196, %199 : vector<16x16xf32>
    %c14 = arith.constant 14 : index
    %201 = memref.load %arg2[%c14] : memref<180xf32, #tpu.memory_space<smem>>
    %202 = vector.broadcast %201 : f32 to vector<16x16xf32>
    %203 = arith.mulf %202, %179 : vector<16x16xf32>
    %204 = arith.addf %200, %203 : vector<16x16xf32>
    %c15 = arith.constant 15 : index
    %205 = memref.load %arg2[%c15] : memref<180xf32, #tpu.memory_space<smem>>
    %206 = vector.broadcast %205 : f32 to vector<16x16xf32>
    %207 = arith.mulf %206, %180 : vector<16x16xf32>
    %c16 = arith.constant 16 : index
    %208 = memref.load %arg2[%c16] : memref<180xf32, #tpu.memory_space<smem>>
    %209 = vector.broadcast %208 : f32 to vector<16x16xf32>
    %210 = arith.mulf %209, %181 : vector<16x16xf32>
    %211 = arith.addf %207, %210 : vector<16x16xf32>
    %c17 = arith.constant 17 : index
    %212 = memref.load %arg2[%c17] : memref<180xf32, #tpu.memory_space<smem>>
    %213 = vector.broadcast %212 : f32 to vector<16x16xf32>
    %214 = arith.mulf %213, %182 : vector<16x16xf32>
    %215 = arith.addf %211, %214 : vector<16x16xf32>
    %216 = arith.addf %193, %204 : vector<16x16xf32>
    %217 = arith.addf %216, %215 : vector<16x16xf32>
    %218 = arith.addf %61, %217 : vector<16x16xf32>
    %c54 = arith.constant 54 : index
    %219 = memref.load %arg2[%c54] : memref<180xf32, #tpu.memory_space<smem>>
    %220 = vector.broadcast %219 : f32 to vector<16x16xf32>
    %221 = arith.mulf %220, %174 : vector<16x16xf32>
    %c55 = arith.constant 55 : index
    %222 = memref.load %arg2[%c55] : memref<180xf32, #tpu.memory_space<smem>>
    %223 = vector.broadcast %222 : f32 to vector<16x16xf32>
    %224 = arith.mulf %223, %175 : vector<16x16xf32>
    %225 = arith.addf %221, %224 : vector<16x16xf32>
    %c56 = arith.constant 56 : index
    %226 = memref.load %arg2[%c56] : memref<180xf32, #tpu.memory_space<smem>>
    %227 = vector.broadcast %226 : f32 to vector<16x16xf32>
    %228 = arith.mulf %227, %176 : vector<16x16xf32>
    %229 = arith.addf %225, %228 : vector<16x16xf32>
    %c57 = arith.constant 57 : index
    %230 = memref.load %arg2[%c57] : memref<180xf32, #tpu.memory_space<smem>>
    %231 = vector.broadcast %230 : f32 to vector<16x16xf32>
    %232 = arith.mulf %231, %177 : vector<16x16xf32>
    %c58 = arith.constant 58 : index
    %233 = memref.load %arg2[%c58] : memref<180xf32, #tpu.memory_space<smem>>
    %234 = vector.broadcast %233 : f32 to vector<16x16xf32>
    %235 = arith.mulf %234, %178 : vector<16x16xf32>
    %236 = arith.addf %232, %235 : vector<16x16xf32>
    %c59 = arith.constant 59 : index
    %237 = memref.load %arg2[%c59] : memref<180xf32, #tpu.memory_space<smem>>
    %238 = vector.broadcast %237 : f32 to vector<16x16xf32>
    %239 = arith.mulf %238, %179 : vector<16x16xf32>
    %240 = arith.addf %236, %239 : vector<16x16xf32>
    %c60 = arith.constant 60 : index
    %241 = memref.load %arg2[%c60] : memref<180xf32, #tpu.memory_space<smem>>
    %242 = vector.broadcast %241 : f32 to vector<16x16xf32>
    %243 = arith.mulf %242, %180 : vector<16x16xf32>
    %c61 = arith.constant 61 : index
    %244 = memref.load %arg2[%c61] : memref<180xf32, #tpu.memory_space<smem>>
    %245 = vector.broadcast %244 : f32 to vector<16x16xf32>
    %246 = arith.mulf %245, %181 : vector<16x16xf32>
    %247 = arith.addf %243, %246 : vector<16x16xf32>
    %c62 = arith.constant 62 : index
    %248 = memref.load %arg2[%c62] : memref<180xf32, #tpu.memory_space<smem>>
    %249 = vector.broadcast %248 : f32 to vector<16x16xf32>
    %250 = arith.mulf %249, %182 : vector<16x16xf32>
    %251 = arith.addf %247, %250 : vector<16x16xf32>
    %252 = arith.addf %229, %240 : vector<16x16xf32>
    %253 = arith.addf %252, %251 : vector<16x16xf32>
    %254 = arith.addf %97, %253 : vector<16x16xf32>
    %c99 = arith.constant 99 : index
    %255 = memref.load %arg2[%c99] : memref<180xf32, #tpu.memory_space<smem>>
    %256 = vector.broadcast %255 : f32 to vector<16x16xf32>
    %257 = arith.mulf %256, %174 : vector<16x16xf32>
    %c100 = arith.constant 100 : index
    %258 = memref.load %arg2[%c100] : memref<180xf32, #tpu.memory_space<smem>>
    %259 = vector.broadcast %258 : f32 to vector<16x16xf32>
    %260 = arith.mulf %259, %175 : vector<16x16xf32>
    %261 = arith.addf %257, %260 : vector<16x16xf32>
    %c101 = arith.constant 101 : index
    %262 = memref.load %arg2[%c101] : memref<180xf32, #tpu.memory_space<smem>>
    %263 = vector.broadcast %262 : f32 to vector<16x16xf32>
    %264 = arith.mulf %263, %176 : vector<16x16xf32>
    %265 = arith.addf %261, %264 : vector<16x16xf32>
    %c102 = arith.constant 102 : index
    %266 = memref.load %arg2[%c102] : memref<180xf32, #tpu.memory_space<smem>>
    %267 = vector.broadcast %266 : f32 to vector<16x16xf32>
    %268 = arith.mulf %267, %177 : vector<16x16xf32>
    %c103 = arith.constant 103 : index
    %269 = memref.load %arg2[%c103] : memref<180xf32, #tpu.memory_space<smem>>
    %270 = vector.broadcast %269 : f32 to vector<16x16xf32>
    %271 = arith.mulf %270, %178 : vector<16x16xf32>
    %272 = arith.addf %268, %271 : vector<16x16xf32>
    %c104 = arith.constant 104 : index
    %273 = memref.load %arg2[%c104] : memref<180xf32, #tpu.memory_space<smem>>
    %274 = vector.broadcast %273 : f32 to vector<16x16xf32>
    %275 = arith.mulf %274, %179 : vector<16x16xf32>
    %276 = arith.addf %272, %275 : vector<16x16xf32>
    %c105 = arith.constant 105 : index
    %277 = memref.load %arg2[%c105] : memref<180xf32, #tpu.memory_space<smem>>
    %278 = vector.broadcast %277 : f32 to vector<16x16xf32>
    %279 = arith.mulf %278, %180 : vector<16x16xf32>
    %c106 = arith.constant 106 : index
    %280 = memref.load %arg2[%c106] : memref<180xf32, #tpu.memory_space<smem>>
    %281 = vector.broadcast %280 : f32 to vector<16x16xf32>
    %282 = arith.mulf %281, %181 : vector<16x16xf32>
    %283 = arith.addf %279, %282 : vector<16x16xf32>
    %c107 = arith.constant 107 : index
    %284 = memref.load %arg2[%c107] : memref<180xf32, #tpu.memory_space<smem>>
    %285 = vector.broadcast %284 : f32 to vector<16x16xf32>
    %286 = arith.mulf %285, %182 : vector<16x16xf32>
    %287 = arith.addf %283, %286 : vector<16x16xf32>
    %288 = arith.addf %265, %276 : vector<16x16xf32>
    %289 = arith.addf %288, %287 : vector<16x16xf32>
    %290 = arith.addf %133, %289 : vector<16x16xf32>
    %c144 = arith.constant 144 : index
    %291 = memref.load %arg2[%c144] : memref<180xf32, #tpu.memory_space<smem>>
    %292 = vector.broadcast %291 : f32 to vector<16x16xf32>
    %293 = arith.mulf %292, %174 : vector<16x16xf32>
    %c145 = arith.constant 145 : index
    %294 = memref.load %arg2[%c145] : memref<180xf32, #tpu.memory_space<smem>>
    %295 = vector.broadcast %294 : f32 to vector<16x16xf32>
    %296 = arith.mulf %295, %175 : vector<16x16xf32>
    %297 = arith.addf %293, %296 : vector<16x16xf32>
    %c146 = arith.constant 146 : index
    %298 = memref.load %arg2[%c146] : memref<180xf32, #tpu.memory_space<smem>>
    %299 = vector.broadcast %298 : f32 to vector<16x16xf32>
    %300 = arith.mulf %299, %176 : vector<16x16xf32>
    %301 = arith.addf %297, %300 : vector<16x16xf32>
    %c147 = arith.constant 147 : index
    %302 = memref.load %arg2[%c147] : memref<180xf32, #tpu.memory_space<smem>>
    %303 = vector.broadcast %302 : f32 to vector<16x16xf32>
    %304 = arith.mulf %303, %177 : vector<16x16xf32>
    %c148 = arith.constant 148 : index
    %305 = memref.load %arg2[%c148] : memref<180xf32, #tpu.memory_space<smem>>
    %306 = vector.broadcast %305 : f32 to vector<16x16xf32>
    %307 = arith.mulf %306, %178 : vector<16x16xf32>
    %308 = arith.addf %304, %307 : vector<16x16xf32>
    %c149 = arith.constant 149 : index
    %309 = memref.load %arg2[%c149] : memref<180xf32, #tpu.memory_space<smem>>
    %310 = vector.broadcast %309 : f32 to vector<16x16xf32>
    %311 = arith.mulf %310, %179 : vector<16x16xf32>
    %312 = arith.addf %308, %311 : vector<16x16xf32>
    %c150 = arith.constant 150 : index
    %313 = memref.load %arg2[%c150] : memref<180xf32, #tpu.memory_space<smem>>
    %314 = vector.broadcast %313 : f32 to vector<16x16xf32>
    %315 = arith.mulf %314, %180 : vector<16x16xf32>
    %c151 = arith.constant 151 : index
    %316 = memref.load %arg2[%c151] : memref<180xf32, #tpu.memory_space<smem>>
    %317 = vector.broadcast %316 : f32 to vector<16x16xf32>
    %318 = arith.mulf %317, %181 : vector<16x16xf32>
    %319 = arith.addf %315, %318 : vector<16x16xf32>
    %c152 = arith.constant 152 : index
    %320 = memref.load %arg2[%c152] : memref<180xf32, #tpu.memory_space<smem>>
    %321 = vector.broadcast %320 : f32 to vector<16x16xf32>
    %322 = arith.mulf %321, %182 : vector<16x16xf32>
    %323 = arith.addf %319, %322 : vector<16x16xf32>
    %324 = arith.addf %301, %312 : vector<16x16xf32>
    %325 = arith.addf %324, %323 : vector<16x16xf32>
    %326 = arith.addf %169, %325 : vector<16x16xf32>
    %c0_27 = arith.constant 0 : index
    %c0_28 = arith.constant 0 : index
    %c2_29 = arith.constant 2 : index
    %c0_30 = arith.constant 0 : index
    %c0_31 = arith.constant 0 : index
    %327 = vector.load %arg4[%c0_27, %c0_28, %c2_29, %c0_30, %c0_31] : memref<1x1x4x16x16xf32, #tpu.memory_space<vmem>>, vector<1x1x1x16x16xf32>
    %328 = vector.shape_cast %327 : vector<1x1x1x16x16xf32> to vector<16x16xf32>
    %c1_32 = arith.constant 1 : index
    %c1_33 = arith.constant 1 : index
    %329 = vector.load %arg9[%c1_32, %c1_33] : memref<18x18xf32, #tpu.memory_space<vmem>>, vector<16x16xf32>
    tpu.vector_store %arg9[%c1_32, %c1_33], %328 {strides = array<i32>} : memref<18x18xf32, #tpu.memory_space<vmem>>, vector<16x16xf32>,
    %c0_34 = arith.constant 0 : index
    %c0_35 = arith.constant 0 : index
    %330 = vector.load %arg9[%c0_34, %c0_35] : memref<18x18xf32, #tpu.memory_space<vmem>>, vector<18x18xf32>
    %331 = vector.extract_strided_slice %330 {offsets = [0, 0], sizes = [16, 16], strides = [1, 1]} : vector<18x18xf32> to vector<16x16xf32>
    %332 = vector.extract_strided_slice %330 {offsets = [0, 1], sizes = [16, 16], strides = [1, 1]} : vector<18x18xf32> to vector<16x16xf32>
    %333 = vector.extract_strided_slice %330 {offsets = [0, 2], sizes = [16, 16], strides = [1, 1]} : vector<18x18xf32> to vector<16x16xf32>
    %334 = vector.extract_strided_slice %330 {offsets = [1, 0], sizes = [16, 16], strides = [1, 1]} : vector<18x18xf32> to vector<16x16xf32>
    %335 = vector.extract_strided_slice %330 {offsets = [1, 1], sizes = [16, 16], strides = [1, 1]} : vector<18x18xf32> to vector<16x16xf32>
    %336 = vector.extract_strided_slice %330 {offsets = [1, 2], sizes = [16, 16], strides = [1, 1]} : vector<18x18xf32> to vector<16x16xf32>
    %337 = vector.extract_strided_slice %330 {offsets = [2, 0], sizes = [16, 16], strides = [1, 1]} : vector<18x18xf32> to vector<16x16xf32>
    %338 = vector.extract_strided_slice %330 {offsets = [2, 1], sizes = [16, 16], strides = [1, 1]} : vector<18x18xf32> to vector<16x16xf32>
    %339 = vector.extract_strided_slice %330 {offsets = [2, 2], sizes = [16, 16], strides = [1, 1]} : vector<18x18xf32> to vector<16x16xf32>
    %c18 = arith.constant 18 : index
    %340 = memref.load %arg2[%c18] : memref<180xf32, #tpu.memory_space<smem>>
    %341 = vector.broadcast %340 : f32 to vector<16x16xf32>
    %342 = arith.mulf %341, %331 : vector<16x16xf32>
    %c19 = arith.constant 19 : index
    %343 = memref.load %arg2[%c19] : memref<180xf32, #tpu.memory_space<smem>>
    %344 = vector.broadcast %343 : f32 to vector<16x16xf32>
    %345 = arith.mulf %344, %332 : vector<16x16xf32>
    %346 = arith.addf %342, %345 : vector<16x16xf32>
    %c20 = arith.constant 20 : index
    %347 = memref.load %arg2[%c20] : memref<180xf32, #tpu.memory_space<smem>>
    %348 = vector.broadcast %347 : f32 to vector<16x16xf32>
    %349 = arith.mulf %348, %333 : vector<16x16xf32>
    %350 = arith.addf %346, %349 : vector<16x16xf32>
    %c21 = arith.constant 21 : index
    %351 = memref.load %arg2[%c21] : memref<180xf32, #tpu.memory_space<smem>>
    %352 = vector.broadcast %351 : f32 to vector<16x16xf32>
    %353 = arith.mulf %352, %334 : vector<16x16xf32>
    %c22 = arith.constant 22 : index
    %354 = memref.load %arg2[%c22] : memref<180xf32, #tpu.memory_space<smem>>
    %355 = vector.broadcast %354 : f32 to vector<16x16xf32>
    %356 = arith.mulf %355, %335 : vector<16x16xf32>
    %357 = arith.addf %353, %356 : vector<16x16xf32>
    %c23 = arith.constant 23 : index
    %358 = memref.load %arg2[%c23] : memref<180xf32, #tpu.memory_space<smem>>
    %359 = vector.broadcast %358 : f32 to vector<16x16xf32>
    %360 = arith.mulf %359, %336 : vector<16x16xf32>
    %361 = arith.addf %357, %360 : vector<16x16xf32>
    %c24 = arith.constant 24 : index
    %362 = memref.load %arg2[%c24] : memref<180xf32, #tpu.memory_space<smem>>
    %363 = vector.broadcast %362 : f32 to vector<16x16xf32>
    %364 = arith.mulf %363, %337 : vector<16x16xf32>
    %c25 = arith.constant 25 : index
    %365 = memref.load %arg2[%c25] : memref<180xf32, #tpu.memory_space<smem>>
    %366 = vector.broadcast %365 : f32 to vector<16x16xf32>
    %367 = arith.mulf %366, %338 : vector<16x16xf32>
    %368 = arith.addf %364, %367 : vector<16x16xf32>
    %c26 = arith.constant 26 : index
    %369 = memref.load %arg2[%c26] : memref<180xf32, #tpu.memory_space<smem>>
    %370 = vector.broadcast %369 : f32 to vector<16x16xf32>
    %371 = arith.mulf %370, %339 : vector<16x16xf32>
    %372 = arith.addf %368, %371 : vector<16x16xf32>
    %373 = arith.addf %350, %361 : vector<16x16xf32>
    %374 = arith.addf %373, %372 : vector<16x16xf32>
    %375 = arith.addf %218, %374 : vector<16x16xf32>
    %c63 = arith.constant 63 : index
    %376 = memref.load %arg2[%c63] : memref<180xf32, #tpu.memory_space<smem>>
    %377 = vector.broadcast %376 : f32 to vector<16x16xf32>
    %378 = arith.mulf %377, %331 : vector<16x16xf32>
    %c64 = arith.constant 64 : index
    %379 = memref.load %arg2[%c64] : memref<180xf32, #tpu.memory_space<smem>>
    %380 = vector.broadcast %379 : f32 to vector<16x16xf32>
    %381 = arith.mulf %380, %332 : vector<16x16xf32>
    %382 = arith.addf %378, %381 : vector<16x16xf32>
    %c65 = arith.constant 65 : index
    %383 = memref.load %arg2[%c65] : memref<180xf32, #tpu.memory_space<smem>>
    %384 = vector.broadcast %383 : f32 to vector<16x16xf32>
    %385 = arith.mulf %384, %333 : vector<16x16xf32>
    %386 = arith.addf %382, %385 : vector<16x16xf32>
    %c66 = arith.constant 66 : index
    %387 = memref.load %arg2[%c66] : memref<180xf32, #tpu.memory_space<smem>>
    %388 = vector.broadcast %387 : f32 to vector<16x16xf32>
    %389 = arith.mulf %388, %334 : vector<16x16xf32>
    %c67 = arith.constant 67 : index
    %390 = memref.load %arg2[%c67] : memref<180xf32, #tpu.memory_space<smem>>
    %391 = vector.broadcast %390 : f32 to vector<16x16xf32>
    %392 = arith.mulf %391, %335 : vector<16x16xf32>
    %393 = arith.addf %389, %392 : vector<16x16xf32>
    %c68 = arith.constant 68 : index
    %394 = memref.load %arg2[%c68] : memref<180xf32, #tpu.memory_space<smem>>
    %395 = vector.broadcast %394 : f32 to vector<16x16xf32>
    %396 = arith.mulf %395, %336 : vector<16x16xf32>
    %397 = arith.addf %393, %396 : vector<16x16xf32>
    %c69 = arith.constant 69 : index
    %398 = memref.load %arg2[%c69] : memref<180xf32, #tpu.memory_space<smem>>
    %399 = vector.broadcast %398 : f32 to vector<16x16xf32>
    %400 = arith.mulf %399, %337 : vector<16x16xf32>
    %c70 = arith.constant 70 : index
    %401 = memref.load %arg2[%c70] : memref<180xf32, #tpu.memory_space<smem>>
    %402 = vector.broadcast %401 : f32 to vector<16x16xf32>
    %403 = arith.mulf %402, %338 : vector<16x16xf32>
    %404 = arith.addf %400, %403 : vector<16x16xf32>
    %c71 = arith.constant 71 : index
    %405 = memref.load %arg2[%c71] : memref<180xf32, #tpu.memory_space<smem>>
    %406 = vector.broadcast %405 : f32 to vector<16x16xf32>
    %407 = arith.mulf %406, %339 : vector<16x16xf32>
    %408 = arith.addf %404, %407 : vector<16x16xf32>
    %409 = arith.addf %386, %397 : vector<16x16xf32>
    %410 = arith.addf %409, %408 : vector<16x16xf32>
    %411 = arith.addf %254, %410 : vector<16x16xf32>
    %c108 = arith.constant 108 : index
    %412 = memref.load %arg2[%c108] : memref<180xf32, #tpu.memory_space<smem>>
    %413 = vector.broadcast %412 : f32 to vector<16x16xf32>
    %414 = arith.mulf %413, %331 : vector<16x16xf32>
    %c109 = arith.constant 109 : index
    %415 = memref.load %arg2[%c109] : memref<180xf32, #tpu.memory_space<smem>>
    %416 = vector.broadcast %415 : f32 to vector<16x16xf32>
    %417 = arith.mulf %416, %332 : vector<16x16xf32>
    %418 = arith.addf %414, %417 : vector<16x16xf32>
    %c110 = arith.constant 110 : index
    %419 = memref.load %arg2[%c110] : memref<180xf32, #tpu.memory_space<smem>>
    %420 = vector.broadcast %419 : f32 to vector<16x16xf32>
    %421 = arith.mulf %420, %333 : vector<16x16xf32>
    %422 = arith.addf %418, %421 : vector<16x16xf32>
    %c111 = arith.constant 111 : index
    %423 = memref.load %arg2[%c111] : memref<180xf32, #tpu.memory_space<smem>>
    %424 = vector.broadcast %423 : f32 to vector<16x16xf32>
    %425 = arith.mulf %424, %334 : vector<16x16xf32>
    %c112 = arith.constant 112 : index
    %426 = memref.load %arg2[%c112] : memref<180xf32, #tpu.memory_space<smem>>
    %427 = vector.broadcast %426 : f32 to vector<16x16xf32>
    %428 = arith.mulf %427, %335 : vector<16x16xf32>
    %429 = arith.addf %425, %428 : vector<16x16xf32>
    %c113 = arith.constant 113 : index
    %430 = memref.load %arg2[%c113] : memref<180xf32, #tpu.memory_space<smem>>
    %431 = vector.broadcast %430 : f32 to vector<16x16xf32>
    %432 = arith.mulf %431, %336 : vector<16x16xf32>
    %433 = arith.addf %429, %432 : vector<16x16xf32>
    %c114 = arith.constant 114 : index
    %434 = memref.load %arg2[%c114] : memref<180xf32, #tpu.memory_space<smem>>
    %435 = vector.broadcast %434 : f32 to vector<16x16xf32>
    %436 = arith.mulf %435, %337 : vector<16x16xf32>
    %c115 = arith.constant 115 : index
    %437 = memref.load %arg2[%c115] : memref<180xf32, #tpu.memory_space<smem>>
    %438 = vector.broadcast %437 : f32 to vector<16x16xf32>
    %439 = arith.mulf %438, %338 : vector<16x16xf32>
    %440 = arith.addf %436, %439 : vector<16x16xf32>
    %c116 = arith.constant 116 : index
    %441 = memref.load %arg2[%c116] : memref<180xf32, #tpu.memory_space<smem>>
    %442 = vector.broadcast %441 : f32 to vector<16x16xf32>
    %443 = arith.mulf %442, %339 : vector<16x16xf32>
    %444 = arith.addf %440, %443 : vector<16x16xf32>
    %445 = arith.addf %422, %433 : vector<16x16xf32>
    %446 = arith.addf %445, %444 : vector<16x16xf32>
    %447 = arith.addf %290, %446 : vector<16x16xf32>
    %c153 = arith.constant 153 : index
    %448 = memref.load %arg2[%c153] : memref<180xf32, #tpu.memory_space<smem>>
    %449 = vector.broadcast %448 : f32 to vector<16x16xf32>
    %450 = arith.mulf %449, %331 : vector<16x16xf32>
    %c154 = arith.constant 154 : index
    %451 = memref.load %arg2[%c154] : memref<180xf32, #tpu.memory_space<smem>>
    %452 = vector.broadcast %451 : f32 to vector<16x16xf32>
    %453 = arith.mulf %452, %332 : vector<16x16xf32>
    %454 = arith.addf %450, %453 : vector<16x16xf32>
    %c155 = arith.constant 155 : index
    %455 = memref.load %arg2[%c155] : memref<180xf32, #tpu.memory_space<smem>>
    %456 = vector.broadcast %455 : f32 to vector<16x16xf32>
    %457 = arith.mulf %456, %333 : vector<16x16xf32>
    %458 = arith.addf %454, %457 : vector<16x16xf32>
    %c156 = arith.constant 156 : index
    %459 = memref.load %arg2[%c156] : memref<180xf32, #tpu.memory_space<smem>>
    %460 = vector.broadcast %459 : f32 to vector<16x16xf32>
    %461 = arith.mulf %460, %334 : vector<16x16xf32>
    %c157 = arith.constant 157 : index
    %462 = memref.load %arg2[%c157] : memref<180xf32, #tpu.memory_space<smem>>
    %463 = vector.broadcast %462 : f32 to vector<16x16xf32>
    %464 = arith.mulf %463, %335 : vector<16x16xf32>
    %465 = arith.addf %461, %464 : vector<16x16xf32>
    %c158 = arith.constant 158 : index
    %466 = memref.load %arg2[%c158] : memref<180xf32, #tpu.memory_space<smem>>
    %467 = vector.broadcast %466 : f32 to vector<16x16xf32>
    %468 = arith.mulf %467, %336 : vector<16x16xf32>
    %469 = arith.addf %465, %468 : vector<16x16xf32>
    %c159 = arith.constant 159 : index
    %470 = memref.load %arg2[%c159] : memref<180xf32, #tpu.memory_space<smem>>
    %471 = vector.broadcast %470 : f32 to vector<16x16xf32>
    %472 = arith.mulf %471, %337 : vector<16x16xf32>
    %c160 = arith.constant 160 : index
    %473 = memref.load %arg2[%c160] : memref<180xf32, #tpu.memory_space<smem>>
    %474 = vector.broadcast %473 : f32 to vector<16x16xf32>
    %475 = arith.mulf %474, %338 : vector<16x16xf32>
    %476 = arith.addf %472, %475 : vector<16x16xf32>
    %c161 = arith.constant 161 : index
    %477 = memref.load %arg2[%c161] : memref<180xf32, #tpu.memory_space<smem>>
    %478 = vector.broadcast %477 : f32 to vector<16x16xf32>
    %479 = arith.mulf %478, %339 : vector<16x16xf32>
    %480 = arith.addf %476, %479 : vector<16x16xf32>
    %481 = arith.addf %458, %469 : vector<16x16xf32>
    %482 = arith.addf %481, %480 : vector<16x16xf32>
    %483 = arith.addf %326, %482 : vector<16x16xf32>
    %c0_36 = arith.constant 0 : index
    %c0_37 = arith.constant 0 : index
    %c3_38 = arith.constant 3 : index
    %c0_39 = arith.constant 0 : index
    %c0_40 = arith.constant 0 : index
    %484 = vector.load %arg4[%c0_36, %c0_37, %c3_38, %c0_39, %c0_40] : memref<1x1x4x16x16xf32, #tpu.memory_space<vmem>>, vector<1x1x1x16x16xf32>
    %485 = vector.shape_cast %484 : vector<1x1x1x16x16xf32> to vector<16x16xf32>
    %c1_41 = arith.constant 1 : index
    %c1_42 = arith.constant 1 : index
    %486 = vector.load %arg9[%c1_41, %c1_42] : memref<18x18xf32, #tpu.memory_space<vmem>>, vector<16x16xf32>
    tpu.vector_store %arg9[%c1_41, %c1_42], %485 {strides = array<i32>} : memref<18x18xf32, #tpu.memory_space<vmem>>, vector<16x16xf32>,
    %c0_43 = arith.constant 0 : index
    %c0_44 = arith.constant 0 : index
    %487 = vector.load %arg9[%c0_43, %c0_44] : memref<18x18xf32, #tpu.memory_space<vmem>>, vector<18x18xf32>
    %488 = vector.extract_strided_slice %487 {offsets = [0, 0], sizes = [16, 16], strides = [1, 1]} : vector<18x18xf32> to vector<16x16xf32>
    %489 = vector.extract_strided_slice %487 {offsets = [0, 1], sizes = [16, 16], strides = [1, 1]} : vector<18x18xf32> to vector<16x16xf32>
    %490 = vector.extract_strided_slice %487 {offsets = [0, 2], sizes = [16, 16], strides = [1, 1]} : vector<18x18xf32> to vector<16x16xf32>
    %491 = vector.extract_strided_slice %487 {offsets = [1, 0], sizes = [16, 16], strides = [1, 1]} : vector<18x18xf32> to vector<16x16xf32>
    %492 = vector.extract_strided_slice %487 {offsets = [1, 1], sizes = [16, 16], strides = [1, 1]} : vector<18x18xf32> to vector<16x16xf32>
    %493 = vector.extract_strided_slice %487 {offsets = [1, 2], sizes = [16, 16], strides = [1, 1]} : vector<18x18xf32> to vector<16x16xf32>
    %494 = vector.extract_strided_slice %487 {offsets = [2, 0], sizes = [16, 16], strides = [1, 1]} : vector<18x18xf32> to vector<16x16xf32>
    %495 = vector.extract_strided_slice %487 {offsets = [2, 1], sizes = [16, 16], strides = [1, 1]} : vector<18x18xf32> to vector<16x16xf32>
    %496 = vector.extract_strided_slice %487 {offsets = [2, 2], sizes = [16, 16], strides = [1, 1]} : vector<18x18xf32> to vector<16x16xf32>
    %c27 = arith.constant 27 : index
    %497 = memref.load %arg2[%c27] : memref<180xf32, #tpu.memory_space<smem>>
    %498 = vector.broadcast %497 : f32 to vector<16x16xf32>
    %499 = arith.mulf %498, %488 : vector<16x16xf32>
    %c28 = arith.constant 28 : index
    %500 = memref.load %arg2[%c28] : memref<180xf32, #tpu.memory_space<smem>>
    %501 = vector.broadcast %500 : f32 to vector<16x16xf32>
    %502 = arith.mulf %501, %489 : vector<16x16xf32>
    %503 = arith.addf %499, %502 : vector<16x16xf32>
    %c29 = arith.constant 29 : index
    %504 = memref.load %arg2[%c29] : memref<180xf32, #tpu.memory_space<smem>>
    %505 = vector.broadcast %504 : f32 to vector<16x16xf32>
    %506 = arith.mulf %505, %490 : vector<16x16xf32>
    %507 = arith.addf %503, %506 : vector<16x16xf32>
    %c30 = arith.constant 30 : index
    %508 = memref.load %arg2[%c30] : memref<180xf32, #tpu.memory_space<smem>>
    %509 = vector.broadcast %508 : f32 to vector<16x16xf32>
    %510 = arith.mulf %509, %491 : vector<16x16xf32>
    %c31 = arith.constant 31 : index
    %511 = memref.load %arg2[%c31] : memref<180xf32, #tpu.memory_space<smem>>
    %512 = vector.broadcast %511 : f32 to vector<16x16xf32>
    %513 = arith.mulf %512, %492 : vector<16x16xf32>
    %514 = arith.addf %510, %513 : vector<16x16xf32>
    %c32 = arith.constant 32 : index
    %515 = memref.load %arg2[%c32] : memref<180xf32, #tpu.memory_space<smem>>
    %516 = vector.broadcast %515 : f32 to vector<16x16xf32>
    %517 = arith.mulf %516, %493 : vector<16x16xf32>
    %518 = arith.addf %514, %517 : vector<16x16xf32>
    %c33 = arith.constant 33 : index
    %519 = memref.load %arg2[%c33] : memref<180xf32, #tpu.memory_space<smem>>
    %520 = vector.broadcast %519 : f32 to vector<16x16xf32>
    %521 = arith.mulf %520, %494 : vector<16x16xf32>
    %c34 = arith.constant 34 : index
    %522 = memref.load %arg2[%c34] : memref<180xf32, #tpu.memory_space<smem>>
    %523 = vector.broadcast %522 : f32 to vector<16x16xf32>
    %524 = arith.mulf %523, %495 : vector<16x16xf32>
    %525 = arith.addf %521, %524 : vector<16x16xf32>
    %c35 = arith.constant 35 : index
    %526 = memref.load %arg2[%c35] : memref<180xf32, #tpu.memory_space<smem>>
    %527 = vector.broadcast %526 : f32 to vector<16x16xf32>
    %528 = arith.mulf %527, %496 : vector<16x16xf32>
    %529 = arith.addf %525, %528 : vector<16x16xf32>
    %530 = arith.addf %507, %518 : vector<16x16xf32>
    %531 = arith.addf %530, %529 : vector<16x16xf32>
    %532 = arith.addf %375, %531 : vector<16x16xf32>
    %c72 = arith.constant 72 : index
    %533 = memref.load %arg2[%c72] : memref<180xf32, #tpu.memory_space<smem>>
    %534 = vector.broadcast %533 : f32 to vector<16x16xf32>
    %535 = arith.mulf %534, %488 : vector<16x16xf32>
    %c73 = arith.constant 73 : index
    %536 = memref.load %arg2[%c73] : memref<180xf32, #tpu.memory_space<smem>>
    %537 = vector.broadcast %536 : f32 to vector<16x16xf32>
    %538 = arith.mulf %537, %489 : vector<16x16xf32>
    %539 = arith.addf %535, %538 : vector<16x16xf32>
    %c74 = arith.constant 74 : index
    %540 = memref.load %arg2[%c74] : memref<180xf32, #tpu.memory_space<smem>>
    %541 = vector.broadcast %540 : f32 to vector<16x16xf32>
    %542 = arith.mulf %541, %490 : vector<16x16xf32>
    %543 = arith.addf %539, %542 : vector<16x16xf32>
    %c75 = arith.constant 75 : index
    %544 = memref.load %arg2[%c75] : memref<180xf32, #tpu.memory_space<smem>>
    %545 = vector.broadcast %544 : f32 to vector<16x16xf32>
    %546 = arith.mulf %545, %491 : vector<16x16xf32>
    %c76 = arith.constant 76 : index
    %547 = memref.load %arg2[%c76] : memref<180xf32, #tpu.memory_space<smem>>
    %548 = vector.broadcast %547 : f32 to vector<16x16xf32>
    %549 = arith.mulf %548, %492 : vector<16x16xf32>
    %550 = arith.addf %546, %549 : vector<16x16xf32>
    %c77 = arith.constant 77 : index
    %551 = memref.load %arg2[%c77] : memref<180xf32, #tpu.memory_space<smem>>
    %552 = vector.broadcast %551 : f32 to vector<16x16xf32>
    %553 = arith.mulf %552, %493 : vector<16x16xf32>
    %554 = arith.addf %550, %553 : vector<16x16xf32>
    %c78 = arith.constant 78 : index
    %555 = memref.load %arg2[%c78] : memref<180xf32, #tpu.memory_space<smem>>
    %556 = vector.broadcast %555 : f32 to vector<16x16xf32>
    %557 = arith.mulf %556, %494 : vector<16x16xf32>
    %c79 = arith.constant 79 : index
    %558 = memref.load %arg2[%c79] : memref<180xf32, #tpu.memory_space<smem>>
    %559 = vector.broadcast %558 : f32 to vector<16x16xf32>
    %560 = arith.mulf %559, %495 : vector<16x16xf32>
    %561 = arith.addf %557, %560 : vector<16x16xf32>
    %c80 = arith.constant 80 : index
    %562 = memref.load %arg2[%c80] : memref<180xf32, #tpu.memory_space<smem>>
    %563 = vector.broadcast %562 : f32 to vector<16x16xf32>
    %564 = arith.mulf %563, %496 : vector<16x16xf32>
    %565 = arith.addf %561, %564 : vector<16x16xf32>
    %566 = arith.addf %543, %554 : vector<16x16xf32>
    %567 = arith.addf %566, %565 : vector<16x16xf32>
    %568 = arith.addf %411, %567 : vector<16x16xf32>
    %c117 = arith.constant 117 : index
    %569 = memref.load %arg2[%c117] : memref<180xf32, #tpu.memory_space<smem>>
    %570 = vector.broadcast %569 : f32 to vector<16x16xf32>
    %571 = arith.mulf %570, %488 : vector<16x16xf32>
    %c118 = arith.constant 118 : index
    %572 = memref.load %arg2[%c118] : memref<180xf32, #tpu.memory_space<smem>>
    %573 = vector.broadcast %572 : f32 to vector<16x16xf32>
    %574 = arith.mulf %573, %489 : vector<16x16xf32>
    %575 = arith.addf %571, %574 : vector<16x16xf32>
    %c119 = arith.constant 119 : index
    %576 = memref.load %arg2[%c119] : memref<180xf32, #tpu.memory_space<smem>>
    %577 = vector.broadcast %576 : f32 to vector<16x16xf32>
    %578 = arith.mulf %577, %490 : vector<16x16xf32>
    %579 = arith.addf %575, %578 : vector<16x16xf32>
    %c120 = arith.constant 120 : index
    %580 = memref.load %arg2[%c120] : memref<180xf32, #tpu.memory_space<smem>>
    %581 = vector.broadcast %580 : f32 to vector<16x16xf32>
    %582 = arith.mulf %581, %491 : vector<16x16xf32>
    %c121 = arith.constant 121 : index
    %583 = memref.load %arg2[%c121] : memref<180xf32, #tpu.memory_space<smem>>
    %584 = vector.broadcast %583 : f32 to vector<16x16xf32>
    %585 = arith.mulf %584, %492 : vector<16x16xf32>
    %586 = arith.addf %582, %585 : vector<16x16xf32>
    %c122 = arith.constant 122 : index
    %587 = memref.load %arg2[%c122] : memref<180xf32, #tpu.memory_space<smem>>
    %588 = vector.broadcast %587 : f32 to vector<16x16xf32>
    %589 = arith.mulf %588, %493 : vector<16x16xf32>
    %590 = arith.addf %586, %589 : vector<16x16xf32>
    %c123 = arith.constant 123 : index
    %591 = memref.load %arg2[%c123] : memref<180xf32, #tpu.memory_space<smem>>
    %592 = vector.broadcast %591 : f32 to vector<16x16xf32>
    %593 = arith.mulf %592, %494 : vector<16x16xf32>
    %c124 = arith.constant 124 : index
    %594 = memref.load %arg2[%c124] : memref<180xf32, #tpu.memory_space<smem>>
    %595 = vector.broadcast %594 : f32 to vector<16x16xf32>
    %596 = arith.mulf %595, %495 : vector<16x16xf32>
    %597 = arith.addf %593, %596 : vector<16x16xf32>
    %c125 = arith.constant 125 : index
    %598 = memref.load %arg2[%c125] : memref<180xf32, #tpu.memory_space<smem>>
    %599 = vector.broadcast %598 : f32 to vector<16x16xf32>
    %600 = arith.mulf %599, %496 : vector<16x16xf32>
    %601 = arith.addf %597, %600 : vector<16x16xf32>
    %602 = arith.addf %579, %590 : vector<16x16xf32>
    %603 = arith.addf %602, %601 : vector<16x16xf32>
    %604 = arith.addf %447, %603 : vector<16x16xf32>
    %c162 = arith.constant 162 : index
    %605 = memref.load %arg2[%c162] : memref<180xf32, #tpu.memory_space<smem>>
    %606 = vector.broadcast %605 : f32 to vector<16x16xf32>
    %607 = arith.mulf %606, %488 : vector<16x16xf32>
    %c163 = arith.constant 163 : index
    %608 = memref.load %arg2[%c163] : memref<180xf32, #tpu.memory_space<smem>>
    %609 = vector.broadcast %608 : f32 to vector<16x16xf32>
    %610 = arith.mulf %609, %489 : vector<16x16xf32>
    %611 = arith.addf %607, %610 : vector<16x16xf32>
    %c164 = arith.constant 164 : index
    %612 = memref.load %arg2[%c164] : memref<180xf32, #tpu.memory_space<smem>>
    %613 = vector.broadcast %612 : f32 to vector<16x16xf32>
    %614 = arith.mulf %613, %490 : vector<16x16xf32>
    %615 = arith.addf %611, %614 : vector<16x16xf32>
    %c165 = arith.constant 165 : index
    %616 = memref.load %arg2[%c165] : memref<180xf32, #tpu.memory_space<smem>>
    %617 = vector.broadcast %616 : f32 to vector<16x16xf32>
    %618 = arith.mulf %617, %491 : vector<16x16xf32>
    %c166 = arith.constant 166 : index
    %619 = memref.load %arg2[%c166] : memref<180xf32, #tpu.memory_space<smem>>
    %620 = vector.broadcast %619 : f32 to vector<16x16xf32>
    %621 = arith.mulf %620, %492 : vector<16x16xf32>
    %622 = arith.addf %618, %621 : vector<16x16xf32>
    %c167 = arith.constant 167 : index
    %623 = memref.load %arg2[%c167] : memref<180xf32, #tpu.memory_space<smem>>
    %624 = vector.broadcast %623 : f32 to vector<16x16xf32>
    %625 = arith.mulf %624, %493 : vector<16x16xf32>
    %626 = arith.addf %622, %625 : vector<16x16xf32>
    %c168 = arith.constant 168 : index
    %627 = memref.load %arg2[%c168] : memref<180xf32, #tpu.memory_space<smem>>
    %628 = vector.broadcast %627 : f32 to vector<16x16xf32>
    %629 = arith.mulf %628, %494 : vector<16x16xf32>
    %c169 = arith.constant 169 : index
    %630 = memref.load %arg2[%c169] : memref<180xf32, #tpu.memory_space<smem>>
    %631 = vector.broadcast %630 : f32 to vector<16x16xf32>
    %632 = arith.mulf %631, %495 : vector<16x16xf32>
    %633 = arith.addf %629, %632 : vector<16x16xf32>
    %c170 = arith.constant 170 : index
    %634 = memref.load %arg2[%c170] : memref<180xf32, #tpu.memory_space<smem>>
    %635 = vector.broadcast %634 : f32 to vector<16x16xf32>
    %636 = arith.mulf %635, %496 : vector<16x16xf32>
    %637 = arith.addf %633, %636 : vector<16x16xf32>
    %638 = arith.addf %615, %626 : vector<16x16xf32>
    %639 = arith.addf %638, %637 : vector<16x16xf32>
    %640 = arith.addf %483, %639 : vector<16x16xf32>
    %c1_45 = arith.constant 1 : index
    %c1_46 = arith.constant 1 : index
    %641 = vector.load %arg9[%c1_45, %c1_46] : memref<18x18xf32, #tpu.memory_space<vmem>>, vector<16x16xf32>
    tpu.vector_store %arg9[%c1_45, %c1_46], %3 {strides = array<i32>} : memref<18x18xf32, #tpu.memory_space<vmem>>, vector<16x16xf32>,
    %c0_47 = arith.constant 0 : index
    %c0_48 = arith.constant 0 : index
    %642 = vector.load %arg9[%c0_47, %c0_48] : memref<18x18xf32, #tpu.memory_space<vmem>>, vector<18x18xf32>
    %643 = vector.extract_strided_slice %642 {offsets = [0, 0], sizes = [16, 16], strides = [1, 1]} : vector<18x18xf32> to vector<16x16xf32>
    %644 = vector.extract_strided_slice %642 {offsets = [0, 1], sizes = [16, 16], strides = [1, 1]} : vector<18x18xf32> to vector<16x16xf32>
    %645 = vector.extract_strided_slice %642 {offsets = [0, 2], sizes = [16, 16], strides = [1, 1]} : vector<18x18xf32> to vector<16x16xf32>
    %646 = vector.extract_strided_slice %642 {offsets = [1, 0], sizes = [16, 16], strides = [1, 1]} : vector<18x18xf32> to vector<16x16xf32>
    %647 = vector.extract_strided_slice %642 {offsets = [1, 1], sizes = [16, 16], strides = [1, 1]} : vector<18x18xf32> to vector<16x16xf32>
    %648 = vector.extract_strided_slice %642 {offsets = [1, 2], sizes = [16, 16], strides = [1, 1]} : vector<18x18xf32> to vector<16x16xf32>
    %649 = vector.extract_strided_slice %642 {offsets = [2, 0], sizes = [16, 16], strides = [1, 1]} : vector<18x18xf32> to vector<16x16xf32>
    %650 = vector.extract_strided_slice %642 {offsets = [2, 1], sizes = [16, 16], strides = [1, 1]} : vector<18x18xf32> to vector<16x16xf32>
    %651 = vector.extract_strided_slice %642 {offsets = [2, 2], sizes = [16, 16], strides = [1, 1]} : vector<18x18xf32> to vector<16x16xf32>
    %c36 = arith.constant 36 : index
    %652 = memref.load %arg2[%c36] : memref<180xf32, #tpu.memory_space<smem>>
    %653 = vector.broadcast %652 : f32 to vector<16x16xf32>
    %654 = arith.mulf %653, %643 : vector<16x16xf32>
    %c37 = arith.constant 37 : index
    %655 = memref.load %arg2[%c37] : memref<180xf32, #tpu.memory_space<smem>>
    %656 = vector.broadcast %655 : f32 to vector<16x16xf32>
    %657 = arith.mulf %656, %644 : vector<16x16xf32>
    %658 = arith.addf %654, %657 : vector<16x16xf32>
    %c38 = arith.constant 38 : index
    %659 = memref.load %arg2[%c38] : memref<180xf32, #tpu.memory_space<smem>>
    %660 = vector.broadcast %659 : f32 to vector<16x16xf32>
    %661 = arith.mulf %660, %645 : vector<16x16xf32>
    %662 = arith.addf %658, %661 : vector<16x16xf32>
    %c39 = arith.constant 39 : index
    %663 = memref.load %arg2[%c39] : memref<180xf32, #tpu.memory_space<smem>>
    %664 = vector.broadcast %663 : f32 to vector<16x16xf32>
    %665 = arith.mulf %664, %646 : vector<16x16xf32>
    %c40 = arith.constant 40 : index
    %666 = memref.load %arg2[%c40] : memref<180xf32, #tpu.memory_space<smem>>
    %667 = vector.broadcast %666 : f32 to vector<16x16xf32>
    %668 = arith.mulf %667, %647 : vector<16x16xf32>
    %669 = arith.addf %665, %668 : vector<16x16xf32>
    %c41 = arith.constant 41 : index
    %670 = memref.load %arg2[%c41] : memref<180xf32, #tpu.memory_space<smem>>
    %671 = vector.broadcast %670 : f32 to vector<16x16xf32>
    %672 = arith.mulf %671, %648 : vector<16x16xf32>
    %673 = arith.addf %669, %672 : vector<16x16xf32>
    %c42 = arith.constant 42 : index
    %674 = memref.load %arg2[%c42] : memref<180xf32, #tpu.memory_space<smem>>
    %675 = vector.broadcast %674 : f32 to vector<16x16xf32>
    %676 = arith.mulf %675, %649 : vector<16x16xf32>
    %c43 = arith.constant 43 : index
    %677 = memref.load %arg2[%c43] : memref<180xf32, #tpu.memory_space<smem>>
    %678 = vector.broadcast %677 : f32 to vector<16x16xf32>
    %679 = arith.mulf %678, %650 : vector<16x16xf32>
    %680 = arith.addf %676, %679 : vector<16x16xf32>
    %c44 = arith.constant 44 : index
    %681 = memref.load %arg2[%c44] : memref<180xf32, #tpu.memory_space<smem>>
    %682 = vector.broadcast %681 : f32 to vector<16x16xf32>
    %683 = arith.mulf %682, %651 : vector<16x16xf32>
    %684 = arith.addf %680, %683 : vector<16x16xf32>
    %685 = arith.addf %662, %673 : vector<16x16xf32>
    %686 = arith.addf %685, %684 : vector<16x16xf32>
    %687 = arith.addf %532, %686 : vector<16x16xf32>
    %c81 = arith.constant 81 : index
    %688 = memref.load %arg2[%c81] : memref<180xf32, #tpu.memory_space<smem>>
    %689 = vector.broadcast %688 : f32 to vector<16x16xf32>
    %690 = arith.mulf %689, %643 : vector<16x16xf32>
    %c82 = arith.constant 82 : index
    %691 = memref.load %arg2[%c82] : memref<180xf32, #tpu.memory_space<smem>>
    %692 = vector.broadcast %691 : f32 to vector<16x16xf32>
    %693 = arith.mulf %692, %644 : vector<16x16xf32>
    %694 = arith.addf %690, %693 : vector<16x16xf32>
    %c83 = arith.constant 83 : index
    %695 = memref.load %arg2[%c83] : memref<180xf32, #tpu.memory_space<smem>>
    %696 = vector.broadcast %695 : f32 to vector<16x16xf32>
    %697 = arith.mulf %696, %645 : vector<16x16xf32>
    %698 = arith.addf %694, %697 : vector<16x16xf32>
    %c84 = arith.constant 84 : index
    %699 = memref.load %arg2[%c84] : memref<180xf32, #tpu.memory_space<smem>>
    %700 = vector.broadcast %699 : f32 to vector<16x16xf32>
    %701 = arith.mulf %700, %646 : vector<16x16xf32>
    %c85 = arith.constant 85 : index
    %702 = memref.load %arg2[%c85] : memref<180xf32, #tpu.memory_space<smem>>
    %703 = vector.broadcast %702 : f32 to vector<16x16xf32>
    %704 = arith.mulf %703, %647 : vector<16x16xf32>
    %705 = arith.addf %701, %704 : vector<16x16xf32>
    %c86 = arith.constant 86 : index
    %706 = memref.load %arg2[%c86] : memref<180xf32, #tpu.memory_space<smem>>
    %707 = vector.broadcast %706 : f32 to vector<16x16xf32>
    %708 = arith.mulf %707, %648 : vector<16x16xf32>
    %709 = arith.addf %705, %708 : vector<16x16xf32>
    %c87 = arith.constant 87 : index
    %710 = memref.load %arg2[%c87] : memref<180xf32, #tpu.memory_space<smem>>
    %711 = vector.broadcast %710 : f32 to vector<16x16xf32>
    %712 = arith.mulf %711, %649 : vector<16x16xf32>
    %c88 = arith.constant 88 : index
    %713 = memref.load %arg2[%c88] : memref<180xf32, #tpu.memory_space<smem>>
    %714 = vector.broadcast %713 : f32 to vector<16x16xf32>
    %715 = arith.mulf %714, %650 : vector<16x16xf32>
    %716 = arith.addf %712, %715 : vector<16x16xf32>
    %c89 = arith.constant 89 : index
    %717 = memref.load %arg2[%c89] : memref<180xf32, #tpu.memory_space<smem>>
    %718 = vector.broadcast %717 : f32 to vector<16x16xf32>
    %719 = arith.mulf %718, %651 : vector<16x16xf32>
    %720 = arith.addf %716, %719 : vector<16x16xf32>
    %721 = arith.addf %698, %709 : vector<16x16xf32>
    %722 = arith.addf %721, %720 : vector<16x16xf32>
    %723 = arith.addf %568, %722 : vector<16x16xf32>
    %c126 = arith.constant 126 : index
    %724 = memref.load %arg2[%c126] : memref<180xf32, #tpu.memory_space<smem>>
    %725 = vector.broadcast %724 : f32 to vector<16x16xf32>
    %726 = arith.mulf %725, %643 : vector<16x16xf32>
    %c127 = arith.constant 127 : index
    %727 = memref.load %arg2[%c127] : memref<180xf32, #tpu.memory_space<smem>>
    %728 = vector.broadcast %727 : f32 to vector<16x16xf32>
    %729 = arith.mulf %728, %644 : vector<16x16xf32>
    %730 = arith.addf %726, %729 : vector<16x16xf32>
    %c128 = arith.constant 128 : index
    %731 = memref.load %arg2[%c128] : memref<180xf32, #tpu.memory_space<smem>>
    %732 = vector.broadcast %731 : f32 to vector<16x16xf32>
    %733 = arith.mulf %732, %645 : vector<16x16xf32>
    %734 = arith.addf %730, %733 : vector<16x16xf32>
    %c129 = arith.constant 129 : index
    %735 = memref.load %arg2[%c129] : memref<180xf32, #tpu.memory_space<smem>>
    %736 = vector.broadcast %735 : f32 to vector<16x16xf32>
    %737 = arith.mulf %736, %646 : vector<16x16xf32>
    %c130 = arith.constant 130 : index
    %738 = memref.load %arg2[%c130] : memref<180xf32, #tpu.memory_space<smem>>
    %739 = vector.broadcast %738 : f32 to vector<16x16xf32>
    %740 = arith.mulf %739, %647 : vector<16x16xf32>
    %741 = arith.addf %737, %740 : vector<16x16xf32>
    %c131 = arith.constant 131 : index
    %742 = memref.load %arg2[%c131] : memref<180xf32, #tpu.memory_space<smem>>
    %743 = vector.broadcast %742 : f32 to vector<16x16xf32>
    %744 = arith.mulf %743, %648 : vector<16x16xf32>
    %745 = arith.addf %741, %744 : vector<16x16xf32>
    %c132 = arith.constant 132 : index
    %746 = memref.load %arg2[%c132] : memref<180xf32, #tpu.memory_space<smem>>
    %747 = vector.broadcast %746 : f32 to vector<16x16xf32>
    %748 = arith.mulf %747, %649 : vector<16x16xf32>
    %c133 = arith.constant 133 : index
    %749 = memref.load %arg2[%c133] : memref<180xf32, #tpu.memory_space<smem>>
    %750 = vector.broadcast %749 : f32 to vector<16x16xf32>
    %751 = arith.mulf %750, %650 : vector<16x16xf32>
    %752 = arith.addf %748, %751 : vector<16x16xf32>
    %c134 = arith.constant 134 : index
    %753 = memref.load %arg2[%c134] : memref<180xf32, #tpu.memory_space<smem>>
    %754 = vector.broadcast %753 : f32 to vector<16x16xf32>
    %755 = arith.mulf %754, %651 : vector<16x16xf32>
    %756 = arith.addf %752, %755 : vector<16x16xf32>
    %757 = arith.addf %734, %745 : vector<16x16xf32>
    %758 = arith.addf %757, %756 : vector<16x16xf32>
    %759 = arith.addf %604, %758 : vector<16x16xf32>
    %c171 = arith.constant 171 : index
    %760 = memref.load %arg2[%c171] : memref<180xf32, #tpu.memory_space<smem>>
    %761 = vector.broadcast %760 : f32 to vector<16x16xf32>
    %762 = arith.mulf %761, %643 : vector<16x16xf32>
    %c172 = arith.constant 172 : index
    %763 = memref.load %arg2[%c172] : memref<180xf32, #tpu.memory_space<smem>>
    %764 = vector.broadcast %763 : f32 to vector<16x16xf32>
    %765 = arith.mulf %764, %644 : vector<16x16xf32>
    %766 = arith.addf %762, %765 : vector<16x16xf32>
    %c173 = arith.constant 173 : index
    %767 = memref.load %arg2[%c173] : memref<180xf32, #tpu.memory_space<smem>>
    %768 = vector.broadcast %767 : f32 to vector<16x16xf32>
    %769 = arith.mulf %768, %645 : vector<16x16xf32>
    %770 = arith.addf %766, %769 : vector<16x16xf32>
    %c174 = arith.constant 174 : index
    %771 = memref.load %arg2[%c174] : memref<180xf32, #tpu.memory_space<smem>>
    %772 = vector.broadcast %771 : f32 to vector<16x16xf32>
    %773 = arith.mulf %772, %646 : vector<16x16xf32>
    %c175 = arith.constant 175 : index
    %774 = memref.load %arg2[%c175] : memref<180xf32, #tpu.memory_space<smem>>
    %775 = vector.broadcast %774 : f32 to vector<16x16xf32>
    %776 = arith.mulf %775, %647 : vector<16x16xf32>
    %777 = arith.addf %773, %776 : vector<16x16xf32>
    %c176 = arith.constant 176 : index
    %778 = memref.load %arg2[%c176] : memref<180xf32, #tpu.memory_space<smem>>
    %779 = vector.broadcast %778 : f32 to vector<16x16xf32>
    %780 = arith.mulf %779, %648 : vector<16x16xf32>
    %781 = arith.addf %777, %780 : vector<16x16xf32>
    %c177 = arith.constant 177 : index
    %782 = memref.load %arg2[%c177] : memref<180xf32, #tpu.memory_space<smem>>
    %783 = vector.broadcast %782 : f32 to vector<16x16xf32>
    %784 = arith.mulf %783, %649 : vector<16x16xf32>
    %c178 = arith.constant 178 : index
    %785 = memref.load %arg2[%c178] : memref<180xf32, #tpu.memory_space<smem>>
    %786 = vector.broadcast %785 : f32 to vector<16x16xf32>
    %787 = arith.mulf %786, %650 : vector<16x16xf32>
    %788 = arith.addf %784, %787 : vector<16x16xf32>
    %c179 = arith.constant 179 : index
    %789 = memref.load %arg2[%c179] : memref<180xf32, #tpu.memory_space<smem>>
    %790 = vector.broadcast %789 : f32 to vector<16x16xf32>
    %791 = arith.mulf %790, %651 : vector<16x16xf32>
    %792 = arith.addf %788, %791 : vector<16x16xf32>
    %793 = arith.addf %770, %781 : vector<16x16xf32>
    %794 = arith.addf %793, %792 : vector<16x16xf32>
    %795 = arith.addf %640, %794 : vector<16x16xf32>
    %796 = arith.negf %687 : vector<16x16xf32>
    %797 = math.exp %796 : vector<16x16xf32>
    %cst = arith.constant 1.000000e+00 : f32
    %798 = vector.broadcast %cst : f32 to vector<16x16xf32>
    %799 = arith.addf %798, %797 : vector<16x16xf32>
    %800 = arith.divf %798, %799 : vector<16x16xf32>
    %801 = arith.negf %723 : vector<16x16xf32>
    %802 = math.exp %801 : vector<16x16xf32>
    %cst_49 = arith.constant 1.000000e+00 : f32
    %803 = vector.broadcast %cst_49 : f32 to vector<16x16xf32>
    %804 = arith.addf %803, %802 : vector<16x16xf32>
    %805 = arith.divf %803, %804 : vector<16x16xf32>
    %806 = arith.negf %759 : vector<16x16xf32>
    %807 = math.exp %806 : vector<16x16xf32>
    %cst_50 = arith.constant 1.000000e+00 : f32
    %808 = vector.broadcast %cst_50 : f32 to vector<16x16xf32>
    %809 = arith.addf %808, %807 : vector<16x16xf32>
    %810 = arith.divf %808, %809 : vector<16x16xf32>
    %811 = math.tanh %795 : vector<16x16xf32>
    %812 = arith.mulf %805, %4 : vector<16x16xf32>
    %813 = arith.mulf %800, %811 : vector<16x16xf32>
    %814 = arith.addf %812, %813 : vector<16x16xf32>
    %815 = math.tanh %814 : vector<16x16xf32>
    %816 = arith.mulf %810, %815 : vector<16x16xf32>
    %c0_51 = arith.constant 0 : index
    %c0_52 = arith.constant 0 : index
    %817 = vector.load %arg7[%c0_51, %c0_52] : memref<16x16xf32, #tpu.memory_space<vmem>>, vector<16x16xf32>
    tpu.vector_store %arg7[%c0_51, %c0_52], %816 {strides = array<i32>} : memref<16x16xf32, #tpu.memory_space<vmem>>, vector<16x16xf32>,
    %c0_53 = arith.constant 0 : index
    %c0_54 = arith.constant 0 : index
    %818 = vector.load %arg8[%c0_53, %c0_54] : memref<16x16xf32, #tpu.memory_space<vmem>>, vector<16x16xf32>
    tpu.vector_store %arg8[%c0_53, %c0_54], %814 {strides = array<i32>} : memref<16x16xf32, #tpu.memory_space<vmem>>, vector<16x16xf32>,
    %c0_55 = arith.constant 0 : index
    %c0_56 = arith.constant 0 : index
    %c0_57 = arith.constant 0 : index
    %c0_58 = arith.constant 0 : index
    %819 = vector.load %arg5[%c0_55, %c0_56, %c0_57, %c0_58] : memref<1x1x16x16xf32, #tpu.memory_space<vmem>>, vector<1x1x16x16xf32>
    %820 = vector.shape_cast %819 : vector<1x1x16x16xf32> to vector<16x16xf32>
    %821 = vector.shape_cast %816 : vector<16x16xf32> to vector<1x1x16x16xf32>
    tpu.vector_store %arg5[%c0_55, %c0_56, %c0_57, %c0_58], %821 {strides = array<i32>} : memref<1x1x16x16xf32, #tpu.memory_space<vmem>>, vector<1x1x16x16xf32>,
    %c0_59 = arith.constant 0 : index
    %c0_60 = arith.constant 0 : index
    %c0_61 = arith.constant 0 : index
    %822 = vector.load %arg6[%c0_59, %c0_60, %c0_61] : memref<1x16x16xf32, #tpu.memory_space<vmem>>, vector<1x16x16xf32>
    %823 = vector.shape_cast %822 : vector<1x16x16xf32> to vector<16x16xf32>
    %824 = vector.shape_cast %814 : vector<16x16xf32> to vector<1x16x16xf32>
    tpu.vector_store %arg6[%c0_59, %c0_60, %c0_61], %824 {strides = array<i32>} : memref<1x16x16xf32, #tpu.memory_space<vmem>>, vector<1x16x16xf32>,
    return
  }
  func.func @transform_0(%arg0: i32, %arg1: i32) -> i32 {
    %c0_i32 = arith.constant 0 : i32
    %c0_i32_0 = arith.constant 0 : i32
    return %c0_i32 : i32
  }
  func.func @transform_1(%arg0: i32, %arg1: i32) -> i32 {
    %c0_i32 = arith.constant 0 : i32
    %c0_i32_0 = arith.constant 0 : i32
    return %c0_i32 : i32
  }
  func.func @transform_2(%arg0: i32, %arg1: i32) -> (i32, i32, i32, i32, i32) {
    %c0_i32 = arith.constant 0 : i32
    %c0_i32_0 = arith.constant 0 : i32
    %c0_i32_1 = arith.constant 0 : i32
    %c0_i32_2 = arith.constant 0 : i32
    return %arg0, %arg1, %c0_i32, %c0_i32_0, %c0_i32_1 : i32, i32, i32, i32, i32
  }
  func.func @transform_3(%arg0: i32, %arg1: i32) -> (i32, i32, i32, i32) {
    %c0_i32 = arith.constant 0 : i32
    %c0_i32_0 = arith.constant 0 : i32
    %c0_i32_1 = arith.constant 0 : i32
    return %arg0, %arg1, %c0_i32, %c0_i32_0 : i32, i32, i32, i32
  }
  func.func @transform_4(%arg0: i32, %arg1: i32) -> (i32, i32, i32) {
    %c0_i32 = arith.constant 0 : i32
    %c0_i32_0 = arith.constant 0 : i32
    %c0_i32_1 = arith.constant 0 : i32
    return %arg0, %c0_i32, %c0_i32_0 : i32, i32, i32
  }
}

</mosaic_0001>

<bundles_post_ra>
// kernel: nano_lstm_forward.9
= control target key start
LH: loop header
LB: loop body
LE: loop exit
PB: predicated region body
PF: predicated region fallthrough
CT: control target
= control target key end

     0   :  { %s2848_s0 = inlined_call_operand.vmem [shape: f32[72], index: 0, kind: input, shape index: {}]   ;;  %s2849_s1 = inlined_call_operand.vmem [shape: f32[4], index: 1, kind: input, shape index: {}]   ;;  %s2850_s2 = inlined_call_operand.vmem [shape: f32[2,4,1,16,16], index: 2, kind: input, shape index: {}]   ;;  %s2851_s3 = inlined_call_operand.vmem [shape: f32[2,4,16,16], index: 3, kind: output, shape index: {0}]   ;;  %s2852_s4 = inlined_call_operand.hbm [shape: f32[2,16,16], index: 4, kind: output, shape index: {1}]  }
   0x1   :  { %2857 = sst [smem:[#allocation14_spill]] %s2848_s0 }
   0x2   :  { %2858 = sst [smem:[#allocation15_spill]] %s2849_s1 }
   0x3   :  { %10 = vsyncpa [#allocation7], 0 }
   0x4   :  { %11 = vsyncpa [#allocation9], 0 }
   0x5   :  { %12 = vsyncpa [#allocation6], 0 }
   0x6   :  { %14 = vsyncpa [#allocation6 + $0x1], 0  ;;  %s2145_s15 = smov 0   ;;  %s2147_s16 = smov 0  }
   0x7   :  { %s2149_s17 = smov 0   ;;  %s2151_s18 = smov 0  }
   0x8   :  { %s2153_s19 = smov 0   ;;  %s2155_s20 = smov 0  }
   0x9   :  { %s2157_s21 = smov 0   ;;  %s2159_s22 = smov 0  }
   0xa LB: > { %s1741_s23 = sadd.s32 4294967295, %s2109_s22   ;;  %s1742_s24 = sadd.s32 4294967294, %s2109_s22   ;;  %s2109_s22 = sphi %s2159_s22, %s20_s22   ;;  %s2105_s21 = sphi %s2157_s21, %s2876_s21   ;;  %s2101_s20 = sphi %s2155_s20, %s2875_s20   ;;  %s2097_s19 = sphi %s2153_s19, %s2874_s19   ;;  %s2093_s18 = sphi %s2151_s18, %s2873_s18   ;;  %s2089_s17 = sphi %s2149_s17, %s2872_s17   ;;  %s2085_s16 = sphi %s2147_s16, %s2871_s16   ;;  %s2081_s15 = sphi %s2145_s15, %s2870_s15  }
   0xb   : > { %s29_s25 = sadd.s32 1, %s2101_s20  ;;  %s32_s26 = sadd.s32 1, %s2105_s21 }
   0xc   : > { %p30_p0 = scmp.ge.s32.totalorder %s29_s25, 4  ;;  %s137_s27 = sadd.s32 1, %s2089_s17 }
   0xd   : > { %p147_p1 = scmp.ne.s32.totalorder %s2089_s17, %s2085_s16  ;;  %p148_p2 = scmp.eq.s32.totalorder %s1741_s23, 7 }
   0xe   : > { %s2878_s25 = smov (%p30_p0, %s29_s25), 0  ;;  %s2880_s26 = smov (!%p30_p0, %s32_s26), %s2105_s21 }
   0xf   : > { %p2195_p3 = por %p148_p2, %p147_p1  ;;  %p153_p4 = scmp.ne.s32.totalorder %s2085_s16, %s2081_s15 }
  0x10   : > { %p34_p5 = scmp.ge.s32.totalorder %s2880_s26, 2  ;;  %p154_p6 = scmp.eq.s32.totalorder %s1742_s24, 7 }
  0x11   : > { %s2859_s28 = scalar_select %p2195_p3, 1, 0 }
  0x12   : > { %p1743_p7 = scmp.ge.s32.totalorder %s2109_s22, 1  ;;  %p161_p8 = scmp.lt.s32.totalorder %s2109_s22, 9 }
  0x13   : > { %s2882_s26 = smov (%p34_p5, %s2880_s26), 0  ;;  %p2205_p9 = por %p154_p6, %p153_p4 }
  0x14   : > { %p2209_p10 = pnand %p1743_p7, %p161_p8  ;;  %s134_s5 = ssub.s32 %s2105_s21, %s2882_s26 }
  0x15   : > { %s2860_s29 = scalar_select %p2205_p9, 1, 0 }
  0x16   : > { %s2861_s30 = scalar_select %p2209_p10, 1, 0 }
  0x17   : > { %p135_p11 = scmp.eq.s32.totalorder %s134_s5, 0  ;;  %p1854_p12 = pneg %p2209_p10 }
  0x18   : > { %p2217_p13 = scmp.eq.s32.totalorder %s1741_s23, 0  ;;  %s2863_s0 = sld [smem:[#allocation14_spill]] }
  0x19   : > { %s2225_s10 = scalar_select %p135_p11, %s2089_s17, %s137_s27  }
  0x1a   : > { %s2862_s6 = scalar_select %p2217_p13, 1, 0 }
  0x1b   : > { %p2229_p0 = pnand %p2217_p13, %p1854_p12  ;;  %s2865_s1 = sld [smem:[#allocation15_spill]] }
  0x1d   : > { %p1979_p2 = pneg %p2229_p0 }
  0x1e   : > { %s174_s9 = sshll.u32 %s2863_s0, 4  ;;  %s175_s9 = int_to_ptr.vmem [resolvable:$true] %s174_s9 }
  0x1f   : > { %s1977_s23 = scalar_lea.vmem %s175_s9, 16  ;;  %p1985_p6 = scmp.lt.s32.totalorder %s175_s9, %s175_s9 }
  0x20   : > { %p1978_p1 = scmp.ne.s32.totalorder %s175_s9, %s1977_s23  ;;  %p1986_p7 = scmp.lt.s32.totalorder %s1977_s23, %s1977_s23 }
  0x21   : > { %s185_s14 = sshll.u32 %s2865_s1, 4  ;;  %s186_s14 = int_to_ptr.vmem [resolvable:$true] %s185_s14 }
  0x22   : > { %p1980_p4 = pnand %p1979_p2, %p1978_p1  ;;  %p1987_p8 = por %p1986_p7, %p1985_p6 }
  0x24   : > { %p1981_p5 = pneg %p1980_p4 }
  0x26   : > { %p1988_p11 = pnand %p1987_p8, %p1981_p5 }
  0x28   : > { %1991 = shalt.err (!%p1988_p11)
}
  0x29   : > { %s2111_s24 = smov [#allocation5]   ;;  %s1992_s27 = scalar_lea.vmem %s186_s14, 16 }
  0x2a   : > { %1857 = dma.vmem_to_smem (!%p2229_p0), %s175_s9, 16, %s2111_s24, [#allocation7]  }
  0x2b   : > { %p1993_p12 = scmp.ne.s32.totalorder %s186_s14, %s1992_s27  ;;  %p2000_p13 = scmp.lt.s32.totalorder %s186_s14, %s186_s14 }
  0x2c   : > { %p2001_p10 = scmp.lt.s32.totalorder %s1992_s27, %s1992_s27 }
  0x2d   : > { %p1995_p9 = pnand %p1993_p12, %p1979_p2 }
  0x2e   : > { %p2002_p1 = por %p2001_p10, %p2000_p13 }
  0x2f   : > { %p1996_p3 = pneg %p1995_p9 }
  0x31   : > { %p2003_p4 = pnand %p2002_p1, %p1996_p3 }
  0x33   : > { %2006 = shalt.err (!%p2003_p4)
}
  0x34   : > { %s2112_s5 = smov [#allocation8]   ;;  %p2866_p5 = scmp.ne.s32.totalorder %s2861_s30, 0 }
  0x35   : > { %1860 = dma.vmem_to_smem (!%p2229_p0), %s186_s14, 16, %s2112_s5, [#allocation9]  }
  0x36   : > { %210 = sbr.rel (%p2866_p5) target bundleno = 619 (0x26b), region = 32  ;;  %p2867_p6 = scmp.ne.s32.totalorder (!%p2866_p5), %s2862_s6, 0 }
  0x3d   : > { %2068 = dma.done.wait (%p2867_p6), [#allocation7], 16  }
  0x3e   : > { %2070 = vsyncadd (%p2867_p6), [#allocation7], 4294967280 }
  0x3f   : > { %2072 = dma.done.wait (%p2867_p6), [#allocation9], 16  }
  0x40   : > { %2074 = vsyncadd (%p2867_p6), [#allocation9], 4294967280 }
  0x41   : > { %220 = sfence }
  0x42   : > { %s251_s30 = sand.u32 1, %s2085_s16   ;;  %p254_p3 = scmp.lt.s32.totalorder %s2097_s19, 1 }
  0x43   : > { %s1750_s7 = sshll.u32 %s251_s30, 4  ;;  %p256_p9 = scmp.lt.s32.totalorder %s2093_s18, 3 }
  0x44   : > { %s255_s8 = scalar_select %p254_p3, %s2097_s19, 1 }
  0x45   : > { %s257_s9 = scalar_select %p256_p9, %s2093_s18, 3 }
  0x46   : > { %s1752_s11 = sshll.u32 %s255_s8, 3  ;;  %s2267_s1 = scalar_lea.vmem [#allocation10], %s1750_s7 }
  0x47   : > { %s1751_s12 = sshll.u32 %s257_s9, 1  ;;  %p1757_p10 = scmp.ne.s32.totalorder %s2093_s18, 0 }
  0x48   : > { %s260_s13 = sadd.s32 %s1752_s11, %s1751_s12  ;;  %vm276_vm0 = vcmask (!%p1757_p10), 130048   ;;  %vm281_vm1 = vcmask (!%p1757_p10), 146432   ;;  %vm284_vm2 = vcmask (!%p1757_p10), 140288   ;;  %v2113_v0 = vmov (!%p1757_p10), 0.0  }
  0x49   : > { %s1753_s14 = sshll.u32 %s260_s13, 3  ;;  %275 = sbr.rel (%p1757_p10) target bundleno = 80 (0x50), region = 44  ;;  %277 = vst.msk [vmem:[#allocation2] sm:$0xff] (!%p1757_p10), %vm276_vm0, %v2113_v0  ;;  %278 = vst.msk [vmem:[#allocation2 + $0x8] sm:$0xff] (!%p1757_p10), %vm276_vm0, %v2113_v0 }
  0x4a   : > { %s262_s24 = scalar_lea.vmem %s2850_s2, %s1753_s14  ;;  %s2265_s0 = scalar_lea.vmem %s2851_s3, %s1753_s14  ;;  %279 = vst.msk [vmem:[#allocation3] sm:$0xff] (!%p1757_p10), %vm276_vm0, %v2113_v0  ;;  %280 = vst.msk [vmem:[#allocation3 + $0x8] sm:$0xff] (!%p1757_p10), %vm276_vm0, %v2113_v0 }
  0x4b   : > { %282 = vst.msk [vmem:[#allocation4] sm:$0xff] (!%p1757_p10), %vm281_vm1, %v2113_v0  ;;  %283 = vst.msk [vmem:[#allocation4 + $0x8] sm:$0xff] (!%p1757_p10), %vm281_vm1, %v2113_v0 }
  0x4c   : > { %285 = vst.msk [vmem:[#allocation4 + $0x10] sm:$0x3] (!%p1757_p10), %vm284_vm2, %v2113_v0 }
  0x50 PF: > { %v298_v1 = vld [vmem:[%s262_s24] sm:$0xff]  ;;  %s2114_s8 = smov 1   ;;  %v299_v3 = vld [vmem:[%s262_s24 + $0x8] sm:$0xff]  ;;  %vm308_vm3 = vcmask 138248   ;;  %s1762_s18 = sld [smem:[#allocation5 + $0x2]]  ;;  %vm439_vm4 = vcmask 1046528  }
  0x51   : > { %302 = vrot.lane.b32.xlu0 %v298_v1, %s2114_s8  ;;  %v286_v2 = vld [vmem:[#allocation2] sm:$0xff]  ;;  %v287_v4 = vld [vmem:[#allocation2 + $0x8] sm:$0xff]  ;;  %s1761_s7 = sld [smem:[#allocation5 + $0x1]]  ;;  %s1764_s9 = sld [smem:[#allocation5 + $0x4]]  ;;  %vm452_vm5 = vcmask 1045504   ;;  %vm1561_vm6 = vcmask 130048  }
  0x52   : > { %910 = vrot.lane.b32.xlu1 %v286_v2, %s2114_s8  ;;  %s2115_s11 = smov 126   ;;  %s2116_s12 = smov 127  }
  0x53   : > { %s1765_s13 = sld [smem:[#allocation5 + $0x5]]  ;;  %s1767_s14 = sld [smem:[#allocation5 + $0x7]] }
  0x54   : > { %s1768_s6 = sld [smem:[#allocation5 + $0x8]]  ;;  %s1770_s23 = sld [smem:[#allocation5 + $0x13]] }
  0x55   : > { %304 = vrot.lane.b32.xlu0 %v299_v3, %s2114_s8  ;;  %s1771_s24 = sld [smem:[#allocation5 + $0x14]]  ;;  %s1773_s27 = sld [smem:[#allocation5 + $0x16]] }
  0x56   : > { %v333_v7 = vstv %s1762_s18  ;;  %s1774_s5 = sld [smem:[#allocation5 + $0x17]]  ;;  %s1777_s18 = sld [smem:[#allocation5 + $0x1a]] }
  0x57   : > { %v319_v8 = vstv %s1761_s7  ;;  %v352_v12 = vstv %s1764_s9  ;;  %s1779_s7 = sld [smem:[#allocation5 + $0x25]]  ;;  %s1780_s9 = sld [smem:[#allocation5 + $0x26]] }
  0x58   : > { %p2868_p0 = scmp.ne.s32.totalorder %s2859_s28, 0 }
  0x59   : > { %912 = vrot.lane.b32.xlu0 %v287_v4, %s2114_s8  ;;  %v372_v21 = vstv %s1765_s13  ;;  %v397_v24 = vstv %s1767_s14  ;;  %s1776_s8 = sld [smem:[#allocation5 + $0x19]]  ;;  %s1782_s13 = sld [smem:[#allocation5 + $0x28]] }
  0x5a   : > { %v417_v29 = vstv %s1768_s6  ;;  %v469_v32 = vstv %s1770_s23  ;;  %s1783_s14 = sld [smem:[#allocation5 + $0x29]]  ;;  %s1785_s6 = sld [smem:[#allocation5 + $0x2b]] }
  0x5b   : > { %v483_v35 = vstv %s1771_s24  ;;  %v502_v38 = vstv %s1773_s27  ;;  %s1786_s23 = sld [smem:[#allocation5 + $0x2c]]  ;;  %s1788_s24 = sld [smem:[#allocation5 + $0x37]] }
  0x5c   : > { %v522_v43 = vstv %s1774_s5  ;;  %v567_v51 = vstv %s1777_s18  ;;  %s1789_s27 = sld [smem:[#allocation5 + $0x38]]  ;;  %s1791_s5 = sld [smem:[#allocation5 + $0x3a]] }
  0x5d   : > { %v617_v54 = vstv %s1779_s7  ;;  %v631_v57 = vstv %s1780_s9  ;;  %s1794_s18 = sld [smem:[#allocation5 + $0x3d]]  ;;  %s1795_s7 = sld [smem:[#allocation5 + $0x3e]] }
  0x5e   : > { %s2394_s9 = sld [smem:[#allocation5 + $0xa]] }
  0x5f   : > { %v547_v46 = vstv %s1776_s8  ;;  %v650_v60 = vstv %s1782_s13  ;;  %s1792_s8 = sld [smem:[#allocation5 + $0x3b]] }
  0x60   : > { %v670_v1 = vstv %s1783_s14  ;;  %v695_v4 = vstv %s1785_s6  ;;  %s2400_s13 = sld [smem:[#allocation5 + $0xb]]  ;;  %s2404_s6 = sld [smem:[#allocation5]] }
  0x61   : > { %s1763_s14 = sld [smem:[#allocation5 + $0x3]] }
  0xc3   : > { %v303_v5 = vpop.permute.xlu0 %302 }
  0xc4   : > { %309 = vst.msk [vmem:[#allocation4 + $0x1] sm:$0xff] %vm308_vm3, %v303_v5  ;;  %v911_v14 = vpop.permute.xlu1 %910 }
  0xc7   : > { %v305_v6 = vpop.permute.xlu0 %304 }
  0xc8   : > { %310 = vst.msk [vmem:[#allocation4 + $0x9] sm:$0xff] %vm308_vm3, %v305_v6 }
  0xcb   : > { %v2272_v9 = vld [vmem:[#allocation4] sm:$0xff]  ;;  %v913_v13 = vpop.permute.xlu0 %912 }
  0xcc   : > { %v334_v10 = vmul.f32 %v333_v7, %v2272_v9  ;;  %v320_v11 = vmul.f32 %v319_v8, %v2272_v9  ;;  %v353_v17 = vmul.f32 %v352_v12, %v2272_v9  ;;  %v398_v25 = vmul.f32 %v397_v24, %v2272_v9 }
  0xcd   : > { %v373_v26 = vmul.f32 %v372_v21, %v2272_v9  ;;  %v470_v33 = vmul.f32 %v469_v32, %v2272_v9  ;;  %v418_v34 = vmul.f32 %v417_v29, %v2272_v9  ;;  %v484_v36 = vmul.f32 %v483_v35, %v2272_v9 }
  0xce   : > { %338 = vrot.lane.b32.xlu0 %v334_v10, %s2115_s11  ;;  %324 = vrot.lane.b32.xlu1 %v320_v11, %s2116_s12  ;;  %v503_v39 = vmul.f32 %v502_v38, %v2272_v9  ;;  %v548_v47 = vmul.f32 %v547_v46, %v2272_v9  ;;  %v523_v48 = vmul.f32 %v522_v43, %v2272_v9  ;;  %v715_v10 = vstv %s1786_s23  ;;  %s1800_s23 = sld [smem:[#allocation5 + $0xd]] }
  0xcf   : > { %v2278_v15 = vld [vmem:[#allocation4 + $0x8] sm:$0xff]  ;;  %v2280_v16 = vld [vmem:[#allocation4 + $0x10] sm:$0x3]  ;;  %v618_v55 = vmul.f32 %v617_v54, %v2272_v9  ;;  %v568_v56 = vmul.f32 %v567_v51, %v2272_v9  ;;  %v632_v58 = vmul.f32 %v631_v57, %v2272_v9  ;;  %v651_v61 = vmul.f32 %v650_v60, %v2272_v9 }
  0xd0   : > { %v321_v18 = vmul.f32 %v319_v8, %v2278_v15  ;;  %917 = vst.msk [vmem:[#allocation4 + $0x9] sm:$0xff] %vm308_vm3, %v913_v13  ;;  %916 = vst.msk [vmem:[#allocation4 + $0x1] sm:$0xff] %vm308_vm3, %v911_v14  ;;  %v355_v19 = vmul.f32 %v352_v12, %v2280_v16  ;;  %v335_v20 = vmul.f32 %v333_v7, %v2278_v15  ;;  %v765_v13 = vstv %s1788_s24  ;;  %s1809_s24 = sld [smem:[#allocation5 + $0x1f]] }
  0xd1   : > { %v374_v22 = vmul.f32 %v372_v21, %v2278_v15  ;;  %v354_v23 = vmul.f32 %v352_v12, %v2278_v15  ;;  %v400_v27 = vmul.f32 %v397_v24, %v2280_v16  ;;  %v375_v28 = vmul.f32 %v372_v21, %v2280_v16 }
  0xd2   : > { %359 = vrot.lane.b32.xlu0 %v353_v17, %s2116_s12  ;;  %326 = vrot.lane.b32.xlu1 %v321_v18, %s2116_s12  ;;  %v419_v30 = vmul.f32 %v417_v29, %v2278_v15  ;;  %v399_v31 = vmul.f32 %v397_v24, %v2278_v15  ;;  %v420_v37 = vmul.f32 %v417_v29, %v2280_v16  ;;  %v779_v18 = vstv %s1789_s27  ;;  %s1766_s27 = sld [smem:[#allocation5 + $0x6]] }
  0xd3   : > { %v471_v40 = vmul.f32 %v469_v32, %v2278_v15  ;;  %v505_v41 = vmul.f32 %v502_v38, %v2280_v16  ;;  %v485_v42 = vmul.f32 %v483_v35, %v2278_v15  ;;  %v524_v44 = vmul.f32 %v522_v43, %v2278_v15 }
  0xd4   : > { %v504_v45 = vmul.f32 %v502_v38, %v2278_v15  ;;  %v550_v49 = vmul.f32 %v547_v46, %v2280_v16  ;;  %v525_v50 = vmul.f32 %v522_v43, %v2280_v16  ;;  %v569_v52 = vmul.f32 %v567_v51, %v2278_v15 }
  0xd5   : > { %v549_v53 = vmul.f32 %v547_v46, %v2278_v15  ;;  %v570_v59 = vmul.f32 %v567_v51, %v2280_v16  ;;  %v619_v62 = vmul.f32 %v617_v54, %v2278_v15  ;;  %v653_v63 = vmul.f32 %v650_v60, %v2280_v16 }
  0xd6   : > { %363 = vrot.lane.b32.xlu0 %v355_v19, %s2116_s12  ;;  %340 = vrot.lane.b32.xlu1 %v335_v20, %s2115_s11  ;;  %v633_v0 = vmul.f32 %v631_v57, %v2278_v15  ;;  %v672_v2 = vmul.f32 %v670_v1, %v2278_v15  ;;  %v652_v3 = vmul.f32 %v650_v60, %v2278_v15  ;;  %v798_v21 = vstv %s1791_s5  ;;  %s2433_s5 = sld [smem:[#allocation5 + $0xe]] }
  0xd7   : > { %v696_v5 = vmul.f32 %v695_v4, %v2272_v9  ;;  %v671_v6 = vmul.f32 %v670_v1, %v2272_v9  ;;  %v698_v7 = vmul.f32 %v695_v4, %v2280_v16  ;;  %v673_v8 = vmul.f32 %v670_v1, %v2280_v16 }
  0xd8   : > { %v717_v11 = vmul.f32 %v715_v10, %v2278_v15  ;;  %v697_v12 = vmul.f32 %v695_v4, %v2278_v15  ;;  %v766_v14 = vmul.f32 %v765_v13, %v2272_v9  ;;  %v716_v17 = vmul.f32 %v715_v10, %v2272_v9 }
  0xd9   : > { %v780_v19 = vmul.f32 %v779_v18, %v2272_v9  ;;  %v718_v20 = vmul.f32 %v715_v10, %v2280_v16  ;;  %v801_v24 = vmul.f32 %v798_v21, %v2280_v16  ;;  %v843_v29 = vstv %s1794_s18  ;;  %s1810_s18 = sld [smem:[#allocation5 + $0x20]] }
  0xda   : > { %381 = vrot.lane.b32.xlu0 %v374_v22, %s2115_s11  ;;  %361 = vrot.lane.b32.xlu1 %v354_v23, %s2116_s12  ;;  %v799_v22 = vmul.f32 %v798_v21, %v2272_v9  ;;  %v767_v23 = vmul.f32 %v765_v13, %v2278_v15 }
  0xde   : > { %404 = vrot.lane.b32.xlu0 %v398_v25, %s2116_s12  ;;  %379 = vrot.lane.b32.xlu1 %v373_v26, %s2115_s11  ;;  %v781_v25 = vmul.f32 %v779_v18, %v2278_v15  ;;  %v818_v26 = vstv %s1792_s8  ;;  %s1803_s8 = sld [smem:[#allocation5 + $0x10]] }
  0xdf   : > { %v821_v35 = vmul.f32 %v818_v26, %v2280_v16 }
  0xe2   : > { %408 = vrot.lane.b32.xlu0 %v400_v27, %s2116_s12  ;;  %383 = vrot.lane.b32.xlu1 %v375_v28, %s2115_s11  ;;  %v820_v27 = vmul.f32 %v818_v26, %v2278_v15  ;;  %v800_v28 = vmul.f32 %v798_v21, %v2278_v15 }
  0xe6   : > { %426 = vrot.lane.b32.xlu0 %v419_v30, %s2115_s11  ;;  %406 = vrot.lane.b32.xlu1 %v399_v31, %s2116_s12  ;;  %v844_v30 = vmul.f32 %v843_v29, %v2272_v9  ;;  %v819_v31 = vmul.f32 %v818_v26, %v2272_v9 }
  0xea   : > { %474 = vrot.lane.b32.xlu0 %v470_v33, %s2116_s12  ;;  %424 = vrot.lane.b32.xlu1 %v418_v34, %s2115_s11  ;;  %v846_v34 = vmul.f32 %v843_v29, %v2280_v16 }
  0xee   : > { %488 = vrot.lane.b32.xlu0 %v484_v36, %s2115_s11  ;;  %428 = vrot.lane.b32.xlu1 %v420_v37, %s2115_s11  ;;  %v863_v36 = vstv %s1795_s7  ;;  %s1772_s7 = sld [smem:[#allocation5 + $0x15]] }
  0xf2   : > { %509 = vrot.lane.b32.xlu0 %v503_v39, %s2116_s12  ;;  %476 = vrot.lane.b32.xlu1 %v471_v40, %s2116_s12  ;;  %v865_v39 = vmul.f32 %v863_v36, %v2278_v15  ;;  %v845_v40 = vmul.f32 %v843_v29, %v2278_v15 }
  0xf6   : > { %513 = vrot.lane.b32.xlu0 %v505_v41, %s2116_s12  ;;  %490 = vrot.lane.b32.xlu1 %v485_v42, %s2115_s11  ;;  %v2408_v41 = vld [vmem:[#allocation4] sm:$0xff]  ;;  %v926_v42 = vstv %s2394_s9  ;;  %s2467_s9 = sld [smem:[#allocation5 + $0x12]] }
  0xf7   : > { %v927_v46 = vmul.f32 %v926_v42, %v2408_v41 }
  0xfa   : > { %531 = vrot.lane.b32.xlu0 %v524_v44, %s2115_s11  ;;  %511 = vrot.lane.b32.xlu1 %v504_v45, %s2116_s12  ;;  %v864_v45 = vmul.f32 %v863_v36, %v2272_v9 }
  0xfe   : > { %554 = vrot.lane.b32.xlu0 %v548_v47, %s2116_s12  ;;  %529 = vrot.lane.b32.xlu1 %v523_v48, %s2115_s11  ;;  %v940_v47 = vstv %s2400_s13  ;;  %v347_v48 = vstv %s1763_s14  ;;  %s1812_s13 = sld [smem:[#allocation5 + $0x22]]  ;;  %s2476_s14 = sld [smem:[#allocation5 + $0x1c]] }
  0xff   : > { %v941_v54 = vmul.f32 %v940_v47, %v2408_v41  ;;  %v350_v4 = vmul.f32 %v347_v48, %v2280_v16 }
 0x102   : > { %558 = vrot.lane.b32.xlu0 %v550_v49, %s2116_s12  ;;  %533 = vrot.lane.b32.xlu1 %v525_v50, %s2115_s11  ;;  %v315_v49 = vstv %s2404_s6  ;;  %v349_v50 = vmul.f32 %v347_v48, %v2278_v15  ;;  %s1804_s6 = sld [smem:[#allocation5 + $0x11]] }
 0x106   : > { %576 = vrot.lane.b32.xlu0 %v569_v52, %s2115_s11  ;;  %556 = vrot.lane.b32.xlu1 %v549_v53, %s2116_s12  ;;  %v866_v53 = vmul.f32 %v863_v36, %v2280_v16 }
 0x10a   : > { %622 = vrot.lane.b32.xlu0 %v618_v55, %s2116_s12  ;;  %574 = vrot.lane.b32.xlu1 %v568_v56, %s2115_s11  ;;  %v2422_v55 = vld [vmem:[#allocation4 + $0x8] sm:$0xff]  ;;  %v348_v56 = vmul.f32 %v347_v48, %v2272_v9 }
 0x10b   : > { %v928_v1 = vmul.f32 %v926_v42, %v2422_v55 }
 0x10e   : > { %636 = vrot.lane.b32.xlu0 %v632_v58, %s2115_s11  ;;  %578 = vrot.lane.b32.xlu1 %v570_v59, %s2115_s11  ;;  %v959_v58 = vstv %s1800_s23  ;;  %v316_v59 = vmul.f32 %v315_v49, %v2272_v9  ;;  %s1775_s23 = sld [smem:[#allocation5 + $0x18]] }
 0x10f   : > { %v961_v29 = vmul.f32 %v959_v58, %v2422_v55 }
 0x112   : > { %657 = vrot.lane.b32.xlu0 %v651_v61, %s2116_s12  ;;  %624 = vrot.lane.b32.xlu1 %v619_v62, %s2116_s12 }
 0x116   : > { %661 = vrot.lane.b32.xlu0 %v653_v63, %s2116_s12  ;;  %638 = vrot.lane.b32.xlu1 %v633_v0, %s2115_s11 }
 0x11a   : > { %679 = vrot.lane.b32.xlu0 %v672_v2, %s2115_s11  ;;  %659 = vrot.lane.b32.xlu1 %v652_v3, %s2116_s12  ;;  %v960_v2 = vmul.f32 %v959_v58, %v2408_v41  ;;  %v2430_v3 = vld [vmem:[#allocation4 + $0x10] sm:$0x3] }
 0x11e   : > { %702 = vrot.lane.b32.xlu0 %v696_v5, %s2116_s12  ;;  %677 = vrot.lane.b32.xlu1 %v671_v6, %s2115_s11 }
 0x122   : > { %706 = vrot.lane.b32.xlu0 %v698_v7, %s2116_s12  ;;  %681 = vrot.lane.b32.xlu1 %v673_v8, %s2115_s11 }
 0x126   : > { %724 = vrot.lane.b32.xlu0 %v717_v11, %s2115_s11  ;;  %704 = vrot.lane.b32.xlu1 %v697_v12, %s2116_s12  ;;  %v317_v11 = vmul.f32 %v315_v49, %v2278_v15 }
 0x12a   : > { %770 = vrot.lane.b32.xlu0 %v766_v14, %s2116_s12  ;;  %722 = vrot.lane.b32.xlu1 %v716_v17, %s2115_s11  ;;  %v942_v14 = vmul.f32 %v940_v47, %v2422_v55  ;;  %v962_v17 = vmul.f32 %v959_v58, %v2430_v3 }
 0x12e   : > { %784 = vrot.lane.b32.xlu0 %v780_v19, %s2115_s11  ;;  %726 = vrot.lane.b32.xlu1 %v718_v20, %s2115_s11  ;;  %v1107_v20 = vstv %s1809_s24  ;;  %s2490_s24 = sld [smem:[#allocation5 + $0x24]] }
 0x132   : > { %805 = vrot.lane.b32.xlu0 %v799_v22, %s2116_s12  ;;  %772 = vrot.lane.b32.xlu1 %v767_v23, %s2116_s12  ;;  %v392_v22 = vstv %s1766_s27  ;;  %s2501_s27 = sld [smem:[#allocation5 + $0x23]] }
 0x136   : > { %809 = vrot.lane.b32.xlu0 %v801_v24, %s2116_s12  ;;  %786 = vrot.lane.b32.xlu1 %v781_v25, %s2115_s11  ;;  %v394_v25 = vmul.f32 %v392_v22, %v2278_v15 }
 0x13a   : > { %827 = vrot.lane.b32.xlu0 %v820_v27, %s2115_s11  ;;  %807 = vrot.lane.b32.xlu1 %v800_v28, %s2116_s12 }
 0x13e   : > { %850 = vrot.lane.b32.xlu0 %v844_v30, %s2116_s12  ;;  %825 = vrot.lane.b32.xlu1 %v819_v31, %s2115_s11  ;;  %v1109_v30 = vmul.f32 %v1107_v20, %v2422_v55  ;;  %v393_v31 = vmul.f32 %v392_v22, %v2272_v9 }
 0x140   : > { %v339_v32 = vpop.permute.xlu0 %338  ;;  %v325_v33 = vpop.permute.xlu1 %324 }
 0x141   : > { %v330_v62 = vadd.f32 %v325_v33, %v316_v59 }
 0x142   : > { %854 = vrot.lane.b32.xlu0 %v846_v34, %s2116_s12  ;;  %829 = vrot.lane.b32.xlu1 %v821_v35, %s2115_s11  ;;  %v979_v34 = vstv %s2433_s5  ;;  %s1781_s5 = sld [smem:[#allocation5 + $0x27]] }
 0x143   : > { %v344_v10 = vadd.f32 %v339_v32, %v330_v62  ;;  %v980_v42 = vmul.f32 %v979_v34, %v2408_v41 }
 0x144   : > { %v360_v37 = vpop.permute.xlu0 %359  ;;  %v327_v38 = vpop.permute.xlu1 %326 }
 0x145   : > { %v368_v60 = vadd.f32 %v360_v37, %v348_v56  ;;  %v331_v21 = vadd.f32 %v327_v38, %v317_v11 }
 0x146   : > { %872 = vrot.lane.b32.xlu0 %v865_v39, %s2115_s11  ;;  %852 = vrot.lane.b32.xlu1 %v845_v40, %s2116_s12  ;;  %v1108_v40 = vmul.f32 %v1107_v20, %v2408_v41 }
 0x148   : > { %v364_v43 = vpop.permute.xlu0 %363  ;;  %v341_v44 = vpop.permute.xlu1 %340 }
 0x149   : > { %v370_v6 = vadd.f32 %v364_v43, %v350_v4  ;;  %v345_v26 = vadd.f32 %v341_v44, %v331_v21  ;;  %v395_v43 = vmul.f32 %v392_v22, %v2280_v16 }
 0x14a   : > { %870 = vrot.lane.b32.xlu1 %v864_v45, %s2115_s11  ;;  %931 = vrot.lane.b32.xlu0 %v927_v46, %s2116_s12 }
 0x14c   : > { %v382_v51 = vpop.permute.xlu0 %381  ;;  %v362_v52 = vpop.permute.xlu1 %361 }
 0x14d   : > { %v369_v57 = vadd.f32 %v362_v52, %v349_v50  ;;  %v1110_v50 = vmul.f32 %v1107_v20, %v2430_v3 }
 0x14e   : > { %874 = vrot.lane.b32.xlu1 %v866_v53, %s2115_s11  ;;  %945 = vrot.lane.b32.xlu0 %v941_v54, %s2115_s11  ;;  %v1004_v54 = vstv %s1803_s8  ;;  %s2511_s8 = sld [smem:[#allocation5 + $0x1d]] }
 0x14f   : > { %v389_v61 = vadd.f32 %v382_v51, %v369_v57  ;;  %v982_v51 = vmul.f32 %v979_v34, %v2430_v3  ;;  %v1005_v4 = vmul.f32 %v1004_v54, %v2408_v41  ;;  %v1007_v11 = vmul.f32 %v1004_v54, %v2430_v3 }
 0x150   : > { %v405_v63 = vpop.permute.xlu0 %404  ;;  %v380_v0 = vpop.permute.xlu1 %379 }
 0x151   : > { %v388_v5 = vadd.f32 %v380_v0, %v368_v60  ;;  %v441_v7 = vrot.slane %v389_v61, 1  ;;  %v413_v36 = vadd.f32 %v405_v63, %v393_v31  ;;  %v981_v60 = vmul.f32 %v979_v34, %v2422_v55 }
 0x152   : > { %933 = vrot.lane.b32.xlu1 %v928_v1, %s2116_s12  ;;  %966 = vrot.lane.b32.xlu0 %v960_v2, %s2116_s12  ;;  %v1006_v61 = vmul.f32 %v1004_v54, %v2422_v55  ;;  %v1127_v63 = vstv %s1810_s18  ;;  %s1818_s18 = sld [smem:[#allocation5 + $0x31]] }
 0x153   : > { %v440_v8 = vrot.slane %v388_v5, 1  ;;  %v1128_v5 = vmul.f32 %v1127_v63, %v2408_v41 }
 0x154   : > { %v409_v12 = vpop.permute.xlu0 %408  ;;  %v384_v13 = vpop.permute.xlu1 %383 }
 0x155   : > { %v442_v18 = vsel %vm439_vm4, %v440_v8, %v441_v7  ;;  %v390_v19 = vadd.f32 %v384_v13, %v370_v6  ;;  %v415_v45 = vadd.f32 %v409_v12, %v395_v43  ;;  %v497_v6 = vstv %s1772_s7  ;;  %s1784_s7 = sld [smem:[#allocation5 + $0x2a]] }
 0x156   : > { %v447_v23 = vadd.f32 %v442_v18, %v344_v10  ;;  %947 = vrot.lane.b32.xlu1 %v942_v14, %s2115_s11  ;;  %970 = vrot.lane.b32.xlu0 %v962_v17, %s2116_s12  ;;  %v1130_v12 = vmul.f32 %v1127_v63, %v2430_v3  ;;  %v465_v13 = vstv %s2467_s9  ;;  %v498_v14 = vmul.f32 %v497_v6, %v2272_v9  ;;  %s1827_s9 = sld [smem:[#allocation5 + $0x43]] }
 0x157   : > { %v443_v24 = vrot.slane %v390_v19, 1  ;;  %v1152_v18 = vstv %s1812_s13  ;;  %v466_v21 = vmul.f32 %v465_v13, %v2272_v9  ;;  %v467_v34 = vmul.f32 %v465_v13, %v2278_v15  ;;  %s1819_s13 = sld [smem:[#allocation5 + $0x32]] }
 0x158   : > { %v427_v27 = vpop.permute.xlu0 %426  ;;  %v407_v28 = vpop.permute.xlu1 %406 }
 0x159   : > { %v444_v32 = vsel %vm439_vm4, %v441_v7, %v443_v24  ;;  %v414_v33 = vadd.f32 %v407_v28, %v394_v25  ;;  %v499_v7 = vmul.f32 %v497_v6, %v2278_v15  ;;  %v1129_v24 = vmul.f32 %v1127_v63, %v2422_v55 }
 0x15a   : > { %v448_v35 = vadd.f32 %v444_v32, %v345_v26  ;;  %968 = vrot.lane.b32.xlu1 %v961_v29, %s2116_s12  ;;  %1116 = vrot.lane.b32.xlu0 %v1109_v30, %s2116_s12  ;;  %v1154_v25 = vmul.f32 %v1152_v18, %v2422_v55  ;;  %v500_v26 = vmul.f32 %v497_v6, %v2280_v16  ;;  %v1074_v28 = vstv %s2476_s14  ;;  %s2554_s14 = sld [smem:[#allocation5 + $0x36]] }
 0x15b   : > { %v434_v37 = vadd.f32 %v427_v27, %v414_v33 }
 0x15c   : > { %v2451_v38 = vpop.permute.xlu0 %474  ;;  %v425_v39 = vpop.permute.xlu1 %424 }
 0x15d   : > { %v433_v44 = vadd.f32 %v425_v39, %v413_v36  ;;  %v454_v46 = vrot.slane %v434_v37, 2  ;;  %v480_v29 = vadd.f32 %v2451_v38, %v466_v21  ;;  %v1153_v37 = vmul.f32 %v1152_v18, %v2408_v41 }
 0x15e   : > { %1114 = vrot.lane.b32.xlu1 %v1108_v40, %s2116_s12  ;;  %986 = vrot.lane.b32.xlu0 %v980_v42, %s2115_s11  ;;  %v1075_v39 = vmul.f32 %v1074_v28, %v2408_v41  ;;  %v1024_v42 = vstv %s1804_s6  ;;  %s1821_s6 = sld [smem:[#allocation5 + $0x34]] }
 0x15f   : > { %v453_v47 = vrot.slane %v433_v44, 2  ;;  %v542_v44 = vstv %s1775_s23  ;;  %s1828_s23 = sld [smem:[#allocation5 + $0x44]] }
 0x160   : > { %v489_v48 = vpop.permute.xlu0 %488  ;;  %v429_v49 = vpop.permute.xlu1 %428  ;;  %v543_v54 = vmul.f32 %v542_v44, %v2272_v9 }
 0x161   : > { %v455_v52 = vsel %vm452_vm5, %v453_v47, %v454_v46  ;;  %v435_v53 = vadd.f32 %v429_v49, %v415_v45  ;;  %v494_v33 = vadd.f32 %v489_v48, %v480_v29  ;;  %v544_v47 = vmul.f32 %v542_v44, %v2278_v15 }
 0x162   : > { %v2461_v56 = vadd.f32 %v455_v52, %v447_v23  ;;  %1118 = vrot.lane.b32.xlu1 %v1110_v50, %s2116_s12  ;;  %990 = vrot.lane.b32.xlu0 %v982_v51, %s2115_s11  ;;  %v1155_v51 = vmul.f32 %v1152_v18, %v2430_v3  ;;  %v1025_v52 = vmul.f32 %v1024_v42, %v2408_v41 }
 0x163   : > { %v456_v57 = vrot.slane %v435_v53, 2  ;;  %v613_v53 = vstv %s2490_s24  ;;  %s1790_s24 = sld [smem:[#allocation5 + $0x39]] }
 0x164   : > { %v510_v58 = vpop.permute.xlu0 %509  ;;  %v477_v59 = vpop.permute.xlu1 %476 }
 0x165   : > { %v457_v62 = vsel %vm452_vm5, %v454_v46, %v456_v57  ;;  %v518_v19 = vadd.f32 %v510_v58, %v498_v14  ;;  %v481_v43 = vadd.f32 %v477_v59, %v467_v34 }
 0x166   : > { %v2470_v0 = vadd.f32 %v457_v62, %v448_v35  ;;  %988 = vrot.lane.b32.xlu1 %v981_v60, %s2115_s11  ;;  %1013 = vrot.lane.b32.xlu0 %v1006_v61, %s2116_s12  ;;  %v614_v62 = vmul.f32 %v613_v53, %v2272_v9 }
 0x168   : > { %v514_v1 = vpop.permute.xlu0 %513  ;;  %v491_v2 = vpop.permute.xlu1 %490 }
 0x169   : > { %v520_v30 = vadd.f32 %v514_v1, %v500_v26  ;;  %v495_v48 = vadd.f32 %v491_v2, %v481_v43  ;;  %v1076_v2 = vmul.f32 %v1074_v28, %v2422_v55 }
 0x16a   : > { %1011 = vrot.lane.b32.xlu1 %v1005_v4, %s2116_s12  ;;  %1134 = vrot.lane.b32.xlu0 %v1128_v5, %s2115_s11  ;;  %v1027_v4 = vmul.f32 %v1024_v42, %v2430_v3  ;;  %v545_v5 = vmul.f32 %v542_v44, %v2280_v16 }
 0x16c   : > { %v532_v8 = vpop.permute.xlu0 %531  ;;  %v512_v10 = vpop.permute.xlu1 %511 }
 0x16d   : > { %v519_v17 = vadd.f32 %v512_v10, %v499_v7 }
 0x16e   : > { %1015 = vrot.lane.b32.xlu1 %v1007_v11, %s2116_s12  ;;  %1138 = vrot.lane.b32.xlu0 %v1130_v12, %s2115_s11 }
 0x16f   : > { %v539_v20 = vadd.f32 %v532_v8, %v519_v17  ;;  %v1172_v8 = vstv %s2501_s27  ;;  %v1026_v17 = vmul.f32 %v1024_v42, %v2422_v55  ;;  %s1830_s27 = sld [smem:[#allocation5 + $0x46]] }
 0x170   : > { %v555_v22 = vpop.permute.xlu0 %554  ;;  %v530_v23 = vpop.permute.xlu1 %529  ;;  %v1174_v18 = vmul.f32 %v1172_v8, %v2422_v55 }
 0x171   : > { %v538_v27 = vadd.f32 %v530_v23, %v518_v19  ;;  %v590_v31 = vrot.slane %v539_v20, 1  ;;  %v563_v60 = vadd.f32 %v555_v22, %v543_v54  ;;  %v645_v19 = vstv %s1781_s5  ;;  %s2582_s5 = sld [smem:[#allocation5 + $0x2e]] }
 0x172   : > { %1136 = vrot.lane.b32.xlu1 %v1129_v24, %s2115_s11  ;;  %1161 = vrot.lane.b32.xlu0 %v1154_v25, %s2116_s12  ;;  %v1088_v23 = vstv %s2511_s8  ;;  %v646_v26 = vmul.f32 %v645_v19, %v2272_v9  ;;  %s1793_s8 = sld [smem:[#allocation5 + $0x3c]] }
 0x173   : > { %v589_v32 = vrot.slane %v538_v27, 1  ;;  %v615_v27 = vmul.f32 %v613_v53, %v2278_v15 }
 0x174   : > { %v559_v35 = vpop.permute.xlu0 %558  ;;  %v534_v36 = vpop.permute.xlu1 %533 }
 0x175   : > { %v591_v40 = vsel %vm439_vm4, %v589_v32, %v590_v31  ;;  %v540_v38 = vadd.f32 %v534_v36, %v520_v30  ;;  %v565_v10 = vadd.f32 %v559_v35, %v545_v5  ;;  %v1173_v30 = vmul.f32 %v1172_v8, %v2408_v41 }
 0x176   : > { %v596_v45 = vadd.f32 %v591_v40, %v494_v33  ;;  %1159 = vrot.lane.b32.xlu1 %v1153_v37, %s2116_s12  ;;  %1079 = vrot.lane.b32.xlu0 %v1075_v39, %s2116_s12  ;;  %v1255_v35 = vstv %s1818_s18  ;;  %v648_v37 = vmul.f32 %v645_v19, %v2280_v16  ;;  %s2593_s18 = sld [smem:[#allocation5 + $0x40]] }
 0x177   : > { %v592_v46 = vrot.slane %v540_v38, 1  ;;  %v1175_v38 = vmul.f32 %v1172_v8, %v2430_v3  ;;  %v1256_v42 = vmul.f32 %v1255_v35, %v2408_v41 }
 0x178   : > { %v577_v49 = vpop.permute.xlu0 %576  ;;  %v557_v50 = vpop.permute.xlu1 %556 }
 0x179   : > { %v593_v57 = vsel %vm439_vm4, %v590_v31, %v592_v46  ;;  %v564_v58 = vadd.f32 %v557_v50, %v544_v47  ;;  %v1089_v31 = vmul.f32 %v1088_v23, %v2408_v41  ;;  %v690_v50 = vstv %s1784_s7  ;;  %s1822_s7 = sld [smem:[#allocation5 + $0x35]] }
 0x17a   : > { %v597_v59 = vadd.f32 %v593_v57, %v495_v48  ;;  %1163 = vrot.lane.b32.xlu1 %v1155_v51, %s2116_s12  ;;  %1031 = vrot.lane.b32.xlu0 %v1025_v52, %s2115_s11  ;;  %v1090_v48 = vmul.f32 %v1088_v23, %v2422_v55  ;;  %v1403_v52 = vstv %s1827_s9  ;;  %v691_v54 = vmul.f32 %v690_v50, %v2272_v9  ;;  %s2614_s9 = sld [smem:[#allocation5 + $0x9]] }
 0x17b   : > { %v584_v61 = vadd.f32 %v577_v49, %v564_v58  ;;  %v1258_v49 = vmul.f32 %v1255_v35, %v2430_v3  ;;  %v1404_v8 = vmul.f32 %v1403_v52, %v2408_v41  ;;  %v761_v23 = vstv %s2554_s14  ;;  %s2622_s14 = sld [smem:[#allocation5 + $0x2f]] }
 0x17c   : > { %v623_v63 = vpop.permute.xlu0 %622  ;;  %v575_v1 = vpop.permute.xlu1 %574 }
 0x17d   : > { %v628_v6 = vadd.f32 %v623_v63, %v614_v62  ;;  %v583_v7 = vadd.f32 %v575_v1, %v563_v60  ;;  %v602_v11 = vrot.slane %v584_v61, 2  ;;  %v1257_v60 = vmul.f32 %v1255_v35, %v2422_v55 }
 0x17e   : > { %1081 = vrot.lane.b32.xlu1 %v1076_v2, %s2116_s12  ;;  %1035 = vrot.lane.b32.xlu0 %v1027_v4, %s2115_s11  ;;  %v1275_v63 = vstv %s1819_s13  ;;  %v693_v4 = vmul.f32 %v690_v50, %v2280_v16  ;;  %s1831_s13 = sld [smem:[#allocation5 + $0x47]] }
 0x17f   : > { %v601_v12 = vrot.slane %v583_v7, 2  ;;  %v1276_v7 = vmul.f32 %v1275_v63, %v2408_v41 }
 0x180   : > { %v637_v13 = vpop.permute.xlu0 %636  ;;  %v579_v14 = vpop.permute.xlu1 %578 }
 0x181   : > { %v603_v20 = vsel %vm452_vm5, %v601_v12, %v602_v11  ;;  %v2525_v21 = vadd.f32 %v637_v13, %v628_v6  ;;  %v585_v22 = vadd.f32 %v579_v14, %v565_v10 }
 0x182   : > { %v2528_v24 = vadd.f32 %v603_v20, %v596_v45  ;;  %1033 = vrot.lane.b32.xlu1 %v1026_v17, %s2115_s11  ;;  %1181 = vrot.lane.b32.xlu0 %v1174_v18, %s2115_s11  ;;  %v647_v45 = vmul.f32 %v645_v19, %v2278_v15  ;;  %v692_v17 = vmul.f32 %v690_v50, %v2278_v15 }
 0x183   : > { %v604_v25 = vrot.slane %v585_v22, 2  ;;  %v1278_v20 = vmul.f32 %v1275_v63, %v2430_v3  ;;  %v1406_v22 = vmul.f32 %v1403_v52, %v2430_v3 }
 0x184   : > { %v658_v28 = vpop.permute.xlu0 %657  ;;  %v625_v29 = vpop.permute.xlu1 %624 }
 0x185   : > { %v605_v32 = vsel %vm452_vm5, %v602_v11, %v604_v25  ;;  %v666_v33 = vadd.f32 %v658_v28, %v646_v26  ;;  %v629_v34 = vadd.f32 %v625_v29, %v615_v27  ;;  %v1300_v27 = vstv %s1821_s6  ;;  %s1799_s6 = sld [smem:[#allocation5 + $0xc]] }
 0x186   : > { %v2537_v36 = vadd.f32 %v605_v32, %v597_v59  ;;  %1179 = vrot.lane.b32.xlu1 %v1173_v30, %s2115_s11  ;;  %1093 = vrot.lane.b32.xlu0 %v1089_v31, %s2115_s11  ;;  %v1405_v59 = vmul.f32 %v1403_v52, %v2422_v55  ;;  %v762_v29 = vmul.f32 %v761_v23, %v2272_v9 }
 0x187   : > { %v1302_v32 = vmul.f32 %v1300_v27, %v2422_v55  ;;  %v763_v52 = vmul.f32 %v761_v23, %v2278_v15 }
 0x188   : > { %v662_v39 = vpop.permute.xlu0 %661  ;;  %v639_v40 = vpop.permute.xlu1 %638 }
 0x189   : > { %v668_v43 = vadd.f32 %v662_v39, %v648_v37  ;;  %v643_v44 = vadd.f32 %v639_v40, %v629_v34  ;;  %v1423_v37 = vstv %s1828_s23  ;;  %s2632_s23 = sld [smem:[#allocation5 + $0x41]] }
 0x18a   : > { %1183 = vrot.lane.b32.xlu1 %v1175_v38, %s2115_s11  ;;  %1262 = vrot.lane.b32.xlu0 %v1256_v42, %s2116_s12 }
 0x18c   : > { %v680_v46 = vpop.permute.xlu0 %679  ;;  %v660_v47 = vpop.permute.xlu1 %659 }
 0x18d   : > { %v667_v51 = vadd.f32 %v660_v47, %v647_v45  ;;  %v793_v45 = vstv %s1790_s24  ;;  %s1802_s24 = sld [smem:[#allocation5 + $0xf]] }
 0x18e   : > { %1095 = vrot.lane.b32.xlu1 %v1090_v48, %s2115_s11  ;;  %1266 = vrot.lane.b32.xlu0 %v1258_v49, %s2116_s12 }
 0x18f   : > { %v687_v53 = vadd.f32 %v680_v46, %v667_v51  ;;  %v794_v51 = vmul.f32 %v793_v45, %v2272_v9 }
 0x190   : > { %v703_v57 = vpop.permute.xlu0 %702  ;;  %v678_v58 = vpop.permute.xlu1 %677 }
 0x191   : > { %v711_v61 = vadd.f32 %v703_v57, %v691_v54  ;;  %v686_v62 = vadd.f32 %v678_v58, %v666_v33  ;;  %v738_v1 = vrot.slane %v687_v53, 1  ;;  %v1277_v33 = vmul.f32 %v1275_v63, %v2422_v55 }
 0x192   : > { %1412 = vrot.lane.b32.xlu0 %v1405_v59, %s2116_s12  ;;  %1264 = vrot.lane.b32.xlu1 %v1257_v60, %s2116_s12  ;;  %v1426_v57 = vmul.f32 %v1423_v37, %v2430_v3  ;;  %v1303_v58 = vmul.f32 %v1300_v27, %v2430_v3 }
 0x193   : > { %v737_v2 = vrot.slane %v686_v62, 1  ;;  %v1448_v62 = vstv %s1830_s27  ;;  %s1811_s27 = sld [smem:[#allocation5 + $0x21]] }
 0x194   : > { %v707_v5 = vpop.permute.xlu0 %706  ;;  %v682_v6 = vpop.permute.xlu1 %681 }
 0x195   : > { %v739_v10 = vsel %vm439_vm4, %v737_v2, %v738_v1  ;;  %v713_v11 = vadd.f32 %v707_v5, %v693_v4  ;;  %v688_v12 = vadd.f32 %v682_v6, %v668_v43  ;;  %v1424_v43 = vmul.f32 %v1423_v37, %v2408_v41 }
 0x196   : > { %v744_v13 = vadd.f32 %v739_v10, %v2525_v21  ;;  %1282 = vrot.lane.b32.xlu0 %v1276_v7, %s2115_s11  ;;  %1410 = vrot.lane.b32.xlu1 %v1404_v8, %s2116_s12  ;;  %v1450_v5 = vmul.f32 %v1448_v62, %v2422_v55  ;;  %v1425_v6 = vmul.f32 %v1423_v37, %v2422_v55  ;;  %v1222_v10 = vstv %s2582_s5  ;;  %s290_s5 = sld [smem:[#allocation8]] }
 0x197   : > { %v740_v14 = vrot.slane %v688_v12, 1  ;;  %v1224_v37 = vmul.f32 %v1222_v10, %v2422_v55 }
 0x198   : > { %v725_v18 = vpop.permute.xlu0 %724  ;;  %v705_v19 = vpop.permute.xlu1 %704 }
 0x199   : > { %v741_v25 = vsel %vm439_vm4, %v738_v1, %v740_v14  ;;  %v712_v26 = vadd.f32 %v705_v19, %v692_v17  ;;  %v796_v1 = vmul.f32 %v793_v45, %v2280_v16  ;;  %v1223_v14 = vmul.f32 %v1222_v10, %v2408_v41 }
 0x19a   : > { %v745_v21 = vadd.f32 %v741_v25, %v643_v44  ;;  %1286 = vrot.lane.b32.xlu0 %v1278_v20, %s2115_s11  ;;  %1414 = vrot.lane.b32.xlu1 %v1406_v22, %s2116_s12  ;;  %v1301_v44 = vmul.f32 %v1300_v27, %v2408_v41  ;;  %v1449_v17 = vmul.f32 %v1448_v62, %v2408_v41  ;;  %v1370_v20 = vstv %s2593_s18  ;;  %s1817_s18 = sld [smem:[#allocation5 + $0x30]] }
 0x19b   : > { %v732_v28 = vadd.f32 %v725_v18, %v712_v26  ;;  %v838_v18 = vstv %s1793_s8  ;;  %v1371_v27 = vmul.f32 %v1370_v20, %v2408_v41  ;;  %v954_v10 = vstv %s1799_s6  ;;  %s2683_s8 = sld [smem:[#allocation8 + $0x1]]  ;;  %s2734_s6 = sld [smem:[#allocation5 + $0x3f]] }
 0x19c   : > { %v771_v30 = vpop.permute.xlu0 %770  ;;  %v723_v31 = vpop.permute.xlu1 %722  ;;  %v839_v23 = vmul.f32 %v838_v18, %v2272_v9  ;;  %v841_v9 = vmul.f32 %v838_v18, %v2280_v16 }
 0x19d   : > { %v776_v34 = vadd.f32 %v771_v30, %v762_v29  ;;  %v731_v35 = vadd.f32 %v723_v31, %v711_v61  ;;  %v750_v39 = vrot.slane %v732_v28, 2  ;;  %v1320_v30 = vstv %s1822_s7  ;;  %s1826_s7 = sld [smem:[#allocation5 + $0x42]] }
 0x19e   : > { %1309 = vrot.lane.b32.xlu0 %v1302_v32, %s2116_s12  ;;  %1284 = vrot.lane.b32.xlu1 %v1277_v33, %s2115_s11 }
 0x19f   : > { %v749_v40 = vrot.slane %v731_v35, 2  ;;  %v1321_v35 = vmul.f32 %v1320_v30, %v2408_v41 }
 0x1a0   : > { %v785_v38 = vpop.permute.xlu0 %784  ;;  %v727_v42 = vpop.permute.xlu1 %726 }
 0x1a1   : > { %v751_v46 = vsel %vm452_vm5, %v749_v40, %v750_v39  ;;  %v2580_v47 = vadd.f32 %v785_v38, %v776_v34  ;;  %v733_v48 = vadd.f32 %v727_v42, %v713_v11  ;;  %v795_v11 = vmul.f32 %v793_v45, %v2278_v15 }
 0x1a2   : > { %v2584_v49 = vadd.f32 %v751_v46, %v744_v13  ;;  %1430 = vrot.lane.b32.xlu0 %v1424_v43, %s2115_s11  ;;  %1307 = vrot.lane.b32.xlu1 %v1301_v44, %s2116_s12  ;;  %v840_v43 = vmul.f32 %v838_v18, %v2278_v15  ;;  %v1323_v46 = vmul.f32 %v1320_v30, %v2430_v3 }
 0x1a3   : > { %v752_v50 = vrot.slane %v733_v48, 2  ;;  %v1372_v48 = vmul.f32 %v1370_v20, %v2422_v55 }
 0x1a4   : > { %v806_v53 = vpop.permute.xlu0 %805  ;;  %v773_v54 = vpop.permute.xlu1 %772 }
 0x1a5   : > { %v753_v59 = vsel %vm452_vm5, %v750_v39, %v752_v50  ;;  %v814_v60 = vadd.f32 %v806_v53, %v794_v51  ;;  %v777_v61 = vadd.f32 %v773_v54, %v763_v52  ;;  %v922_v50 = vstv %s2614_s9  ;;  %s1820_s9 = sld [smem:[#allocation5 + $0x33]] }
 0x1a6   : > { %v2595_v63 = vadd.f32 %v753_v59, %v745_v21  ;;  %1434 = vrot.lane.b32.xlu0 %v1426_v57, %s2115_s11  ;;  %1311 = vrot.lane.b32.xlu1 %v1303_v58, %s2116_s12  ;;  %v1451_v21 = vmul.f32 %v1448_v62, %v2430_v3  ;;  %v923_v54 = vmul.f32 %v922_v50, %v2408_v41 }
 0x1a7   : > { %v924_v20 = vmul.f32 %v922_v50, %v2422_v55 }
 0x1a8   : > { %v810_v2 = vpop.permute.xlu0 %809  ;;  %v787_v4 = vpop.permute.xlu1 %786 }
 0x1a9   : > { %v816_v7 = vadd.f32 %v810_v2, %v796_v1  ;;  %v791_v8 = vadd.f32 %v787_v4, %v777_v61  ;;  %v1236_v1 = vstv %s2622_s14  ;;  %s2729_s14 = sld [smem:[#allocation5 + $0x2d]] }
 0x1aa   : > { %1457 = vrot.lane.b32.xlu0 %v1450_v5, %s2116_s12  ;;  %1432 = vrot.lane.b32.xlu1 %v1425_v6, %s2115_s11 }
 0x1ac   : > { %v828_v12 = vpop.permute.xlu0 %827  ;;  %v808_v13 = vpop.permute.xlu1 %807 }
 0x1ad   : > { %v815_v19 = vadd.f32 %v808_v13, %v795_v11 }
 0x1ae   : > { %1227 = vrot.lane.b32.xlu0 %v1223_v14, %s2116_s12  ;;  %1455 = vrot.lane.b32.xlu1 %v1449_v17, %s2116_s12  ;;  %v1384_v14 = vstv %s2632_s23  ;;  %s2742_s23 = sld [smem:[#allocation8 + $0x2]] }
 0x1af   : > { %v835_v22 = vadd.f32 %v828_v12, %v815_v19  ;;  %v955_v19 = vmul.f32 %v954_v10, %v2408_v41 }
 0x1b0   : > { %v851_v25 = vpop.permute.xlu0 %850  ;;  %v826_v26 = vpop.permute.xlu1 %825 }
 0x1b1   : > { %v859_v28 = vadd.f32 %v851_v25, %v839_v23  ;;  %v834_v29 = vadd.f32 %v826_v26, %v814_v60  ;;  %v886_v31 = vrot.slane %v835_v22, 1  ;;  %v1322_v60 = vmul.f32 %v1320_v30, %v2422_v55 }
 0x1b2   : > { %1375 = vrot.lane.b32.xlu0 %v1371_v27, %s2116_s12  ;;  %1459 = vrot.lane.b32.xlu1 %v1451_v21, %s2116_s12  ;;  %v1385_v25 = vmul.f32 %v1384_v14, %v2408_v41  ;;  %v957_v30 = vmul.f32 %v954_v10, %v2430_v3 }
 0x1b3   : > { %v885_v32 = vrot.slane %v834_v29, 1 }
 0x1b4   : > { %v855_v33 = vpop.permute.xlu0 %854  ;;  %v830_v34 = vpop.permute.xlu1 %829 }
 0x1b5   : > { %v887_v39 = vsel %vm439_vm4, %v885_v32, %v886_v31  ;;  %v861_v40 = vadd.f32 %v855_v33, %v841_v9  ;;  %v836_v38 = vadd.f32 %v830_v34, %v816_v7  ;;  %v1237_v7 = vmul.f32 %v1236_v1, %v2408_v41 }
 0x1b6   : > { %v892_v42 = vadd.f32 %v887_v39, %v2580_v47  ;;  %1327 = vrot.lane.b32.xlu0 %v1321_v35, %s2115_s11  ;;  %1229 = vrot.lane.b32.xlu1 %v1224_v37, %s2116_s12  ;;  %v1468_v47 = vstv %s1831_s13  ;;  %v1238_v9 = vmul.f32 %v1236_v1, %v2422_v55  ;;  %v956_v39 = vmul.f32 %v954_v10, %v2422_v55  ;;  %s1829_s13 = sld [smem:[#allocation5 + $0x45]] }
 0x1b7   : > { %v888_v16 = vrot.slane %v836_v38, 1  ;;  %v1470_v59 = vmul.f32 %v1468_v47, %v2422_v55  ;;  %v1471_v26 = vmul.f32 %v1468_v47, %v2430_v3 }
 0x1b8   : > { %v873_v44 = vpop.permute.xlu0 %872  ;;  %v853_v45 = vpop.permute.xlu1 %852 }
 0x1b9   : > { %v889_v51 = vsel %vm439_vm4, %v886_v31, %v888_v16  ;;  %v860_v52 = vadd.f32 %v853_v45, %v840_v43 }
 0x1ba   : > { %v893_v53 = vadd.f32 %v889_v51, %v791_v8  ;;  %1331 = vrot.lane.b32.xlu0 %v1323_v46, %s2115_s11  ;;  %1377 = vrot.lane.b32.xlu1 %v1372_v48, %s2116_s12  ;;  %v1469_v8 = vmul.f32 %v1468_v47, %v2408_v41  ;;  %s1808_s12 = sld [smem:[#allocation5 + $0x1e]] }
 0x1bb   : > { %v880_v15 = vadd.f32 %v873_v44, %v860_v52 }
 0x1bc   : > { %v932_v57 = vpop.permute.xlu0 %931  ;;  %v871_v58 = vpop.permute.xlu1 %870 }
 0x1bd   : > { %v937_v61 = vadd.f32 %v932_v57, %v923_v54  ;;  %v879_v62 = vadd.f32 %v871_v58, %v859_v28  ;;  %v898_v2 = vrot.slane %v880_v15, 2 }
 0x1be   : > { %1477 = vrot.lane.b32.xlu0 %v1470_v59, %s2115_s11  ;;  %1329 = vrot.lane.b32.xlu1 %v1322_v60, %s2115_s11 }
 0x1bf   : > { %v897_v4 = vrot.slane %v879_v62, 2 }
 0x1c0   : > { %v946_v5 = vpop.permute.xlu0 %945  ;;  %v875_v6 = vpop.permute.xlu1 %874  ;;  %v1102_v33 = vstv %s1808_s12  ;;  %s2749_s12 = sld [smem:[#allocation8 + $0x3]] }
 0x1c1   : > { %v899_v11 = vsel %vm452_vm5, %v897_v4, %v898_v2  ;;  %v2645_v12 = vadd.f32 %v946_v5, %v937_v61  ;;  %v881_v13 = vadd.f32 %v875_v6, %v861_v40  ;;  %v1104_v37 = vmul.f32 %v1102_v33, %v2422_v55 }
 0x1c2   : > { %v2648_v17 = vadd.f32 %v899_v11, %v892_v42  ;;  %1241 = vrot.lane.b32.xlu0 %v1237_v7, %s2115_s11  ;;  %1475 = vrot.lane.b32.xlu1 %v1469_v8, %s2115_s11  ;;  %v1386_v42 = vmul.f32 %v1384_v14, %v2422_v55  ;;  %v1103_v44 = vmul.f32 %v1102_v33, %v2408_v41 }
 0x1c3   : > { %v900_v18 = vrot.slane %v881_v13, 2  ;;  %v1105_v51 = vmul.f32 %v1102_v33, %v2430_v3 }
 0x1c4   : > { %v967_v22 = vpop.permute.xlu0 %966  ;;  %v934_v23 = vpop.permute.xlu1 %933 }
 0x1c5   : > { %v901_v27 = vsel %vm452_vm5, %v898_v2, %v900_v18  ;;  %v975_v21 = vadd.f32 %v967_v22, %v955_v19  ;;  %v938_v28 = vadd.f32 %v934_v23, %v924_v20  ;;  %v1147_v22 = vstv %s1811_s27  ;;  %s1596_s27 = sshll.u32 %s2267_s1, 4  ;;  %s2783_s27 = int_to_ptr.vmem [resolvable:$true] %s1596_s27 }
 0x1c6   : > { %v2657_v29 = vadd.f32 %v901_v27, %v893_v53  ;;  %1389 = vrot.lane.b32.xlu0 %v1385_v25, %s2115_s11  ;;  %1479 = vrot.lane.b32.xlu1 %v1471_v26, %s2115_s11  ;;  %v999_v53 = vstv %s1802_s24  ;;  %v1149_v26 = vmul.f32 %v1147_v22, %v2422_v55  ;;  %s1843_s24 = sshll.u32 %s2097_s19, 8  ;;  %s2790_s19 = scalar_lea.sflag [#allocation6], %s251_s30 }
 0x1c7   : > { %v1001_v57 = vmul.f32 %v999_v53, %v2422_v55  ;;  %v1000_v4 = vmul.f32 %v999_v53, %v2408_v41  ;;  %v1002_v18 = vmul.f32 %v999_v53, %v2430_v3 }
 0x1c8   : > { %v971_v31 = vpop.permute.xlu0 %970  ;;  %v948_v32 = vpop.permute.xlu1 %947 }
 0x1c9   : > { %v977_v34 = vadd.f32 %v971_v31, %v957_v30  ;;  %v952_v35 = vadd.f32 %v948_v32, %v938_v28 }
 0x1ca   : > { %1243 = vrot.lane.b32.xlu1 %v1238_v9, %s2115_s11 }
 0x1cc   : > { %v1117_v40 = vpop.permute.xlu0 %1116  ;;  %v969_v38 = vpop.permute.xlu1 %968 }
 0x1cd   : > { %v1124_v16 = vadd.f32 %v1117_v40, %v1104_v37  ;;  %v976_v43 = vadd.f32 %v969_v38, %v956_v39  ;;  %v1150_v37 = vmul.f32 %v1147_v22, %v2430_v3 }
 0x1ce   : > { %1391 = vrot.lane.b32.xlu1 %v1386_v42, %s2115_s11  ;;  %s2677_s11 = sld [smem:[#allocation5 + $0x1b]] }
 0x1d0   : > { %v987_v45 = vpop.permute.xlu0 %986  ;;  %v1115_v46 = vpop.permute.xlu1 %1114 }
 0x1d1   : > { %v995_v48 = vadd.f32 %v987_v45, %v975_v21  ;;  %v1123_v50 = vadd.f32 %v1115_v46, %v1103_v44  ;;  %v1148_v46 = vmul.f32 %v1147_v22, %v2408_v41  ;;  %v2696_v22 = vld [vmem:[#allocation4 + $0x8] sm:$0xff] }
 0x1d3   : > { %v1046_v62 = vrot.slane %v995_v48, 1 }
 0x1d4   : > { %v991_v52 = vpop.permute.xlu0 %990  ;;  %v1119_v47 = vpop.permute.xlu1 %1118 }
 0x1d5   : > { %v997_v15 = vadd.f32 %v991_v52, %v977_v34  ;;  %v1125_v54 = vadd.f32 %v1119_v47, %v1105_v51  ;;  %v291_v52 = vstv %s290_s5 }
 0x1d7   : > { %v1049_v1 = vrot.slane %v997_v15, 1 }
 0x1d8   : > { %v1014_v58 = vpop.permute.xlu0 %1013  ;;  %v989_v59 = vpop.permute.xlu1 %988 }
 0x1d9   : > { %v1021_v60 = vadd.f32 %v1014_v58, %v1001_v57  ;;  %v996_v61 = vadd.f32 %v989_v59, %v976_v43 }
 0x1db   : > { %v1047_v2 = vrot.slane %v996_v61, 1 }
 0x1dc   : > { %v1135_v5 = vpop.permute.xlu0 %1134  ;;  %v1012_v6 = vpop.permute.xlu1 %1011 }
 0x1dd   : > { %v1048_v7 = vsel %vm439_vm4, %v1046_v62, %v1047_v2  ;;  %v1050_v8 = vsel %vm439_vm4, %v1047_v2, %v1049_v1  ;;  %v1143_v10 = vadd.f32 %v1135_v5, %v1123_v50  ;;  %v1020_v11 = vadd.f32 %v1012_v6, %v1000_v4 }
 0x1de   : > { %v1053_v13 = vadd.f32 %v1048_v7, %v2645_v12  ;;  %v1054_v14 = vadd.f32 %v1050_v8, %v952_v35  ;;  %v293_v8 = vstv %s2683_s8  ;;  %s2781_s8 = scalar_lea.hbm %s2852_s4, %s1843_s24 }
 0x1df   : > { %v1194_v31 = vrot.slane %v1143_v10, 1 }
 0x1e0   : > { %v1139_v19 = vpop.permute.xlu0 %1138  ;;  %v1016_v20 = vpop.permute.xlu1 %1015 }
 0x1e1   : > { %v1145_v23 = vadd.f32 %v1139_v19, %v1125_v54  ;;  %v1022_v25 = vadd.f32 %v1016_v20, %v1002_v18 }
 0x1e3   : > { %v1197_v32 = vrot.slane %v1145_v23, 1 }
 0x1e4   : > { %v1162_v27 = vpop.permute.xlu0 %1161  ;;  %v1137_v21 = vpop.permute.xlu1 %1136 }
 0x1e5   : > { %v1169_v28 = vadd.f32 %v1162_v27, %v1149_v26  ;;  %v1144_v30 = vadd.f32 %v1137_v21, %v1124_v16  ;;  %v1070_v16 = vstv %s2677_s11 }
 0x1e6   : > { %v1071_v45 = vmul.f32 %v1070_v16, %v2408_v41  ;;  %v462_v41 = vadd.f32 %v2461_v56, %v291_v52  ;;  %v1072_v23 = vmul.f32 %v2696_v22, %v1070_v16 }
 0x1e7   : > { %v1195_v9 = vrot.slane %v1144_v30, 1 }
 0x1e8   : > { %v1080_v33 = vpop.permute.xlu0 %1079  ;;  %v1160_v34 = vpop.permute.xlu1 %1159 }
 0x1e9   : > { %v1196_v12 = vsel %vm439_vm4, %v1194_v31, %v1195_v9  ;;  %v1198_v35 = vsel %vm439_vm4, %v1195_v9, %v1197_v32  ;;  %v1085_v3 = vadd.f32 %v1080_v33, %v1071_v45  ;;  %v1168_v47 = vadd.f32 %v1160_v34, %v1148_v46 }
 0x1ea   : > { %v611_v34 = vadd.f32 %v2537_v36, %v293_v8 }
 0x1ec   : > { %v1032_v39 = vpop.permute.xlu0 %1031  ;;  %v1164_v55 = vpop.permute.xlu1 %1163 }
 0x1ed   : > { %v1170_v40 = vadd.f32 %v1164_v55, %v1150_v37  ;;  %v1040_v44 = vadd.f32 %v1032_v39, %v1020_v11 }
 0x1ef   : > { %v1058_v53 = vrot.slane %v1040_v44, 2 }
 0x1f0   : > { %v1036_v38 = vpop.permute.xlu0 %1035  ;;  %v1082_v42 = vpop.permute.xlu1 %1081 }
 0x1f1   : > { %v1042_v43 = vadd.f32 %v1036_v38, %v1022_v25 }
 0x1f3   : > { %v1061_v15 = vrot.slane %v1042_v43, 2 }
 0x1f4   : > { %v1182_v48 = vpop.permute.xlu0 %1181  ;;  %v1034_v50 = vpop.permute.xlu1 %1033 }
 0x1f5   : > { %v1041_v51 = vadd.f32 %v1034_v50, %v1021_v60  ;;  %v1189_v54 = vadd.f32 %v1182_v48, %v1169_v28  ;;  %v463_v60 = vadd.f32 %v2470_v0, %v291_v52  ;;  %v610_v0 = vadd.f32 %v2528_v24, %v293_v8 }
 0x1f6   : > { %v1250_v24 = vstv %s1817_s18  ;;  %s2007_s18 = scalar_lea.vmem %s2783_s27, 256 }
 0x1f7   : > { %v1059_v57 = vrot.slane %v1041_v51, 2  ;;  %v1207_v6 = vrot.slane %v1189_v54, 2  ;;  %v1252_v36 = vmul.f32 %v2696_v22, %v1250_v24  ;;  %v1398_v54 = vstv %s1826_s7  ;;  %p2008_p13 = scmp.ne.s32.totalorder %s2783_s27, %s2007_s18  ;;  %s2117_s7 = smov [#allocation10]  }
 0x1f8   : > { %v1094_v58 = vpop.permute.xlu0 %1093  ;;  %v1180_v59 = vpop.permute.xlu1 %1179 }
 0x1f9   : > { %v1060_v61 = vsel %vm452_vm5, %v1058_v53, %v1059_v57  ;;  %v1062_v62 = vsel %vm452_vm5, %v1059_v57, %v1061_v15  ;;  %v1099_v1 = vadd.f32 %v1094_v58, %v1085_v3  ;;  %v1188_v2 = vadd.f32 %v1180_v59, %v1168_v47  ;;  %p2009_p2 = pnand %p2008_p13, %p2868_p0 }
 0x1fa   : > { %v1065_v4 = vadd.f32 %v1060_v61, %v1053_v13  ;;  %v1066_v5 = vadd.f32 %v1062_v62, %v1054_v14  ;;  %v1086_v14 = vadd.f32 %v1082_v42, %v1072_v23  ;;  %v2710_v42 = vld [vmem:[#allocation4 + $0x10] sm:$0x3] }
 0x1fb   : > { %v1201_v7 = vadd.f32 %v1196_v12, %v1099_v1  ;;  %v1206_v10 = vrot.slane %v1188_v2, 2  ;;  %v1253_v16 = vmul.f32 %v2710_v42, %v1250_v24  ;;  %v1401_v1 = vmul.f32 %v2710_v42, %v1398_v54  ;;  %p2010_p7 = pneg %p2009_p2 }
 0x1fc   : > { %v2692_v11 = vadd.f32 %v1065_v4, %v462_v41  ;;  %v2694_v18 = vadd.f32 %v1066_v5, %v463_v60  ;;  %v1263_v19 = vpop.permute.xlu0 %1262  ;;  %v1184_v20 = vpop.permute.xlu1 %1183  ;;  %v1400_v60 = vmul.f32 %v2696_v22, %v1398_v54 }
 0x1fd   : > { %v1208_v56 = vsel %vm452_vm5, %v1206_v10, %v1207_v6  ;;  %v1190_v25 = vadd.f32 %v1184_v20, %v1170_v40  ;;  %v2707_v40 = vld [vmem:[#allocation4] sm:$0xff] }
 0x1fe   : > { %v1213_v13 = vadd.f32 %v1208_v56, %v1201_v7  ;;  %v1251_v38 = vmul.f32 %v2707_v40, %v1250_v24  ;;  %v1399_v62 = vmul.f32 %v2707_v40, %v1398_v54  ;;  %v1443_v24 = vstv %s1829_s13 }
 0x1ff   : > { %v1209_v26 = vrot.slane %v1190_v25, 2 }
 0x200   : > { %v2701_v27 = vadd.f32 %v1213_v13, %v610_v0  ;;  %v1267_v21 = vpop.permute.xlu0 %1266  ;;  %v1096_v28 = vpop.permute.xlu1 %1095  ;;  %v1271_v44 = vadd.f32 %v1263_v19, %v1251_v38 }
 0x201   : > { %v1210_v30 = vsel %vm452_vm5, %v1207_v6, %v1209_v26  ;;  %v1100_v31 = vadd.f32 %v1096_v28, %v1086_v14  ;;  %v1273_v45 = vadd.f32 %v1267_v21, %v1253_v16 }
 0x203   : > { %v1202_v32 = vadd.f32 %v1198_v35, %v1100_v31 }
 0x204   : > { %v1413_v9 = vpop.permute.xlu0 %1412  ;;  %v1265_v33 = vpop.permute.xlu1 %1264 }
 0x205   : > { %v1214_v12 = vadd.f32 %v1210_v30, %v1202_v32  ;;  %v1272_v46 = vadd.f32 %v1265_v33, %v1252_v36  ;;  %v1420_v6 = vadd.f32 %v1413_v9, %v1400_v60  ;;  %v1295_v30 = vstv %s1820_s9  ;;  %s2011_s9 = sshll.u32 %s2117_s7, 4  ;;  %s2012_s9 = int_to_ptr.vmem [resolvable:$false] %s2011_s9 }
 0x206   : > { %v1834_v9 = vmul.f32 -1.442695, %v2701_v27  ;;  %v1832_v33 = vmul.f32 -1.442695, %v2692_v11  ;;  %s2013_s13 = scalar_lea.vmem %s2012_s9, 512  ;;  %p2014_p8 = scmp.lt.s32.totalorder %s2783_s27, %s2012_s9 }
 0x207   : > { %v2705_v37 = vadd.f32 %v1214_v12, %v611_v34  ;;  %v1296_v34 = vmul.f32 %v2707_v40, %v1295_v30  ;;  %v1298_v12 = vmul.f32 %v2710_v42, %v1295_v30  ;;  %p2015_p11 = scmp.lt.s32.totalorder %s2013_s13, %s2007_s18 }
 0x208   : > { %v1283_v39 = vpop.permute.xlu0 %1282  ;;  %v1411_v55 = vpop.permute.xlu1 %1410  ;;  %1942 = vpow2.f32 %v1834_v9 }
 0x209   : > { %v1291_v48 = vadd.f32 %v1283_v39, %v1271_v44  ;;  %v1419_v4 = vadd.f32 %v1411_v55, %v1399_v62  ;;  %v1297_v39 = vmul.f32 %v2696_v22, %v1295_v30  ;;  %1944 = vpow2.f32 %v1832_v33  ;;  %p2016_p12 = por %p2015_p11, %p2014_p8 }
 0x20a   : > { %v1835_v36 = vmul.f32 -1.442695, %v2705_v37 }
 0x20b   : > { %v1342_v47 = vrot.slane %v1291_v48, 1  ;;  %v1444_v48 = vmul.f32 %v2707_v40, %v1443_v24  ;;  %p2017_p1 = pnand %p2016_p12, %p2010_p7 }
 0x20c   : > { %v1287_v35 = vpop.permute.xlu0 %1286  ;;  %v1415_v43 = vpop.permute.xlu1 %1414  ;;  %1946 = vpow2.f32 %v1835_v36 }
 0x20d   : > { %v1293_v50 = vadd.f32 %v1287_v35, %v1273_v45  ;;  %v1421_v5 = vadd.f32 %v1415_v43, %v1401_v1  ;;  %v1218_v35 = vstv %s2729_s14  ;;  %v1445_v43 = vmul.f32 %v2696_v22, %v1443_v24 }
 0x20f   : > { %v1345_v53 = vrot.slane %v1293_v50, 1 }
 0x210   : > { %v1310_v51 = vpop.permute.xlu0 %1309  ;;  %v1285_v52 = vpop.permute.xlu1 %1284 }
 0x211   : > { %v1292_v3 = vadd.f32 %v1285_v52, %v1272_v46  ;;  %v1317_v11 = vadd.f32 %v1310_v51, %v1297_v39  ;;  %v1219_v46 = vmul.f32 %v2707_v40, %v1218_v35 }
 0x213   : > { %v1343_v15 = vrot.slane %v1292_v3, 1 }
 0x214   : > { %v1431_v57 = vpop.permute.xlu0 %1430  ;;  %v1308_v58 = vpop.permute.xlu1 %1307 }
 0x215   : > { %v2715_v59 = vsel %vm439_vm4, %v1342_v47, %v1343_v15  ;;  %v2718_v61 = vsel %vm439_vm4, %v1343_v15, %v1345_v53  ;;  %v1439_v7 = vadd.f32 %v1431_v57, %v1419_v4  ;;  %v1316_v16 = vadd.f32 %v1308_v58, %v1296_v34 }
 0x216   : > { %v1366_v47 = vstv %s2734_s6  ;;  %v1833_v15 = vmul.f32 -1.442695, %v2694_v18 }
 0x217   : > { %v1490_v23 = vrot.slane %v1439_v7, 1  ;;  %v1367_v1 = vmul.f32 %v2707_v40, %v1366_v47 }
 0x218   : > { %v1435_v2 = vpop.permute.xlu0 %1434  ;;  %v1312_v41 = vpop.permute.xlu1 %1311  ;;  %1948 = vpow2.f32 %v1833_v15 }
 0x219   : > { %v1441_v8 = vadd.f32 %v1435_v2, %v1421_v5  ;;  %v1318_v27 = vadd.f32 %v1312_v41, %v1298_v12  ;;  %v1446_v2 = vmul.f32 %v2710_v42, %v1443_v24  ;;  %v295_v41 = vstv %s2742_s23 }
 0x21a   : > { %v1220_v42 = vmul.f32 %v2696_v22, %v1218_v35 }
 0x21b   : > { %v1493_v56 = vrot.slane %v1441_v8, 1 }
 0x21c   : > { %v1458_v10 = vpop.permute.xlu0 %1457  ;;  %v1433_v19 = vpop.permute.xlu1 %1432 }
 0x21d   : > { %v1440_v20 = vadd.f32 %v1433_v19, %v1420_v6  ;;  %v1465_v3 = vadd.f32 %v1458_v10, %v1445_v43  ;;  %v1943_v10 = vpop.eup %1942 }
 0x21e   : > { %v1945_v30 = vpop.eup %1944 }
 0x21f   : > { %v1491_v25 = vrot.slane %v1440_v20, 1  ;;  %v1519_v39 = vadd.f32 1.0, %v1945_v30 }
 0x220   : > { %v1228_v0 = vpop.permute.xlu0 %1227  ;;  %v1456_v13 = vpop.permute.xlu1 %1455 }
 0x221   : > { %v2724_v14 = vsel %vm439_vm4, %v1490_v23, %v1491_v25  ;;  %v2727_v26 = vsel %vm439_vm4, %v1491_v25, %v1493_v56  ;;  %v1233_v54 = vadd.f32 %v1228_v0, %v1219_v46  ;;  %v1464_v51 = vadd.f32 %v1456_v13, %v1444_v48 }
 0x222   : > { %v758_v56 = vadd.f32 %v2584_v49, %v295_v41  ;;  %v297_v25 = vstv %s2749_s12 }
 0x223   : > { %v906_v49 = vadd.f32 %v2648_v17, %v297_v25  ;;  %v759_v17 = vadd.f32 %v2595_v63, %v295_v41  ;;  %v288_v63 = vld [vmem:[#allocation3] sm:$0xff]  ;;  %v289_v41 = vld [vmem:[#allocation3 + $0x8] sm:$0xff] }
 0x224   : > { %v1376_v21 = vpop.permute.xlu0 %1375  ;;  %v1460_v28 = vpop.permute.xlu1 %1459 }
 0x225   : > { %v1381_v8 = vadd.f32 %v1376_v21, %v1367_v1  ;;  %v1466_v19 = vadd.f32 %v1460_v28, %v1446_v2  ;;  %v1531_v21 = vadd.f32 1.0, %v1943_v10 }
 0x227   : > { %1950 = vrcp.f32 %v1531_v21 }
 0x228   : > { %v1328_v31 = vpop.permute.xlu0 %1327  ;;  %v2731_v32 = vpop.permute.xlu1 %1229 }
 0x229   : > { %v1336_v44 = vadd.f32 %v1328_v31, %v1316_v16  ;;  %v1234_v28 = vadd.f32 %v2731_v32, %v1220_v42 }
 0x22b   : > { %v1354_v57 = vrot.slane %v1336_v44, 2  ;;  %v1947_v44 = vpop.eup %1946 }
 0x22c   : > { %v1332_v55 = vpop.permute.xlu0 %1331  ;;  %v2740_v38 = vpop.permute.xlu1 %1377 }
 0x22d   : > { %v1338_v45 = vadd.f32 %v1332_v55, %v1318_v27  ;;  %v1368_v55 = vmul.f32 %v2696_v22, %v1366_v47  ;;  %v1949_v36 = vpop.eup %1948 }
 0x22e   : > { %v1520_v47 = vadd.f32 1.0, %v1949_v36 }
 0x22f   : > { %v1357_v58 = vrot.slane %v1338_v45, 2  ;;  %v1382_v45 = vadd.f32 %v2740_v38, %v1368_v55  ;;  %v907_v38 = vadd.f32 %v2657_v29, %v297_v25 }
 0x230   : > { %v1478_v50 = vpop.permute.xlu0 %1477  ;;  %v1330_v52 = vpop.permute.xlu1 %1329 }
 0x231   : > { %v1337_v53 = vadd.f32 %v1330_v52, %v1317_v11  ;;  %v1485_v62 = vadd.f32 %v1478_v50, %v1465_v3  ;;  %v1532_v50 = vadd.f32 1.0, %v1947_v44 }
 0x233   : > { %v1355_v37 = vrot.slane %v1337_v53, 2  ;;  %v1503_v20 = vrot.slane %v1485_v62, 2 }
 0x234   : > { %v1242_v60 = vpop.permute.xlu0 %1241  ;;  %v1476_v4 = vpop.permute.xlu1 %1475 }
 0x235   : > { %v1247_v5 = vadd.f32 %v1242_v60, %v1233_v54  ;;  %v1356_v6 = vsel %vm452_vm5, %v1354_v57, %v1355_v37  ;;  %v1484_v7 = vadd.f32 %v1476_v4, %v1464_v51  ;;  %v1358_v18 = vsel %vm452_vm5, %v1355_v37, %v1357_v58  ;;  %v1951_v54 = vpop.eup %1950 }
 0x236   : > { %v1551_v37 = vmul.f32 %v1951_v54, %v288_v63 }
 0x237   : > { %v1349_v23 = vadd.f32 %v2715_v59, %v1247_v5  ;;  %v1502_v40 = vrot.slane %v1484_v7, 2 }
 0x238   : > { %v1390_v0 = vpop.permute.xlu0 %1389  ;;  %v1480_v13 = vpop.permute.xlu1 %1479 }
 0x239   : > { %v1361_v31 = vadd.f32 %v1356_v6, %v1349_v23  ;;  %v1395_v9 = vadd.f32 %v1390_v0, %v1381_v8  ;;  %v1504_v33 = vsel %vm452_vm5, %v1502_v40, %v1503_v20  ;;  %v1486_v34 = vadd.f32 %v1480_v13, %v1466_v19 }
 0x23b   : > { %v1363_v12 = vadd.f32 %v1361_v31, %v758_v56  ;;  %v1497_v59 = vadd.f32 %v2724_v14, %v1395_v9  ;;  %v1505_v24 = vrot.slane %v1486_v34, 2 }
 0x23c   : > { %v1244_v16 = vpop.permute.xlu1 %1243 }
 0x23d   : > { %v1836_v27 = vmul.f32 -1.442695, %v1363_v12  ;;  %v1509_v35 = vadd.f32 %v1504_v33, %v1497_v59  ;;  %v1248_v43 = vadd.f32 %v1244_v16, %v1234_v28  ;;  %v1506_v11 = vsel %vm452_vm5, %v1503_v20, %v1505_v24 }
 0x23f   : > { %1952 = vpow2.f32 %v1836_v27  ;;  %v1511_v32 = vadd.f32 %v1509_v35, %v906_v49  ;;  %v1350_v14 = vadd.f32 %v2718_v61, %v1248_v43 }
 0x240   : > { %1954 = vrcp.f32 %v1519_v39  ;;  %v1392_v46 = vpop.permute.xlu1 %1391 }
 0x241   : > { %1956 = vtanh.f32 %v1511_v32  ;;  %v1362_v22 = vadd.f32 %v1358_v18, %v1350_v14  ;;  %v1396_v48 = vadd.f32 %v1392_v46, %v1382_v45 }
 0x242   : > { %1958 = vrcp.f32 %v1532_v50 }
 0x243   : > { %v1364_v52 = vadd.f32 %v1362_v22, %v759_v17  ;;  %v1498_v3 = vadd.f32 %v2727_v26, %v1396_v48 }
 0x245   : > { %v1837_v53 = vmul.f32 -1.442695, %v1364_v52  ;;  %v1510_v15 = vadd.f32 %v1506_v11, %v1498_v3 }
 0x247   : > { %1960 = vpow2.f32 %v1837_v53  ;;  %v1512_v61 = vadd.f32 %v1510_v15, %v907_v38 }
 0x248   : > { %1962 = vrcp.f32 %v1520_v47 }
 0x249   : > { %v1953_v51 = vpop.eup %1952  ;;  %1964 = vtanh.f32 %v1512_v61 }
 0x24a   : > { %v1955_v57 = vpop.eup %1954  ;;  %v1543_v62 = vadd.f32 1.0, %v1953_v51 }
 0x24b   : > { %v1957_v58 = vpop.eup %1956 }
 0x24c   : > { %v1553_v26 = vmul.f32 %v1957_v58, %v1955_v57  ;;  %1966 = vrcp.f32 %v1543_v62  ;;  %v1959_v29 = vpop.eup %1958 }
 0x24d   : > { %v1552_v7 = vmul.f32 %v1959_v29, %v289_v41 }
 0x24e   : > { %v1555_v1 = vadd.f32 %v1553_v26, %v1551_v37 }
 0x250   : > { %1968 = vtanh.f32 %v1555_v1  ;;  %1564 = vst.msk [vmem:[#allocation3] sm:$0xff] %vm1561_vm6, %v1555_v1  ;;  %1568 = vst.msk [vmem:[%s2267_s1] sm:$0xff] %vm1561_vm6, %v1555_v1 }
 0x251   : > { %v1961_v2 = vpop.eup %1960 }
 0x252   : > { %v1963_v60 = vpop.eup %1962  ;;  %v1544_v5 = vadd.f32 1.0, %v1961_v2 }
 0x253   : > { %v1965_v4 = vpop.eup %1964 }
 0x254   : > { %v1554_v6 = vmul.f32 %v1965_v4, %v1963_v60  ;;  %1970 = vrcp.f32 %v1544_v5 }
 0x256   : > { %v1556_v18 = vadd.f32 %v1554_v6, %v1552_v7  ;;  %v1967_v8 = vpop.eup %1966 }
 0x258   : > { %1972 = vtanh.f32 %v1556_v18  ;;  %1565 = vst.msk [vmem:[#allocation3 + $0x8] sm:$0xff] %vm1561_vm6, %v1556_v18  ;;  %1569 = vst.msk [vmem:[%s2267_s1 + $0x8] sm:$0xff] %vm1561_vm6, %v1556_v18 }
 0x259   : > { %2020 = shalt.err (!%p2017_p1)
}
 0x25a   : > { %s2021_s1 = scalar_lea.hbm %s2781_s8, 256  ;;  %s2025_s6 = scalar_lea.hbm %s2852_s4, 512 }
 0x25b   : > { %p2022_p4 = scmp.ne.s32.totalorder %s2781_s8, %s2021_s1  ;;  %p2026_p3 = scmp.lt.u32.totalorder %s2781_s8, %s2852_s4 }
 0x25c   : > { %p2027_p9 = scmp.lt.u32.totalorder %s2025_s6, %s2021_s1  ;;  %p2029_p13 = scmp.lt.u32.totalorder %s2021_s1, %s2781_s8 }
 0x25d   : > { %p2023_p5 = pnand %p2022_p4, %p2868_p0 }
 0x25e   : > { %p2028_p10 = por %p2027_p9, %p2026_p3 }
 0x25f   : > { %p2024_p6 = pneg %p2023_p5 }
 0x260   : > { %p2030_p2 = por %p2029_p13, %p2028_p10 }
 0x262   : > { %p2031_p7 = pnand %p2030_p2, %p2024_p6 }
 0x264   : > { %2034 = shalt.err (!%p2031_p7)
}
 0x265   : > { %s2118_s24 = smov 128   ;;  %s2119_s11 = smov 8   ;;  %v1969_v10 = vpop.eup %1968 }
 0x266   : > { %1852 = dma.vmem_to_hbm [thread:$0]  (%p2868_p0), %s2783_s27, 256, %s2781_s8, %s2790_s19, %s2118_s24, %s2118_s24, %s2119_s11   ;;  %v1559_v19 = vmul.f32 %v1969_v10, %v1967_v8  ;;  %v1971_v20 = vpop.eup %1970 }
 0x267   : > { %v1973_v23 = vpop.eup %1972 }
 0x268   : > { %1562 = vst.msk [vmem:[#allocation2] sm:$0xff] %vm1561_vm6, %v1559_v19  ;;  %1566 = vst.msk [vmem:[%s2265_s0] sm:$0xff] %vm1561_vm6, %v1559_v19  ;;  %v1560_v40 = vmul.f32 %v1973_v23, %v1971_v20 }
 0x26a   : > { %1563 = vst.msk [vmem:[#allocation2 + $0x8] sm:$0xff] %vm1561_vm6, %v1560_v40  ;;  %1567 = vst.msk [vmem:[%s2265_s0 + $0x8] sm:$0xff] %vm1561_vm6, %v1560_v40 }
 0x26b PF: > { %p1869_p8 = scmp.ge.s32.totalorder %s2109_s22, 2  ;;  %s1623_s28 = sand.u32 1, %s2081_s15  }
 0x26c   : > { %p2869_p0 = scmp.ne.s32.totalorder %s2860_s29, 0  ;;  %s1624_s27 = scalar_lea.sflag [#allocation6], %s1623_s28 }
 0x26e   : > { %p1862_p11 = pnand %p1869_p8, %p2869_p0 }
 0x270   : > { %2076 = dma.done.wait (!%p1862_p11), %s1624_s27, 256  }
 0x271   : > { %2078 = vsyncadd (!%p1862_p11), %s1624_s27, 4294967040  ;;  %s20_s22 = sadd.s32 1, %s2109_s22   ;;  %s2870_s15 = smov %s2085_s16 }
 0x272   : > { %p17_p12 = scmp.ge.s32.totalorder %s20_s22, 10   ;;  %s2871_s16 = smov %s2089_s17 }
 0x273   : > { %s2872_s17 = smov %s2225_s10  ;;  %s2873_s18 = smov %s2101_s20 }
 0x274   : > { %s2874_s19 = smov %s2105_s21  ;;  %s2875_s20 = smov %s2878_s25 }
 0x275   : > { %s2876_s21 = smov %s2882_s26  ;;  %19 = sbr.rel (!%p17_p12) target bundleno = 10 (0xa), region = 92 }
 0x27c   :  { %1629 = vsyncpa [#allocation6], 1 }
 0x27d   :  { %1631 = vsyncpa [#allocation6 + $0x1], 1 }
 0x27e   :  { %1632 = vsyncpa [#allocation7], 1 }
 0x27f   :  { %1634 = vsyncpa [#allocation7 + $0x1], 1 }
 0x280   :  { %1635 = vsyncpa [#allocation9], 1 }

// kernel: nano_lstm_forward.8
= control target key start
LH: loop header
LB: loop body
LE: loop exit
PB: predicated region body
PF: predicated region fallthrough
CT: control target
= control target key end

     0   :  { %s7025_s0 = inlined_call_operand.vmem [shape: f32[180], index: 0, kind: input, shape index: {}]   ;;  %s7026_s1 = inlined_call_operand.vmem [shape: f32[4], index: 1, kind: input, shape index: {}]   ;;  %s7027_s2 = inlined_call_operand.hbm [shape: f32[2,4,4,16,16], index: 2, kind: input, shape index: {}]   ;;  %s7028_s3 = inlined_call_operand.vmem [shape: f32[2,4,16,16], index: 3, kind: output, shape index: {0}]   ;;  %s7029_s4 = inlined_call_operand.hbm [shape: f32[2,16,16], index: 4, kind: output, shape index: {1}]  }
   0x1   :  { %7063 = sst [smem:[#allocation247_spill]] %s7025_s0 }
   0x2   :  { %7064 = sst [smem:[#allocation248_spill]] %s7026_s1 }
   0x3   :  { %7065 = sst [smem:[#allocation249_spill]] %s7029_s4 }
   0x4   :  { %10 = vsyncpa [#allocation8], 0 }
   0x5   :  { %11 = vsyncpa [#allocation10], 0 }
   0x6   :  { %12 = vsyncpa [#allocation6], 0 }
   0x7   :  { %14 = vsyncpa [#allocation6 + $0x1], 0 }
   0x8   :  { %15 = vsyncpa [#allocation7], 0 }
   0x9   :  { %17 = vsyncpa [#allocation7 + $0x1], 0  ;;  %s4197_s15 = smov 0   ;;  %s4199_s16 = smov 0  }
   0xa   :  { %s4201_s17 = smov 0   ;;  %s4203_s18 = smov 0  }
   0xb   :  { %s4205_s19 = smov 0   ;;  %s4207_s20 = smov 0  }
   0xc   :  { %s4209_s21 = smov 0   ;;  %s4211_s22 = smov 0  }
   0xd   :  { %s4213_s23 = smov 0   ;;  %s4215_s24 = smov 0  }
   0xe   :  { %s4217_s25 = smov 0  }
   0xf LB: > { %7066 = sst [smem:[#allocation17_spill]] %s4118_s15  ;;  %s3580_s26 = sadd.s32 4294967295, %s4158_s25   ;;  %s4158_s25 = sphi %s4217_s25, %s23_s25   ;;  %s4154_s24 = sphi %s4215_s24, %s7598_s24   ;;  %s4150_s23 = sphi %s4213_s23, %s7590_s23   ;;  %s4146_s22 = sphi %s4211_s22, %s7597_s22   ;;  %s4142_s21 = sphi %s4209_s21, %s7589_s21   ;;  %s4138_s20 = sphi %s4207_s20, %s7596_s20   ;;  %s4134_s19 = sphi %s4205_s19, %s7595_s19   ;;  %s4130_s18 = sphi %s4203_s18, %s7594_s18   ;;  %s4126_s17 = sphi %s4201_s17, %s7593_s17   ;;  %s4122_s16 = sphi %s4199_s16, %s7592_s16   ;;  %s4118_s15 = sphi %s4197_s15, %s7591_s15  }
  0x10   : > { %7067 = sst [smem:[#allocation18_spill]] %s4150_s23  ;;  %s3581_s27 = sadd.s32 4294967294, %s4158_s25  }
  0x11   : > { %7068 = sst [smem:[#allocation19_spill]] %s4158_s25  ;;  %p93_p0 = scmp.ne.s32.totalorder %s4138_s20, %s4134_s19 }
  0x12   : > { %p94_p1 = scmp.eq.s32.totalorder %s4158_s25, 0  ;;  %p99_p2 = scmp.ne.s32.totalorder %s4134_s19, %s4130_s18 }
  0x13   : > { %p4257_p3 = scmp.eq.s32.totalorder %s3580_s26, 0  ;;  %p150_p5 = scmp.ne.s32.totalorder %s4126_s17, %s4122_s16 }
  0x14   : > { %p4262_p4 = por %p94_p1, %p93_p0  ;;  %p151_p7 = scmp.eq.s32.totalorder %s3580_s26, 7 }
  0x15   : > { %s7069_s29 = scalar_select %p4257_p3, 1, 0 }
  0x16   : > { %p4270_p6 = por %p4257_p3, %p99_p2  ;;  %p156_p8 = scmp.ne.s32.totalorder %s4122_s16, %s4118_s15 }
  0x17   : > { %p157_p9 = scmp.eq.s32.totalorder %s3581_s27, 7  ;;  %p4276_p10 = por %p151_p7, %p150_p5 }
  0x18   : > { %s7071_s6 = scalar_select %p4270_p6, 1, 0 }
  0x19   : > { %s7072_s7 = scalar_select %p4276_p10, 1, 0 }
  0x1a   : > { %p3582_p11 = scmp.ge.s32.totalorder %s4158_s25, 1  ;;  %p4281_p12 = por %p157_p9, %p156_p8 }
  0x1b   : > { %p164_p13 = scmp.lt.s32.totalorder %s4158_s25, 9  ;;  %s7075_s0 = sld [smem:[#allocation247_spill]] }
  0x1c   : > { %s7073_s8 = scalar_select %p4281_p12, 1, 0 }
  0x1d   : > { %p4289_p0 = pnand %p3582_p11, %p164_p13  ;;  %p3828_p2 = scmp.lt.s32.totalorder %s4158_s25, 8 }
  0x1e   : > { %7074 = sst [smem:[#allocation20_spill]] %s7073_s8  ;;  %s7077_s1 = sld [smem:[#allocation248_spill]] }
  0x1f   : > { %s7076_s12 = scalar_select %p4289_p0, 1, 0 }
  0x20   : > { %p3811_p1 = pneg %p4289_p0  ;;  %p4307_p7 = pnand %p3828_p2, %p4262_p4 }
  0x21   : > { %s177_s11 = sshll.u32 %s7075_s0, 4  ;;  %s178_s11 = int_to_ptr.vmem [resolvable:$true] %s177_s11 }
  0x22   : > { %p4301_p5 = pnand %p3811_p1, %p4257_p3  ;;  %s3968_s9 = scalar_lea.vmem %s178_s11, 32 }
  0x23   : > { %s7079_s27 = scalar_select %p4307_p7, 1, 0 }
  0x24   : > { %s188_s18 = sshll.u32 %s7077_s1, 4  ;;  %p3969_p8 = scmp.ne.s32.totalorder %s178_s11, %s3968_s9  ;;  %s189_s18 = int_to_ptr.vmem [resolvable:$true] %s188_s18 }
  0x25   : > { %p3970_p9 = pneg %p4301_p5  ;;  %p3976_p12 = scmp.lt.s32.totalorder %s178_s11, %s178_s11 }
  0x26   : > { %p3977_p10 = scmp.lt.s32.totalorder %s3968_s9, %s3968_s9 }
  0x27   : > { %p3971_p11 = pnand %p3970_p9, %p3969_p8 }
  0x28   : > { %p3978_p6 = por %p3977_p10, %p3976_p12 }
  0x29   : > { %p3972_p13 = pneg %p3971_p11 }
  0x2b   : > { %p3979_p1 = pnand %p3978_p6, %p3972_p13 }
  0x2d   : > { %3982 = shalt.err (!%p3979_p1)
}
  0x2e   : > { %s4160_s10 = smov [#allocation5]   ;;  %s3983_s5 = scalar_lea.vmem %s189_s18, 16 }
  0x2f   : > { %3814 = dma.vmem_to_smem (!%p4301_p5), %s178_s11, 32, %s4160_s10, [#allocation8]  }
  0x30   : > { %p3984_p4 = scmp.ne.s32.totalorder %s189_s18, %s3983_s5  ;;  %p3991_p0 = scmp.lt.s32.totalorder %s189_s18, %s189_s18 }
  0x31   : > { %p3992_p7 = scmp.lt.s32.totalorder %s3983_s5, %s3983_s5 }
  0x32   : > { %p3986_p2 = pnand %p3984_p4, %p3970_p9 }
  0x33   : > { %p3993_p8 = por %p3992_p7, %p3991_p0 }
  0x34   : > { %p3987_p3 = pneg %p3986_p2 }
  0x36   : > { %p3994_p11 = pnand %p3993_p8, %p3987_p3 }
  0x38   : > { %3997 = shalt.err (!%p3994_p11)
}
  0x39   : > { %s4161_s13 = smov [#allocation9]   ;;  %s32_s11 = sadd.s32 1, %s4150_s23 }
  0x3a   : > { %3817 = dma.vmem_to_smem (!%p4301_p5), %s189_s18, 16, %s4161_s13, [#allocation10]  }
  0x3b   : > { %p33_p6 = scmp.ge.s32.totalorder %s32_s11, 4  ;;  %s35_s14 = sadd.s32 1, %s4154_s24 }
  0x3c   : > { %s199_s9 = sand.u32 1, %s4138_s20   ;;  %s3587_s10 = sshll.u32 %s4150_s23, 3 }
  0x3d   : > { %s7600_s11 = smov (%p33_p6, %s32_s11), 0  ;;  %s7602_s14 = smov (!%p33_p6, %s35_s14), %s4154_s24 }
  0x3e   : > { %7080 = sst [smem:[#allocation21_spill]] %s7600_s11  ;;  %s82_s26 = ssub.s32 %s4150_s23, %s7600_s11 }
  0x3f   : > { %p37_p3 = scmp.ge.s32.totalorder %s7602_s14, 2  ;;  %s3586_s5 = sshll.u32 %s199_s9, 6 }
  0x40   : > { %s3588_s28 = sshll.u32 %s4154_s24, 5  ;;  %s203_s13 = scalar_lea.vmem [#allocation11], %s3586_s5 }
  0x41   : > { %s7604_s14 = smov (%p37_p3, %s7602_s14), 0  ;;  %s209_s18 = sadd.s32 %s3588_s28, %s3587_s10 }
  0x42   : > { %s212_s30 = sshll.u32 %s203_s13, 4  ;;  %s81_s0 = ssub.s32 %s4154_s24, %s7604_s14  ;;  %s4346_s30 = int_to_ptr.vmem [resolvable:$true] %s212_s30 }
  0x43   : > { %s3589_s1 = sshll.u32 %s209_s18, 7  ;;  %s83_s8 = sor.u32 %s82_s26, %s81_s0 }
  0x44   : > { %p138_p10 = scmp.eq.s32.totalorder %s81_s0, 0  ;;  %p84_p12 = scmp.eq.s32.totalorder %s83_s8, 0 }
  0x45   : > { %s4334_s11 = scalar_lea.hbm %s7027_s2, %s3589_s1  ;;  %s7081_s23 = sadd.s32 1, %s4126_s17 }
  0x46   : > { %s4339_s4 = scalar_select %p138_p10, %s4126_s17, %s7081_s23  }
  0x47   : > { %s7082_s28 = sadd.s32 1, %s4138_s20  ;;  %s4348_s26 = scalar_lea.sflag [#allocation6], %s199_s9 }
  0x48   : > { %s4344_s10 = scalar_select %p84_p12, %s4138_s20, %s7082_s28  }
  0x49   : > { %s3998_s0 = scalar_lea.hbm %s4334_s11, 1024  ;;  %p7083_p5 = scmp.ne.s32.totalorder %s7079_s27, 0 }
  0x4a   : > { %p3999_p0 = scmp.ne.s32.totalorder %s4334_s11, %s3998_s0  ;;  %s4003_s23 = scalar_lea.hbm %s7027_s2, 8192 }
  0x4b   : > { %p4000_p7 = pneg %p7083_p5  ;;  %p4004_p1 = scmp.lt.u32.totalorder %s4334_s11, %s7027_s2 }
  0x4c   : > { %p4005_p4 = scmp.lt.u32.totalorder %s4003_s23, %s3998_s0  ;;  %p4007_p8 = scmp.lt.u32.totalorder %s3998_s0, %s4334_s11 }
  0x4d   : > { %p4001_p9 = pnand %p4000_p7, %p3999_p0 }
  0x4e   : > { %p4006_p2 = por %p4005_p4, %p4004_p1 }
  0x4f   : > { %p4002_p13 = pneg %p4001_p9 }
  0x50   : > { %p4008_p11 = por %p4007_p8, %p4006_p2 }
  0x52   : > { %p4009_p6 = pnand %p4008_p11, %p4002_p13 }
  0x54   : > { %4012 = shalt.err (!%p4009_p6)
}
  0x55   : > { %s4013_s9 = scalar_lea.vmem %s4346_s30, 1024  ;;  %s4162_s5 = smov [#allocation11]  }
  0x56   : > { %p4014_p3 = scmp.ne.s32.totalorder %s4346_s30, %s4013_s9  ;;  %s4018_s18 = sshll.u32 %s4162_s5, 4  ;;  %s4019_s18 = int_to_ptr.vmem [resolvable:$false] %s4018_s18 }
  0x57   : > { %s4020_s13 = scalar_lea.vmem %s4019_s18, 2048  ;;  %p4021_p0 = scmp.lt.s32.totalorder %s4346_s30, %s4019_s18 }
  0x58   : > { %p4016_p10 = pnand %p4014_p3, %p4000_p7  ;;  %p4022_p9 = scmp.lt.s32.totalorder %s4020_s13, %s4013_s9 }
  0x5a   : > { %p4017_p12 = pneg %p4016_p10  ;;  %p4023_p1 = por %p4022_p9, %p4021_p0 }
  0x5c   : > { %p4024_p4 = pnand %p4023_p1, %p4017_p12 }
  0x5e   : > { %4027 = shalt.err (!%p4024_p4)
}
  0x5f   : > { %s4163_s28 = smov 128   ;;  %s4164_s0 = smov 8  }
  0x60   : > { %3821 = dma.hbm_to_vmem [thread:$0]  (!%p7083_p5), %s4334_s11, 1024, %s4346_s30, %s4348_s26, %s4163_s28, %s4163_s28, %s4164_s0  }
  0x61   : > { %p7084_p7 = scmp.ne.s32.totalorder %s7076_s12, 0 }
  0x63   : > { %224 = sbr.rel (%p7084_p7) target bundleno = 1505 (0x5e1), region = 32 }
  0x6a   : > { %p7085_p13 = scmp.ne.s32.totalorder %s7069_s29, 0 }
  0x6c   : > { %4101 = dma.done.wait (%p7085_p13), [#allocation8], 32  }
  0x6d   : > { %4103 = vsyncadd (%p7085_p13), [#allocation8], 4294967264 }
  0x6e   : > { %4105 = dma.done.wait (%p7085_p13), [#allocation10], 16  }
  0x6f   : > { %4107 = vsyncadd (%p7085_p13), [#allocation10], 4294967280  ;;  %s234_s1 = sand.u32 1, %s4134_s19   ;;  %p7086_p5 = scmp.ne.s32.totalorder %s7071_s6, 0 }
  0x70   : > { %s3593_s27 = sshll.u32 %s234_s1, 6  ;;  %s235_s30 = scalar_lea.sflag [#allocation6], %s234_s1 }
  0x71   : > { %s4387_s11 = scalar_lea.vmem [#allocation11], %s3593_s27 }
  0x72   : > { %4109 = dma.done.wait (%p7086_p5), %s235_s30, 1024  }
  0x73   : > { %4111 = vsyncadd (%p7086_p5), %s235_s30, 4294966272 }
  0x74   : > { %243 = sfence }
  0x75   : > { %s7055_s29 = sand.u32 1, %s4122_s16   ;;  %p273_p2 = scmp.lt.s32.totalorder %s4146_s22, 1 }
  0x76   : > { %s3594_s12 = sshll.u32 %s7055_s29, 4  ;;  %p275_p8 = scmp.lt.s32.totalorder %s4142_s21, 3 }
  0x77   : > { %s274_s26 = scalar_select %p273_p2, %s4146_s22, 1 }
  0x78   : > { %s276_s15 = scalar_select %p275_p8, %s4142_s21, 3 }
  0x79   : > { %s3596_s23 = sshll.u32 %s274_s26, 3  ;;  %s4405_s13 = scalar_lea.vmem [#allocation12], %s3594_s12 }
  0x7a   : > { %s3595_s25 = sshll.u32 %s276_s15, 1  ;;  %p3598_p11 = scmp.ne.s32.totalorder %s4142_s21, 0 }
  0x7b   : > { %s279_s8 = sadd.s32 %s3596_s23, %s3595_s25  ;;  %vm286_vm0 = vcmask (!%p3598_p11), 130048   ;;  %vm291_vm1 = vcmask (!%p3598_p11), 146432   ;;  %vm294_vm2 = vcmask (!%p3598_p11), 140288   ;;  %v4165_v0 = vmov (!%p3598_p11), 0.0  }
  0x7c   : > { %s3597_s9 = sshll.u32 %s279_s8, 3  ;;  %285 = sbr.rel (%p3598_p11) target bundleno = 131 (0x83), region = 48  ;;  %287 = vst.msk [vmem:[#allocation2] sm:$0xff] (!%p3598_p11), %vm286_vm0, %v4165_v0  ;;  %288 = vst.msk [vmem:[#allocation2 + $0x8] sm:$0xff] (!%p3598_p11), %vm286_vm0, %v4165_v0 }
  0x7d   : > { %s4403_s18 = scalar_lea.vmem %s7028_s3, %s3597_s9  ;;  %289 = vst.msk [vmem:[#allocation3] sm:$0xff] (!%p3598_p11), %vm286_vm0, %v4165_v0  ;;  %290 = vst.msk [vmem:[#allocation3 + $0x8] sm:$0xff] (!%p3598_p11), %vm286_vm0, %v4165_v0 }
  0x7e   : > { %292 = vst.msk [vmem:[#allocation4] sm:$0xff] (!%p3598_p11), %vm291_vm1, %v4165_v0  ;;  %293 = vst.msk [vmem:[#allocation4 + $0x8] sm:$0xff] (!%p3598_p11), %vm291_vm1, %v4165_v0 }
  0x7f   : > { %295 = vst.msk [vmem:[#allocation4 + $0x10] sm:$0x3] (!%p3598_p11), %vm294_vm2, %v4165_v0 }
  0x83 PF: > { %v308_v1 = vld [vmem:[%s4387_s11] sm:$0xff]  ;;  %s4166_s28 = smov 1   ;;  %v309_v2 = vld [vmem:[%s4387_s11 + $0x8] sm:$0xff]  ;;  %vm318_vm3 = vcmask 138248   ;;  %s3603_s21 = sld [smem:[#allocation5 + $0x2]]  ;;  %vm449_vm4 = vcmask 1046528  }
  0x84   : > { %312 = vrot.lane.b32.xlu0 %v308_v1, %s4166_s28  ;;  %s3602_s0 = sld [smem:[#allocation5 + $0x1]]  ;;  %s3605_s1 = sld [smem:[#allocation5 + $0x4]]  ;;  %vm462_vm5 = vcmask 1045504   ;;  %vm3395_vm6 = vcmask 130048  }
  0x85   : > { %s4167_s27 = smov 126   ;;  %s4168_s30 = smov 127  }
  0x86   : > { %s3606_s12 = sld [smem:[#allocation5 + $0x5]]  ;;  %s3608_s26 = sld [smem:[#allocation5 + $0x7]] }
  0x87   : > { %s3609_s15 = sld [smem:[#allocation5 + $0x8]]  ;;  %s3611_s23 = sld [smem:[#allocation5 + $0x2e]] }
  0x88   : > { %314 = vrot.lane.b32.xlu0 %v309_v2, %s4166_s28  ;;  %s3612_s25 = sld [smem:[#allocation5 + $0x2f]]  ;;  %s3614_s8 = sld [smem:[#allocation5 + $0x31]] }
  0x89   : > { %v343_v5 = vstv %s3603_s21  ;;  %s3615_s9 = sld [smem:[#allocation5 + $0x32]]  ;;  %s3617_s6 = sld [smem:[#allocation5 + $0x34]] }
  0x8a   : > { %v329_v6 = vstv %s3602_s0  ;;  %v362_v10 = vstv %s3605_s1  ;;  %s3618_s5 = sld [smem:[#allocation5 + $0x35]]  ;;  %s3620_s21 = sld [smem:[#allocation5 + $0x5b]] }
  0x8b   : > { %s3621_s0 = sld [smem:[#allocation5 + $0x5c]]  ;;  %s3623_s1 = sld [smem:[#allocation5 + $0x5e]] }
  0x8c   : > { %v382_v17 = vstv %s3606_s12  ;;  %v407_v20 = vstv %s3608_s26  ;;  %s3624_s12 = sld [smem:[#allocation5 + $0x5f]]  ;;  %s3626_s26 = sld [smem:[#allocation5 + $0x61]] }
  0x8d   : > { %v427_v25 = vstv %s3609_s15  ;;  %v479_v28 = vstv %s3611_s23  ;;  %s3627_s15 = sld [smem:[#allocation5 + $0x62]]  ;;  %s3629_s23 = sld [smem:[#allocation5 + $0x88]] }
  0x8e   : > { %v493_v31 = vstv %s3612_s25  ;;  %v512_v34 = vstv %s3614_s8  ;;  %s3630_s25 = sld [smem:[#allocation5 + $0x89]]  ;;  %s3632_s8 = sld [smem:[#allocation5 + $0x8b]] }
  0x8f   : > { %v532_v39 = vstv %s3615_s9  ;;  %v557_v42 = vstv %s3617_s6  ;;  %s3633_s9 = sld [smem:[#allocation5 + $0x8c]]  ;;  %s3635_s6 = sld [smem:[#allocation5 + $0x8e]] }
  0x90   : > { %v577_v47 = vstv %s3618_s5  ;;  %v627_v50 = vstv %s3620_s21  ;;  %s3636_s5 = sld [smem:[#allocation5 + $0x8f]]  ;;  %s3640_s21 = sld [smem:[#allocation5 + $0xa]] }
  0x91   : > { %v641_v53 = vstv %s3621_s0  ;;  %v660_v56 = vstv %s3623_s1  ;;  %s3641_s0 = sld [smem:[#allocation5 + $0xb]]  ;;  %s3643_s1 = sld [smem:[#allocation5 + $0xd]] }
  0x92   : > { %v680_v61 = vstv %s3624_s12  ;;  %v705_v0 = vstv %s3626_s26  ;;  %s3644_s12 = sld [smem:[#allocation5 + $0xe]]  ;;  %s3646_s26 = sld [smem:[#allocation5 + $0x10]] }
  0x93   : > { %s5498_s29 = sld [smem:[#allocation5 + $0x8d]]  ;;  %p7584_p3 = scmp.ne.s32.totalorder %s7072_s7, 0 }
  0xf6   : > { %v313_v3 = vpop.permute.xlu0 %312 }
  0xf7   : > { %319 = vst.msk [vmem:[#allocation4 + $0x1] sm:$0xff] %vm318_vm3, %v313_v3 }
  0xfa   : > { %v315_v4 = vpop.permute.xlu0 %314 }
  0xfb   : > { %320 = vst.msk [vmem:[#allocation4 + $0x9] sm:$0xff] %vm318_vm3, %v315_v4 }
  0xfe   : > { %v4414_v7 = vld [vmem:[#allocation4] sm:$0xff] }
  0xff   : > { %v344_v8 = vmul.f32 %v343_v5, %v4414_v7  ;;  %v330_v9 = vmul.f32 %v329_v6, %v4414_v7  ;;  %v363_v13 = vmul.f32 %v362_v10, %v4414_v7  ;;  %v408_v21 = vmul.f32 %v407_v20, %v4414_v7 }
 0x100   : > { %v383_v22 = vmul.f32 %v382_v17, %v4414_v7  ;;  %v480_v29 = vmul.f32 %v479_v28, %v4414_v7  ;;  %v428_v30 = vmul.f32 %v427_v25, %v4414_v7  ;;  %v494_v32 = vmul.f32 %v493_v31, %v4414_v7 }
 0x101   : > { %348 = vrot.lane.b32.xlu0 %v344_v8, %s4167_s27  ;;  %334 = vrot.lane.b32.xlu1 %v330_v9, %s4168_s30  ;;  %v513_v35 = vmul.f32 %v512_v34, %v4414_v7  ;;  %v558_v43 = vmul.f32 %v557_v42, %v4414_v7  ;;  %v533_v44 = vmul.f32 %v532_v39, %v4414_v7  ;;  %v775_v9 = vstv %s3629_s23  ;;  %s3649_s23 = sld [smem:[#allocation5 + $0x37]] }
 0x102   : > { %v4420_v11 = vld [vmem:[#allocation4 + $0x8] sm:$0xff]  ;;  %v4424_v14 = vld [vmem:[#allocation4 + $0x10] sm:$0x3]  ;;  %v628_v51 = vmul.f32 %v627_v50, %v4414_v7  ;;  %v578_v52 = vmul.f32 %v577_v47, %v4414_v7  ;;  %v642_v54 = vmul.f32 %v641_v53, %v4414_v7  ;;  %v661_v57 = vmul.f32 %v660_v56, %v4414_v7 }
 0x103   : > { %v331_v12 = vmul.f32 %v329_v6, %v4420_v11  ;;  %v365_v15 = vmul.f32 %v362_v10, %v4424_v14  ;;  %v345_v16 = vmul.f32 %v343_v5, %v4420_v11  ;;  %v384_v18 = vmul.f32 %v382_v17, %v4420_v11 }
 0x104   : > { %v364_v19 = vmul.f32 %v362_v10, %v4420_v11  ;;  %v410_v23 = vmul.f32 %v407_v20, %v4424_v14  ;;  %v385_v24 = vmul.f32 %v382_v17, %v4424_v14  ;;  %v429_v26 = vmul.f32 %v427_v25, %v4420_v11 }
 0x105   : > { %369 = vrot.lane.b32.xlu0 %v363_v13, %s4168_s30  ;;  %336 = vrot.lane.b32.xlu1 %v331_v12, %s4168_s30  ;;  %v409_v27 = vmul.f32 %v407_v20, %v4420_v11  ;;  %v430_v33 = vmul.f32 %v427_v25, %v4424_v14  ;;  %v481_v36 = vmul.f32 %v479_v28, %v4420_v11  ;;  %v725_v5 = vstv %s3627_s15  ;;  %s3647_s15 = sld [smem:[#allocation5 + $0x11]] }
 0x106   : > { %v515_v37 = vmul.f32 %v512_v34, %v4424_v14  ;;  %v495_v38 = vmul.f32 %v493_v31, %v4420_v11  ;;  %v534_v40 = vmul.f32 %v532_v39, %v4420_v11  ;;  %v514_v41 = vmul.f32 %v512_v34, %v4420_v11 }
 0x107   : > { %v560_v45 = vmul.f32 %v557_v42, %v4424_v14  ;;  %v535_v46 = vmul.f32 %v532_v39, %v4424_v14  ;;  %v579_v48 = vmul.f32 %v577_v47, %v4420_v11  ;;  %v559_v49 = vmul.f32 %v557_v42, %v4420_v11 }
 0x108   : > { %v580_v55 = vmul.f32 %v577_v47, %v4424_v14  ;;  %v629_v58 = vmul.f32 %v627_v50, %v4420_v11  ;;  %v663_v59 = vmul.f32 %v660_v56, %v4424_v14  ;;  %v643_v60 = vmul.f32 %v641_v53, %v4420_v11 }
 0x109   : > { %373 = vrot.lane.b32.xlu0 %v365_v15, %s4168_s30  ;;  %350 = vrot.lane.b32.xlu1 %v345_v16, %s4167_s27  ;;  %v682_v62 = vmul.f32 %v680_v61, %v4420_v11  ;;  %v662_v63 = vmul.f32 %v660_v56, %v4420_v11  ;;  %v706_v1 = vmul.f32 %v705_v0, %v4414_v7  ;;  %v789_v13 = vstv %s3630_s25  ;;  %s3650_s25 = sld [smem:[#allocation5 + $0x38]] }
 0x10a   : > { %v681_v2 = vmul.f32 %v680_v61, %v4414_v7  ;;  %v708_v3 = vmul.f32 %v705_v0, %v4424_v14  ;;  %v683_v4 = vmul.f32 %v680_v61, %v4424_v14  ;;  %v727_v6 = vmul.f32 %v725_v5, %v4420_v11 }
 0x10b   : > { %v707_v8 = vmul.f32 %v705_v0, %v4420_v11  ;;  %v776_v10 = vmul.f32 %v775_v9, %v4414_v7  ;;  %v726_v12 = vmul.f32 %v725_v5, %v4414_v7  ;;  %v790_v15 = vmul.f32 %v789_v13, %v4414_v7 }
 0x10c   : > { %v728_v16 = vmul.f32 %v725_v5, %v4424_v14  ;;  %v808_v17 = vstv %s3632_s8  ;;  %v853_v25 = vstv %s3635_s6  ;;  %s3652_s8 = sld [smem:[#allocation5 + $0x3a]]  ;;  %s3655_s6 = sld [smem:[#allocation5 + $0x3d]] }
 0x10d   : > { %391 = vrot.lane.b32.xlu0 %v384_v18, %s4167_s27  ;;  %371 = vrot.lane.b32.xlu1 %v364_v19, %s4168_s30  ;;  %v809_v18 = vmul.f32 %v808_v17, %v4414_v7  ;;  %v777_v19 = vmul.f32 %v775_v9, %v4420_v11  ;;  %v811_v20 = vmul.f32 %v808_v17, %v4424_v14 }
 0x111   : > { %414 = vrot.lane.b32.xlu0 %v408_v21, %s4168_s30  ;;  %389 = vrot.lane.b32.xlu1 %v383_v22, %s4167_s27  ;;  %v791_v21 = vmul.f32 %v789_v13, %v4420_v11  ;;  %v828_v22 = vstv %s3633_s9  ;;  %s3653_s9 = sld [smem:[#allocation5 + $0x3b]] }
 0x112   : > { %v831_v31 = vmul.f32 %v828_v22, %v4424_v14 }
 0x115   : > { %418 = vrot.lane.b32.xlu0 %v410_v23, %s4168_s30  ;;  %393 = vrot.lane.b32.xlu1 %v385_v24, %s4167_s27  ;;  %v830_v23 = vmul.f32 %v828_v22, %v4420_v11  ;;  %v810_v24 = vmul.f32 %v808_v17, %v4420_v11 }
 0x119   : > { %436 = vrot.lane.b32.xlu0 %v429_v26, %s4167_s27  ;;  %416 = vrot.lane.b32.xlu1 %v409_v27, %s4168_s30  ;;  %v854_v26 = vmul.f32 %v853_v25, %v4414_v7  ;;  %v829_v27 = vmul.f32 %v828_v22, %v4414_v7 }
 0x11d   : > { %484 = vrot.lane.b32.xlu0 %v480_v29, %s4168_s30  ;;  %434 = vrot.lane.b32.xlu1 %v428_v30, %s4167_s27  ;;  %v856_v30 = vmul.f32 %v853_v25, %v4424_v14 }
 0x121   : > { %498 = vrot.lane.b32.xlu0 %v494_v32, %s4167_s27  ;;  %438 = vrot.lane.b32.xlu1 %v430_v33, %s4167_s27  ;;  %v873_v32 = vstv %s3636_s5  ;;  %s3656_s5 = sld [smem:[#allocation5 + $0x3e]] }
 0x125   : > { %519 = vrot.lane.b32.xlu0 %v513_v35, %s4168_s30  ;;  %486 = vrot.lane.b32.xlu1 %v481_v36, %s4168_s30  ;;  %v875_v35 = vmul.f32 %v873_v32, %v4420_v11  ;;  %v855_v36 = vmul.f32 %v853_v25, %v4420_v11 }
 0x129   : > { %523 = vrot.lane.b32.xlu0 %v515_v37, %s4168_s30  ;;  %500 = vrot.lane.b32.xlu1 %v495_v38, %s4167_s27  ;;  %v3637_v37 = vld [vmem:[%s4387_s11 + $0x10] sm:$0xff] }
 0x12d   : > { %541 = vrot.lane.b32.xlu0 %v534_v40, %s4167_s27  ;;  %521 = vrot.lane.b32.xlu1 %v514_v41, %s4168_s30  ;;  %v874_v40 = vmul.f32 %v873_v32, %v4414_v7 }
 0x131   : > { %564 = vrot.lane.b32.xlu0 %v558_v43, %s4168_s30  ;;  %539 = vrot.lane.b32.xlu1 %v533_v44, %s4167_s27  ;;  %v876_v43 = vmul.f32 %v873_v32, %v4424_v14  ;;  %v3638_v44 = vld [vmem:[%s4387_s11 + $0x18] sm:$0xff] }
 0x135   : > { %568 = vrot.lane.b32.xlu0 %v560_v45, %s4168_s30  ;;  %543 = vrot.lane.b32.xlu1 %v535_v46, %s4167_s27 }
 0x139   : > { %586 = vrot.lane.b32.xlu0 %v579_v48, %s4167_s27  ;;  %566 = vrot.lane.b32.xlu1 %v559_v49, %s4168_s30 }
 0x13d   : > { %632 = vrot.lane.b32.xlu0 %v628_v51, %s4168_s30  ;;  %584 = vrot.lane.b32.xlu1 %v578_v52, %s4167_s27 }
 0x141   : > { %646 = vrot.lane.b32.xlu0 %v642_v54, %s4167_s27  ;;  %588 = vrot.lane.b32.xlu1 %v580_v55, %s4167_s27 }
 0x145   : > { %667 = vrot.lane.b32.xlu0 %v661_v57, %s4168_s30  ;;  %634 = vrot.lane.b32.xlu1 %v629_v58, %s4168_s30 }
 0x149   : > { %671 = vrot.lane.b32.xlu0 %v663_v59, %s4168_s30  ;;  %648 = vrot.lane.b32.xlu1 %v643_v60, %s4167_s27 }
 0x14d   : > { %689 = vrot.lane.b32.xlu0 %v682_v62, %s4167_s27  ;;  %669 = vrot.lane.b32.xlu1 %v662_v63, %s4168_s30 }
 0x151   : > { %712 = vrot.lane.b32.xlu0 %v706_v1, %s4168_s30  ;;  %687 = vrot.lane.b32.xlu1 %v681_v2, %s4167_s27 }
 0x155   : > { %716 = vrot.lane.b32.xlu0 %v708_v3, %s4168_s30  ;;  %691 = vrot.lane.b32.xlu1 %v683_v4, %s4167_s27 }
 0x159   : > { %734 = vrot.lane.b32.xlu0 %v727_v6, %s4167_s27  ;;  %714 = vrot.lane.b32.xlu1 %v707_v8, %s4168_s30 }
 0x15d   : > { %780 = vrot.lane.b32.xlu0 %v776_v10, %s4168_s30  ;;  %732 = vrot.lane.b32.xlu1 %v726_v12, %s4167_s27 }
 0x161   : > { %794 = vrot.lane.b32.xlu0 %v790_v15, %s4167_s27  ;;  %736 = vrot.lane.b32.xlu1 %v728_v16, %s4167_s27 }
 0x165   : > { %815 = vrot.lane.b32.xlu0 %v809_v18, %s4168_s30  ;;  %782 = vrot.lane.b32.xlu1 %v777_v19, %s4168_s30 }
 0x169   : > { %819 = vrot.lane.b32.xlu0 %v811_v20, %s4168_s30  ;;  %796 = vrot.lane.b32.xlu1 %v791_v21, %s4167_s27 }
 0x16d   : > { %837 = vrot.lane.b32.xlu0 %v830_v23, %s4167_s27  ;;  %817 = vrot.lane.b32.xlu1 %v810_v24, %s4168_s30 }
 0x171   : > { %860 = vrot.lane.b32.xlu0 %v854_v26, %s4168_s30  ;;  %835 = vrot.lane.b32.xlu1 %v829_v27, %s4167_s27 }
 0x173   : > { %v4536_v28 = vpop.permute.xlu1 %334  ;;  %v4538_v29 = vpop.permute.xlu0 %348 }
 0x175   : > { %864 = vrot.lane.b32.xlu0 %v856_v30, %s4168_s30  ;;  %839 = vrot.lane.b32.xlu1 %v831_v31, %s4167_s27 }
 0x177   : > { %v4544_v33 = vpop.permute.xlu1 %336  ;;  %v4546_v34 = vpop.permute.xlu0 %369 }
 0x179   : > { %882 = vrot.lane.b32.xlu0 %v875_v35, %s4167_s27  ;;  %862 = vrot.lane.b32.xlu1 %v855_v36, %s4168_s30 }
 0x17b   : > { %v4553_v38 = vpop.permute.xlu1 %350  ;;  %v4555_v39 = vpop.permute.xlu0 %373 }
 0x17d   : > { %923 = vrot.lane.b32.xlu0 %v3637_v37, %s4166_s28  ;;  %880 = vrot.lane.b32.xlu1 %v874_v40, %s4167_s27 }
 0x17f   : > { %v4560_v41 = vpop.permute.xlu1 %371  ;;  %v4562_v42 = vpop.permute.xlu0 %391 }
 0x181   : > { %884 = vrot.lane.b32.xlu1 %v876_v43, %s4167_s27 }
 0x183   : > { %v4567_v45 = vpop.permute.xlu1 %389  ;;  %v4569_v46 = vpop.permute.xlu0 %414 }
 0x185   : > { %925 = vrot.lane.b32.xlu1 %v3638_v44, %s4166_s28 }
 0x187   : > { %v4572_v47 = vpop.permute.xlu1 %393  ;;  %v4574_v48 = vpop.permute.xlu0 %418 }
 0x18b   : > { %v4576_v49 = vpop.permute.xlu1 %416  ;;  %v4578_v50 = vpop.permute.xlu0 %436 }
 0x18f   : > { %v4580_v51 = vpop.permute.xlu1 %434  ;;  %v4582_v52 = vpop.permute.xlu0 %484 }
 0x190   : > { %7087 = vst [vmem:[#allocation22_spill] sm:$0xff] %v4582_v52 }
 0x193   : > { %v4584_v53 = vpop.permute.xlu1 %438  ;;  %v4586_v54 = vpop.permute.xlu0 %498 }
 0x194   : > { %7088 = vst [vmem:[#allocation23_spill] sm:$0xff] %v4586_v54 }
 0x197   : > { %v4588_v55 = vpop.permute.xlu1 %486  ;;  %v4590_v56 = vpop.permute.xlu0 %519 }
 0x198   : > { %7089 = vst [vmem:[#allocation24_spill] sm:$0xff] %v4588_v55 }
 0x19b   : > { %v4592_v57 = vpop.permute.xlu1 %500  ;;  %v4594_v58 = vpop.permute.xlu0 %523 }
 0x19c   : > { %7090 = vst [vmem:[#allocation25_spill] sm:$0xff] %v4592_v57 }
 0x19f   : > { %v4596_v59 = vpop.permute.xlu1 %521  ;;  %v4598_v60 = vpop.permute.xlu0 %541 }
 0x1a0   : > { %7091 = vst [vmem:[#allocation26_spill] sm:$0xff] %v4598_v60 }
 0x1a3   : > { %v4600_v61 = vpop.permute.xlu1 %539  ;;  %v4602_v62 = vpop.permute.xlu0 %564 }
 0x1a4   : > { %7092 = vst [vmem:[#allocation27_spill] sm:$0xff] %v4600_v61  ;;  %7093 = vst [vmem:[#allocation28_spill] sm:$0xff] %v4602_v62 }
 0x1a7   : > { %v4604_v63 = vpop.permute.xlu1 %543  ;;  %v4606_v0 = vpop.permute.xlu0 %568 }
 0x1a8   : > { %7094 = vst [vmem:[#allocation29_spill] sm:$0xff] %v4604_v63  ;;  %7095 = vst [vmem:[#allocation30_spill] sm:$0xff] %v4606_v0 }
 0x1ab   : > { %v4608_v1 = vpop.permute.xlu1 %566  ;;  %v4610_v2 = vpop.permute.xlu0 %586 }
 0x1ac   : > { %7096 = vst [vmem:[#allocation31_spill] sm:$0xff] %v4608_v1  ;;  %7097 = vst [vmem:[#allocation32_spill] sm:$0xff] %v4610_v2 }
 0x1af   : > { %v4612_v3 = vpop.permute.xlu1 %584  ;;  %v4614_v4 = vpop.permute.xlu0 %632 }
 0x1b0   : > { %7098 = vst [vmem:[#allocation33_spill] sm:$0xff] %v4612_v3  ;;  %7099 = vst [vmem:[#allocation34_spill] sm:$0xff] %v4614_v4 }
 0x1b3   : > { %v4616_v5 = vpop.permute.xlu1 %588  ;;  %v4618_v6 = vpop.permute.xlu0 %646 }
 0x1b4   : > { %7100 = vst [vmem:[#allocation35_spill] sm:$0xff] %v4616_v5  ;;  %7101 = vst [vmem:[#allocation36_spill] sm:$0xff] %v4618_v6 }
 0x1b7   : > { %v4620_v8 = vpop.permute.xlu1 %634  ;;  %v4622_v9 = vpop.permute.xlu0 %667 }
 0x1b8   : > { %7102 = vst [vmem:[#allocation37_spill] sm:$0xff] %v4620_v8  ;;  %7103 = vst [vmem:[#allocation38_spill] sm:$0xff] %v4622_v9 }
 0x1bb   : > { %v4624_v10 = vpop.permute.xlu1 %648  ;;  %v4626_v12 = vpop.permute.xlu0 %671 }
 0x1bc   : > { %7104 = vst [vmem:[#allocation39_spill] sm:$0xff] %v4624_v10  ;;  %7105 = vst [vmem:[#allocation40_spill] sm:$0xff] %v4626_v12 }
 0x1bf   : > { %v4628_v13 = vpop.permute.xlu1 %669  ;;  %v4630_v15 = vpop.permute.xlu0 %689 }
 0x1c0   : > { %7106 = vst [vmem:[#allocation41_spill] sm:$0xff] %v4628_v13  ;;  %7107 = vst [vmem:[#allocation42_spill] sm:$0xff] %v4630_v15 }
 0x1c3   : > { %v4632_v16 = vpop.permute.xlu1 %687  ;;  %v4634_v17 = vpop.permute.xlu0 %712 }
 0x1c4   : > { %7108 = vst [vmem:[#allocation43_spill] sm:$0xff] %v4632_v16  ;;  %7109 = vst [vmem:[#allocation44_spill] sm:$0xff] %v4634_v17 }
 0x1c7   : > { %v4636_v18 = vpop.permute.xlu1 %691  ;;  %v4638_v19 = vpop.permute.xlu0 %716 }
 0x1c8   : > { %7110 = vst [vmem:[#allocation45_spill] sm:$0xff] %v4636_v18  ;;  %7111 = vst [vmem:[#allocation46_spill] sm:$0xff] %v4638_v19 }
 0x1cb   : > { %v4640_v20 = vpop.permute.xlu1 %714  ;;  %v4642_v21 = vpop.permute.xlu0 %734 }
 0x1cc   : > { %7112 = vst [vmem:[#allocation47_spill] sm:$0xff] %v4640_v20  ;;  %7113 = vst [vmem:[#allocation48_spill] sm:$0xff] %v4642_v21  ;;  %v1017_v21 = vstv %s3646_s26  ;;  %s3664_s26 = sld [smem:[#allocation5 + $0x6a]] }
 0x1cf   : > { %v4644_v22 = vpop.permute.xlu1 %732  ;;  %v4646_v23 = vpop.permute.xlu0 %780 }
 0x1d0   : > { %7114 = vst [vmem:[#allocation49_spill] sm:$0xff] %v4644_v22  ;;  %7115 = vst [vmem:[#allocation50_spill] sm:$0xff] %v4646_v23  ;;  %v939_v23 = vstv %s3640_s21  ;;  %s3658_s21 = sld [smem:[#allocation5 + $0x64]] }
 0x1d3   : > { %v4648_v24 = vpop.permute.xlu1 %736  ;;  %v4650_v25 = vpop.permute.xlu0 %794 }
 0x1d4   : > { %7116 = vst [vmem:[#allocation51_spill] sm:$0xff] %v4648_v24  ;;  %7117 = vst [vmem:[#allocation52_spill] sm:$0xff] %v4650_v25 }
 0x1d7   : > { %v4652_v26 = vpop.permute.xlu1 %782  ;;  %v4654_v27 = vpop.permute.xlu0 %815 }
 0x1d8   : > { %7118 = vst [vmem:[#allocation53_spill] sm:$0xff] %v4652_v26  ;;  %7119 = vst [vmem:[#allocation54_spill] sm:$0xff] %v4654_v27 }
 0x1db   : > { %v4656_v30 = vpop.permute.xlu1 %796  ;;  %v4658_v31 = vpop.permute.xlu0 %819 }
 0x1dc   : > { %7120 = vst [vmem:[#allocation55_spill] sm:$0xff] %v4656_v30  ;;  %7121 = vst [vmem:[#allocation56_spill] sm:$0xff] %v4658_v31 }
 0x1df   : > { %v4660_v32 = vpop.permute.xlu1 %817  ;;  %v4662_v35 = vpop.permute.xlu0 %837 }
 0x1e0   : > { %7122 = vst [vmem:[#allocation57_spill] sm:$0xff] %v4660_v32  ;;  %7123 = vst [vmem:[#allocation58_spill] sm:$0xff] %v4662_v35  ;;  %v953_v35 = vstv %s3641_s0  ;;  %s3659_s0 = sld [smem:[#allocation5 + $0x65]] }
 0x1e3   : > { %v4664_v36 = vpop.permute.xlu1 %835  ;;  %v4666_v37 = vpop.permute.xlu0 %860 }
 0x1e4   : > { %7124 = vst [vmem:[#allocation59_spill] sm:$0xff] %v4664_v36  ;;  %7125 = vst [vmem:[#allocation60_spill] sm:$0xff] %v4666_v37 }
 0x1e7   : > { %v4668_v40 = vpop.permute.xlu1 %839  ;;  %v4670_v43 = vpop.permute.xlu0 %864 }
 0x1e8   : > { %7126 = vst [vmem:[#allocation61_spill] sm:$0xff] %v4668_v40  ;;  %7127 = vst [vmem:[#allocation62_spill] sm:$0xff] %v4670_v43 }
 0x1eb   : > { %v4672_v44 = vpop.permute.xlu1 %862  ;;  %v4674_v26 = vpop.permute.xlu0 %882 }
 0x1ec   : > { %7128 = vst [vmem:[#allocation63_spill] sm:$0xff] %v4672_v44  ;;  %7129 = vst [vmem:[#allocation64_spill] sm:$0xff] %v4674_v26 }
 0x1ef   : > { %v4676_v30 = vpop.permute.xlu1 %880  ;;  %v924_v25 = vpop.permute.xlu0 %923 }
 0x1f0   : > { %7130 = vst [vmem:[#allocation65_spill] sm:$0xff] %v4676_v30  ;;  %929 = vst.msk [vmem:[#allocation4 + $0x1] sm:$0xff] %vm318_vm3, %v924_v25  ;;  %v972_v30 = vstv %s3643_s1  ;;  %s3661_s1 = sld [smem:[#allocation5 + $0x67]] }
 0x1f3   : > { %v4679_v10 = vpop.permute.xlu1 %884 }
 0x1f4   : > { %7131 = vst [vmem:[#allocation66_spill] sm:$0xff] %v4679_v10 }
 0x1f7   : > { %v4681_v8 = vld [vmem:[#allocation4] sm:$0xff]  ;;  %v926_v40 = vpop.permute.xlu1 %925 }
 0x1f8   : > { %7132 = vst [vmem:[#allocation67_spill] sm:$0xff] %v4681_v8  ;;  %930 = vst.msk [vmem:[#allocation4 + $0x9] sm:$0xff] %vm318_vm3, %v926_v40  ;;  %v940_v43 = vmul.f32 %v939_v23, %v4681_v8  ;;  %v954_v26 = vmul.f32 %v953_v35, %v4681_v8  ;;  %v973_v24 = vmul.f32 %v972_v30, %v4681_v8 }
 0x1fa   : > { %944 = vrot.lane.b32.xlu0 %v940_v43, %s4168_s30 }
 0x1fe   : > { %958 = vrot.lane.b32.xlu0 %v954_v26, %s4167_s27  ;;  %v992_v26 = vstv %s3644_s12  ;;  %s3662_s12 = sld [smem:[#allocation5 + $0x68]] }
 0x1ff   : > { %v4688_v25 = vld [vmem:[#allocation4 + $0x8] sm:$0xff]  ;;  %v4692_v31 = vld [vmem:[#allocation4 + $0x10] sm:$0x3] }
 0x200   : > { %7133 = vst [vmem:[#allocation68_spill] sm:$0xff] %v4688_v25  ;;  %v941_v10 = vmul.f32 %v939_v23, %v4688_v25  ;;  %7134 = vst [vmem:[#allocation69_spill] sm:$0xff] %v4692_v31  ;;  %v955_v40 = vmul.f32 %v953_v35, %v4688_v25  ;;  %v975_v43 = vmul.f32 %v972_v30, %v4692_v31 }
 0x201   : > { %v974_v23 = vmul.f32 %v972_v30, %v4688_v25  ;;  %v994_v22 = vmul.f32 %v992_v26, %v4688_v25  ;;  %v995_v35 = vmul.f32 %v992_v26, %v4692_v31  ;;  %v1020_v30 = vmul.f32 %v1017_v21, %v4692_v31 }
 0x202   : > { %946 = vrot.lane.b32.xlu1 %v941_v10, %s4168_s30  ;;  %979 = vrot.lane.b32.xlu0 %v973_v24, %s4168_s30  ;;  %v993_v10 = vmul.f32 %v992_v26, %v4681_v8  ;;  %v1018_v24 = vmul.f32 %v1017_v21, %v4681_v8 }
 0x206   : > { %960 = vrot.lane.b32.xlu1 %v955_v40, %s4167_s27  ;;  %983 = vrot.lane.b32.xlu0 %v975_v43, %s4168_s30  ;;  %v1019_v40 = vmul.f32 %v1017_v21, %v4688_v25 }
 0x20a   : > { %981 = vrot.lane.b32.xlu1 %v974_v23, %s4168_s30  ;;  %1001 = vrot.lane.b32.xlu0 %v994_v22, %s4167_s27  ;;  %v1037_v22 = vstv %s3647_s15  ;;  %v1087_v23 = vstv %s3649_s23  ;;  %s3665_s15 = sld [smem:[#allocation5 + $0x6b]]  ;;  %s3667_s23 = sld [smem:[#allocation5 + $0x91]] }
 0x20b   : > { %v1039_v43 = vmul.f32 %v1037_v22, %v4688_v25  ;;  %v1038_v26 = vmul.f32 %v1037_v22, %v4681_v8 }
 0x20e   : > { %999 = vrot.lane.b32.xlu1 %v993_v10, %s4167_s27  ;;  %1024 = vrot.lane.b32.xlu0 %v1018_v24, %s4168_s30  ;;  %v1088_v10 = vmul.f32 %v1087_v23, %v4681_v8  ;;  %v1101_v24 = vstv %s3650_s25  ;;  %s3668_s25 = sld [smem:[#allocation5 + $0x92]] }
 0x20f   : > { %v1102_v21 = vmul.f32 %v1101_v24, %v4681_v8 }
 0x212   : > { %1003 = vrot.lane.b32.xlu1 %v995_v35, %s4167_s27  ;;  %1028 = vrot.lane.b32.xlu0 %v1020_v30, %s4168_s30  ;;  %v1040_v35 = vmul.f32 %v1037_v22, %v4692_v31  ;;  %v1120_v30 = vstv %s3652_s8  ;;  %s3670_s8 = sld [smem:[#allocation5 + $0x94]] }
 0x213   : > { %v1123_v22 = vmul.f32 %v1120_v30, %v4692_v31 }
 0x216   : > { %1026 = vrot.lane.b32.xlu1 %v1019_v40, %s4168_s30  ;;  %1046 = vrot.lane.b32.xlu0 %v1039_v43, %s4167_s27  ;;  %v1089_v40 = vmul.f32 %v1087_v23, %v4688_v25  ;;  %v1121_v43 = vmul.f32 %v1120_v30, %v4681_v8 }
 0x21a   : > { %1044 = vrot.lane.b32.xlu1 %v1038_v26, %s4167_s27  ;;  %1092 = vrot.lane.b32.xlu0 %v1088_v10, %s4168_s30  ;;  %v1103_v26 = vmul.f32 %v1101_v24, %v4688_v25  ;;  %v1140_v10 = vstv %s3653_s9  ;;  %s3671_s9 = sld [smem:[#allocation5 + $0x95]] }
 0x21b   : > { %v1142_v23 = vmul.f32 %v1140_v10, %v4688_v25 }
 0x21e   : > { %1048 = vrot.lane.b32.xlu1 %v1040_v35, %s4167_s27  ;;  %1106 = vrot.lane.b32.xlu0 %v1102_v21, %s4167_s27  ;;  %v1122_v35 = vmul.f32 %v1120_v30, %v4688_v25  ;;  %v1165_v21 = vstv %s3655_s6  ;;  %s3673_s6 = sld [smem:[#allocation5 + $0x97]] }
 0x21f   : > { %v1166_v24 = vmul.f32 %v1165_v21, %v4681_v8  ;;  %v1168_v30 = vmul.f32 %v1165_v21, %v4692_v31 }
 0x222   : > { %1094 = vrot.lane.b32.xlu1 %v1089_v40, %s4168_s30  ;;  %1127 = vrot.lane.b32.xlu0 %v1121_v43, %s4168_s30  ;;  %v1141_v40 = vmul.f32 %v1140_v10, %v4681_v8  ;;  %v1143_v43 = vmul.f32 %v1140_v10, %v4692_v31 }
 0x226   : > { %1108 = vrot.lane.b32.xlu1 %v1103_v26, %s4167_s27  ;;  %1131 = vrot.lane.b32.xlu0 %v1123_v22, %s4168_s30  ;;  %v1185_v26 = vstv %s3656_s5  ;;  %v1167_v22 = vmul.f32 %v1165_v21, %v4688_v25  ;;  %s3674_s5 = sld [smem:[#allocation5 + $0x98]] }
 0x227   : > { %v1186_v10 = vmul.f32 %v1185_v26, %v4681_v8 }
 0x22a   : > { %1129 = vrot.lane.b32.xlu1 %v1122_v35, %s4168_s30  ;;  %1149 = vrot.lane.b32.xlu0 %v1142_v23, %s4167_s27  ;;  %v1187_v35 = vmul.f32 %v1185_v26, %v4688_v25  ;;  %v1235_v23 = vstv %s3658_s21  ;;  %s3678_s21 = sld [smem:[#allocation5 + $0x13]] }
 0x22e   : > { %1147 = vrot.lane.b32.xlu1 %v1141_v40, %s4167_s27  ;;  %1172 = vrot.lane.b32.xlu0 %v1166_v24, %s4168_s30  ;;  %v1236_v40 = vmul.f32 %v1235_v23, %v4681_v8  ;;  %v1249_v24 = vstv %s3659_s0  ;;  %s3679_s0 = sld [smem:[#allocation5 + $0x14]] }
 0x22f   : > { %v1250_v21 = vmul.f32 %v1249_v24, %v4681_v8 }
 0x232   : > { %1151 = vrot.lane.b32.xlu1 %v1143_v43, %s4167_s27  ;;  %1176 = vrot.lane.b32.xlu0 %v1168_v30, %s4168_s30  ;;  %v1188_v43 = vmul.f32 %v1185_v26, %v4692_v31  ;;  %v1268_v30 = vstv %s3661_s1  ;;  %s3681_s1 = sld [smem:[#allocation5 + $0x16]] }
 0x233   : > { %v1271_v26 = vmul.f32 %v1268_v30, %v4692_v31 }
 0x236   : > { %1174 = vrot.lane.b32.xlu1 %v1167_v22, %s4168_s30  ;;  %1194 = vrot.lane.b32.xlu0 %v1187_v35, %s4167_s27  ;;  %v1237_v22 = vmul.f32 %v1235_v23, %v4688_v25  ;;  %v1269_v35 = vmul.f32 %v1268_v30, %v4681_v8 }
 0x23a   : > { %1192 = vrot.lane.b32.xlu1 %v1186_v10, %s4167_s27  ;;  %1240 = vrot.lane.b32.xlu0 %v1236_v40, %s4168_s30  ;;  %v1251_v10 = vmul.f32 %v1249_v24, %v4688_v25  ;;  %v1288_v40 = vstv %s3662_s12  ;;  %s3682_s12 = sld [smem:[#allocation5 + $0x17]] }
 0x23b   : > { %v1290_v23 = vmul.f32 %v1288_v40, %v4688_v25 }
 0x23e   : > { %1196 = vrot.lane.b32.xlu1 %v1188_v43, %s4167_s27  ;;  %1254 = vrot.lane.b32.xlu0 %v1250_v21, %s4167_s27  ;;  %v1270_v43 = vmul.f32 %v1268_v30, %v4688_v25  ;;  %v1313_v21 = vstv %s3664_s26  ;;  %s3684_s26 = sld [smem:[#allocation5 + $0x19]] }
 0x23f   : > { %v1314_v24 = vmul.f32 %v1313_v21, %v4681_v8  ;;  %v1316_v30 = vmul.f32 %v1313_v21, %v4692_v31 }
 0x242   : > { %1242 = vrot.lane.b32.xlu1 %v1237_v22, %s4168_s30  ;;  %1275 = vrot.lane.b32.xlu0 %v1269_v35, %s4168_s30  ;;  %v1289_v22 = vmul.f32 %v1288_v40, %v4681_v8  ;;  %v1291_v35 = vmul.f32 %v1288_v40, %v4692_v31 }
 0x246   : > { %1256 = vrot.lane.b32.xlu1 %v1251_v10, %s4167_s27  ;;  %1279 = vrot.lane.b32.xlu0 %v1271_v26, %s4168_s30  ;;  %v1333_v10 = vstv %s3665_s15  ;;  %v1315_v26 = vmul.f32 %v1313_v21, %v4688_v25  ;;  %s3685_s15 = sld [smem:[#allocation5 + $0x1a]] }
 0x247   : > { %v1334_v40 = vmul.f32 %v1333_v10, %v4681_v8 }
 0x24a   : > { %1277 = vrot.lane.b32.xlu1 %v1270_v43, %s4168_s30  ;;  %1297 = vrot.lane.b32.xlu0 %v1290_v23, %s4167_s27  ;;  %v1335_v43 = vmul.f32 %v1333_v10, %v4688_v25  ;;  %v1383_v23 = vstv %s3667_s23  ;;  %s3687_s23 = sld [smem:[#allocation5 + $0x40]] }
 0x24e   : > { %1295 = vrot.lane.b32.xlu1 %v1289_v22, %s4167_s27  ;;  %1320 = vrot.lane.b32.xlu0 %v1314_v24, %s4168_s30  ;;  %v1384_v22 = vmul.f32 %v1383_v23, %v4681_v8  ;;  %v1397_v24 = vstv %s3668_s25  ;;  %s3688_s25 = sld [smem:[#allocation5 + $0x41]] }
 0x24f   : > { %v1398_v21 = vmul.f32 %v1397_v24, %v4681_v8 }
 0x252   : > { %1299 = vrot.lane.b32.xlu1 %v1291_v35, %s4167_s27  ;;  %1324 = vrot.lane.b32.xlu0 %v1316_v30, %s4168_s30  ;;  %v1336_v35 = vmul.f32 %v1333_v10, %v4692_v31  ;;  %v1416_v30 = vstv %s3670_s8  ;;  %s3690_s8 = sld [smem:[#allocation5 + $0x43]] }
 0x253   : > { %v1419_v10 = vmul.f32 %v1416_v30, %v4692_v31 }
 0x256   : > { %1322 = vrot.lane.b32.xlu1 %v1315_v26, %s4168_s30  ;;  %1342 = vrot.lane.b32.xlu0 %v1335_v43, %s4167_s27  ;;  %v1385_v26 = vmul.f32 %v1383_v23, %v4688_v25  ;;  %v1417_v43 = vmul.f32 %v1416_v30, %v4681_v8 }
 0x25a   : > { %1340 = vrot.lane.b32.xlu1 %v1334_v40, %s4167_s27  ;;  %1388 = vrot.lane.b32.xlu0 %v1384_v22, %s4168_s30  ;;  %v1399_v40 = vmul.f32 %v1397_v24, %v4688_v25  ;;  %v1436_v22 = vstv %s3671_s9  ;;  %s3691_s9 = sld [smem:[#allocation5 + $0x44]] }
 0x25b   : > { %v1438_v23 = vmul.f32 %v1436_v22, %v4688_v25  ;;  %v1437_v24 = vmul.f32 %v1436_v22, %v4681_v8 }
 0x25e   : > { %1344 = vrot.lane.b32.xlu1 %v1336_v35, %s4167_s27  ;;  %1402 = vrot.lane.b32.xlu0 %v1398_v21, %s4167_s27  ;;  %v1418_v35 = vmul.f32 %v1416_v30, %v4688_v25  ;;  %v1461_v21 = vstv %s3673_s6  ;;  %s3693_s6 = sld [smem:[#allocation5 + $0x46]] }
 0x262   : > { %1390 = vrot.lane.b32.xlu1 %v1385_v26, %s4168_s30  ;;  %1423 = vrot.lane.b32.xlu0 %v1417_v43, %s4168_s30  ;;  %v1462_v43 = vmul.f32 %v1461_v21, %v4681_v8 }
 0x266   : > { %1404 = vrot.lane.b32.xlu1 %v1399_v40, %s4167_s27  ;;  %1427 = vrot.lane.b32.xlu0 %v1419_v10, %s4168_s30  ;;  %v1439_v40 = vmul.f32 %v1436_v22, %v4692_v31  ;;  %v1464_v10 = vmul.f32 %v1461_v21, %v4692_v31  ;;  %v3675_v22 = vld [vmem:[%s4387_s11 + $0x20] sm:$0xff] }
 0x26a   : > { %1425 = vrot.lane.b32.xlu1 %v1418_v35, %s4168_s30  ;;  %1445 = vrot.lane.b32.xlu0 %v1438_v23, %s4167_s27  ;;  %v1481_v35 = vstv %s3674_s5  ;;  %s3694_s5 = sld [smem:[#allocation5 + $0x47]] }
 0x26c   : > { %v4800_v26 = vpop.permute.xlu0 %944 }
 0x26d   : > { %7135 = vst [vmem:[#allocation70_spill] sm:$0xff] %v4800_v26 }
 0x26e   : > { %1443 = vrot.lane.b32.xlu1 %v1437_v24, %s4167_s27  ;;  %1468 = vrot.lane.b32.xlu0 %v1462_v43, %s4168_s30  ;;  %v1463_v24 = vmul.f32 %v1461_v21, %v4688_v25  ;;  %v1483_v43 = vmul.f32 %v1481_v35, %v4688_v25 }
 0x270   : > { %v4806_v30 = vpop.permute.xlu0 %958 }
 0x271   : > { %7136 = vst [vmem:[#allocation71_spill] sm:$0xff] %v4806_v30 }
 0x272   : > { %1447 = vrot.lane.b32.xlu1 %v1439_v40, %s4167_s27  ;;  %1472 = vrot.lane.b32.xlu0 %v1464_v10, %s4168_s30  ;;  %v1482_v10 = vmul.f32 %v1481_v35, %v4681_v8  ;;  %v1625_v8 = vstv %s3684_s26  ;;  %s3702_s26 = sld [smem:[#allocation5 + $0x73]] }
 0x274   : > { %v4812_v23 = vpop.permute.xlu1 %946  ;;  %v4814_v26 = vpop.permute.xlu0 %979 }
 0x275   : > { %7137 = vst [vmem:[#allocation72_spill] sm:$0xff] %v4812_v23  ;;  %7138 = vst [vmem:[#allocation73_spill] sm:$0xff] %v4814_v26  ;;  %v1484_v26 = vmul.f32 %v1481_v35, %v4692_v31 }
 0x276   : > { %1470 = vrot.lane.b32.xlu1 %v1463_v24, %s4168_s30  ;;  %1490 = vrot.lane.b32.xlu0 %v1483_v43, %s4167_s27  ;;  %v3676_v24 = vld [vmem:[%s4387_s11 + $0x28] sm:$0xff] }
 0x278   : > { %v4821_v30 = vpop.permute.xlu1 %960  ;;  %v4823_v40 = vpop.permute.xlu0 %983 }
 0x279   : > { %7139 = vst [vmem:[#allocation74_spill] sm:$0xff] %v4821_v30  ;;  %7140 = vst [vmem:[#allocation75_spill] sm:$0xff] %v4823_v40 }
 0x27a   : > { %1488 = vrot.lane.b32.xlu1 %v1482_v10, %s4167_s27  ;;  %1531 = vrot.lane.b32.xlu0 %v3675_v22, %s4166_s28 }
 0x27c   : > { %v4828_v23 = vpop.permute.xlu1 %981  ;;  %v4830_v21 = vpop.permute.xlu0 %1001 }
 0x27d   : > { %7141 = vst [vmem:[#allocation76_spill] sm:$0xff] %v4828_v23  ;;  %7142 = vst [vmem:[#allocation77_spill] sm:$0xff] %v4830_v21 }
 0x27e   : > { %1492 = vrot.lane.b32.xlu1 %v1484_v26, %s4167_s27 }
 0x280   : > { %v4835_v43 = vpop.permute.xlu1 %999  ;;  %v4837_v30 = vpop.permute.xlu0 %1024 }
 0x281   : > { %7143 = vst [vmem:[#allocation78_spill] sm:$0xff] %v4835_v43  ;;  %7144 = vst [vmem:[#allocation79_spill] sm:$0xff] %v4837_v30 }
 0x282   : > { %1533 = vrot.lane.b32.xlu1 %v3676_v24, %s4166_s28 }
 0x284   : > { %v4840_v40 = vpop.permute.xlu1 %1003  ;;  %v4842_v10 = vpop.permute.xlu0 %1028 }
 0x285   : > { %7145 = vst [vmem:[#allocation80_spill] sm:$0xff] %v4840_v40  ;;  %7146 = vst [vmem:[#allocation81_spill] sm:$0xff] %v4842_v10 }
 0x288   : > { %v4844_v22 = vpop.permute.xlu1 %1026  ;;  %v4846_v23 = vpop.permute.xlu0 %1046 }
 0x289   : > { %7147 = vst [vmem:[#allocation82_spill] sm:$0xff] %v4844_v22  ;;  %7148 = vst [vmem:[#allocation83_spill] sm:$0xff] %v4846_v23 }
 0x28c   : > { %v4848_v21 = vpop.permute.xlu1 %1044  ;;  %v4850_v35 = vpop.permute.xlu0 %1092 }
 0x28d   : > { %7149 = vst [vmem:[#allocation84_spill] sm:$0xff] %v4848_v21  ;;  %7150 = vst [vmem:[#allocation85_spill] sm:$0xff] %v4850_v35 }
 0x290   : > { %v4852_v26 = vpop.permute.xlu1 %1048  ;;  %v4854_v31 = vpop.permute.xlu0 %1106 }
 0x291   : > { %7151 = vst [vmem:[#allocation86_spill] sm:$0xff] %v4852_v26  ;;  %7152 = vst [vmem:[#allocation87_spill] sm:$0xff] %v4854_v31 }
 0x294   : > { %v4856_v43 = vpop.permute.xlu1 %1094  ;;  %v4858_v30 = vpop.permute.xlu0 %1127 }
 0x295   : > { %7153 = vst [vmem:[#allocation88_spill] sm:$0xff] %v4856_v43  ;;  %7154 = vst [vmem:[#allocation89_spill] sm:$0xff] %v4858_v30 }
 0x298   : > { %v4860_v24 = vpop.permute.xlu1 %1108  ;;  %v4862_v40 = vpop.permute.xlu0 %1131 }
 0x299   : > { %7155 = vst [vmem:[#allocation90_spill] sm:$0xff] %v4860_v24  ;;  %7156 = vst [vmem:[#allocation91_spill] sm:$0xff] %v4862_v40 }
 0x29c   : > { %v4864_v10 = vpop.permute.xlu1 %1129  ;;  %v4866_v22 = vpop.permute.xlu0 %1149 }
 0x29d   : > { %7157 = vst [vmem:[#allocation92_spill] sm:$0xff] %v4864_v10  ;;  %7158 = vst [vmem:[#allocation93_spill] sm:$0xff] %v4866_v22 }
 0x2a0   : > { %v4868_v23 = vpop.permute.xlu1 %1147  ;;  %v4870_v21 = vpop.permute.xlu0 %1172 }
 0x2a1   : > { %7159 = vst [vmem:[#allocation94_spill] sm:$0xff] %v4868_v23  ;;  %7160 = vst [vmem:[#allocation95_spill] sm:$0xff] %v4870_v21 }
 0x2a4   : > { %v4872_v35 = vpop.permute.xlu1 %1151  ;;  %v4874_v26 = vpop.permute.xlu0 %1176 }
 0x2a5   : > { %7161 = vst [vmem:[#allocation96_spill] sm:$0xff] %v4872_v35  ;;  %7162 = vst [vmem:[#allocation97_spill] sm:$0xff] %v4874_v26 }
 0x2a8   : > { %v4876_v31 = vpop.permute.xlu1 %1174  ;;  %v4878_v43 = vpop.permute.xlu0 %1194 }
 0x2a9   : > { %7163 = vst [vmem:[#allocation98_spill] sm:$0xff] %v4876_v31  ;;  %7164 = vst [vmem:[#allocation99_spill] sm:$0xff] %v4878_v43 }
 0x2ac   : > { %v4880_v30 = vpop.permute.xlu1 %1192  ;;  %v4882_v24 = vpop.permute.xlu0 %1240 }
 0x2ad   : > { %7165 = vst [vmem:[#allocation100_spill] sm:$0xff] %v4880_v30  ;;  %7166 = vst [vmem:[#allocation101_spill] sm:$0xff] %v4882_v24 }
 0x2b0   : > { %v4884_v40 = vpop.permute.xlu1 %1196  ;;  %v4886_v10 = vpop.permute.xlu0 %1254 }
 0x2b1   : > { %7167 = vst [vmem:[#allocation102_spill] sm:$0xff] %v4884_v40  ;;  %7168 = vst [vmem:[#allocation103_spill] sm:$0xff] %v4886_v10 }
 0x2b4   : > { %v4888_v22 = vpop.permute.xlu1 %1242  ;;  %v4890_v23 = vpop.permute.xlu0 %1275 }
 0x2b5   : > { %7169 = vst [vmem:[#allocation104_spill] sm:$0xff] %v4888_v22  ;;  %7170 = vst [vmem:[#allocation105_spill] sm:$0xff] %v4890_v23 }
 0x2b8   : > { %v4892_v21 = vpop.permute.xlu1 %1256  ;;  %v4894_v35 = vpop.permute.xlu0 %1279 }
 0x2b9   : > { %7171 = vst [vmem:[#allocation106_spill] sm:$0xff] %v4892_v21  ;;  %7172 = vst [vmem:[#allocation107_spill] sm:$0xff] %v4894_v35 }
 0x2bc   : > { %v4896_v26 = vpop.permute.xlu1 %1277  ;;  %v4898_v31 = vpop.permute.xlu0 %1297 }
 0x2bd   : > { %7173 = vst [vmem:[#allocation108_spill] sm:$0xff] %v4896_v26  ;;  %7174 = vst [vmem:[#allocation109_spill] sm:$0xff] %v4898_v31 }
 0x2c0   : > { %v4900_v43 = vpop.permute.xlu1 %1295  ;;  %v4902_v30 = vpop.permute.xlu0 %1320 }
 0x2c1   : > { %7175 = vst [vmem:[#allocation110_spill] sm:$0xff] %v4900_v43  ;;  %7176 = vst [vmem:[#allocation111_spill] sm:$0xff] %v4902_v30 }
 0x2c4   : > { %v4904_v24 = vpop.permute.xlu1 %1299  ;;  %v4906_v40 = vpop.permute.xlu0 %1324 }
 0x2c5   : > { %7177 = vst [vmem:[#allocation112_spill] sm:$0xff] %v4904_v24  ;;  %7178 = vst [vmem:[#allocation113_spill] sm:$0xff] %v4906_v40 }
 0x2c8   : > { %v4908_v10 = vpop.permute.xlu1 %1322  ;;  %v4910_v22 = vpop.permute.xlu0 %1342 }
 0x2c9   : > { %7179 = vst [vmem:[#allocation114_spill] sm:$0xff] %v4908_v10  ;;  %7180 = vst [vmem:[#allocation115_spill] sm:$0xff] %v4910_v22 }
 0x2cc   : > { %v4912_v23 = vpop.permute.xlu1 %1340  ;;  %v4914_v21 = vpop.permute.xlu0 %1388 }
 0x2cd   : > { %7181 = vst [vmem:[#allocation116_spill] sm:$0xff] %v4912_v23  ;;  %7182 = vst [vmem:[#allocation117_spill] sm:$0xff] %v4914_v21 }
 0x2d0   : > { %v4916_v35 = vpop.permute.xlu1 %1344  ;;  %v4918_v26 = vpop.permute.xlu0 %1402 }
 0x2d1   : > { %7183 = vst [vmem:[#allocation118_spill] sm:$0xff] %v4916_v35  ;;  %7184 = vst [vmem:[#allocation119_spill] sm:$0xff] %v4918_v26 }
 0x2d4   : > { %v4920_v31 = vpop.permute.xlu1 %1390  ;;  %v4922_v43 = vpop.permute.xlu0 %1423 }
 0x2d5   : > { %7185 = vst [vmem:[#allocation120_spill] sm:$0xff] %v4920_v31  ;;  %7186 = vst [vmem:[#allocation121_spill] sm:$0xff] %v4922_v43 }
 0x2d8   : > { %v4924_v30 = vpop.permute.xlu1 %1404  ;;  %v4926_v24 = vpop.permute.xlu0 %1427 }
 0x2d9   : > { %7187 = vst [vmem:[#allocation122_spill] sm:$0xff] %v4924_v30  ;;  %7188 = vst [vmem:[#allocation123_spill] sm:$0xff] %v4926_v24 }
 0x2dc   : > { %v4928_v40 = vpop.permute.xlu1 %1425  ;;  %v4930_v10 = vpop.permute.xlu0 %1445 }
 0x2dd   : > { %7189 = vst [vmem:[#allocation124_spill] sm:$0xff] %v4928_v40  ;;  %7190 = vst [vmem:[#allocation125_spill] sm:$0xff] %v4930_v10  ;;  %v1561_v40 = vstv %s3679_s0  ;;  %s3697_s0 = sld [smem:[#allocation5 + $0x6e]] }
 0x2e0   : > { %v4932_v22 = vpop.permute.xlu1 %1443  ;;  %v4934_v23 = vpop.permute.xlu0 %1468 }
 0x2e1   : > { %7191 = vst [vmem:[#allocation126_spill] sm:$0xff] %v4932_v22  ;;  %7192 = vst [vmem:[#allocation127_spill] sm:$0xff] %v4934_v23  ;;  %v1547_v22 = vstv %s3678_s21  ;;  %s3696_s21 = sld [smem:[#allocation5 + $0x6d]] }
 0x2e4   : > { %v4936_v21 = vpop.permute.xlu1 %1447  ;;  %v4938_v35 = vpop.permute.xlu0 %1472 }
 0x2e5   : > { %7193 = vst [vmem:[#allocation128_spill] sm:$0xff] %v4936_v21  ;;  %7194 = vst [vmem:[#allocation129_spill] sm:$0xff] %v4938_v35 }
 0x2e8   : > { %v4940_v26 = vpop.permute.xlu1 %1470  ;;  %v4942_v31 = vpop.permute.xlu0 %1490 }
 0x2e9   : > { %7195 = vst [vmem:[#allocation130_spill] sm:$0xff] %v4940_v26  ;;  %7196 = vst [vmem:[#allocation131_spill] sm:$0xff] %v4942_v31 }
 0x2ec   : > { %v4944_v30 = vpop.permute.xlu1 %1488  ;;  %v1532_v24 = vpop.permute.xlu0 %1531 }
 0x2ed   : > { %7197 = vst [vmem:[#allocation132_spill] sm:$0xff] %v4944_v30  ;;  %1537 = vst.msk [vmem:[#allocation4 + $0x1] sm:$0xff] %vm318_vm3, %v1532_v24  ;;  %v1580_v30 = vstv %s3681_s1  ;;  %s3699_s1 = sld [smem:[#allocation5 + $0x70]] }
 0x2f0   : > { %v4947_v10 = vpop.permute.xlu1 %1492 }
 0x2f1   : > { %7198 = vst [vmem:[#allocation133_spill] sm:$0xff] %v4947_v10 }
 0x2f4   : > { %v4949_v23 = vld [vmem:[#allocation4] sm:$0xff]  ;;  %v1534_v21 = vpop.permute.xlu1 %1533 }
 0x2f5   : > { %7199 = vst [vmem:[#allocation134_spill] sm:$0xff] %v4949_v23  ;;  %1538 = vst.msk [vmem:[#allocation4 + $0x9] sm:$0xff] %vm318_vm3, %v1534_v21  ;;  %v1548_v35 = vmul.f32 %v1547_v22, %v4949_v23  ;;  %v1562_v31 = vmul.f32 %v1561_v40, %v4949_v23  ;;  %v1581_v26 = vmul.f32 %v1580_v30, %v4949_v23 }
 0x2f7   : > { %1552 = vrot.lane.b32.xlu0 %v1548_v35, %s4168_s30 }
 0x2fb   : > { %1566 = vrot.lane.b32.xlu0 %v1562_v31, %s4167_s27  ;;  %v1600_v31 = vstv %s3682_s12  ;;  %s3700_s12 = sld [smem:[#allocation5 + $0x71]] }
 0x2fc   : > { %v4956_v24 = vld [vmem:[#allocation4 + $0x8] sm:$0xff]  ;;  %v4960_v43 = vld [vmem:[#allocation4 + $0x10] sm:$0x3] }
 0x2fd   : > { %7200 = vst [vmem:[#allocation135_spill] sm:$0xff] %v4956_v24  ;;  %v1549_v10 = vmul.f32 %v1547_v22, %v4956_v24  ;;  %7201 = vst [vmem:[#allocation136_spill] sm:$0xff] %v4960_v43  ;;  %v1563_v21 = vmul.f32 %v1561_v40, %v4956_v24  ;;  %v1583_v35 = vmul.f32 %v1580_v30, %v4960_v43 }
 0x2fe   : > { %v1582_v22 = vmul.f32 %v1580_v30, %v4956_v24  ;;  %v1602_v25 = vmul.f32 %v1600_v31, %v4956_v24  ;;  %v1626_v40 = vmul.f32 %v1625_v8, %v4949_v23  ;;  %v1628_v30 = vmul.f32 %v1625_v8, %v4960_v43 }
 0x2ff   : > { %1554 = vrot.lane.b32.xlu1 %v1549_v10, %s4168_s30  ;;  %1587 = vrot.lane.b32.xlu0 %v1581_v26, %s4168_s30  ;;  %v1601_v10 = vmul.f32 %v1600_v31, %v4949_v23  ;;  %v1603_v26 = vmul.f32 %v1600_v31, %v4960_v43 }
 0x303   : > { %1568 = vrot.lane.b32.xlu1 %v1563_v21, %s4167_s27  ;;  %1591 = vrot.lane.b32.xlu0 %v1583_v35, %s4168_s30  ;;  %v1627_v21 = vmul.f32 %v1625_v8, %v4956_v24 }
 0x307   : > { %1589 = vrot.lane.b32.xlu1 %v1582_v22, %s4168_s30  ;;  %1609 = vrot.lane.b32.xlu0 %v1602_v25, %s4167_s27  ;;  %v1645_v25 = vstv %s3685_s15  ;;  %v1695_v22 = vstv %s3687_s23  ;;  %s3703_s15 = sld [smem:[#allocation5 + $0x74]]  ;;  %s3705_s23 = sld [smem:[#allocation5 + $0x9a]] }
 0x308   : > { %v1647_v35 = vmul.f32 %v1645_v25, %v4956_v24  ;;  %v1646_v31 = vmul.f32 %v1645_v25, %v4949_v23 }
 0x30b   : > { %1607 = vrot.lane.b32.xlu1 %v1601_v10, %s4167_s27  ;;  %1632 = vrot.lane.b32.xlu0 %v1626_v40, %s4168_s30  ;;  %v1696_v10 = vmul.f32 %v1695_v22, %v4949_v23  ;;  %v1709_v40 = vstv %s3688_s25  ;;  %s3706_s25 = sld [smem:[#allocation5 + $0x9b]] }
 0x30c   : > { %v1710_v8 = vmul.f32 %v1709_v40, %v4949_v23 }
 0x30f   : > { %1611 = vrot.lane.b32.xlu1 %v1603_v26, %s4167_s27  ;;  %1636 = vrot.lane.b32.xlu0 %v1628_v30, %s4168_s30  ;;  %v1648_v26 = vmul.f32 %v1645_v25, %v4960_v43  ;;  %v1728_v30 = vstv %s3690_s8  ;;  %s3708_s8 = sld [smem:[#allocation5 + $0x9d]] }
 0x310   : > { %v1731_v25 = vmul.f32 %v1728_v30, %v4960_v43 }
 0x313   : > { %1634 = vrot.lane.b32.xlu1 %v1627_v21, %s4168_s30  ;;  %1654 = vrot.lane.b32.xlu0 %v1647_v35, %s4167_s27  ;;  %v1697_v21 = vmul.f32 %v1695_v22, %v4956_v24  ;;  %v1729_v35 = vmul.f32 %v1728_v30, %v4949_v23 }
 0x317   : > { %1652 = vrot.lane.b32.xlu1 %v1646_v31, %s4167_s27  ;;  %1700 = vrot.lane.b32.xlu0 %v1696_v10, %s4168_s30  ;;  %v1711_v31 = vmul.f32 %v1709_v40, %v4956_v24  ;;  %v1748_v10 = vstv %s3691_s9  ;;  %s3709_s9 = sld [smem:[#allocation5 + $0x9e]] }
 0x318   : > { %v1750_v22 = vmul.f32 %v1748_v10, %v4956_v24 }
 0x31b   : > { %1656 = vrot.lane.b32.xlu1 %v1648_v26, %s4167_s27  ;;  %1714 = vrot.lane.b32.xlu0 %v1710_v8, %s4167_s27  ;;  %v1730_v26 = vmul.f32 %v1728_v30, %v4956_v24  ;;  %v1773_v8 = vstv %s3693_s6  ;;  %s3711_s6 = sld [smem:[#allocation5 + $0xa0]] }
 0x31c   : > { %v1774_v40 = vmul.f32 %v1773_v8, %v4949_v23  ;;  %v1776_v30 = vmul.f32 %v1773_v8, %v4960_v43 }
 0x31f   : > { %1702 = vrot.lane.b32.xlu1 %v1697_v21, %s4168_s30  ;;  %1735 = vrot.lane.b32.xlu0 %v1729_v35, %s4168_s30  ;;  %v1749_v21 = vmul.f32 %v1748_v10, %v4949_v23  ;;  %v1751_v35 = vmul.f32 %v1748_v10, %v4960_v43 }
 0x323   : > { %1716 = vrot.lane.b32.xlu1 %v1711_v31, %s4167_s27  ;;  %1739 = vrot.lane.b32.xlu0 %v1731_v25, %s4168_s30  ;;  %v1793_v31 = vstv %s3694_s5  ;;  %v1775_v25 = vmul.f32 %v1773_v8, %v4956_v24  ;;  %s3712_s5 = sld [smem:[#allocation5 + $0xa1]] }
 0x324   : > { %v1794_v10 = vmul.f32 %v1793_v31, %v4949_v23 }
 0x327   : > { %1737 = vrot.lane.b32.xlu1 %v1730_v26, %s4168_s30  ;;  %1757 = vrot.lane.b32.xlu0 %v1750_v22, %s4167_s27  ;;  %v1795_v26 = vmul.f32 %v1793_v31, %v4956_v24  ;;  %v1843_v22 = vstv %s3696_s21  ;;  %s3717_s21 = sld [smem:[#allocation5 + $0x1d]] }
 0x32b   : > { %1755 = vrot.lane.b32.xlu1 %v1749_v21, %s4167_s27  ;;  %1780 = vrot.lane.b32.xlu0 %v1774_v40, %s4168_s30  ;;  %v1844_v21 = vmul.f32 %v1843_v22, %v4949_v23  ;;  %v1857_v40 = vstv %s3697_s0  ;;  %s3719_s0 = sld [smem:[#allocation5 + $0x1f]] }
 0x32c   : > { %v1858_v8 = vmul.f32 %v1857_v40, %v4949_v23 }
 0x32f   : > { %1759 = vrot.lane.b32.xlu1 %v1751_v35, %s4167_s27  ;;  %1784 = vrot.lane.b32.xlu0 %v1776_v30, %s4168_s30  ;;  %v1796_v35 = vmul.f32 %v1793_v31, %v4960_v43  ;;  %v1876_v30 = vstv %s3699_s1  ;;  %s3720_s1 = sld [smem:[#allocation5 + $0x20]] }
 0x330   : > { %v1879_v31 = vmul.f32 %v1876_v30, %v4960_v43 }
 0x333   : > { %1782 = vrot.lane.b32.xlu1 %v1775_v25, %s4168_s30  ;;  %1802 = vrot.lane.b32.xlu0 %v1795_v26, %s4167_s27  ;;  %v1845_v25 = vmul.f32 %v1843_v22, %v4956_v24  ;;  %v1877_v26 = vmul.f32 %v1876_v30, %v4949_v23 }
 0x337   : > { %1800 = vrot.lane.b32.xlu1 %v1794_v10, %s4167_s27  ;;  %1848 = vrot.lane.b32.xlu0 %v1844_v21, %s4168_s30  ;;  %v1859_v10 = vmul.f32 %v1857_v40, %v4956_v24  ;;  %v1896_v21 = vstv %s3700_s12  ;;  %s3722_s12 = sld [smem:[#allocation5 + $0x22]] }
 0x338   : > { %v1898_v22 = vmul.f32 %v1896_v21, %v4956_v24 }
 0x33b   : > { %1804 = vrot.lane.b32.xlu1 %v1796_v35, %s4167_s27  ;;  %1862 = vrot.lane.b32.xlu0 %v1858_v8, %s4167_s27  ;;  %v1878_v35 = vmul.f32 %v1876_v30, %v4956_v24  ;;  %v1921_v8 = vstv %s3702_s26  ;;  %s3723_s26 = sld [smem:[#allocation5 + $0x23]] }
 0x33c   : > { %v1922_v40 = vmul.f32 %v1921_v8, %v4949_v23  ;;  %v1924_v30 = vmul.f32 %v1921_v8, %v4960_v43 }
 0x33f   : > { %1850 = vrot.lane.b32.xlu1 %v1845_v25, %s4168_s30  ;;  %1883 = vrot.lane.b32.xlu0 %v1877_v26, %s4168_s30  ;;  %v1897_v25 = vmul.f32 %v1896_v21, %v4949_v23  ;;  %v1899_v26 = vmul.f32 %v1896_v21, %v4960_v43 }
 0x343   : > { %1864 = vrot.lane.b32.xlu1 %v1859_v10, %s4167_s27  ;;  %1887 = vrot.lane.b32.xlu0 %v1879_v31, %s4168_s30  ;;  %v1941_v10 = vstv %s3703_s15  ;;  %v1923_v31 = vmul.f32 %v1921_v8, %v4956_v24  ;;  %s3725_s15 = sld [smem:[#allocation5 + $0x49]] }
 0x344   : > { %v1942_v21 = vmul.f32 %v1941_v10, %v4949_v23 }
 0x347   : > { %1885 = vrot.lane.b32.xlu1 %v1878_v35, %s4168_s30  ;;  %1905 = vrot.lane.b32.xlu0 %v1898_v22, %s4167_s27  ;;  %v1943_v35 = vmul.f32 %v1941_v10, %v4956_v24  ;;  %v1991_v22 = vstv %s3705_s23  ;;  %s3726_s23 = sld [smem:[#allocation5 + $0x4a]] }
 0x34b   : > { %1903 = vrot.lane.b32.xlu1 %v1897_v25, %s4167_s27  ;;  %1928 = vrot.lane.b32.xlu0 %v1922_v40, %s4168_s30  ;;  %v1992_v25 = vmul.f32 %v1991_v22, %v4949_v23  ;;  %v2005_v40 = vstv %s3706_s25  ;;  %s3728_s25 = sld [smem:[#allocation5 + $0x4c]] }
 0x34c   : > { %v2006_v8 = vmul.f32 %v2005_v40, %v4949_v23 }
 0x34f   : > { %1907 = vrot.lane.b32.xlu1 %v1899_v26, %s4167_s27  ;;  %1932 = vrot.lane.b32.xlu0 %v1924_v30, %s4168_s30  ;;  %v1944_v26 = vmul.f32 %v1941_v10, %v4960_v43  ;;  %v2024_v30 = vstv %s3708_s8  ;;  %s3729_s8 = sld [smem:[#allocation5 + $0x4d]] }
 0x350   : > { %v2027_v10 = vmul.f32 %v2024_v30, %v4960_v43 }
 0x353   : > { %1930 = vrot.lane.b32.xlu1 %v1923_v31, %s4168_s30  ;;  %1950 = vrot.lane.b32.xlu0 %v1943_v35, %s4167_s27  ;;  %v1993_v31 = vmul.f32 %v1991_v22, %v4956_v24  ;;  %v2025_v35 = vmul.f32 %v2024_v30, %v4949_v23 }
 0x357   : > { %1948 = vrot.lane.b32.xlu1 %v1942_v21, %s4167_s27  ;;  %1996 = vrot.lane.b32.xlu0 %v1992_v25, %s4168_s30  ;;  %v2007_v21 = vmul.f32 %v2005_v40, %v4956_v24  ;;  %v2044_v25 = vstv %s3709_s9  ;;  %s3731_s9 = sld [smem:[#allocation5 + $0x4f]] }
 0x358   : > { %v2046_v22 = vmul.f32 %v2044_v25, %v4956_v24  ;;  %v2045_v40 = vmul.f32 %v2044_v25, %v4949_v23 }
 0x35b   : > { %1952 = vrot.lane.b32.xlu1 %v1944_v26, %s4167_s27  ;;  %2010 = vrot.lane.b32.xlu0 %v2006_v8, %s4167_s27  ;;  %v2026_v26 = vmul.f32 %v2024_v30, %v4956_v24  ;;  %v2069_v8 = vstv %s3711_s6  ;;  %s3732_s6 = sld [smem:[#allocation5 + $0x50]] }
 0x35f   : > { %1998 = vrot.lane.b32.xlu1 %v1993_v31, %s4168_s30  ;;  %2031 = vrot.lane.b32.xlu0 %v2025_v35, %s4168_s30  ;;  %v2070_v35 = vmul.f32 %v2069_v8, %v4949_v23 }
 0x363   : > { %2012 = vrot.lane.b32.xlu1 %v2007_v21, %s4167_s27  ;;  %2035 = vrot.lane.b32.xlu0 %v2027_v10, %s4168_s30  ;;  %v2047_v21 = vmul.f32 %v2044_v25, %v4960_v43  ;;  %v2072_v10 = vmul.f32 %v2069_v8, %v4960_v43  ;;  %v3713_v25 = vld [vmem:[%s4387_s11 + $0x30] sm:$0xff] }
 0x367   : > { %2033 = vrot.lane.b32.xlu1 %v2026_v26, %s4168_s30  ;;  %2053 = vrot.lane.b32.xlu0 %v2046_v22, %s4167_s27  ;;  %v2089_v26 = vstv %s3712_s5  ;;  %s3734_s5 = sld [smem:[#allocation5 + $0x76]] }
 0x369   : > { %v5068_v31 = vpop.permute.xlu0 %1552 }
 0x36a   : > { %7202 = vst [vmem:[#allocation137_spill] sm:$0xff] %v5068_v31 }
 0x36b   : > { %2051 = vrot.lane.b32.xlu1 %v2045_v40, %s4167_s27  ;;  %2076 = vrot.lane.b32.xlu0 %v2070_v35, %s4168_s30  ;;  %v2071_v40 = vmul.f32 %v2069_v8, %v4956_v24  ;;  %v2091_v35 = vmul.f32 %v2089_v26, %v4956_v24 }
 0x36d   : > { %v5074_v30 = vpop.permute.xlu0 %1566 }
 0x36e   : > { %7203 = vst [vmem:[#allocation138_spill] sm:$0xff] %v5074_v30 }
 0x36f   : > { %2055 = vrot.lane.b32.xlu1 %v2047_v21, %s4167_s27  ;;  %2080 = vrot.lane.b32.xlu0 %v2072_v10, %s4168_s30  ;;  %v2090_v10 = vmul.f32 %v2089_v26, %v4949_v23  ;;  %v2233_v23 = vstv %s3722_s12  ;;  %s3741_s12 = sld [smem:[#allocation5 + $0x7d]] }
 0x371   : > { %v5080_v22 = vpop.permute.xlu1 %1554  ;;  %v5082_v31 = vpop.permute.xlu0 %1587 }
 0x372   : > { %7204 = vst [vmem:[#allocation139_spill] sm:$0xff] %v5080_v22  ;;  %7205 = vst [vmem:[#allocation140_spill] sm:$0xff] %v5082_v31  ;;  %v2092_v31 = vmul.f32 %v2089_v26, %v4960_v43 }
 0x373   : > { %2078 = vrot.lane.b32.xlu1 %v2071_v40, %s4168_s30  ;;  %2098 = vrot.lane.b32.xlu0 %v2091_v35, %s4167_s27  ;;  %v3714_v40 = vld [vmem:[%s4387_s11 + $0x38] sm:$0xff]  ;;  %s3716_s11 = sld [smem:[#allocation5 + $0x1c]] }
 0x375   : > { %v5089_v30 = vpop.permute.xlu1 %1568  ;;  %v5091_v21 = vpop.permute.xlu0 %1591 }
 0x376   : > { %7206 = vst [vmem:[#allocation141_spill] sm:$0xff] %v5089_v30  ;;  %7207 = vst [vmem:[#allocation142_spill] sm:$0xff] %v5091_v21 }
 0x377   : > { %2096 = vrot.lane.b32.xlu1 %v2090_v10, %s4167_s27  ;;  %2139 = vrot.lane.b32.xlu0 %v3713_v25, %s4166_s28 }
 0x379   : > { %v5096_v22 = vpop.permute.xlu1 %1589  ;;  %v5098_v8 = vpop.permute.xlu0 %1609 }
 0x37a   : > { %7208 = vst [vmem:[#allocation143_spill] sm:$0xff] %v5096_v22  ;;  %7209 = vst [vmem:[#allocation144_spill] sm:$0xff] %v5098_v8 }
 0x37b   : > { %2100 = vrot.lane.b32.xlu1 %v2092_v31, %s4167_s27 }
 0x37d   : > { %v5103_v35 = vpop.permute.xlu1 %1607  ;;  %v5105_v30 = vpop.permute.xlu0 %1632 }
 0x37e   : > { %7210 = vst [vmem:[#allocation145_spill] sm:$0xff] %v5103_v35  ;;  %7211 = vst [vmem:[#allocation146_spill] sm:$0xff] %v5105_v30 }
 0x37f   : > { %2141 = vrot.lane.b32.xlu1 %v3714_v40, %s4166_s28 }
 0x381   : > { %v5108_v21 = vpop.permute.xlu1 %1611  ;;  %v5110_v10 = vpop.permute.xlu0 %1636 }
 0x382   : > { %7212 = vst [vmem:[#allocation147_spill] sm:$0xff] %v5108_v21  ;;  %7213 = vst [vmem:[#allocation148_spill] sm:$0xff] %v5110_v10 }
 0x385   : > { %v5112_v25 = vpop.permute.xlu1 %1634  ;;  %v5114_v22 = vpop.permute.xlu0 %1654 }
 0x386   : > { %7214 = vst [vmem:[#allocation149_spill] sm:$0xff] %v5112_v25  ;;  %7215 = vst [vmem:[#allocation150_spill] sm:$0xff] %v5114_v22 }
 0x389   : > { %v5116_v8 = vpop.permute.xlu1 %1652  ;;  %v5118_v26 = vpop.permute.xlu0 %1700 }
 0x38a   : > { %7216 = vst [vmem:[#allocation151_spill] sm:$0xff] %v5116_v8  ;;  %7217 = vst [vmem:[#allocation152_spill] sm:$0xff] %v5118_v26 }
 0x38d   : > { %v5120_v31 = vpop.permute.xlu1 %1656  ;;  %v5122_v43 = vpop.permute.xlu0 %1714 }
 0x38e   : > { %7218 = vst [vmem:[#allocation153_spill] sm:$0xff] %v5120_v31  ;;  %7219 = vst [vmem:[#allocation154_spill] sm:$0xff] %v5122_v43 }
 0x391   : > { %v5124_v35 = vpop.permute.xlu1 %1702  ;;  %v5126_v30 = vpop.permute.xlu0 %1735 }
 0x392   : > { %7220 = vst [vmem:[#allocation155_spill] sm:$0xff] %v5124_v35  ;;  %7221 = vst [vmem:[#allocation156_spill] sm:$0xff] %v5126_v30 }
 0x395   : > { %v5128_v40 = vpop.permute.xlu1 %1716  ;;  %v5130_v21 = vpop.permute.xlu0 %1739 }
 0x396   : > { %7222 = vst [vmem:[#allocation157_spill] sm:$0xff] %v5128_v40  ;;  %7223 = vst [vmem:[#allocation158_spill] sm:$0xff] %v5130_v21 }
 0x399   : > { %v5132_v10 = vpop.permute.xlu1 %1737  ;;  %v5134_v25 = vpop.permute.xlu0 %1757 }
 0x39a   : > { %7224 = vst [vmem:[#allocation159_spill] sm:$0xff] %v5132_v10  ;;  %7225 = vst [vmem:[#allocation160_spill] sm:$0xff] %v5134_v25 }
 0x39d   : > { %v5136_v22 = vpop.permute.xlu1 %1755  ;;  %v5138_v8 = vpop.permute.xlu0 %1780 }
 0x39e   : > { %7226 = vst [vmem:[#allocation161_spill] sm:$0xff] %v5136_v22  ;;  %7227 = vst [vmem:[#allocation162_spill] sm:$0xff] %v5138_v8 }
 0x3a1   : > { %v5140_v26 = vpop.permute.xlu1 %1759  ;;  %v5142_v31 = vpop.permute.xlu0 %1784 }
 0x3a2   : > { %7228 = vst [vmem:[#allocation163_spill] sm:$0xff] %v5140_v26  ;;  %7229 = vst [vmem:[#allocation164_spill] sm:$0xff] %v5142_v31 }
 0x3a5   : > { %v5144_v43 = vpop.permute.xlu1 %1782  ;;  %v5146_v35 = vpop.permute.xlu0 %1802 }
 0x3a6   : > { %7230 = vst [vmem:[#allocation165_spill] sm:$0xff] %v5144_v43  ;;  %7231 = vst [vmem:[#allocation166_spill] sm:$0xff] %v5146_v35 }
 0x3a9   : > { %v5148_v30 = vpop.permute.xlu1 %1800  ;;  %v5150_v40 = vpop.permute.xlu0 %1848 }
 0x3aa   : > { %7232 = vst [vmem:[#allocation167_spill] sm:$0xff] %v5148_v30  ;;  %7233 = vst [vmem:[#allocation168_spill] sm:$0xff] %v5150_v40 }
 0x3ad   : > { %v5152_v21 = vpop.permute.xlu1 %1804  ;;  %v5154_v10 = vpop.permute.xlu0 %1862 }
 0x3ae   : > { %7234 = vst [vmem:[#allocation169_spill] sm:$0xff] %v5152_v21  ;;  %7235 = vst [vmem:[#allocation170_spill] sm:$0xff] %v5154_v10 }
 0x3b1   : > { %v5156_v25 = vpop.permute.xlu1 %1850  ;;  %v5158_v22 = vpop.permute.xlu0 %1883 }
 0x3b2   : > { %7236 = vst [vmem:[#allocation171_spill] sm:$0xff] %v5156_v25  ;;  %7237 = vst [vmem:[#allocation172_spill] sm:$0xff] %v5158_v22 }
 0x3b5   : > { %v5160_v8 = vpop.permute.xlu1 %1864  ;;  %v5162_v26 = vpop.permute.xlu0 %1887 }
 0x3b6   : > { %7238 = vst [vmem:[#allocation173_spill] sm:$0xff] %v5160_v8  ;;  %7239 = vst [vmem:[#allocation174_spill] sm:$0xff] %v5162_v26 }
 0x3b9   : > { %v5164_v31 = vpop.permute.xlu1 %1885  ;;  %v5166_v43 = vpop.permute.xlu0 %1905 }
 0x3ba   : > { %7240 = vst [vmem:[#allocation175_spill] sm:$0xff] %v5164_v31  ;;  %7241 = vst [vmem:[#allocation176_spill] sm:$0xff] %v5166_v43 }
 0x3bd   : > { %v5168_v35 = vpop.permute.xlu1 %1903  ;;  %v5170_v30 = vpop.permute.xlu0 %1928 }
 0x3be   : > { %7242 = vst [vmem:[#allocation177_spill] sm:$0xff] %v5168_v35  ;;  %7243 = vst [vmem:[#allocation178_spill] sm:$0xff] %v5170_v30 }
 0x3c1   : > { %v5172_v40 = vpop.permute.xlu1 %1907  ;;  %v5174_v21 = vpop.permute.xlu0 %1932 }
 0x3c2   : > { %7244 = vst [vmem:[#allocation179_spill] sm:$0xff] %v5172_v40  ;;  %7245 = vst [vmem:[#allocation180_spill] sm:$0xff] %v5174_v21 }
 0x3c5   : > { %v5176_v10 = vpop.permute.xlu1 %1930  ;;  %v5178_v25 = vpop.permute.xlu0 %1950 }
 0x3c6   : > { %7246 = vst [vmem:[#allocation181_spill] sm:$0xff] %v5176_v10  ;;  %7247 = vst [vmem:[#allocation182_spill] sm:$0xff] %v5178_v25 }
 0x3c9   : > { %v5180_v22 = vpop.permute.xlu1 %1948  ;;  %v5182_v8 = vpop.permute.xlu0 %1996 }
 0x3ca   : > { %7248 = vst [vmem:[#allocation183_spill] sm:$0xff] %v5180_v22  ;;  %7249 = vst [vmem:[#allocation184_spill] sm:$0xff] %v5182_v8 }
 0x3cd   : > { %v5184_v26 = vpop.permute.xlu1 %1952  ;;  %v5186_v31 = vpop.permute.xlu0 %2010 }
 0x3ce   : > { %7250 = vst [vmem:[#allocation185_spill] sm:$0xff] %v5184_v26  ;;  %7251 = vst [vmem:[#allocation186_spill] sm:$0xff] %v5186_v31 }
 0x3d1   : > { %v5188_v43 = vpop.permute.xlu1 %1998  ;;  %v5190_v35 = vpop.permute.xlu0 %2031 }
 0x3d2   : > { %7252 = vst [vmem:[#allocation187_spill] sm:$0xff] %v5188_v43  ;;  %7253 = vst [vmem:[#allocation188_spill] sm:$0xff] %v5190_v35  ;;  %v2169_v35 = vstv %s3717_s21  ;;  %s3737_s21 = sld [smem:[#allocation5 + $0x79]] }
 0x3d5   : > { %v5192_v30 = vpop.permute.xlu1 %2012  ;;  %v5194_v40 = vpop.permute.xlu0 %2035 }
 0x3d6   : > { %7254 = vst [vmem:[#allocation189_spill] sm:$0xff] %v5192_v30  ;;  %7255 = vst [vmem:[#allocation190_spill] sm:$0xff] %v5194_v40 }
 0x3d9   : > { %v5196_v21 = vpop.permute.xlu1 %2033  ;;  %v5198_v10 = vpop.permute.xlu0 %2053 }
 0x3da   : > { %7256 = vst [vmem:[#allocation191_spill] sm:$0xff] %v5196_v21  ;;  %7257 = vst [vmem:[#allocation192_spill] sm:$0xff] %v5198_v10 }
 0x3dd   : > { %v5200_v25 = vpop.permute.xlu1 %2051  ;;  %v5202_v22 = vpop.permute.xlu0 %2076 }
 0x3de   : > { %7258 = vst [vmem:[#allocation193_spill] sm:$0xff] %v5200_v25  ;;  %7259 = vst [vmem:[#allocation194_spill] sm:$0xff] %v5202_v22  ;;  %v2155_v25 = vstv %s3716_s11  ;;  %s3735_s11 = sld [smem:[#allocation5 + $0x77]] }
 0x3e1   : > { %v5204_v8 = vpop.permute.xlu1 %2055  ;;  %v5206_v26 = vpop.permute.xlu0 %2080 }
 0x3e2   : > { %7260 = vst [vmem:[#allocation195_spill] sm:$0xff] %v5204_v8  ;;  %7261 = vst [vmem:[#allocation196_spill] sm:$0xff] %v5206_v26 }
 0x3e5   : > { %v5208_v31 = vpop.permute.xlu1 %2078  ;;  %v5210_v43 = vpop.permute.xlu0 %2098 }
 0x3e6   : > { %7262 = vst [vmem:[#allocation197_spill] sm:$0xff] %v5208_v31  ;;  %7263 = vst [vmem:[#allocation198_spill] sm:$0xff] %v5210_v43  ;;  %v2188_v43 = vstv %s3719_s0  ;;  %s3738_s0 = sld [smem:[#allocation5 + $0x7a]] }
 0x3e9   : > { %v5212_v30 = vpop.permute.xlu1 %2096  ;;  %v2140_v40 = vpop.permute.xlu0 %2139 }
 0x3ea   : > { %7264 = vst [vmem:[#allocation199_spill] sm:$0xff] %v5212_v30  ;;  %2145 = vst.msk [vmem:[#allocation4 + $0x1] sm:$0xff] %vm318_vm3, %v2140_v40 }
 0x3ed   : > { %v5215_v10 = vpop.permute.xlu1 %2100 }
 0x3ee   : > { %7265 = vst [vmem:[#allocation200_spill] sm:$0xff] %v5215_v10 }
 0x3f1   : > { %v5217_v22 = vld [vmem:[#allocation4] sm:$0xff]  ;;  %v2142_v8 = vpop.permute.xlu1 %2141 }
 0x3f2   : > { %7266 = vst [vmem:[#allocation201_spill] sm:$0xff] %v5217_v22  ;;  %2146 = vst.msk [vmem:[#allocation4 + $0x9] sm:$0xff] %vm318_vm3, %v2142_v8  ;;  %v2156_v26 = vmul.f32 %v2155_v25, %v5217_v22  ;;  %v2170_v30 = vmul.f32 %v2169_v35, %v5217_v22  ;;  %v2189_v31 = vmul.f32 %v2188_v43, %v5217_v22 }
 0x3f4   : > { %2160 = vrot.lane.b32.xlu0 %v2156_v26, %s4168_s30 }
 0x3f8   : > { %2174 = vrot.lane.b32.xlu0 %v2170_v30, %s4167_s27  ;;  %v2208_v30 = vstv %s3720_s1  ;;  %s3740_s1 = sld [smem:[#allocation5 + $0x7c]] }
 0x3f9   : > { %v5224_v40 = vld [vmem:[#allocation4 + $0x8] sm:$0xff]  ;;  %v5228_v21 = vld [vmem:[#allocation4 + $0x10] sm:$0x3] }
 0x3fa   : > { %7267 = vst [vmem:[#allocation202_spill] sm:$0xff] %v5224_v40  ;;  %v2157_v10 = vmul.f32 %v2155_v25, %v5224_v40  ;;  %7268 = vst [vmem:[#allocation203_spill] sm:$0xff] %v5228_v21  ;;  %v2171_v8 = vmul.f32 %v2169_v35, %v5224_v40  ;;  %v2191_v26 = vmul.f32 %v2188_v43, %v5228_v21 }
 0x3fb   : > { %v2190_v25 = vmul.f32 %v2188_v43, %v5224_v40  ;;  %v2210_v24 = vmul.f32 %v2208_v30, %v5224_v40  ;;  %v2234_v35 = vmul.f32 %v2233_v23, %v5217_v22  ;;  %v2236_v43 = vmul.f32 %v2233_v23, %v5228_v21 }
 0x3fc   : > { %2162 = vrot.lane.b32.xlu1 %v2157_v10, %s4168_s30  ;;  %2195 = vrot.lane.b32.xlu0 %v2189_v31, %s4168_s30  ;;  %v2209_v10 = vmul.f32 %v2208_v30, %v5217_v22  ;;  %v2211_v31 = vmul.f32 %v2208_v30, %v5228_v21 }
 0x400   : > { %2176 = vrot.lane.b32.xlu1 %v2171_v8, %s4167_s27  ;;  %2199 = vrot.lane.b32.xlu0 %v2191_v26, %s4168_s30  ;;  %v2235_v8 = vmul.f32 %v2233_v23, %v5224_v40 }
 0x404   : > { %2197 = vrot.lane.b32.xlu1 %v2190_v25, %s4168_s30  ;;  %2217 = vrot.lane.b32.xlu0 %v2210_v24, %s4167_s27  ;;  %v2253_v24 = vstv %s3723_s26  ;;  %v2303_v25 = vstv %s3725_s15  ;;  %s3743_s26 = sld [smem:[#allocation5 + $0xa3]]  ;;  %s3744_s15 = sld [smem:[#allocation5 + $0xa4]] }
 0x405   : > { %v2255_v26 = vmul.f32 %v2253_v24, %v5224_v40  ;;  %v2254_v30 = vmul.f32 %v2253_v24, %v5217_v22 }
 0x408   : > { %2215 = vrot.lane.b32.xlu1 %v2209_v10, %s4167_s27  ;;  %2240 = vrot.lane.b32.xlu0 %v2234_v35, %s4168_s30  ;;  %v2304_v10 = vmul.f32 %v2303_v25, %v5217_v22  ;;  %v2317_v35 = vstv %s3726_s23  ;;  %s3747_s23 = sld [smem:[#allocation5 + $0xa7]] }
 0x409   : > { %v2318_v23 = vmul.f32 %v2317_v35, %v5217_v22 }
 0x40c   : > { %2219 = vrot.lane.b32.xlu1 %v2211_v31, %s4167_s27  ;;  %2244 = vrot.lane.b32.xlu0 %v2236_v43, %s4168_s30  ;;  %v2256_v31 = vmul.f32 %v2253_v24, %v5228_v21  ;;  %v2336_v43 = vstv %s3728_s25  ;;  %s3749_s25 = sld [smem:[#allocation5 + $0xa9]] }
 0x40d   : > { %v2339_v24 = vmul.f32 %v2336_v43, %v5228_v21 }
 0x410   : > { %2242 = vrot.lane.b32.xlu1 %v2235_v8, %s4168_s30  ;;  %2262 = vrot.lane.b32.xlu0 %v2255_v26, %s4167_s27  ;;  %v2305_v8 = vmul.f32 %v2303_v25, %v5224_v40  ;;  %v2337_v26 = vmul.f32 %v2336_v43, %v5217_v22 }
 0x412   : > { %v2677_v44 = vstv %s3749_s25  ;;  %s5466_s25 = sld [smem:[#allocation5 + $0x2d]] }
 0x414   : > { %2260 = vrot.lane.b32.xlu1 %v2254_v30, %s4167_s27  ;;  %2308 = vrot.lane.b32.xlu0 %v2304_v10, %s4168_s30  ;;  %v2319_v30 = vmul.f32 %v2317_v35, %v5224_v40  ;;  %v2356_v10 = vstv %s3729_s8  ;;  %s3750_s8 = sld [smem:[#allocation5 + $0xaa]] }
 0x415   : > { %v2358_v25 = vmul.f32 %v2356_v10, %v5224_v40 }
 0x418   : > { %2264 = vrot.lane.b32.xlu1 %v2256_v31, %s4167_s27  ;;  %2322 = vrot.lane.b32.xlu0 %v2318_v23, %s4167_s27  ;;  %v2338_v31 = vmul.f32 %v2336_v43, %v5224_v40  ;;  %v2381_v23 = vstv %s3731_s9  ;;  %s3733_s9 = sld [smem:[#allocation5 + $0x75]] }
 0x419   : > { %v2382_v35 = vmul.f32 %v2381_v23, %v5217_v22  ;;  %v2384_v43 = vmul.f32 %v2381_v23, %v5228_v21 }
 0x41c   : > { %2310 = vrot.lane.b32.xlu1 %v2305_v8, %s4168_s30  ;;  %2343 = vrot.lane.b32.xlu0 %v2337_v26, %s4168_s30  ;;  %v2357_v8 = vmul.f32 %v2356_v10, %v5217_v22  ;;  %v2359_v26 = vmul.f32 %v2356_v10, %v5228_v21 }
 0x420   : > { %2324 = vrot.lane.b32.xlu1 %v2319_v30, %s4167_s27  ;;  %2347 = vrot.lane.b32.xlu0 %v2339_v24, %s4168_s30  ;;  %v2401_v30 = vstv %s3732_s6  ;;  %v2383_v24 = vmul.f32 %v2381_v23, %v5224_v40  ;;  %s3736_s6 = sld [smem:[#allocation5 + $0x78]] }
 0x421   : > { %v2402_v10 = vmul.f32 %v2401_v30, %v5217_v22 }
 0x424   : > { %2345 = vrot.lane.b32.xlu1 %v2338_v31, %s4168_s30  ;;  %2365 = vrot.lane.b32.xlu0 %v2358_v25, %s4167_s27  ;;  %v2403_v31 = vmul.f32 %v2401_v30, %v5224_v40  ;;  %v2451_v25 = vstv %s3734_s5  ;;  %s3752_s5 = sld [smem:[#allocation5 + $0x25]] }
 0x426   : > { %v2479_v17 = vstv %s3736_s6  ;;  %s5479_s6 = sld [smem:[#allocation5 + $0x30]] }
 0x427   : > { %v2481_v27 = vmul.f32 %v2479_v17, %v5224_v40 }
 0x428   : > { %2363 = vrot.lane.b32.xlu1 %v2357_v8, %s4167_s27  ;;  %2388 = vrot.lane.b32.xlu0 %v2382_v35, %s4168_s30  ;;  %v2452_v8 = vmul.f32 %v2451_v25, %v5217_v22  ;;  %v2465_v35 = vstv %s3735_s11  ;;  %s3739_s11 = sld [smem:[#allocation5 + $0x7b]] }
 0x429   : > { %v2466_v23 = vmul.f32 %v2465_v35, %v5217_v22 }
 0x42a   : > { %v2760_v20 = vstv %s3752_s5  ;;  %s5481_s5 = sld [smem:[#allocation5 + $0x33]] }
 0x42c   : > { %2367 = vrot.lane.b32.xlu1 %v2359_v26, %s4167_s27  ;;  %2392 = vrot.lane.b32.xlu0 %v2384_v43, %s4168_s30  ;;  %v2404_v26 = vmul.f32 %v2401_v30, %v5228_v21  ;;  %v2484_v43 = vstv %s3737_s21  ;;  %s5424_s21 = sld [smem:[#allocation5 + $0x26]] }
 0x42d   : > { %v2487_v30 = vmul.f32 %v2484_v43, %v5228_v21 }
 0x430   : > { %2390 = vrot.lane.b32.xlu1 %v2383_v24, %s4168_s30  ;;  %2410 = vrot.lane.b32.xlu0 %v2403_v31, %s4167_s27  ;;  %v2453_v24 = vmul.f32 %v2451_v25, %v5224_v40  ;;  %v2485_v31 = vmul.f32 %v2484_v43, %v5217_v22  ;;  %v2504_v25 = vstv %s3738_s0  ;;  %s5427_s0 = sld [smem:[#allocation5 + $0xa2]] }
 0x434   : > { %2408 = vrot.lane.b32.xlu1 %v2402_v10, %s4167_s27  ;;  %2456 = vrot.lane.b32.xlu0 %v2452_v8, %s4168_s30  ;;  %v2467_v10 = vmul.f32 %v2465_v35, %v5224_v40  ;;  %v297_v8 = vld [vmem:[#allocation2 + $0x8] sm:$0xff] }
 0x436   : > { %v2595_v15 = vstv %s5427_s0  ;;  %s5489_s0 = sld [smem:[#allocation5 + $0x60]] }
 0x438   : > { %2412 = vrot.lane.b32.xlu1 %v2404_v26, %s4167_s27  ;;  %2470 = vrot.lane.b32.xlu0 %v2466_v23, %s4167_s27  ;;  %v2486_v26 = vmul.f32 %v2484_v43, %v5224_v40  ;;  %v296_v23 = vld [vmem:[#allocation2] sm:$0xff] }
 0x43c   : > { %2458 = vrot.lane.b32.xlu1 %v2453_v24, %s4168_s30  ;;  %2491 = vrot.lane.b32.xlu0 %v2485_v31, %s4168_s30  ;;  %v2506_v24 = vmul.f32 %v2504_v25, %v5224_v40  ;;  %v2529_v31 = vstv %s3740_s1  ;;  %s5429_s1 = sld [smem:[#allocation5 + $0x28]] }
 0x43d   : > { %v2530_v35 = vmul.f32 %v2529_v31, %v5217_v22  ;;  %v2532_v43 = vmul.f32 %v2529_v31, %v5228_v21 }
 0x440   : > { %2472 = vrot.lane.b32.xlu1 %v2467_v10, %s4167_s27  ;;  %2495 = vrot.lane.b32.xlu0 %v2487_v30, %s4168_s30  ;;  %v2505_v10 = vmul.f32 %v2504_v25, %v5217_v22  ;;  %v2507_v30 = vmul.f32 %v2504_v25, %v5228_v21 }
 0x444   : > { %2493 = vrot.lane.b32.xlu1 %v2486_v26, %s4168_s30  ;;  %2746 = vrot.lane.b32.xlu0 %v297_v8, %s4166_s28  ;;  %v2549_v8 = vstv %s3741_s12  ;;  %s3764_s12 = sld [smem:[#allocation5 + $0x55]] }
 0x445   : > { %v2551_v26 = vmul.f32 %v2549_v8, %v5224_v40  ;;  %v2550_v25 = vmul.f32 %v2549_v8, %v5217_v22 }
 0x448   : > { %2513 = vrot.lane.b32.xlu0 %v2506_v24, %s4167_s27  ;;  %2744 = vrot.lane.b32.xlu1 %v296_v23, %s4166_s28  ;;  %v2531_v23 = vmul.f32 %v2529_v31, %v5224_v40  ;;  %v2599_v24 = vstv %s3743_s26  ;;  %s3746_s28 = sld [smem:[#allocation5 + $0xa6]]  ;;  %s5454_s26 = sld [smem:[#allocation5 + $0x29]] }
 0x44c   : > { %2536 = vrot.lane.b32.xlu0 %v2530_v35, %s4168_s30  ;;  %2511 = vrot.lane.b32.xlu1 %v2505_v10, %s4167_s27  ;;  %v2600_v35 = vmul.f32 %v2599_v24, %v5217_v22  ;;  %v2613_v10 = vstv %s3744_s15  ;;  %s5459_s15 = sld [smem:[#allocation5]] }
 0x44e   : > { %v2632_v31 = vstv %s3746_s28  ;;  %s5461_s28 = sld [smem:[#allocation5 + $0x3]] }
 0x450   : > { %2540 = vrot.lane.b32.xlu0 %v2532_v43, %s4168_s30  ;;  %2515 = vrot.lane.b32.xlu1 %v2507_v30, %s4167_s27  ;;  %v2614_v43 = vmul.f32 %v2613_v10, %v5217_v22  ;;  %v2552_v30 = vmul.f32 %v2549_v8, %v5228_v21  ;;  %v2652_v8 = vstv %s3747_s23  ;;  %s5464_s23 = sld [smem:[#allocation5 + $0x6]] }
 0x454   : > { %2558 = vrot.lane.b32.xlu0 %v2551_v26, %s4167_s27  ;;  %2538 = vrot.lane.b32.xlu1 %v2531_v23, %s4168_s30  ;;  %v2633_v26 = vmul.f32 %v2632_v31, %v5217_v22  ;;  %v2601_v23 = vmul.f32 %v2599_v24, %v5224_v40  ;;  %v2634_v24 = vmul.f32 %v2632_v31, %v5224_v40 }
 0x458   : > { %2604 = vrot.lane.b32.xlu0 %v2600_v35, %s4168_s30  ;;  %2556 = vrot.lane.b32.xlu1 %v2550_v25, %s4167_s27  ;;  %v2635_v35 = vmul.f32 %v2632_v31, %v5228_v21  ;;  %v2615_v25 = vmul.f32 %v2613_v10, %v5224_v40  ;;  %v2678_v10 = vmul.f32 %v2677_v44, %v5217_v22 }
 0x459   : > { %v2680_v31 = vmul.f32 %v2677_v44, %v5228_v21 }
 0x45c   : > { %2618 = vrot.lane.b32.xlu0 %v2614_v43, %s4167_s27  ;;  %2560 = vrot.lane.b32.xlu1 %v2552_v30, %s4167_s27  ;;  %v2654_v30 = vmul.f32 %v2652_v8, %v5224_v40 }
 0x460   : > { %2639 = vrot.lane.b32.xlu0 %v2633_v26, %s4168_s30  ;;  %2606 = vrot.lane.b32.xlu1 %v2601_v23, %s4168_s30  ;;  %v2653_v23 = vmul.f32 %v2652_v8, %v5217_v22 }
 0x464   : > { %2643 = vrot.lane.b32.xlu0 %v2635_v35, %s4168_s30  ;;  %2620 = vrot.lane.b32.xlu1 %v2615_v25, %s4167_s27 }
 0x466   : > { %v5334_v43 = vpop.permute.xlu0 %2160 }
 0x467   : > { %7269 = vst [vmem:[#allocation204_spill] sm:$0xff] %v5334_v43 }
 0x468   : > { %2661 = vrot.lane.b32.xlu0 %v2654_v30, %s4167_s27  ;;  %2641 = vrot.lane.b32.xlu1 %v2634_v24, %s4168_s30  ;;  %v2655_v30 = vmul.f32 %v2652_v8, %v5228_v21  ;;  %v2697_v24 = vstv %s3750_s8  ;;  %s5475_s8 = sld [smem:[#allocation5 + $0xa5]] }
 0x46a   : > { %v5340_v26 = vpop.permute.xlu0 %2174 }
 0x46b   : > { %7270 = vst [vmem:[#allocation205_spill] sm:$0xff] %v5340_v26 }
 0x46c   : > { %2684 = vrot.lane.b32.xlu0 %v2678_v10, %s4168_s30  ;;  %2659 = vrot.lane.b32.xlu1 %v2653_v23, %s4167_s27  ;;  %v2699_v10 = vmul.f32 %v2697_v24, %v5224_v40  ;;  %v2679_v23 = vmul.f32 %v2677_v44, %v5224_v40 }
 0x46e   : > { %v5346_v35 = vpop.permute.xlu1 %2162  ;;  %v5348_v25 = vpop.permute.xlu0 %2195 }
 0x46f   : > { %7271 = vst [vmem:[#allocation206_spill] sm:$0xff] %v5346_v35  ;;  %7272 = vst [vmem:[#allocation207_spill] sm:$0xff] %v5348_v25 }
 0x470   : > { %2688 = vrot.lane.b32.xlu0 %v2680_v31, %s4168_s30  ;;  %2663 = vrot.lane.b32.xlu1 %v2655_v30, %s4167_s27  ;;  %v2698_v31 = vmul.f32 %v2697_v24, %v5217_v22 }
 0x472   : > { %v5354_v26 = vpop.permute.xlu1 %2176  ;;  %v5356_v43 = vpop.permute.xlu0 %2199 }
 0x473   : > { %7273 = vst [vmem:[#allocation208_spill] sm:$0xff] %v5354_v26  ;;  %7274 = vst [vmem:[#allocation209_spill] sm:$0xff] %v5356_v43  ;;  %v2700_v43 = vmul.f32 %v2697_v24, %v5228_v21 }
 0x474   : > { %2706 = vrot.lane.b32.xlu0 %v2699_v10, %s4167_s27  ;;  %2686 = vrot.lane.b32.xlu1 %v2679_v23, %s4168_s30 }
 0x476   : > { %v5362_v35 = vpop.permute.xlu1 %2197  ;;  %v5364_v8 = vpop.permute.xlu0 %2217 }
 0x477   : > { %7275 = vst [vmem:[#allocation210_spill] sm:$0xff] %v5362_v35  ;;  %7276 = vst [vmem:[#allocation211_spill] sm:$0xff] %v5364_v8 }
 0x478   : > { %2704 = vrot.lane.b32.xlu1 %v2698_v31, %s4167_s27 }
 0x47a   : > { %v5368_v30 = vpop.permute.xlu1 %2215  ;;  %v5370_v26 = vpop.permute.xlu0 %2240 }
 0x47b   : > { %7277 = vst [vmem:[#allocation212_spill] sm:$0xff] %v5368_v30  ;;  %7278 = vst [vmem:[#allocation213_spill] sm:$0xff] %v5370_v26 }
 0x47c   : > { %2708 = vrot.lane.b32.xlu1 %v2700_v43, %s4167_s27 }
 0x47e   : > { %v5374_v44 = vpop.permute.xlu1 %2219  ;;  %v5376_v10 = vpop.permute.xlu0 %2244 }
 0x47f   : > { %7279 = vst [vmem:[#allocation214_spill] sm:$0xff] %v5374_v44  ;;  %7280 = vst [vmem:[#allocation215_spill] sm:$0xff] %v5376_v10 }
 0x482   : > { %v5378_v23 = vpop.permute.xlu1 %2242  ;;  %v5380_v35 = vpop.permute.xlu0 %2262 }
 0x483   : > { %7281 = vst [vmem:[#allocation216_spill] sm:$0xff] %v5378_v23  ;;  %7282 = vst [vmem:[#allocation217_spill] sm:$0xff] %v5380_v35 }
 0x486   : > { %v5382_v8 = vpop.permute.xlu1 %2260  ;;  %v5384_v25 = vpop.permute.xlu0 %2308 }
 0x487   : > { %7283 = vst [vmem:[#allocation218_spill] sm:$0xff] %v5382_v8  ;;  %7284 = vst [vmem:[#allocation219_spill] sm:$0xff] %v5384_v25 }
 0x48a   : > { %v5386_v31 = vpop.permute.xlu1 %2264  ;;  %v5388_v30 = vpop.permute.xlu0 %2322 }
 0x48b   : > { %7285 = vst [vmem:[#allocation220_spill] sm:$0xff] %v5386_v31  ;;  %7286 = vst [vmem:[#allocation221_spill] sm:$0xff] %v5388_v30 }
 0x48e   : > { %v5390_v26 = vpop.permute.xlu1 %2310  ;;  %v5392_v24 = vpop.permute.xlu0 %2343 }
 0x48f   : > { %7287 = vst [vmem:[#allocation222_spill] sm:$0xff] %v5390_v26  ;;  %7288 = vst [vmem:[#allocation223_spill] sm:$0xff] %v5392_v24 }
 0x492   : > { %v5394_v43 = vpop.permute.xlu1 %2324  ;;  %v5396_v44 = vpop.permute.xlu0 %2347 }
 0x493   : > { %7289 = vst [vmem:[#allocation224_spill] sm:$0xff] %v5394_v43  ;;  %7290 = vst [vmem:[#allocation225_spill] sm:$0xff] %v5396_v44  ;;  %v2447_v43 = vstv %s3733_s9  ;;  %s5477_s9 = sld [smem:[#allocation5 + $0x2b]] }
 0x496   : > { %v5398_v10 = vpop.permute.xlu1 %2345  ;;  %v5400_v23 = vpop.permute.xlu0 %2365 }
 0x497   : > { %7291 = vst [vmem:[#allocation226_spill] sm:$0xff] %v5398_v10  ;;  %7292 = vst [vmem:[#allocation227_spill] sm:$0xff] %v5400_v23  ;;  %v2448_v10 = vmul.f32 %v2447_v43, %v5217_v22 }
 0x49a   : > { %v5402_v35 = vpop.permute.xlu1 %2363  ;;  %v5404_v8 = vpop.permute.xlu0 %2388 }
 0x49b   : > { %7293 = vst [vmem:[#allocation228_spill] sm:$0xff] %v5402_v35  ;;  %7294 = vst [vmem:[#allocation229_spill] sm:$0xff] %v5404_v8 }
 0x49e   : > { %v5406_v25 = vpop.permute.xlu1 %2367  ;;  %v5408_v30 = vpop.permute.xlu0 %2392 }
 0x49f   : > { %7295 = vst [vmem:[#allocation230_spill] sm:$0xff] %v5406_v25  ;;  %7296 = vst [vmem:[#allocation231_spill] sm:$0xff] %v5408_v30  ;;  %v2449_v30 = vmul.f32 %v2447_v43, %v5224_v40 }
 0x4a2   : > { %v5410_v26 = vpop.permute.xlu1 %2390  ;;  %v5412_v24 = vpop.permute.xlu0 %2410 }
 0x4a3   : > { %7297 = vst [vmem:[#allocation232_spill] sm:$0xff] %v5410_v26  ;;  %7298 = vst [vmem:[#allocation233_spill] sm:$0xff] %v5412_v24 }
 0x4a6   : > { %v5414_v31 = vpop.permute.xlu1 %2408  ;;  %v2457_v44 = vpop.permute.xlu0 %2456 }
 0x4a7   : > { %7299 = vst [vmem:[#allocation234_spill] sm:$0xff] %v5414_v31  ;;  %v2462_v23 = vadd.f32 %v2457_v44, %v2448_v10 }
 0x4aa   : > { %v5417_v37 = vpop.permute.xlu1 %2412  ;;  %v2471_v35 = vpop.permute.xlu0 %2470 }
 0x4ab   : > { %7300 = vst [vmem:[#allocation235_spill] sm:$0xff] %v5417_v37  ;;  %v2476_v8 = vadd.f32 %v2471_v35, %v2462_v23  ;;  %v2480_v23 = vmul.f32 %v2479_v17, %v5217_v22 }
 0x4ae   : > { %v2459_v36 = vpop.permute.xlu1 %2458  ;;  %v2492_v25 = vpop.permute.xlu0 %2491 }
 0x4af   : > { %v2463_v19 = vadd.f32 %v2459_v36, %v2449_v30  ;;  %v2482_v30 = vmul.f32 %v2479_v17, %v5228_v21 }
 0x4b2   : > { %v2473_v26 = vpop.permute.xlu1 %2472  ;;  %v2496_v18 = vpop.permute.xlu0 %2495 }
 0x4b3   : > { %v2477_v24 = vadd.f32 %v2473_v26, %v2463_v19  ;;  %v2500_v19 = vadd.f32 %v2492_v25, %v2480_v23 }
 0x4b6   : > { %v2494_v32 = vpop.permute.xlu1 %2493  ;;  %v2747_v31 = vpop.permute.xlu0 %2746 }
 0x4b7   : > { %2751 = vst.msk [vmem:[#allocation4 + $0x9] sm:$0xff] %vm318_vm3, %v2747_v31  ;;  %v2501_v44 = vadd.f32 %v2494_v32, %v2481_v27  ;;  %v2502_v27 = vadd.f32 %v2496_v18, %v2482_v30  ;;  %v2774_v18 = vstv %s5424_s21  ;;  %s5486_s21 = sld [smem:[#allocation5 + $0x5d]] }
 0x4ba   : > { %v2514_v10 = vpop.permute.xlu0 %2513  ;;  %v2745_v35 = vpop.permute.xlu1 %2744 }
 0x4bb   : > { %v2521_v37 = vadd.f32 %v2514_v10, %v2501_v44  ;;  %2750 = vst.msk [vmem:[#allocation4 + $0x1] sm:$0xff] %vm318_vm3, %v2745_v35 }
 0x4bd   : > { %v2572_v32 = vrot.slane %v2521_v37, 1 }
 0x4be   : > { %v2537_v36 = vpop.permute.xlu0 %2536  ;;  %v2512_v26 = vpop.permute.xlu1 %2511 }
 0x4bf   : > { %v2520_v43 = vadd.f32 %v2512_v26, %v2500_v19  ;;  %v2524_v26 = vstv %s3739_s11  ;;  %s5484_s11 = sld [smem:[#allocation5 + $0x5a]] }
 0x4c0   : > { %v2526_v30 = vmul.f32 %v2524_v26, %v5224_v40  ;;  %v2527_v13 = vmul.f32 %v2524_v26, %v5228_v21 }
 0x4c1   : > { %v2571_v31 = vrot.slane %v2520_v43, 1 }
 0x4c2   : > { %v5431_v44 = vld [vmem:[#allocation4] sm:$0xff]  ;;  %v5433_v10 = vld [vmem:[#allocation4 + $0x8] sm:$0xff]  ;;  %v2541_v25 = vpop.permute.xlu0 %2540  ;;  %v2516_v35 = vpop.permute.xlu1 %2515 }
 0x4c3   : > { %v2573_v23 = vsel %vm449_vm4, %v2571_v31, %v2572_v32  ;;  %v2522_v17 = vadd.f32 %v2516_v35, %v2502_v27  ;;  %v2762_v19 = vmul.f32 %v2760_v20, %v5433_v10  ;;  %v2761_v12 = vmul.f32 %v2760_v20, %v5431_v44 }
 0x4c4   : > { %v2578_v16 = vadd.f32 %v2573_v23, %v2476_v8  ;;  %v2525_v27 = vmul.f32 %v2524_v26, %v5217_v22  ;;  %v2776_v23 = vmul.f32 %v2774_v18, %v5433_v10  ;;  %v2775_v6 = vmul.f32 %v2774_v18, %v5431_v44 }
 0x4c5   : > { %v2574_v37 = vrot.slane %v2522_v17, 1  ;;  %2767 = vrot.lane.b32.xlu1 %v2762_v19, %s4168_s30  ;;  %2765 = vrot.lane.b32.xlu0 %v2761_v12, %s4168_s30  ;;  %v2793_v17 = vstv %s5429_s1  ;;  %v2941_v18 = vstv %s3764_s12  ;;  %s5491_s1 = sld [smem:[#allocation5 + $0x87]]  ;;  %s5496_s12 = sld [smem:[#allocation5 + $0x8a]] }
 0x4c6   : > { %v2559_v43 = vpop.permute.xlu0 %2558  ;;  %v2539_v31 = vpop.permute.xlu1 %2538  ;;  %v2545_v9 = vadd.f32 %v2537_v36, %v2525_v27  ;;  %v5456_v36 = vld [vmem:[#allocation4 + $0x10] sm:$0x3] }
 0x4c7   : > { %v2575_v35 = vsel %vm449_vm4, %v2572_v32, %v2574_v37  ;;  %v2546_v8 = vadd.f32 %v2539_v31, %v2526_v30  ;;  %v2596_v32 = vmul.f32 %v2595_v15, %v5217_v22  ;;  %v2795_v30 = vmul.f32 %v2793_v17, %v5433_v10 }
 0x4c8   : > { %v2579_v20 = vadd.f32 %v2575_v35, %v2477_v24  ;;  %v2794_v24 = vmul.f32 %v2793_v17, %v5431_v44  ;;  %v2942_v35 = vmul.f32 %v2941_v18, %v5431_v44 }
 0x4c9   : > { %v2566_v19 = vadd.f32 %v2559_v43, %v2546_v8  ;;  %2781 = vrot.lane.b32.xlu1 %v2776_v23, %s4167_s27  ;;  %2779 = vrot.lane.b32.xlu0 %v2775_v6, %s4167_s27  ;;  %v2547_v43 = vadd.f32 %v2541_v25, %v2527_v13  ;;  %v2796_v23 = vmul.f32 %v2793_v17, %v5456_v36 }
 0x4ca   : > { %v2605_v12 = vpop.permute.xlu0 %2604  ;;  %v2557_v4 = vpop.permute.xlu1 %2556 }
 0x4cb   : > { %v2565_v37 = vadd.f32 %v2557_v4, %v2545_v9  ;;  %v2584_v31 = vrot.slane %v2566_v19, 2  ;;  %v2610_v27 = vadd.f32 %v2605_v12, %v2596_v32  ;;  %v2597_v32 = vmul.f32 %v2595_v15, %v5224_v40 }
 0x4cc   : > { %v5534_v57 = vstv %s5496_s12  ;;  %s5758_s12 = sld [smem:[#allocation5 + $0xf]] }
 0x4cd   : > { %v2583_v6 = vrot.slane %v2565_v37, 2  ;;  %2802 = vrot.lane.b32.xlu1 %v2795_v30, %s4168_s30  ;;  %2800 = vrot.lane.b32.xlu0 %v2794_v24, %s4168_s30  ;;  %v2944_v37 = vmul.f32 %v2941_v18, %v5456_v36  ;;  %v2943_v24 = vmul.f32 %v2941_v18, %v5433_v10  ;;  %v2627_v18 = vstv %s5475_s8  ;;  %s5661_s8 = sld [smem:[#allocation5 + $0x59]] }
 0x4ce   : > { %v2619_v4 = vpop.permute.xlu0 %2618  ;;  %v2561_v9 = vpop.permute.xlu1 %2560 }
 0x4cf   : > { %v2585_v13 = vsel %vm462_vm5, %v2583_v6, %v2584_v31  ;;  %v5469_v25 = vadd.f32 %v2619_v4, %v2610_v27  ;;  %v2567_v26 = vadd.f32 %v2561_v9, %v2547_v43  ;;  %v2813_v43 = vstv %s5454_s26  ;;  %s5514_s26 = sld [smem:[#allocation5 + $0x56]] }
 0x4d0   : > { %v5472_v8 = vadd.f32 %v2585_v13, %v2578_v16  ;;  %v325_v6 = vstv %s5459_s15  ;;  %v357_v9 = vstv %s5461_s28  ;;  %v2814_v13 = vmul.f32 %v2813_v43, %v5431_v44  ;;  %s5540_s15 = sld [smem:[#allocation5 + $0xa8]] }
 0x4d1   : > { %v2586_v19 = vrot.slane %v2567_v26, 2  ;;  %2948 = vrot.lane.b32.xlu1 %v2942_v35, %s4168_s30  ;;  %2804 = vrot.lane.b32.xlu0 %v2796_v23, %s4168_s30  ;;  %v2838_v26 = vstv %s5477_s9  ;;  %v402_v35 = vstv %s5464_s23  ;;  %s5542_s28 = sld [smem:[#allocation5 + $0x58]]  ;;  %v5548_v3 = vmul.f32 %v325_v6, %v4420_v11  ;;  %s5599_s23 = sld [smem:[#allocation5 + $0x52]] }
 0x4d2   : > { %7301 = vst [vmem:[#allocation236_spill] sm:$0xff] %v5472_v8  ;;  %v2640_v16 = vpop.permute.xlu0 %2639  ;;  %v2607_v17 = vpop.permute.xlu1 %2606  ;;  %v475_v23 = vstv %s5466_s25  ;;  %v2628_v8 = vmul.f32 %v2627_v18, %v5217_v22  ;;  %v2839_v5 = vmul.f32 %v2838_v26, %v5431_v44  ;;  %v358_v2 = vmul.f32 %v357_v9, %v4414_v7  ;;  %s5633_s25 = sld [smem:[#allocation5 + $0x2c]]  ;;  %s5678_s9 = sld [smem:[#allocation9 + $0x1]] }
 0x4d3   : > { %v2587_v12 = vsel %vm462_vm5, %v2584_v31, %v2586_v19  ;;  %v2611_v31 = vadd.f32 %v2607_v17, %v2597_v32  ;;  %v507_v19 = vstv %s5479_s6  ;;  %v2629_v17 = vmul.f32 %v2627_v18, %v5224_v40  ;;  %s5684_s6 = sld [smem:[#allocation9 + $0x2]] }
 0x4d4   : > { %v5500_v30 = vadd.f32 %v2587_v12, %v2579_v20  ;;  %v2815_v20 = vmul.f32 %v2813_v43, %v5433_v10  ;;  %v552_v12 = vstv %s5481_s5  ;;  %v2816_v32 = vmul.f32 %v2813_v43, %v5456_v36  ;;  %s5700_s5 = sld [smem:[#allocation9 + $0x3]] }
 0x4d5   : > { %2952 = vrot.lane.b32.xlu1 %v2944_v37, %s4168_s30  ;;  %2950 = vrot.lane.b32.xlu0 %v2943_v24, %s4168_s30  ;;  %v5524_v37 = vstv %s5486_s21  ;;  %v360_v0 = vmul.f32 %v357_v9, %v4424_v14  ;;  %v359_v43 = vmul.f32 %v357_v9, %v4420_v11  ;;  %v5555_v54 = vmul.f32 %v402_v35, %v4414_v7  ;;  %s5738_s21 = sld [smem:[#allocation5 + $0x9]] }
 0x4d6   : > { %7302 = vst [vmem:[#allocation237_spill] sm:$0xff] %v5500_v30  ;;  %v2644_v15 = vpop.permute.xlu0 %2643  ;;  %v2621_v27 = vpop.permute.xlu1 %2620  ;;  %v5567_v9 = vmul.f32 %v475_v23, %v4414_v7  ;;  %v2961_v1 = vstv %s5514_s26  ;;  %s5760_s26 = sld [smem:[#allocation5 + $0x36]] }
 0x4d7   : > { %v5507_v4 = vadd.f32 %v2621_v27, %v2611_v31  ;;  %v5528_v27 = vstv %s5489_s0  ;;  %s5747_s0 = sld [smem:[#allocation5 + $0xc]] }
 0x4d8   : > { %7303 = vst [vmem:[#allocation238_spill] sm:$0xff] %v5567_v9  ;;  %v2986_v9 = vstv %s5542_s28  ;;  %s5768_s28 = sld [smem:[#allocation5 + $0x3c]] }
 0x4d9   : > { %2822 = vrot.lane.b32.xlu1 %v2815_v20, %s4167_s27  ;;  %2820 = vrot.lane.b32.xlu0 %v2814_v13, %s4167_s27  ;;  %v5537_v20 = vstv %s5498_s29  ;;  %v5545_v13 = vmul.f32 %v325_v6, %v4414_v7  ;;  %v5559_v6 = vmul.f32 %v402_v35, %v4424_v14  ;;  %s5575_s29 = sld [smem:[#allocation9]] }
 0x4da   : > { %v2662_v24 = vpop.permute.xlu0 %2661  ;;  %v2642_v31 = vpop.permute.xlu1 %2641 }
 0x4db   : > { %v2649_v30 = vadd.f32 %v2642_v31, %v2629_v17  ;;  %v2648_v17 = vadd.f32 %v2640_v16, %v2628_v8  ;;  %v2630_v8 = vmul.f32 %v2627_v18, %v5228_v21  ;;  %v5581_v18 = vmul.f32 %v507_v19, %v4424_v14 }
 0x4dd   : > { %v2669_v31 = vadd.f32 %v2662_v24, %v2649_v30  ;;  %2845 = vrot.lane.b32.xlu1 %v2839_v5, %s4168_s30  ;;  %2824 = vrot.lane.b32.xlu0 %v2816_v32, %s4167_s27  ;;  %v2841_v5 = vmul.f32 %v2838_v26, %v5456_v36  ;;  %v5564_v30 = vmul.f32 %v402_v35, %v4420_v11 }
 0x4de   : > { %v2685_v60 = vpop.permute.xlu0 %2684  ;;  %v2660_v55 = vpop.permute.xlu1 %2659  ;;  %v2840_v24 = vmul.f32 %v2838_v26, %v5433_v10  ;;  %v5572_v32 = vmul.f32 %v475_v23, %v4420_v11  ;;  %v2650_v62 = vadd.f32 %v2644_v15, %v2630_v8  ;;  %v5584_v26 = vmul.f32 %v507_v19, %v4420_v11 }
 0x4df   : > { %v2668_v16 = vadd.f32 %v2660_v55, %v2648_v17  ;;  %v2720_v52 = vrot.slane %v2669_v31, 1  ;;  %v5578_v55 = vmul.f32 %v507_v19, %v4414_v7  ;;  %v5587_v15 = vmul.f32 %v552_v12, %v4414_v7 }
 0x4e0   : > { %7304 = vst [vmem:[#allocation239_spill] sm:$0xff] %v5572_v32  ;;  %v5591_v17 = vmul.f32 %v552_v12, %v4424_v14  ;;  %v2962_v32 = vmul.f32 %v2961_v1, %v5431_v44 }
 0x4e1   : > { %v2719_v63 = vrot.slane %v2668_v16, 1  ;;  %2849 = vrot.lane.b32.xlu1 %v2841_v5, %s4168_s30  ;;  %7305 = vst [vmem:[#allocation240_spill] sm:$0xff] %v5587_v15  ;;  %2847 = vrot.lane.b32.xlu0 %v2840_v24, %s4168_s30  ;;  %v2963_v16 = vmul.f32 %v2961_v1, %v5433_v10  ;;  %v2672_v5 = vstv %s5540_s15  ;;  %v5602_v24 = vmul.f32 %v552_v12, %v4420_v11  ;;  %s5766_s15 = sld [smem:[#allocation5 + $0x39]] }
 0x4e2   : > { %v2689_v35 = vpop.permute.xlu0 %2688  ;;  %v2664_v23 = vpop.permute.xlu1 %2663  ;;  %7306 = vst [vmem:[#allocation241_spill] sm:$0xff] %v5591_v17  ;;  %v7307_v15 = vstv %s5484_s11  ;;  %v5623_v12 = vmul.f32 %v5524_v37, %v4424_v14  ;;  %s5710_s11 = sld [smem:[#allocation5 + $0x53]] }
 0x4e3   : > { %v2721_v31 = vsel %vm449_vm4, %v2719_v63, %v2720_v52  ;;  %v2670_v8 = vadd.f32 %v2664_v23, %v2650_v62  ;;  %v5607_v61 = vmul.f32 %v7307_v15, %v4414_v7  ;;  %v2674_v62 = vmul.f32 %v2672_v5, %v5224_v40 }
 0x4e4   : > { %v2726_v19 = vadd.f32 %v2721_v31, %v5469_v25  ;;  %v379_v63 = vadd.f32 %v4560_v41, %v359_v43  ;;  %v7308_v25 = vmov %v7307_v15  ;;  %v5619_v31 = vmul.f32 %v5524_v37, %v4414_v7  ;;  %7311 = vst [vmem:[#allocation244_spill] sm:$0xff] %v5623_v12 }
 0x4e5   : > { %v2722_v17 = vrot.slane %v2670_v8, 1  ;;  %2970 = vrot.lane.b32.xlu1 %v2963_v16, %s4167_s27  ;;  %v5615_v23 = vmul.f32 %v7308_v25, %v4420_v11  ;;  %2968 = vrot.lane.b32.xlu0 %v2962_v32, %s4167_s27  ;;  %v2673_v8 = vmul.f32 %v2672_v5, %v5217_v22  ;;  %v2987_v43 = vmul.f32 %v2986_v9, %v5431_v44 }
 0x4e6   : > { %7310 = vst [vmem:[#allocation243_spill] sm:$0xff] %v5619_v31  ;;  %v2687_v15 = vpop.permute.xlu1 %2686  ;;  %v378_v25 = vadd.f32 %v4546_v34, %v358_v2  ;;  %v380_v40 = vadd.f32 %v4555_v39, %v360_v0  ;;  %v2707_v31 = vpop.permute.xlu0 %2706  ;;  %v2964_v12 = vmul.f32 %v2961_v1, %v5456_v36  ;;  %v5637_v32 = vmul.f32 %v5524_v37, %v4420_v11 }
 0x4e7   : > { %7309 = vst [vmem:[#allocation242_spill] sm:$0xff] %v5615_v23  ;;  %v2723_v16 = vsel %vm449_vm4, %v2720_v52, %v2722_v17  ;;  %v2694_v41 = vadd.f32 %v2687_v15, %v2674_v62  ;;  %v5641_v52 = vmul.f32 %v5528_v27, %v4414_v7  ;;  %v2693_v17 = vadd.f32 %v2685_v60, %v2673_v8 }
 0x4e8   : > { %v2727_v23 = vadd.f32 %v2723_v16, %v5507_v4  ;;  %v399_v39 = vadd.f32 %v4562_v42, %v379_v63  ;;  %v398_v0 = vadd.f32 %v4567_v45, %v378_v25  ;;  %v400_v1 = vadd.f32 %v4572_v47, %v380_v40 }
 0x4e9   : > { %v2714_v34 = vadd.f32 %v2707_v31, %v2694_v41  ;;  %2993 = vrot.lane.b32.xlu1 %v2987_v43, %s4168_s30  ;;  %v301_v2 = vstv %s5575_s29  ;;  %2972 = vrot.lane.b32.xlu0 %v2964_v12, %s4167_s27  ;;  %v5651_v37 = vmul.f32 %v5528_v27, %v4424_v14  ;;  %v2675_v60 = vmul.f32 %v2672_v5, %v5228_v21  ;;  %s5837_s29 = sld [smem:[#allocation5 + $0x83]]  ;;  %v7428_v21 = vld [vmem:[#allocation115_spill] sm:$0xff] }
 0x4ea   : > { %v2705_v4 = vpop.permute.xlu1 %2704  ;;  %v2989_v31 = vmul.f32 %v2986_v9, %v5456_v36  ;;  %v423_v42 = vadd.f32 %v4569_v46, %v5555_v54  ;;  %v424_v45 = vadd.f32 %v4576_v49, %v5564_v30  ;;  %v2988_v47 = vmul.f32 %v2986_v9, %v5433_v10 }
 0x4eb   : > { %v2713_v62 = vadd.f32 %v2705_v4, %v2693_v17  ;;  %v2908_v40 = vstv %s5599_s23  ;;  %v425_v63 = vadd.f32 %v4574_v48, %v5559_v6  ;;  %v2695_v12 = vadd.f32 %v2689_v35, %v2675_v60  ;;  %s5783_s23 = sld [smem:[#allocation5 + $0xaf]] }
 0x4ec   : > { %v2732_v15 = vrot.slane %v2714_v34, 2  ;;  %v451_v8 = vrot.slane %v399_v39, 1  ;;  %v450_v16 = vrot.slane %v398_v0, 1  ;;  %v453_v46 = vrot.slane %v400_v1, 1 }
 0x4ed   : > { %v2731_v5 = vrot.slane %v2713_v62, 2  ;;  %2997 = vrot.lane.b32.xlu1 %v2989_v31, %s4168_s30  ;;  %v443_v49 = vadd.f32 %v4580_v51, %v423_v42  ;;  %2995 = vrot.lane.b32.xlu0 %v2988_v47, %s4168_s30  ;;  %v445_v30 = vadd.f32 %v4584_v53, %v425_v63  ;;  %v2910_v6 = vmul.f32 %v2908_v40, %v5433_v10 }
 0x4ee   : > { %v2709_v54 = vpop.permute.xlu1 %2708  ;;  %v444_v35 = vadd.f32 %v4578_v50, %v424_v45  ;;  %v2909_v43 = vmul.f32 %v2908_v40, %v5431_v44  ;;  %v2858_v25 = vstv %s5633_s25  ;;  %v340_v51 = vadd.f32 %v4536_v28, %v5545_v13  ;;  %s5793_s25 = sld [smem:[#allocation5 + $0x63]] }
 0x4ef   : > { %v2733_v9 = vsel %vm462_vm5, %v2731_v5, %v2732_v15  ;;  %v2715_v48 = vadd.f32 %v2709_v54, %v2695_v12  ;;  %v5682_v53 = vmul.f32 %v5528_v27, %v4420_v11  ;;  %v7313_v17 = vstv %s5491_s1  ;;  %s5750_s1 = sld [smem:[#allocation5 + $0x82]] }
 0x4f0   : > { %v5672_v41 = vadd.f32 %v2733_v9, %v2726_v19  ;;  %v5689_v34 = vmul.f32 %v7313_v17, %v4414_v7  ;;  %v341_v19 = vadd.f32 %v4544_v33, %v5548_v3  ;;  %v452_v28 = vsel %vm449_vm4, %v450_v16, %v451_v8 }
 0x4f1   : > { %v2734_v50 = vrot.slane %v2715_v48, 2  ;;  %2915 = vrot.lane.b32.xlu1 %v2910_v6, %s4168_s30  ;;  %v463_v13 = vrot.slane %v443_v49, 2  ;;  %v7314_v39 = vmov %v7313_v17  ;;  %2913 = vrot.lane.b32.xlu0 %v2909_v43, %s4168_s30  ;;  %v454_v0 = vsel %vm449_vm4, %v451_v8, %v453_v46  ;;  %v7320_v48 = vld [vmem:[#allocation240_spill] sm:$0xff]  ;;  %v7322_v43 = vld [vmem:[#allocation31_spill] sm:$0xff] }
 0x4f2   : > { %7312 = vst [vmem:[#allocation245_spill] sm:$0xff] %v5672_v41  ;;  %v5698_v27 = vmul.f32 %v7314_v39, %v4420_v11  ;;  %v466_v1 = vrot.slane %v445_v30, 2  ;;  %v2860_v60 = vmul.f32 %v2858_v25, %v5433_v10  ;;  %v464_v62 = vrot.slane %v444_v35, 2  ;;  %v7321_v6 = vld [vmem:[#allocation28_spill] sm:$0xff]  ;;  %v7323_v17 = vld [vmem:[#allocation239_spill] sm:$0xff]  ;;  %v7427_v41 = vld [vmem:[#allocation106_spill] sm:$0xff] }
 0x4f3   : > { %v2735_v4 = vsel %vm462_vm5, %v2732_v15, %v2734_v50  ;;  %v2859_v3 = vmul.f32 %v2858_v25, %v5431_v44  ;;  %v3006_v31 = vstv %s5661_s8  ;;  %v354_v42 = vadd.f32 %v4538_v29, %v340_v51  ;;  %v7324_v50 = vld [vmem:[#allocation24_spill] sm:$0xff]  ;;  %s5868_s8 = sld [smem:[#allocation5 + $0x85]] }
 0x4f4   : > { %v5706_v33 = vadd.f32 %v2735_v4, %v2727_v23  ;;  %v355_v45 = vadd.f32 %v4553_v38, %v341_v19  ;;  %v5716_v47 = vmul.f32 %v5534_v57, %v4414_v7  ;;  %v5720_v40 = vmul.f32 %v5534_v57, %v4424_v14  ;;  %v7326_v4 = vld [vmem:[#allocation23_spill] sm:$0xff] }
 0x4f5   : > { %2867 = vrot.lane.b32.xlu1 %v2860_v60, %s4167_s27  ;;  %v465_v23 = vsel %vm462_vm5, %v463_v13, %v464_v62  ;;  %v5726_v63 = vmul.f32 %v5534_v57, %v4420_v11  ;;  %v5730_v29 = vmul.f32 %v5537_v20, %v4414_v7  ;;  %v5734_v38 = vmul.f32 %v5537_v20, %v4424_v14 }
 0x4f6   : > { %7315 = vst [vmem:[#allocation246_spill] sm:$0xff] %v5706_v33  ;;  %2865 = vrot.lane.b32.xlu0 %v2859_v3, %s4167_s27  ;;  %v457_v12 = vadd.f32 %v452_v28, %v354_v42  ;;  %v458_v15 = vadd.f32 %v454_v0, %v355_v45  ;;  %v467_v5 = vsel %vm462_vm5, %v464_v62, %v466_v1  ;;  %v303_v49 = vstv %s5678_s9  ;;  %v7325_v28 = vld [vmem:[#allocation26_spill] sm:$0xff]  ;;  %v7327_v62 = vld [vmem:[#allocation241_spill] sm:$0xff]  ;;  %s5993_s9 = sld [smem:[#allocation5 + $0x7f]] }
 0x4f7   : > { %v3007_v57 = vmul.f32 %v3006_v31, %v5431_v44  ;;  %v528_v8 = vadd.f32 %v4590_v56, %v5578_v55  ;;  %v530_v7 = vadd.f32 %v4594_v58, %v5581_v18  ;;  %v529_v14 = vadd.f32 %v4596_v59, %v5584_v26  ;;  %v7316_v58 = vld [vmem:[#allocation27_spill] sm:$0xff]  ;;  %v7317_v55 = vld [vmem:[#allocation29_spill] sm:$0xff] }
 0x4f8   : > { %v2861_v16 = vmul.f32 %v2858_v25, %v5456_v36  ;;  %v470_v46 = vadd.f32 %v465_v23, %v457_v12  ;;  %v305_v54 = vstv %s5684_s6  ;;  %v5756_v30 = vmul.f32 %v5537_v20, %v4420_v11  ;;  %v7318_v11 = vld [vmem:[#allocation238_spill] sm:$0xff]  ;;  %v7329_v42 = vld [vmem:[#allocation33_spill] sm:$0xff]  ;;  %s6026_s6 = sld [smem:[#allocation5 + $0xac]] }
 0x4f9   : > { %3013 = vrot.lane.b32.xlu1 %v3007_v57, %s4167_s27  ;;  %v471_v56 = vadd.f32 %v467_v5, %v458_v15  ;;  %v548_v59 = vadd.f32 %v7316_v58, %v528_v8  ;;  %v550_v18 = vadd.f32 %v7317_v55, %v530_v7  ;;  %v307_v26 = vstv %s5700_s5  ;;  %v7319_v20 = vld [vmem:[#allocation22_spill] sm:$0xff]  ;;  %v7330_v23 = vld [vmem:[#allocation25_spill] sm:$0xff]  ;;  %v7331_v57 = vld [vmem:[#allocation32_spill] sm:$0xff]  ;;  %s6063_s5 = sld [smem:[#allocation5 + $0x86]] }
 0x4fa   : > { %2869 = vrot.lane.b32.xlu0 %v2861_v16, %s4167_s27  ;;  %v490_v9 = vadd.f32 %v7319_v20, %v7318_v11  ;;  %v573_v35 = vadd.f32 %v7321_v6, %v7320_v48  ;;  %v574_v25 = vadd.f32 %v7322_v43, %v5602_v24  ;;  %v3009_v51 = vmul.f32 %v3006_v31, %v5456_v36  ;;  %v7328_v24 = vld [vmem:[#allocation30_spill] sm:$0xff]  ;;  %v7332_v7 = vld [vmem:[#allocation35_spill] sm:$0xff] }
 0x4fb   : > { %v491_v19 = vadd.f32 %v7324_v50, %v7323_v17  ;;  %v549_v13 = vadd.f32 %v7325_v28, %v529_v14  ;;  %v3008_v39 = vmul.f32 %v3006_v31, %v5433_v10  ;;  %v2922_v0 = vstv %s5710_s11  ;;  %v7336_v28 = vld [vmem:[#allocation38_spill] sm:$0xff]  ;;  %s5895_s11 = sld [smem:[#allocation5 + $0x66]] }
 0x4fc   : > { %v5787_v1 = vadd.f32 %v470_v46, %v301_v2  ;;  %v504_v60 = vadd.f32 %v7326_v4, %v490_v9  ;;  %v575_v3 = vadd.f32 %v7328_v24, %v7327_v62  ;;  %v593_v45 = vadd.f32 %v7329_v42, %v573_v35 }
 0x4fd   : > { %3017 = vrot.lane.b32.xlu1 %v3009_v51, %s4167_s27  ;;  %v5798_v31 = vadd.f32 %v471_v56, %v301_v2  ;;  %v505_v12 = vadd.f32 %v7330_v23, %v491_v19  ;;  %v599_v15 = vrot.slane %v548_v59, 1  ;;  %v602_v5 = vrot.slane %v550_v18, 1  ;;  %v7333_v2 = vld [vmem:[#allocation41_spill] sm:$0xff]  ;;  %v7335_v19 = vld [vmem:[#allocation243_spill] sm:$0xff] }
 0x4fe   : > { %3015 = vrot.lane.b32.xlu0 %v3008_v39, %s4167_s27  ;;  %v594_v8 = vadd.f32 %v7331_v57, %v574_v25  ;;  %v595_v14 = vadd.f32 %v7332_v7, %v575_v3  ;;  %v935_v16 = vstv %s5738_s21  ;;  %v2924_v46 = vmul.f32 %v2922_v0, %v5433_v10  ;;  %v7334_v25 = vld [vmem:[#allocation34_spill] sm:$0xff]  ;;  %s6094_s21 = sld [smem:[#allocation5 + $0xb3]] }
 0x4ff   : > { %v600_v58 = vrot.slane %v549_v13, 1  ;;  %v677_v56 = vadd.f32 %v7333_v2, %v5637_v32  ;;  %v2923_v55 = vmul.f32 %v2922_v0, %v5431_v44  ;;  %v3089_v11 = vstv %s5750_s1  ;;  %v7337_v39 = vld [vmem:[#allocation42_spill] sm:$0xff]  ;;  %v7344_v2 = vld [vmem:[#allocation57_spill] sm:$0xff]  ;;  %s5902_s1 = sld [smem:[#allocation5 + $0x90]] }
 0x500   : > { %v611_v59 = vrot.slane %v593_v45, 2  ;;  %v5811_v18 = vstv %s5747_s0  ;;  %v5814_v20 = vstv %s5758_s12  ;;  %v1083_v9 = vstv %s5760_s26  ;;  %v7338_v45 = vld [vmem:[#allocation36_spill] sm:$0xff]  ;;  %s5900_s0 = sld [smem:[#allocation5 + $0x69]]  ;;  %s5905_s12 = sld [smem:[#allocation5 + $0x93]] }
 0x501   : > { %2929 = vrot.lane.b32.xlu1 %v2924_v46, %s4167_s27  ;;  %v601_v48 = vsel %vm449_vm4, %v599_v15, %v600_v58  ;;  %v603_v6 = vsel %vm449_vm4, %v600_v58, %v602_v5  ;;  %v5821_v35 = vstv %s5766_s15  ;;  %v5824_v32 = vstv %s5768_s28  ;;  %v7339_v15 = vld [vmem:[#allocation244_spill] sm:$0xff]  ;;  %s5910_s15 = sld [smem:[#allocation5 + $0x96]]  ;;  %s5914_s28 = sld [smem:[#allocation5 + $0xb0]] }
 0x502   : > { %2927 = vrot.lane.b32.xlu0 %v2923_v55, %s4167_s27  ;;  %v612_v43 = vrot.slane %v594_v8, 2  ;;  %v638_v51 = vadd.f32 %v7334_v25, %v5607_v61  ;;  %v614_v17 = vrot.slane %v595_v14, 2  ;;  %v3091_v50 = vmul.f32 %v3089_v11, %v5433_v10  ;;  %v7340_v5 = vld [vmem:[#allocation40_spill] sm:$0xff]  ;;  %v7341_v8 = vld [vmem:[#allocation43_spill] sm:$0xff]  ;;  %v7346_v25 = vld [vmem:[#allocation45_spill] sm:$0xff]  ;;  %s6105_s26 = sld [smem:[#allocation5 + $0x12]] }
 0x503   : > { %v676_v13 = vadd.f32 %v7336_v28, %v7335_v19  ;;  %v5833_v0 = vadd.f32 %v7337_v39, %v677_v56  ;;  %v3090_v4 = vmul.f32 %v3089_v11, %v5431_v44  ;;  %v3237_v62 = vstv %s5783_s23  ;;  %v7342_v14 = vld [vmem:[#allocation47_spill] sm:$0xff]  ;;  %v7351_v39 = vld [vmem:[#allocation48_spill] sm:$0xff]  ;;  %s5930_s23 = sld [smem:[#allocation5 + $0xb2]] }
 0x504   : > { %v5839_v24 = vadd.f32 %v601_v48, %v504_v60  ;;  %v5841_v3 = vadd.f32 %v603_v6, %v505_v12  ;;  %v5844_v61 = vsel %vm462_vm5, %v611_v59, %v612_v43  ;;  %v1231_v42 = vstv %s5793_s25  ;;  %v7343_v12 = vld [vmem:[#allocation54_spill] sm:$0xff]  ;;  %v7345_v48 = vld [vmem:[#allocation44_spill] sm:$0xff]  ;;  %v7350_v28 = vld [vmem:[#allocation63_spill] sm:$0xff]  ;;  %s6107_s25 = sld [smem:[#allocation5 + $0x15]] }
 0x505   : > { %3098 = vrot.lane.b32.xlu1 %v3091_v50, %s4168_s30  ;;  %v652_v23 = vadd.f32 %v7338_v45, %v638_v51  ;;  %v678_v57 = vadd.f32 %v7340_v5, %v7339_v15  ;;  %v696_v7 = vadd.f32 %v7341_v8, %v676_v13  ;;  %v722_v46 = vadd.f32 %v7342_v14, %v5682_v53  ;;  %v7353_v45 = vld [vmem:[#allocation56_spill] sm:$0xff] }
 0x506   : > { %3096 = vrot.lane.b32.xlu0 %v3090_v4, %s4168_s30  ;;  %v5856_v60 = vsel %vm462_vm5, %v612_v43, %v614_v17  ;;  %v824_v58 = vadd.f32 %v7343_v12, %v5716_v47  ;;  %v825_v56 = vadd.f32 %v7344_v2, %v5726_v63  ;;  %v3238_v55 = vmul.f32 %v3237_v62, %v5431_v44  ;;  %v7347_v43 = vld [vmem:[#allocation46_spill] sm:$0xff]  ;;  %v7348_v47 = vld [vmem:[#allocation59_spill] sm:$0xff]  ;;  %v7349_v63 = vld [vmem:[#allocation60_spill] sm:$0xff] }
 0x507   : > { %v748_v59 = vrot.slane %v5833_v0, 1  ;;  %v721_v6 = vadd.f32 %v7345_v48, %v5641_v52  ;;  %v698_v53 = vadd.f32 %v7346_v25, %v678_v57  ;;  %v3092_v51 = vmul.f32 %v3089_v11, %v5456_v36  ;;  %v7352_v11 = vld [vmem:[#allocation49_spill] sm:$0xff]  ;;  %v7355_v57 = vld [vmem:[#allocation58_spill] sm:$0xff] }
 0x508   : > { %v723_v17 = vadd.f32 %v7347_v43, %v5651_v37  ;;  %v844_v50 = vadd.f32 %v7348_v47, %v824_v58  ;;  %v869_v19 = vadd.f32 %v7349_v63, %v5730_v29  ;;  %v870_v13 = vadd.f32 %v7350_v28, %v5756_v30  ;;  %v7354_v37 = vld [vmem:[#allocation51_spill] sm:$0xff]  ;;  %v7356_v29 = vld [vmem:[#allocation65_spill] sm:$0xff]  ;;  %v7359_v48 = vld [vmem:[#allocation242_spill] sm:$0xff] }
 0x509   : > { %3244 = vrot.lane.b32.xlu1 %v3238_v55, %s4168_s30  ;;  %v747_v52 = vrot.slane %v696_v7, 1  ;;  %v742_v0 = vadd.f32 %v7351_v39, %v722_v46  ;;  %v741_v4 = vadd.f32 %v7352_v11, %v721_v6  ;;  %v826_v15 = vadd.f32 %v7353_v45, %v5720_v40  ;;  %v7357_v12 = vld [vmem:[#allocation61_spill] sm:$0xff]  ;;  %v7358_v7 = vld [vmem:[#allocation62_spill] sm:$0xff]  ;;  %v7361_v43 = vld [vmem:[#allocation64_spill] sm:$0xff] }
 0x50a   : > { %3100 = vrot.lane.b32.xlu0 %v3092_v51, %s4168_s30  ;;  %v743_v5 = vadd.f32 %v7354_v37, %v723_v17  ;;  %v845_v8 = vadd.f32 %v7355_v57, %v825_v56  ;;  %v889_v14 = vadd.f32 %v7356_v29, %v869_v19  ;;  %v3240_v30 = vmul.f32 %v3237_v62, %v5456_v36  ;;  %v7360_v40 = vld [vmem:[#allocation37_spill] sm:$0xff] }
 0x50b   : > { %v846_v58 = vadd.f32 %v7357_v12, %v826_v15  ;;  %v871_v46 = vadd.f32 %v7358_v7, %v5734_v38  ;;  %v3239_v2 = vmul.f32 %v3237_v62, %v5433_v10  ;;  %v3109_v55 = vstv %s5837_s29  ;;  %v7362_v38 = vld [vmem:[#allocation66_spill] sm:$0xff]  ;;  %v7366_v12 = vld [vmem:[#allocation53_spill] sm:$0xff]  ;;  %s6124_s29 = sld [smem:[#allocation5 + $0x18]] }
 0x50c   : > { %v639_v6 = vadd.f32 %v7360_v40, %v7359_v48  ;;  %v750_v25 = vrot.slane %v698_v53, 1  ;;  %v895_v51 = vrot.slane %v844_v50, 1  ;;  %v890_v17 = vadd.f32 %v7361_v43, %v870_v13  ;;  %v7363_v13 = vld [vmem:[#allocation50_spill] sm:$0xff] }
 0x50d   : > { %3248 = vrot.lane.b32.xlu1 %v3240_v30, %s4168_s30  ;;  %v749_v56 = vsel %vm449_vm4, %v747_v52, %v748_v59  ;;  %v760_v47 = vrot.slane %v742_v0, 2  ;;  %v759_v63 = vrot.slane %v741_v4, 2  ;;  %v891_v19 = vadd.f32 %v7362_v38, %v871_v46  ;;  %v7364_v4 = vld [vmem:[#allocation39_spill] sm:$0xff] }
 0x50e   : > { %3246 = vrot.lane.b32.xlu0 %v3239_v2, %s4168_s30  ;;  %v762_v62 = vrot.slane %v743_v5, 2  ;;  %v896_v53 = vrot.slane %v845_v8, 1  ;;  %v907_v50 = vrot.slane %v889_v14, 2  ;;  %v3111_v28 = vmul.f32 %v3109_v55, %v5433_v10  ;;  %v7365_v8 = vld [vmem:[#allocation52_spill] sm:$0xff] }
 0x50f   : > { %v786_v52 = vadd.f32 %v7363_v13, %v5689_v34  ;;  %v898_v39 = vrot.slane %v846_v58, 1  ;;  %v3110_v0 = vmul.f32 %v3109_v55, %v5431_v44  ;;  %v3134_v11 = vstv %s5868_s8  ;;  %s6126_s8 = sld [smem:[#allocation5 + $0x3f]] }
 0x510   : > { %v653_v45 = vadd.f32 %v7364_v4, %v639_v6  ;;  %v751_v15 = vsel %vm449_vm4, %v748_v59, %v750_v25  ;;  %v897_v37 = vsel %vm449_vm4, %v895_v51, %v896_v53  ;;  %v908_v5 = vrot.slane %v890_v17, 2  ;;  %v7367_v25 = vld [vmem:[#allocation55_spill] sm:$0xff]  ;;  %v7370_v4 = vld [vmem:[#allocation69_spill] sm:$0xff] }
 0x511   : > { %3118 = vrot.lane.b32.xlu1 %v3111_v28, %s4167_s27  ;;  %v754_v57 = vadd.f32 %v749_v56, %v652_v23  ;;  %v761_v34 = vsel %vm462_vm5, %v759_v63, %v760_v47  ;;  %v800_v29 = vadd.f32 %v7365_v8, %v786_v52  ;;  %v910_v14 = vrot.slane %v891_v19, 2 }
 0x512   : > { %3116 = vrot.lane.b32.xlu0 %v3110_v0, %s4167_s27  ;;  %v763_v30 = vsel %vm462_vm5, %v760_v47, %v762_v62  ;;  %v787_v58 = vadd.f32 %v7366_v12, %v5698_v27  ;;  %v909_v59 = vsel %vm462_vm5, %v907_v50, %v908_v5  ;;  %v3135_v7 = vmul.f32 %v3134_v11, %v5431_v44  ;;  %v7373_v12 = vld [vmem:[#allocation75_spill] sm:$0xff] }
 0x513   : > { %v755_v46 = vadd.f32 %v751_v15, %v653_v45  ;;  %v902_v23 = vadd.f32 %v897_v37, %v800_v29  ;;  %v899_v2 = vsel %vm449_vm4, %v896_v53, %v898_v39  ;;  %v3112_v48 = vmul.f32 %v3109_v55, %v5456_v36  ;;  %v7368_v39 = vld [vmem:[#allocation67_spill] sm:$0xff] }
 0x514   : > { %v618_v27 = vadd.f32 %v5844_v61, %v5839_v24  ;;  %v619_v40 = vadd.f32 %v5856_v60, %v5841_v3  ;;  %v766_v6 = vadd.f32 %v761_v34, %v754_v57  ;;  %v801_v51 = vadd.f32 %v7367_v25, %v787_v58  ;;  %v7372_v34 = vld [vmem:[#allocation76_spill] sm:$0xff]  ;;  %v7378_v25 = vld [vmem:[#allocation81_spill] sm:$0xff] }
 0x515   : > { %3141 = vrot.lane.b32.xlu1 %v3135_v7, %s4168_s30  ;;  %v767_v55 = vadd.f32 %v763_v30, %v755_v46  ;;  %v914_v43 = vadd.f32 %v909_v59, %v902_v23  ;;  %v911_v17 = vsel %vm462_vm5, %v908_v5, %v910_v14  ;;  %v5940_v56 = vstv %s5895_s11  ;;  %v7371_v5 = vld [vmem:[#allocation73_spill] sm:$0xff]  ;;  %v7374_v7 = vld [vmem:[#allocation78_spill] sm:$0xff]  ;;  %v7375_v23 = vld [vmem:[#allocation79_spill] sm:$0xff]  ;;  %s6132_s11 = sld [smem:[#allocation5 + $0x24]] }
 0x516   : > { %3120 = vrot.lane.b32.xlu0 %v3112_v48, %s4167_s27  ;;  %v903_v24 = vadd.f32 %v899_v2, %v801_v51  ;;  %v5944_v3 = vstv %s5900_s0  ;;  %v1379_v61 = vstv %s5902_s1  ;;  %v3137_v60 = vmul.f32 %v3134_v11, %v5456_v36  ;;  %v7376_v48 = vld [vmem:[#allocation82_spill] sm:$0xff]  ;;  %s6136_s0 = sld [smem:[#allocation5 + $0x42]]  ;;  %s6138_s1 = sld [smem:[#allocation5 + $0x45]] }
 0x517   : > { %v5949_v47 = vstv %s5905_s12  ;;  %v5952_v63 = vstv %s5910_s15  ;;  %v3136_v38 = vmul.f32 %v3134_v11, %v5433_v10  ;;  %v3257_v19 = vstv %s5914_s28  ;;  %s6178_s12 = sld [smem:[#allocation5 + $0x6c]]  ;;  %s6180_s15 = sld [smem:[#allocation5 + $0x6f]] }
 0x518   : > { %v5958_v62 = vadd.f32 %v618_v27, %v303_v49  ;;  %v5962_v53 = vadd.f32 %v619_v40, %v303_v49  ;;  %v5966_v50 = vadd.f32 %v766_v6, %v305_v54  ;;  %v915_v28 = vadd.f32 %v911_v17, %v903_v24  ;;  %v7369_v49 = vld [vmem:[#allocation68_spill] sm:$0xff]  ;;  %v7379_v17 = vld [vmem:[#allocation77_spill] sm:$0xff]  ;;  %s6198_s28 = sld [smem:[#allocation5 + $0x72]] }
 0x519   : > { %3145 = vrot.lane.b32.xlu1 %v3137_v60, %s4168_s30  ;;  %v5971_v13 = vadd.f32 %v767_v55, %v305_v54  ;;  %v5975_v52 = vadd.f32 %v914_v43, %v307_v26  ;;  %v968_v0 = vmul.f32 %v5811_v18, %v7368_v39  ;;  %v969_v11 = vmul.f32 %v5811_v18, %v7369_v49  ;;  %v7377_v40 = vld [vmem:[#allocation80_spill] sm:$0xff] }
 0x51a   : > { %3143 = vrot.lane.b32.xlu0 %v3136_v38, %s4168_s30  ;;  %v970_v45 = vmul.f32 %v5811_v18, %v7370_v4  ;;  %v1013_v15 = vmul.f32 %v5814_v20, %v7368_v39  ;;  %v1014_v54 = vmul.f32 %v5814_v20, %v7369_v49  ;;  %v3259_v37 = vmul.f32 %v3257_v19, %v5433_v10  ;;  %v7380_v60 = vld [vmem:[#allocation84_spill] sm:$0xff] }
 0x51b   : > { %v988_v57 = vadd.f32 %v7371_v5, %v968_v0  ;;  %v989_v8 = vadd.f32 %v7372_v34, %v969_v11  ;;  %v3258_v29 = vmul.f32 %v3257_v19, %v5431_v44  ;;  %v3282_v14 = vstv %s5930_s23  ;;  %v7381_v0 = vld [vmem:[#allocation86_spill] sm:$0xff]  ;;  %s6214_s23 = sld [smem:[#allocation5 + $0x27]] }
 0x51c   : > { %v5997_v18 = vadd.f32 %v915_v28, %v307_v26  ;;  %v936_v30 = vmul.f32 %v935_v16, %v7368_v39  ;;  %v990_v58 = vadd.f32 %v7373_v12, %v970_v45  ;;  %v1015_v59 = vmul.f32 %v5814_v20, %v7370_v4 }
 0x51d   : > { %3266 = vrot.lane.b32.xlu1 %v3259_v37, %s4167_s27  ;;  %v1008_v46 = vadd.f32 %v7374_v7, %v988_v57  ;;  %v1033_v2 = vadd.f32 %v7375_v23, %v1013_v15  ;;  %v1034_v27 = vadd.f32 %v7376_v48, %v1014_v54  ;;  %v6012_v26 = vmul.f32 %v1083_v9, %v7368_v39  ;;  %v7383_v7 = vld [vmem:[#allocation70_spill] sm:$0xff] }
 0x51e   : > { %3264 = vrot.lane.b32.xlu0 %v3258_v29, %s4167_s27  ;;  %v1010_v6 = vadd.f32 %v7377_v40, %v990_v58  ;;  %v1035_v51 = vadd.f32 %v7378_v25, %v1015_v59  ;;  %v1116_v20 = vmul.f32 %v5821_v35, %v7368_v39  ;;  %v3283_v55 = vmul.f32 %v3282_v14, %v5431_v44  ;;  %v7385_v40 = vld [vmem:[#allocation71_spill] sm:$0xff] }
 0x51f   : > { %v937_v43 = vmul.f32 %v935_v16, %v7369_v49  ;;  %v1009_v24 = vadd.f32 %v7379_v17, %v989_v8  ;;  %v1053_v38 = vadd.f32 %v7380_v60, %v1033_v2  ;;  %v3260_v28 = vmul.f32 %v3257_v19, %v5456_v36  ;;  %v7382_v19 = vld [vmem:[#allocation83_spill] sm:$0xff] }
 0x520   : > { %v1055_v11 = vadd.f32 %v7381_v0, %v1035_v51  ;;  %v6032_v45 = vmul.f32 %v1083_v9, %v7369_v49  ;;  %v6036_v15 = vmul.f32 %v5821_v35, %v7370_v4  ;;  %v1117_v16 = vmul.f32 %v5821_v35, %v7369_v49 }
 0x521   : > { %3289 = vrot.lane.b32.xlu1 %v3283_v55, %s4168_s30  ;;  %v1059_v54 = vrot.slane %v1008_v46, 1  ;;  %v1054_v37 = vadd.f32 %v7382_v19, %v1034_v27  ;;  %v6044_v5 = vmul.f32 %v5824_v32, %v7368_v39  ;;  %v6048_v9 = vmul.f32 %v5824_v32, %v7370_v4  ;;  %v7386_v55 = vld [vmem:[#allocation74_spill] sm:$0xff] }
 0x522   : > { %3268 = vrot.lane.b32.xlu0 %v3260_v28, %s4167_s27  ;;  %v1062_v57 = vrot.slane %v1010_v6, 1  ;;  %v6053_v35 = vmul.f32 %v5824_v32, %v7369_v49  ;;  %v6058_v34 = vmul.f32 %v1231_v42, %v7368_v39  ;;  %v3285_v8 = vmul.f32 %v3282_v14, %v5456_v36  ;;  %v7384_v36 = vld [vmem:[#allocation72_spill] sm:$0xff] }
 0x523   : > { %v1060_v29 = vrot.slane %v1009_v24, 1  ;;  %v1071_v12 = vrot.slane %v1053_v38, 2  ;;  %v3284_v58 = vmul.f32 %v3282_v14, %v5433_v10  ;;  %v3056_v59 = vstv %s5993_s9  ;;  %s6227_s9 = sld [smem:[#allocation5 + $0xad]] }
 0x524   : > { %v950_v46 = vadd.f32 %v7383_v7, %v936_v30  ;;  %v1074_v23 = vrot.slane %v1055_v11, 2  ;;  %v6069_v32 = vmul.f32 %v1231_v42, %v7369_v49  ;;  %v6073_v2 = vmul.f32 %v5940_v56, %v7368_v39  ;;  %v6140_v7 = vld [vmem:[#allocation4] sm:$0xff] }
 0x525   : > { %3293 = vrot.lane.b32.xlu1 %v3285_v8, %s4168_s30  ;;  %v951_v48 = vadd.f32 %v7384_v36, %v937_v43  ;;  %v1061_v14 = vsel %vm449_vm4, %v1059_v54, %v1060_v29  ;;  %v1072_v27 = vrot.slane %v1054_v37, 2  ;;  %v6080_v30 = vmul.f32 %v5940_v56, %v7370_v4 }
 0x526   : > { %3291 = vrot.lane.b32.xlu0 %v3284_v58, %s4168_s30  ;;  %v964_v42 = vadd.f32 %v7385_v40, %v950_v46  ;;  %v1063_v6 = vsel %vm449_vm4, %v1060_v29, %v1062_v57  ;;  %v6087_v25 = vmul.f32 %v5940_v56, %v7369_v49  ;;  %v3058_v51 = vmul.f32 %v3056_v59, %v5433_v10  ;;  %v7387_v57 = vld [vmem:[#allocation89_spill] sm:$0xff] }
 0x527   : > { %v965_v43 = vadd.f32 %v7386_v55, %v951_v48  ;;  %v1073_v17 = vsel %vm462_vm5, %v1071_v12, %v1072_v27  ;;  %v3057_v24 = vmul.f32 %v3056_v59, %v5431_v44  ;;  %v3204_v60 = vstv %s6026_s6  ;;  %v7389_v58 = vld [vmem:[#allocation85_spill] sm:$0xff]  ;;  %v7391_v48 = vld [vmem:[#allocation87_spill] sm:$0xff]  ;;  %s6246_s6 = sld [smem:[#allocation5 + $0x54]] }
 0x528   : > { %v1066_v38 = vadd.f32 %v1061_v14, %v964_v42  ;;  %v1075_v28 = vsel %vm462_vm5, %v1072_v27, %v1074_v23  ;;  %v6099_v56 = vmul.f32 %v5944_v3, %v7368_v39  ;;  %v6103_v0 = vmul.f32 %v5944_v3, %v7370_v4  ;;  %v7393_v55 = vld [vmem:[#allocation93_spill] sm:$0xff] }
 0x529   : > { %3063 = vrot.lane.b32.xlu1 %v3058_v51, %s4168_s30  ;;  %v1067_v44 = vadd.f32 %v1063_v6, %v965_v43  ;;  %v6112_v11 = vmul.f32 %v5944_v3, %v7369_v49  ;;  %v6117_v54 = vmul.f32 %v1379_v61, %v7368_v39  ;;  %v6122_v19 = vmul.f32 %v1379_v61, %v7369_v49  ;;  %v7388_v3 = vld [vmem:[#allocation92_spill] sm:$0xff]  ;;  %v7392_v6 = vld [vmem:[#allocation91_spill] sm:$0xff] }
 0x52a   : > { %3061 = vrot.lane.b32.xlu0 %v3057_v24, %s4168_s30  ;;  %v1078_v37 = vadd.f32 %v1073_v17, %v1066_v38  ;;  %v1136_v8 = vadd.f32 %v7387_v57, %v1116_v20  ;;  %v1137_v29 = vadd.f32 %v7388_v3, %v1117_v16  ;;  %v3206_v12 = vmul.f32 %v3204_v60, %v5433_v10  ;;  %v7390_v20 = vld [vmem:[#allocation94_spill] sm:$0xff] }
 0x52b   : > { %v1098_v59 = vadd.f32 %v7389_v58, %v6012_v26  ;;  %v1079_v61 = vadd.f32 %v1075_v28, %v1067_v44  ;;  %v3205_v46 = vmul.f32 %v6140_v7, %v3204_v60  ;;  %v3154_v23 = vstv %s6063_s5  ;;  %v7395_v60 = vld [vmem:[#allocation96_spill] sm:$0xff]  ;;  %v7396_v28 = vld [vmem:[#allocation98_spill] sm:$0xff]  ;;  %s6316_s5 = sld [smem:[#allocation5 + $0x2a]] }
 0x52c   : > { %v1156_v36 = vadd.f32 %v7390_v20, %v1136_v8  ;;  %v6147_v10 = vmul.f32 %v5949_v47, %v7368_v39  ;;  %v6151_v16 = vmul.f32 %v5949_v47, %v7370_v4  ;;  %v6155_v26 = vmul.f32 %v5949_v47, %v7369_v49 }
 0x52d   : > { %3211 = vrot.lane.b32.xlu1 %v3206_v12, %s4168_s30  ;;  %v1112_v14 = vadd.f32 %v7391_v48, %v1098_v59  ;;  %v6161_v27 = vmul.f32 %v5952_v63, %v7368_v39  ;;  %v6165_v40 = vmul.f32 %v5952_v63, %v7370_v4  ;;  %v6169_v42 = vmul.f32 %v5952_v63, %v7369_v49  ;;  %v6182_v4 = vld [vmem:[#allocation4 + $0x8] sm:$0xff]  ;;  %v7398_v12 = vld [vmem:[#allocation95_spill] sm:$0xff]  ;;  %v6224_v48 = vld [vmem:[#allocation4 + $0x10] sm:$0x3] }
 0x52e   : > { %3209 = vrot.lane.b32.xlu0 %v3205_v46, %s4168_s30  ;;  %v6173_v47 = vadd.f32 %v1078_v37, %v5787_v1  ;;  %v1138_v51 = vadd.f32 %v7392_v6, %v6036_v15  ;;  %v1157_v39 = vadd.f32 %v7393_v55, %v1137_v29  ;;  %v3156_v63 = vmul.f32 %v6182_v4, %v3154_v23  ;;  %v7394_v1 = vld [vmem:[#allocation88_spill] sm:$0xff]  ;;  %s6192_s30 = sld [smem:[#allocation5 + $0x80]]  ;;  %v7400_v55 = vld [vmem:[#allocation99_spill] sm:$0xff]  ;;  %v7416_v37 = vld [vmem:[#allocation114_spill] sm:$0xff] }
 0x52f   : > { %v6186_v49 = vadd.f32 %v1079_v61, %v5798_v31  ;;  %v1099_v43 = vadd.f32 %v7394_v1, %v6032_v45  ;;  %v3155_v15 = vmul.f32 %v6140_v7, %v3154_v23  ;;  %v3302_v17 = vstv %s6094_s21  ;;  %v7397_v31 = vld [vmem:[#allocation90_spill] sm:$0xff]  ;;  %v7399_v61 = vld [vmem:[#allocation97_spill] sm:$0xff]  ;;  %s6342_s21 = sld [smem:[#allocation5 + $0x9c]] }
 0x530   : > { %v1207_v24 = vrot.slane %v1156_v36, 1  ;;  %v1158_v38 = vadd.f32 %v7395_v60, %v1138_v51  ;;  %v1182_v44 = vadd.f32 %v7396_v28, %v6053_v35  ;;  %v6203_v57 = vstv %s6107_s25  ;;  %v7404_v28 = vld [vmem:[#allocation108_spill] sm:$0xff]  ;;  %s6344_s25 = sld [smem:[#allocation5 + $0x9f]] }
 0x531   : > { %3163 = vrot.lane.b32.xlu1 %v3156_v63, %s4167_s27  ;;  %v1113_v45 = vadd.f32 %v7397_v31, %v1099_v43  ;;  %v6206_v8 = vstv %s6124_s29  ;;  %v1208_v29 = vrot.slane %v1157_v39, 1  ;;  %v1181_v58 = vadd.f32 %v7398_v12, %v6044_v5  ;;  %v7401_v63 = vld [vmem:[#allocation100_spill] sm:$0xff]  ;;  %s6362_s29 = sld [smem:[#allocation5 + $0x57]] }
 0x532   : > { %3161 = vrot.lane.b32.xlu0 %v3155_v15, %s4167_s27  ;;  %v3303_v35 = vmul.f32 %v6140_v7, %v3302_v17  ;;  %v2756_v59 = vstv %s6132_s11  ;;  %v1183_v46 = vadd.f32 %v7399_v61, %v6048_v9  ;;  %v6219_v20 = vstv %s6136_s0  ;;  %v7402_v9 = vld [vmem:[#allocation102_spill] sm:$0xff]  ;;  %v7403_v15 = vld [vmem:[#allocation105_spill] sm:$0xff]  ;;  %s6535_s11 = sld [smem:[#allocation5 + $0x1e]]  ;;  %s6611_s0 = sld [smem:[#allocation5 + $0x21]] }
 0x533   : > { %v6222_v36 = vstv %s6138_s1  ;;  %v3157_v6 = vmul.f32 %v6224_v48, %v3154_v23  ;;  %v1209_v5 = vsel %vm449_vm4, %v1207_v24, %v1208_v29  ;;  %v1210_v51 = vrot.slane %v1158_v38, 1  ;;  %s6613_s1 = sld [smem:[#allocation5 + $0x48]] }
 0x534   : > { %v1202_v39 = vadd.f32 %v7400_v55, %v1182_v44  ;;  %v1201_v1 = vadd.f32 %v7401_v63, %v1181_v58  ;;  %v1203_v43 = vadd.f32 %v7402_v9, %v1183_v46  ;;  %v1284_v60 = vadd.f32 %v7403_v15, %v6073_v2 }
 0x535   : > { %3309 = vrot.lane.b32.xlu1 %v3303_v35, %s4167_s27  ;;  %v1285_v23 = vadd.f32 %v7404_v28, %v6087_v25  ;;  %v2758_v24 = vmul.f32 %v6182_v4, %v2756_v59  ;;  %v6242_v44 = vstv %s6180_s15  ;;  %v2757_v31 = vmul.f32 %v6140_v7, %v2756_v59  ;;  %v7405_v35 = vld [vmem:[#allocation110_spill] sm:$0xff]  ;;  %s6633_s15 = sld [smem:[#allocation5 + $0x4e]] }
 0x536   : > { %3165 = vrot.lane.b32.xlu0 %v3157_v6, %s4167_s27  ;;  %v3305_v58 = vmul.f32 %v6224_v48, %v3302_v17  ;;  %v1304_v2 = vadd.f32 %v7405_v35, %v1284_v60  ;;  %v3304_v25 = vmul.f32 %v6182_v4, %v3302_v17  ;;  %v3070_v6 = vstv %s6192_s30  ;;  %v7406_v60 = vld [vmem:[#allocation109_spill] sm:$0xff]  ;;  %s6642_s30 = sld [smem:[#allocation5 + $0x81]] }
 0x537   : > { %v2768_v12 = vpop.permute.xlu1 %2767  ;;  %v2766_v61 = vpop.permute.xlu0 %2765  ;;  %v6251_v55 = vadd.f32 %v1209_v5, %v1112_v14  ;;  %v1219_v63 = vrot.slane %v1201_v1, 2  ;;  %v6254_v9 = vstv %s6198_s28  ;;  %v1211_v59 = vsel %vm449_vm4, %v1208_v29, %v1210_v51  ;;  %v7407_v17 = vld [vmem:[#allocation101_spill] sm:$0xff]  ;;  %v7408_v5 = vld [vmem:[#allocation107_spill] sm:$0xff]  ;;  %s6723_s28 = sld [smem:[#allocation5 + $0xae]] }
 0x538   : > { %v2772_v46 = vadd.f32 %v2768_v12, %v2758_v24  ;;  %v2771_v15 = vadd.f32 %v2766_v61, %v2757_v31  ;;  %v1220_v28 = vrot.slane %v1202_v39, 2  ;;  %v1222_v38 = vrot.slane %v1203_v43, 2 }
 0x539   : > { %3313 = vrot.lane.b32.xlu1 %v3305_v58, %s4167_s27  ;;  %v6259_v35 = vadd.f32 %v7406_v60, %v1285_v23  ;;  %v1246_v14 = vadd.f32 %v7407_v17, %v6058_v34  ;;  %v1286_v1 = vadd.f32 %v7408_v5, %v6080_v30  ;;  %v3072_v31 = vmul.f32 %v6182_v4, %v3070_v6  ;;  %v7409_v34 = vld [vmem:[#allocation103_spill] sm:$0xff]  ;;  %v7410_v60 = vld [vmem:[#allocation112_spill] sm:$0xff] }
 0x53a   : > { %3311 = vrot.lane.b32.xlu0 %v3304_v25, %s4167_s27  ;;  %v2788_v12 = vstv %s6214_s23  ;;  %v1355_v58 = vrot.slane %v1304_v2, 1  ;;  %v3071_v51 = vmul.f32 %v6140_v7, %v3070_v6  ;;  %v3218_v39 = vstv %s6227_s9  ;;  %s6801_s23 = sld [smem:[#allocation5 + $0x84]]  ;;  %s6848_s9 = sld [smem:[#allocation5 + $0xb1]] }
 0x53b   : > { %v2782_v24 = vpop.permute.xlu1 %2781  ;;  %v2780_v61 = vpop.permute.xlu0 %2779  ;;  %v6272_v43 = vadd.f32 %v1211_v59, %v1113_v45  ;;  %v6275_v23 = vsel %vm462_vm5, %v1219_v63, %v1220_v28  ;;  %v1260_v25 = vadd.f32 %v7409_v34, %v1246_v14  ;;  %v6282_v2 = vsel %vm462_vm5, %v1220_v28, %v1222_v38  ;;  %v7411_v63 = vld [vmem:[#allocation104_spill] sm:$0xff]  ;;  %v7412_v28 = vld [vmem:[#allocation111_spill] sm:$0xff] }
 0x53c   : > { %v6268_v29 = vadd.f32 %v2782_v24, %v2772_v46  ;;  %v6278_v30 = vadd.f32 %v2780_v61, %v2771_v15  ;;  %v1356_v46 = vrot.slane %v6259_v35, 1  ;;  %v1306_v6 = vadd.f32 %v7410_v60, %v1286_v1  ;;  %v7413_v61 = vld [vmem:[#allocation113_spill] sm:$0xff]  ;;  %v7415_v60 = vld [vmem:[#allocation124_spill] sm:$0xff] }
 0x53d   : > { %3077 = vrot.lane.b32.xlu1 %v3072_v31, %s4167_s27  ;;  %v2790_v45 = vmul.f32 %v6182_v4, %v2788_v12  ;;  %v1247_v59 = vadd.f32 %v7411_v63, %v6069_v32  ;;  %v2789_v17 = vmul.f32 %v6140_v7, %v2788_v12  ;;  %v3220_v14 = vmul.f32 %v6182_v4, %v3218_v39  ;;  %v7414_v32 = vld [vmem:[#allocation121_spill] sm:$0xff] }
 0x53e   : > { %3075 = vrot.lane.b32.xlu0 %v3071_v51, %s4167_s27  ;;  %v2936_v5 = vstv %s6246_s6  ;;  %v1357_v38 = vsel %vm449_vm4, %v1355_v58, %v1356_v46  ;;  %v1329_v35 = vadd.f32 %v7412_v28, %v6099_v56  ;;  %v3219_v31 = vmul.f32 %v6140_v7, %v3218_v39  ;;  %v7418_v39 = vld [vmem:[#allocation126_spill] sm:$0xff]  ;;  %s6881_s6 = sld [smem:[#allocation5 + $0x7e]] }
 0x53f   : > { %v2803_v15 = vpop.permute.xlu1 %2802  ;;  %v2801_v24 = vpop.permute.xlu0 %2800  ;;  %v1331_v51 = vadd.f32 %v7413_v61, %v6103_v0  ;;  %v1432_v34 = vadd.f32 %v7414_v32, %v6147_v10  ;;  %v1433_v63 = vadd.f32 %v7415_v60, %v6155_v26  ;;  %v1358_v58 = vrot.slane %v1306_v6, 1  ;;  %v7419_v10 = vld [vmem:[#allocation127_spill] sm:$0xff]  ;;  %v7420_v26 = vld [vmem:[#allocation130_spill] sm:$0xff] }
 0x540   : > { %v2810_v1 = vadd.f32 %v2803_v15, %v2790_v45  ;;  %v2809_v3 = vadd.f32 %v2801_v24, %v2789_v17  ;;  %v1330_v56 = vadd.f32 %v7416_v37, %v6112_v11  ;;  %v7417_v45 = vld [vmem:[#allocation123_spill] sm:$0xff]  ;;  %v2937_v0 = vmul.f32 %v6140_v7, %v2936_v5  ;;  %v7421_v11 = vld [vmem:[#allocation116_spill] sm:$0xff] }
 0x541   : > { %3225 = vrot.lane.b32.xlu1 %v3220_v14, %s4167_s27  ;;  %v1434_v15 = vadd.f32 %v7417_v45, %v6151_v16  ;;  %v1452_v28 = vadd.f32 %v7418_v39, %v1432_v34  ;;  %v1477_v61 = vadd.f32 %v7419_v10, %v6161_v27  ;;  %v1478_v17 = vadd.f32 %v7420_v26, %v6169_v42  ;;  %v7422_v16 = vld [vmem:[#allocation128_spill] sm:$0xff]  ;;  %v7424_v45 = vld [vmem:[#allocation118_spill] sm:$0xff]  ;;  %v7425_v39 = vld [vmem:[#allocation125_spill] sm:$0xff] }
 0x542   : > { %3223 = vrot.lane.b32.xlu0 %v3219_v31, %s4167_s27  ;;  %v2791_v6 = vmul.f32 %v6224_v48, %v2788_v12  ;;  %v1349_v37 = vadd.f32 %v7421_v11, %v1329_v35  ;;  %v7423_v31 = vld [vmem:[#allocation129_spill] sm:$0xff]  ;;  %v1351_v27 = vadd.f32 %v7424_v45, %v1331_v51  ;;  %v1453_v10 = vadd.f32 %v7425_v39, %v1433_v63  ;;  %v7426_v42 = vld [vmem:[#allocation132_spill] sm:$0xff]  ;;  %s6336_s27 = sld [smem:[#allocation5 + $0x99]] }
 0x543   : > { %v2949_v14 = vpop.permute.xlu1 %2948  ;;  %v1454_v24 = vadd.f32 %v7422_v16, %v1434_v15  ;;  %v1479_v32 = vadd.f32 %v7423_v31, %v6165_v40  ;;  %v2805_v60 = vpop.permute.xlu0 %2804  ;;  %v1497_v26 = vadd.f32 %v7426_v42, %v1477_v61  ;;  %v1261_v33 = vadd.f32 %v7427_v41, %v1247_v59  ;;  %v7429_v35 = vld [vmem:[#allocation133_spill] sm:$0xff] }
 0x544   : > { %v6322_v34 = vadd.f32 %v2949_v14, %v2937_v0  ;;  %v2811_v12 = vadd.f32 %v2805_v60, %v2791_v6  ;;  %v1350_v22 = vadd.f32 %v7428_v21, %v1330_v56  ;;  %v2939_v15 = vmul.f32 %v6224_v48, %v2936_v5  ;;  %v7430_v0 = vld [vmem:[#allocation131_spill] sm:$0xff] }
 0x545   : > { %v1499_v11 = vadd.f32 %v7429_v35, %v1479_v32  ;;  %v1359_v40 = vsel %vm449_vm4, %v1356_v46, %v1358_v58  ;;  %v1503_v16 = vrot.slane %v1452_v28, 1  ;;  %v1498_v14 = vadd.f32 %v7430_v0, %v1478_v17  ;;  %v7431_v28 = vld [vmem:[#allocation117_spill] sm:$0xff]  ;;  %v7434_v35 = vld [vmem:[#allocation122_spill] sm:$0xff] }
 0x546   : > { %v2938_v51 = vmul.f32 %v6182_v4, %v2936_v5  ;;  %v1362_v63 = vadd.f32 %v1357_v38, %v1260_v25  ;;  %v1367_v45 = vrot.slane %v1349_v37, 2  ;;  %v1506_v61 = vrot.slane %v1454_v24, 1  ;;  %v7432_v25 = vld [vmem:[#allocation120_spill] sm:$0xff] }
 0x547   : > { %v2953_v31 = vpop.permute.xlu1 %2952  ;;  %v2951_v6 = vpop.permute.xlu0 %2950  ;;  %v1370_v21 = vrot.slane %v1351_v27, 2  ;;  %v1504_v41 = vrot.slane %v1453_v10, 1  ;;  %v1515_v59 = vrot.slane %v1497_v26, 2  ;;  %v1363_v46 = vadd.f32 %v1359_v40, %v1261_v33  ;;  %v7433_v33 = vld [vmem:[#allocation119_spill] sm:$0xff] }
 0x548   : > { %v6334_v60 = vadd.f32 %v2953_v31, %v2939_v15  ;;  %v6338_v56 = vadd.f32 %v2951_v6, %v2938_v51  ;;  %v1368_v58 = vrot.slane %v1350_v22, 2  ;;  %v1394_v5 = vadd.f32 %v7431_v28, %v6117_v54 }
 0x549   : > { %v1518_v17 = vrot.slane %v1499_v11, 2  ;;  %v1395_v38 = vadd.f32 %v7432_v25, %v6122_v19  ;;  %v1505_v37 = vsel %vm449_vm4, %v1503_v16, %v1504_v41  ;;  %v1516_v24 = vrot.slane %v1498_v14, 2 }
 0x54a   : > { %v2833_v27 = vstv %s6316_s5  ;;  %v1369_v39 = vsel %vm462_vm5, %v1367_v45, %v1368_v58  ;;  %v1408_v22 = vadd.f32 %v7433_v33, %v1394_v5  ;;  %v1507_v10 = vsel %vm449_vm4, %v1504_v41, %v1506_v61  ;;  %s6897_s5 = sld [smem:[#allocation5 + $0xab]] }
 0x54b   : > { %v2823_v32 = vpop.permute.xlu1 %2822  ;;  %v2821_v54 = vpop.permute.xlu0 %2820  ;;  %v1371_v26 = vsel %vm462_vm5, %v1368_v58, %v1370_v21  ;;  %v1409_v11 = vadd.f32 %v7434_v35, %v1395_v38  ;;  %v1517_v15 = vsel %vm462_vm5, %v1515_v59, %v1516_v24  ;;  %v1519_v16 = vsel %vm462_vm5, %v1516_v24, %v1518_v17 }
 0x54c   : > { %v2830_v42 = vadd.f32 %v2823_v32, %v2810_v1  ;;  %v2829_v19 = vadd.f32 %v2821_v54, %v2809_v3  ;;  %v1510_v40 = vadd.f32 %v1505_v37, %v1408_v22  ;;  %v2834_v14 = vmul.f32 %v6140_v7, %v2833_v27 }
 0x54d   : > { %v1226_v51 = vadd.f32 %v6275_v23, %v6251_v55  ;;  %v1227_v1 = vadd.f32 %v6282_v2, %v6272_v43  ;;  %v1511_v31 = vadd.f32 %v1507_v10, %v1409_v11  ;;  %v1374_v3 = vadd.f32 %v1369_v39, %v1362_v63  ;;  %v7441_v10 = vld [vmem:[#allocation135_spill] sm:$0xff] }
 0x54e   : > { %v2881_v0 = vrot.slane %v2830_v42, 1  ;;  %v2880_v45 = vrot.slane %v2829_v19, 1  ;;  %v1375_v6 = vadd.f32 %v1371_v26, %v1363_v46  ;;  %v1522_v21 = vadd.f32 %v1517_v15, %v1510_v40 }
 0x54f   : > { %v2846_v61 = vpop.permute.xlu1 %2845  ;;  %v2825_v41 = vpop.permute.xlu0 %2824  ;;  %v1523_v58 = vadd.f32 %v1519_v16, %v1511_v31  ;;  %v1987_v28 = vstv %s6336_s27  ;;  %v6369_v23 = vstv %s6342_s21  ;;  %v6372_v43 = vstv %s6344_s25  ;;  %s3798_s27 = sshll.u32 %s4146_s22, 8  ;;  %s3430_s21 = sshll.u32 %s4405_s13, 4  ;;  %s6948_s21 = int_to_ptr.vmem [resolvable:$true] %s3430_s21 }
 0x550   : > { %v6364_v59 = vadd.f32 %v2846_v61, %v2834_v14  ;;  %v2882_v5 = vsel %vm449_vm4, %v2880_v45, %v2881_v0  ;;  %v2831_v55 = vadd.f32 %v2825_v41, %v2811_v12  ;;  %v2836_v63 = vmul.f32 %v6224_v48, %v2833_v27  ;;  %v7445_v14 = vld [vmem:[#allocation140_spill] sm:$0xff]  ;;  %v7447_v45 = vld [vmem:[#allocation142_spill] sm:$0xff]  ;;  %v7448_v41 = vld [vmem:[#allocation145_spill] sm:$0xff]  ;;  %s7583_s22 = sand.u32 1, %s4122_s16  }
 0x551   : > { %v6375_v2 = vadd.f32 %v2882_v5, %v6278_v30  ;;  %v6379_v46 = vadd.f32 %v1226_v51, %v5958_v62  ;;  %v6382_v17 = vadd.f32 %v1227_v1, %v5962_v53  ;;  %v2835_v38 = vmul.f32 %v6182_v4, %v2833_v27  ;;  %v7439_v27 = vld [vmem:[#allocation134_spill] sm:$0xff] }
 0x552   : > { %v2883_v25 = vrot.slane %v2831_v55, 1  ;;  %v6386_v37 = vadd.f32 %v1374_v3, %v5966_v50  ;;  %v6389_v24 = vadd.f32 %v1375_v6, %v5971_v13  ;;  %v6392_v30 = vadd.f32 %v1522_v21, %v5975_v52  ;;  %v7449_v5 = vld [vmem:[#allocation146_spill] sm:$0xff] }
 0x553   : > { %v2850_v12 = vpop.permute.xlu1 %2849  ;;  %v2848_v62 = vpop.permute.xlu0 %2847  ;;  %v6397_v53 = vadd.f32 %v1523_v58, %v5997_v18  ;;  %v7440_v39 = vstv %s6105_s26  ;;  %v1576_v13 = vmul.f32 %v6203_v57, %v7439_v27  ;;  %v1577_v52 = vmul.f32 %v6203_v57, %v7441_v10  ;;  %v7442_v18 = vld [vmem:[#allocation136_spill] sm:$0xff]  ;;  %s6523_s26 = sld [smem:[#allocation5 + $0x51]] }
 0x554   : > { %7435 = vst [vmem:[#allocation27_spill] sm:$0xff] %v6386_v37  ;;  %7436 = vst [vmem:[#allocation29_spill] sm:$0xff] %v6389_v24  ;;  %v6394_v32 = vadd.f32 %v2850_v12, %v2836_v63  ;;  %v1544_v33 = vmul.f32 %v7440_v39, %v7439_v27  ;;  %v2884_v50 = vsel %vm449_vm4, %v2881_v0, %v2883_v25  ;;  %v7443_v35 = vstv %s6126_s8  ;;  %v7510_v24 = vld [vmem:[#allocation211_spill] sm:$0xff] }
 0x555   : > { %7437 = vst [vmem:[#allocation238_spill] sm:$0xff] %v6392_v30  ;;  %7438 = vst [vmem:[#allocation22_spill] sm:$0xff] %v6397_v53  ;;  %v6403_v22 = vadd.f32 %v2848_v62, %v2835_v38  ;;  %v1621_v54 = vmul.f32 %v6206_v8, %v7439_v27  ;;  %v6412_v42 = vadd.f32 %v2884_v50, %v6268_v29  ;;  %v2981_v40 = vstv %s6362_s29  ;;  %v7446_v29 = vld [vmem:[#allocation143_spill] sm:$0xff] }
 0x556   : > { %v1578_v26 = vmul.f32 %v6203_v57, %v7442_v18  ;;  %v6419_v11 = vmul.f32 %v7443_v35, %v7439_v27  ;;  %v6423_v15 = vmul.f32 %v6219_v20, %v7439_v27  ;;  %v7444_v16 = vmov %v7440_v39  ;;  %v7450_v38 = vld [vmem:[#allocation147_spill] sm:$0xff]  ;;  %v7452_v39 = vld [vmem:[#allocation149_spill] sm:$0xff] }
 0x557   : > { %v2971_v19 = vpop.permute.xlu1 %2970  ;;  %v1545_v0 = vmul.f32 %v7444_v16, %v7441_v10  ;;  %v1596_v51 = vadd.f32 %v7445_v14, %v1576_v13  ;;  %v1597_v1 = vadd.f32 %v7446_v29, %v1577_v52  ;;  %v2969_v31 = vpop.permute.xlu0 %2968  ;;  %v1623_v3 = vmul.f32 %v6206_v8, %v7442_v18  ;;  %v7455_v14 = vld [vmem:[#allocation151_spill] sm:$0xff]  ;;  %v7456_v29 = vld [vmem:[#allocation153_spill] sm:$0xff] }
 0x558   : > { %v2978_v57 = vadd.f32 %v2971_v19, %v6338_v56  ;;  %v1598_v61 = vadd.f32 %v7447_v45, %v1578_v26  ;;  %v1622_v6 = vmul.f32 %v6206_v8, %v7441_v10  ;;  %v2977_v21 = vadd.f32 %v2969_v31, %v6322_v34  ;;  %v7451_v56 = vld [vmem:[#allocation148_spill] sm:$0xff] }
 0x559   : > { %v1616_v58 = vadd.f32 %v7448_v41, %v1596_v51  ;;  %v1641_v55 = vadd.f32 %v7449_v5, %v1621_v54  ;;  %v2982_v25 = vmul.f32 %v6140_v7, %v2981_v40  ;;  %v1643_v62 = vadd.f32 %v7451_v56, %v1623_v3  ;;  %v7453_v26 = vld [vmem:[#allocation144_spill] sm:$0xff]  ;;  %v7457_v41 = vld [vmem:[#allocation150_spill] sm:$0xff] }
 0x55a   : > { %v3029_v63 = vrot.slane %v2978_v57, 1  ;;  %v1618_v12 = vadd.f32 %v7450_v38, %v1598_v61  ;;  %v1642_v50 = vadd.f32 %v7452_v39, %v1622_v6  ;;  %v3028_v13 = vrot.slane %v2977_v21, 1 }
 0x55b   : > { %v2994_v52 = vpop.permute.xlu1 %2993  ;;  %v1617_v35 = vadd.f32 %v7453_v26, %v1597_v1  ;;  %v7454_v8 = vstv %s6126_s8  ;;  %v6452_v54 = vmul.f32 %v6219_v20, %v7442_v18  ;;  %v2973_v19 = vpop.permute.xlu0 %2972  ;;  %v1661_v51 = vadd.f32 %v7455_v14, %v1641_v55  ;;  %v7459_v26 = vld [vmem:[#allocation139_spill] sm:$0xff]  ;;  %s6533_s8 = sld [smem:[#allocation5 + $0x1b]] }
 0x55c   : > { %v6448_v34 = vmul.f32 %v7454_v8, %v7441_v10  ;;  %v6454_v16 = vadd.f32 %v2994_v52, %v2982_v25  ;;  %v1663_v31 = vadd.f32 %v7456_v29, %v1643_v62  ;;  %v2979_v57 = vadd.f32 %v2973_v19, %v6334_v60 }
 0x55d   : > { %v6460_v45 = vsel %vm449_vm4, %v3028_v13, %v3029_v63  ;;  %v1667_v1 = vrot.slane %v1616_v58, 1  ;;  %v1725_v61 = vmul.f32 %v6219_v20, %v7441_v10  ;;  %v6466_v3 = vmul.f32 %v6222_v36, %v7439_v27 }
 0x55e   : > { %v2984_v6 = vmul.f32 %v6224_v48, %v2981_v40  ;;  %v1670_v21 = vrot.slane %v1618_v12, 1  ;;  %v1662_v5 = vadd.f32 %v7457_v41, %v1642_v50  ;;  %v3031_v55 = vrot.slane %v2979_v57, 1 }
 0x55f   : > { %v2983_v60 = vmul.f32 %v6182_v4, %v2981_v40  ;;  %v2998_v25 = vpop.permute.xlu1 %2997  ;;  %v1668_v38 = vrot.slane %v1617_v35, 1  ;;  %v6473_v58 = vmul.f32 %v6222_v36, %v7442_v18  ;;  %v6477_v20 = vmul.f32 %v6222_v36, %v7441_v10  ;;  %v2996_v56 = vpop.permute.xlu0 %2995  ;;  %v7458_v40 = vld [vmem:[#allocation137_spill] sm:$0xff] }
 0x560   : > { %v6479_v62 = vadd.f32 %v2998_v25, %v2984_v6  ;;  %v1679_v12 = vrot.slane %v1661_v51, 2  ;;  %v1682_v39 = vrot.slane %v1663_v31, 2  ;;  %v6484_v13 = vsel %vm449_vm4, %v3029_v63, %v3031_v55  ;;  %v7463_v6 = vld [vmem:[#allocation141_spill] sm:$0xff]  ;;  %v7464_v25 = vld [vmem:[#allocation156_spill] sm:$0xff] }
 0x561   : > { %v6481_v50 = vadd.f32 %v2996_v56, %v2983_v60  ;;  %v1558_v52 = vadd.f32 %v7458_v40, %v1544_v33  ;;  %v1559_v35 = vadd.f32 %v7459_v26, %v1545_v0  ;;  %v7460_v8 = vstv %s6178_s12  ;;  %v7462_v0 = vld [vmem:[#allocation138_spill] sm:$0xff]  ;;  %v7465_v56 = vld [vmem:[#allocation159_spill] sm:$0xff]  ;;  %s6631_s12 = sld [smem:[#allocation5 + $0x4b]] }
 0x562   : > { %v6491_v19 = vmul.f32 %v7460_v8, %v7439_v27  ;;  %v7461_v36 = vmov %v7460_v8  ;;  %v1669_v51 = vsel %vm449_vm4, %v1667_v1, %v1668_v38  ;;  %v1671_v29 = vsel %vm449_vm4, %v1668_v38, %v1670_v21 }
 0x563   : > { %v6496_v14 = vmul.f32 %v7461_v36, %v7441_v10  ;;  %v1680_v31 = vrot.slane %v1662_v5, 2  ;;  %v6502_v63 = vmul.f32 %v6242_v44, %v7439_v27  ;;  %v6504_v33 = vpop.permute.xlu1 %2915  ;;  %v1572_v57 = vadd.f32 %v7462_v0, %v1558_v52  ;;  %v6516_v21 = vpop.permute.xlu0 %2913 }
 0x564   : > { %v1573_v41 = vadd.f32 %v7463_v6, %v1559_v35  ;;  %v6510_v55 = vmul.f32 %v6242_v44, %v7442_v18  ;;  %v6514_v1 = vmul.f32 %v6242_v44, %v7441_v10  ;;  %v1744_v38 = vadd.f32 %v7464_v25, %v6423_v15 }
 0x565   : > { %v1681_v5 = vsel %vm462_vm5, %v1679_v12, %v1680_v31  ;;  %v1683_v60 = vsel %vm462_vm5, %v1680_v31, %v1682_v39  ;;  %v1745_v40 = vadd.f32 %v7465_v56, %v1725_v61  ;;  %v1674_v52 = vadd.f32 %v1669_v51, %v1572_v57  ;;  %v7466_v12 = vld [vmem:[#allocation161_spill] sm:$0xff] }
 0x566   : > { %v1675_v26 = vadd.f32 %v1671_v29, %v1573_v41  ;;  %v6527_v44 = vmul.f32 %v6254_v9, %v7439_v27  ;;  %v6531_v35 = vmul.f32 %v6254_v9, %v7442_v18  ;;  %v1764_v15 = vadd.f32 %v7466_v12, %v1744_v38  ;;  %v7470_v41 = vld [vmem:[#allocation160_spill] sm:$0xff] }
 0x567   : > { %v6540_v61 = vmul.f32 %v6254_v9, %v7441_v10  ;;  %v6545_v39 = vmul.f32 %v1987_v28, %v7439_v27  ;;  %v6550_v8 = vmul.f32 %v1987_v28, %v7441_v10  ;;  %v2868_v36 = vpop.permute.xlu1 %2867  ;;  %v1686_v51 = vadd.f32 %v1681_v5, %v1674_v52  ;;  %v7469_v9 = vld [vmem:[#allocation152_spill] sm:$0xff] }
 0x568   : > { %v1687_v29 = vadd.f32 %v1683_v60, %v1675_v26  ;;  %v6554_v31 = vmul.f32 %v6369_v23, %v7439_v27  ;;  %v2866_v0 = vpop.permute.xlu0 %2865  ;;  %v2875_v57 = vadd.f32 %v2868_v36, %v6403_v22  ;;  %v1706_v6 = vadd.f32 %v7469_v9, %v6419_v11  ;;  %v7472_v60 = vld [vmem:[#allocation155_spill] sm:$0xff] }
 0x569   : > { %7467 = vst [vmem:[#allocation240_spill] sm:$0xff] %v6550_v8  ;;  %v6560_v25 = vadd.f32 %v7470_v41, %v1745_v40  ;;  %v6564_v28 = vmul.f32 %v6369_v23, %v7442_v18  ;;  %v2874_v5 = vadd.f32 %v2866_v0, %v6364_v59  ;;  %v1707_v38 = vadd.f32 %v7472_v60, %v6448_v34  ;;  %v7474_v40 = vld [vmem:[#allocation154_spill] sm:$0xff]  ;;  %v7511_v8 = vld [vmem:[#allocation209_spill] sm:$0xff] }
 0x56a   : > { %7468 = vst [vmem:[#allocation28_spill] sm:$0xff] %v6554_v31  ;;  %v6571_v56 = vmul.f32 %v6369_v23, %v7441_v10  ;;  %v6575_v22 = vmul.f32 %v6372_v43, %v7439_v27  ;;  %v2893_v11 = vrot.slane %v2875_v57, 2  ;;  %v6578_v52 = vadd.f32 %v7474_v40, %v1706_v6  ;;  %v7476_v27 = vld [vmem:[#allocation157_spill] sm:$0xff]  ;;  %v7477_v57 = vld [vmem:[#allocation158_spill] sm:$0xff] }
 0x56b   : > { %7471 = vst [vmem:[#allocation31_spill] sm:$0xff] %v6564_v28  ;;  %v1815_v26 = vrot.slane %v1764_v15, 1  ;;  %v6582_v59 = vmul.f32 %v6372_v43, %v7442_v18  ;;  %v2892_v34 = vrot.slane %v2874_v5, 2  ;;  %v3014_v12 = vpop.permute.xlu1 %3013  ;;  %v6585_v23 = vadd.f32 %v1686_v51, %v6173_v47  ;;  %v7478_v47 = vld [vmem:[#allocation162_spill] sm:$0xff]  ;;  %v7512_v28 = vld [vmem:[#allocation204_spill] sm:$0xff] }
 0x56c   : > { %7473 = vst [vmem:[#allocation239_spill] sm:$0xff] %v6575_v22  ;;  %v6588_v36 = vadd.f32 %v1687_v29, %v6186_v49  ;;  %v6591_v0 = vadd.f32 %v7476_v27, %v1707_v38  ;;  %v1746_v9 = vadd.f32 %v7477_v57, %v6452_v54  ;;  %v2870_v6 = vpop.permute.xlu0 %2869  ;;  %v1816_v15 = vrot.slane %v6560_v25, 1  ;;  %v7480_v54 = vld [vmem:[#allocation165_spill] sm:$0xff]  ;;  %v7482_v57 = vld [vmem:[#allocation164_spill] sm:$0xff] }
 0x56d   : > { %7475 = vst [vmem:[#allocation24_spill] sm:$0xff] %v6582_v59  ;;  %v2904_v41 = vstv %s6523_s26  ;;  %v2894_v18 = vsel %vm462_vm5, %v2892_v34, %v2893_v11  ;;  %v2876_v5 = vadd.f32 %v2870_v6, %v6394_v32  ;;  %v1789_v51 = vadd.f32 %v7478_v47, %v6466_v3  ;;  %v7481_v3 = vld [vmem:[#allocation163_spill] sm:$0xff]  ;;  %s7582_s26 = sld [smem:[#allocation249_spill]] }
 0x56e   : > { %v6603_v49 = vstv %s6535_s11  ;;  %v6606_v29 = vadd.f32 %v2894_v18, %v6375_v2  ;;  %v1817_v38 = vsel %vm449_vm4, %v1815_v26, %v1816_v15  ;;  %v1790_v40 = vadd.f32 %v7480_v54, %v6477_v20  ;;  %v7483_v47 = vld [vmem:[#allocation167_spill] sm:$0xff]  ;;  %s6958_s11 = scalar_lea.sflag [#allocation7], %s7583_s22 }
 0x56f   : > { %v2895_v25 = vrot.slane %v2876_v5, 2  ;;  %v3022_v32 = vadd.f32 %v3014_v12, %v6454_v16  ;;  %v3018_v34 = vpop.permute.xlu1 %3017  ;;  %v1766_v27 = vadd.f32 %v7481_v3, %v1746_v9  ;;  %v1791_v6 = vadd.f32 %v7482_v57, %v6473_v58  ;;  %v7484_v16 = vld [vmem:[#allocation169_spill] sm:$0xff]  ;;  %v7486_v57 = vld [vmem:[#allocation166_spill] sm:$0xff] }
 0x570   : > { %7479 = vst [vmem:[#allocation26_spill] sm:$0xff] %v6606_v29  ;;  %v2906_v2 = vmul.f32 %v6182_v4, %v2904_v41  ;;  %v3016_v18 = vpop.permute.xlu0 %3015  ;;  %v3024_v26 = vadd.f32 %v3018_v34, %v6479_v62  ;;  %v1809_v20 = vadd.f32 %v7483_v47, %v1789_v51  ;;  %v2905_v54 = vmul.f32 %v6140_v7, %v2904_v41  ;;  %v7490_v47 = vld [vmem:[#allocation181_spill] sm:$0xff] }
 0x571   : > { %v2896_v60 = vsel %vm462_vm5, %v2893_v11, %v2895_v25  ;;  %v3023_v5 = vadd.f32 %v3016_v18, %v6481_v50  ;;  %v1811_v12 = vadd.f32 %v7484_v16, %v1791_v6  ;;  %v1810_v30 = vadd.f32 %v7486_v57, %v1790_v40  ;;  %v7487_v25 = vld [vmem:[#allocation172_spill] sm:$0xff] }
 0x572   : > { %v2920_v9 = vadd.f32 %v6504_v33, %v2906_v2  ;;  %v6628_v3 = vadd.f32 %v2896_v60, %v6412_v42  ;;  %v3043_v58 = vrot.slane %v3024_v26, 2  ;;  %v2919_v62 = vadd.f32 %v6516_v21, %v2905_v54  ;;  %v7488_v42 = vld [vmem:[#allocation175_spill] sm:$0xff]  ;;  %v7489_v26 = vld [vmem:[#allocation177_spill] sm:$0xff] }
 0x573   : > { %v3040_v41 = vrot.slane %v3022_v32, 2  ;;  %v3041_v11 = vrot.slane %v3023_v5, 2  ;;  %v2930_v51 = vpop.permute.xlu1 %2929  ;;  %v1818_v50 = vrot.slane %v1766_v27, 1  ;;  %v1892_v33 = vadd.f32 %v7487_v25, %v6502_v63 }
 0x574   : > { %7485 = vst [vmem:[#allocation23_spill] sm:$0xff] %v6628_v3  ;;  %v1893_v60 = vadd.f32 %v7488_v42, %v6514_v1  ;;  %v2928_v34 = vpop.permute.xlu0 %2927  ;;  %v2934_v40 = vadd.f32 %v2930_v51, %v2920_v9  ;;  %v1827_v6 = vrot.slane %v1809_v20, 2  ;;  %v1830_v32 = vrot.slane %v1811_v12, 2  ;;  %v7497_v42 = vld [vmem:[#allocation182_spill] sm:$0xff] }
 0x575   : > { %v2933_v2 = vadd.f32 %v2928_v34, %v2919_v62  ;;  %v3042_v18 = vsel %vm462_vm5, %v3040_v41, %v3041_v11  ;;  %v3044_v21 = vsel %vm462_vm5, %v3041_v11, %v3043_v58  ;;  %v1912_v27 = vadd.f32 %v7489_v26, %v1892_v33  ;;  %v7491_v58 = vld [vmem:[#allocation174_spill] sm:$0xff]  ;;  %v7492_v62 = vld [vmem:[#allocation176_spill] sm:$0xff]  ;;  %v7496_v33 = vld [vmem:[#allocation179_spill] sm:$0xff] }
 0x576   : > { %v1938_v54 = vadd.f32 %v7490_v47, %v6540_v61  ;;  %v3036_v63 = vadd.f32 %v6484_v13, %v2934_v40  ;;  %v1828_v5 = vrot.slane %v1810_v30, 2  ;;  %v2228_v1 = vstv %s6611_s0  ;;  %s4028_s0 = scalar_lea.vmem %s6948_s21, 256 }
 0x577   : > { %v2299_v16 = vstv %s6613_s1  ;;  %v3035_v20 = vadd.f32 %v6460_v45, %v2933_v2  ;;  %v3099_v9 = vpop.permute.xlu1 %3098  ;;  %v1819_v57 = vsel %vm449_vm4, %v1816_v15, %v1818_v50  ;;  %v1894_v12 = vadd.f32 %v7491_v58, %v6510_v55  ;;  %v7494_v45 = vld [vmem:[#allocation178_spill] sm:$0xff]  ;;  %v7503_v58 = vld [vmem:[#allocation180_spill] sm:$0xff]  ;;  %p4029_p6 = scmp.ne.s32.totalorder %s6948_s21, %s4028_s0  ;;  %s4169_s1 = smov [#allocation12]  }
 0x578   : > { %v6655_v41 = vadd.f32 %v7492_v62, %v1893_v60  ;;  %v6657_v11 = vadd.f32 %v3044_v21, %v3036_v63  ;;  %v3097_v61 = vpop.permute.xlu0 %3096  ;;  %v1822_v30 = vadd.f32 %v1817_v38, %v6578_v52  ;;  %v1829_v13 = vsel %vm462_vm5, %v1827_v6, %v1828_v5  ;;  %v7498_v52 = vld [vmem:[#allocation183_spill] sm:$0xff] }
 0x579   : > { %v1937_v51 = vadd.f32 %v7494_v45, %v6527_v44  ;;  %v6663_v25 = vadd.f32 %v3042_v18, %v3035_v20  ;;  %v1831_v15 = vsel %vm462_vm5, %v1828_v5, %v1830_v32  ;;  %v1963_v50 = vrot.slane %v1912_v27, 1  ;;  %v7499_v18 = vld [vmem:[#allocation168_spill] sm:$0xff]  ;;  %v7500_v32 = vld [vmem:[#allocation171_spill] sm:$0xff]  ;;  %v7502_v5 = vld [vmem:[#allocation202_spill] sm:$0xff]  ;;  %p4030_p10 = pnand %p4029_p6, %p7584_p3 }
 0x57a   : > { %7493 = vst [vmem:[#allocation241_spill] sm:$0xff] %v6657_v11  ;;  %v6667_v55 = vadd.f32 %v7496_v33, %v1894_v12  ;;  %v6670_v60 = vadd.f32 %v7497_v42, %v1938_v54  ;;  %v1823_v34 = vadd.f32 %v1819_v57, %v6591_v0  ;;  %v2331_v40 = vstv %s6631_s12  ;;  %v7501_v54 = vld [vmem:[#allocation201_spill] sm:$0xff]  ;;  %v7506_v33 = vld [vmem:[#allocation210_spill] sm:$0xff]  ;;  %s4032_s12 = sshll.u32 %s4169_s1, 4  ;;  %s4033_s12 = int_to_ptr.vmem [resolvable:$false] %s4032_s12 }
 0x57b   : > { %7495 = vst [vmem:[#allocation30_spill] sm:$0xff] %v6663_v25  ;;  %v6674_v38 = vadd.f32 %v7498_v52, %v1937_v51  ;;  %v2376_v6 = vstv %s6633_s15  ;;  %v6678_v44 = vpop.permute.xlu1 %3244  ;;  %v6680_v2 = vadd.f32 %v1829_v13, %v1822_v30  ;;  %v6684_v21 = vadd.f32 %v7499_v18, %v6491_v19  ;;  %v7505_v51 = vld [vmem:[#allocation207_spill] sm:$0xff]  ;;  %p4031_p12 = pneg %p4030_p10  ;;  %s4034_s15 = scalar_lea.vmem %s4033_s12, 512 }
 0x57c   : > { %v6688_v26 = vadd.f32 %v7500_v32, %v6496_v14  ;;  %v7062_v0 = vrot.slane %v6655_v41, 1  ;;  %v3101_v27 = vpop.permute.xlu0 %3100  ;;  %v6691_v47 = vadd.f32 %v1831_v15, %v1823_v34  ;;  %v2184_v63 = vmul.f32 %v6603_v49, %v7501_v54  ;;  %p4035_p0 = scmp.lt.s32.totalorder %s6948_s21, %s4033_s12  ;;  %p4036_p9 = scmp.lt.s32.totalorder %s4034_s15, %s4028_s0 }
 0x57d   : > { %v2185_v20 = vmul.f32 %v6603_v49, %v7502_v5  ;;  %v3084_v57 = vstv %s6642_s30  ;;  %v6706_v12 = vadd.f32 %v7503_v58, %v6531_v35  ;;  %v7504_v13 = vstv %s6533_s8  ;;  %s6946_s8 = scalar_lea.hbm %s7582_s26, %s3798_s27 }
 0x57e   : > { %v6701_v19 = vsel %vm449_vm4, %v1963_v50, %v7062_v0  ;;  %v2152_v45 = vmul.f32 %v7504_v13, %v7501_v54  ;;  %v2204_v15 = vadd.f32 %v7505_v51, %v2184_v63  ;;  %v2229_v50 = vmul.f32 %v2228_v1, %v7501_v54  ;;  %v7508_v63 = vld [vmem:[#allocation203_spill] sm:$0xff]  ;;  %v7509_v51 = vld [vmem:[#allocation212_spill] sm:$0xff]  ;;  %p4037_p1 = por %p4036_p9, %p4035_p0 }
 0x57f   : > { %v2205_v42 = vadd.f32 %v7506_v33, %v2185_v20  ;;  %v6715_v34 = vpop.permute.xlu1 %3248  ;;  %v6719_v52 = vmul.f32 %v2299_v16, %v7501_v54  ;;  %v2332_v35 = vmul.f32 %v2331_v40, %v7501_v54  ;;  %v3086_v18 = vmul.f32 %v6182_v4, %v3084_v57 }
 0x580   : > { %v3247_v32 = vpop.permute.xlu0 %3246  ;;  %v7507_v58 = vmov %v7504_v13  ;;  %v2186_v20 = vmul.f32 %v6603_v49, %v7508_v63  ;;  %v2224_v33 = vadd.f32 %v7509_v51, %v2204_v15  ;;  %v3085_v30 = vmul.f32 %v6140_v7, %v3084_v57  ;;  %p4038_p4 = pnand %p4037_p1, %p4031_p12 }
 0x581   : > { %v2153_v13 = vmul.f32 %v7507_v58, %v7502_v5  ;;  %v2231_v62 = vmul.f32 %v2228_v1, %v7508_v63  ;;  %v2230_v0 = vmul.f32 %v2228_v1, %v7502_v5  ;;  %v6735_v14 = vmul.f32 %v2299_v16, %v7502_v5 }
 0x582   : > { %v3106_v53 = vadd.f32 %v3099_v9, %v3086_v18  ;;  %v2225_v59 = vadd.f32 %v7510_v24, %v2205_v42  ;;  %v2334_v22 = vmul.f32 %v2331_v40, %v7508_v63  ;;  %v2333_v58 = vmul.f32 %v2331_v40, %v7502_v5  ;;  %v7513_v18 = vld [vmem:[#allocation206_spill] sm:$0xff] }
 0x583   : > { %v3105_v25 = vadd.f32 %v3097_v61, %v3085_v30  ;;  %v3119_v49 = vpop.permute.xlu1 %3118  ;;  %v2206_v15 = vadd.f32 %v7511_v8, %v2186_v20  ;;  %v2377_v51 = vmul.f32 %v2376_v6, %v7501_v54  ;;  %v2379_v37 = vmul.f32 %v2376_v6, %v7508_v63  ;;  %v7514_v40 = vld [vmem:[#allocation214_spill] sm:$0xff]  ;;  %v7515_v30 = vld [vmem:[#allocation216_spill] sm:$0xff] }
 0x584   : > { %v3117_v11 = vpop.permute.xlu0 %3116  ;;  %v3126_v1 = vadd.f32 %v3119_v49, %v3106_v53  ;;  %v2166_v16 = vadd.f32 %v7512_v28, %v2152_v45  ;;  %v2275_v9 = vrot.slane %v2224_v33, 1  ;;  %v3087_v24 = vmul.f32 %v6224_v48, %v3084_v57  ;;  %v7517_v28 = vld [vmem:[#allocation205_spill] sm:$0xff]  ;;  %v7518_v33 = vld [vmem:[#allocation208_spill] sm:$0xff] }
 0x585   : > { %v3125_v42 = vadd.f32 %v3117_v11, %v3105_v25  ;;  %v2167_v3 = vadd.f32 %v7513_v18, %v2153_v13  ;;  %v2226_v61 = vadd.f32 %v7514_v40, %v2206_v15  ;;  %v2250_v29 = vadd.f32 %v7515_v30, %v2230_v0  ;;  %v7519_v11 = vld [vmem:[#allocation213_spill] sm:$0xff]  ;;  %v7520_v0 = vld [vmem:[#allocation215_spill] sm:$0xff]  ;;  %v7523_v18 = vld [vmem:[#allocation226_spill] sm:$0xff] }
 0x586   : > { %v3177_v8 = vrot.slane %v3126_v1, 1  ;;  %v2276_v20 = vrot.slane %v2225_v59, 1  ;;  %v2378_v54 = vmul.f32 %v2376_v6, %v7502_v5  ;;  %v3107_v63 = vadd.f32 %v3101_v27, %v3087_v24  ;;  %v7521_v5 = vld [vmem:[#allocation217_spill] sm:$0xff]  ;;  %v7524_v40 = vld [vmem:[#allocation218_spill] sm:$0xff] }
 0x587   : > { %v3176_v31 = vrot.slane %v3125_v42, 1  ;;  %v6749_v53 = vpop.permute.xlu1 %3141  ;;  %v2180_v45 = vadd.f32 %v7517_v28, %v2166_v16  ;;  %v6753_v49 = vadd.f32 %v7518_v33, %v2167_v3  ;;  %v2249_v25 = vadd.f32 %v7519_v11, %v2229_v50  ;;  %v7522_v42 = vld [vmem:[#allocation225_spill] sm:$0xff]  ;;  %v7525_v50 = vld [vmem:[#allocation220_spill] sm:$0xff]  ;;  %v7526_v33 = vld [vmem:[#allocation223_spill] sm:$0xff] }
 0x588   : > { %7516 = vst [vmem:[#allocation33_spill] sm:$0xff] %v6749_v53  ;;  %v3232_v57 = vstv %s6723_s28  ;;  %v3121_v13 = vpop.permute.xlu0 %3120  ;;  %v2277_v15 = vsel %vm449_vm4, %v2275_v9, %v2276_v20  ;;  %v2251_v1 = vadd.f32 %v7520_v0, %v2231_v62  ;;  %v2278_v27 = vrot.slane %v2226_v61, 1  ;;  %v7527_v62 = vld [vmem:[#allocation230_spill] sm:$0xff]  ;;  %v7529_v61 = vld [vmem:[#allocation232_spill] sm:$0xff] }
 0x589   : > { %v3127_v59 = vadd.f32 %v3121_v13, %v3107_v63  ;;  %v6760_v6 = vsel %vm449_vm4, %v3176_v31, %v3177_v8  ;;  %v2270_v24 = vadd.f32 %v7521_v5, %v2250_v29  ;;  %v2354_v16 = vadd.f32 %v7522_v42, %v2334_v22  ;;  %v7528_v31 = vld [vmem:[#allocation231_spill] sm:$0xff] }
 0x58a   : > { %v2353_v3 = vadd.f32 %v7523_v18, %v2333_v58  ;;  %v2269_v30 = vadd.f32 %v7524_v40, %v2249_v25  ;;  %v2271_v28 = vadd.f32 %v7525_v50, %v2251_v1  ;;  %v2352_v11 = vadd.f32 %v7526_v33, %v2332_v35  ;;  %v7530_v58 = vld [vmem:[#allocation228_spill] sm:$0xff]  ;;  %v7531_v25 = vld [vmem:[#allocation229_spill] sm:$0xff]  ;;  %v7532_v18 = vld [vmem:[#allocation227_spill] sm:$0xff] }
 0x58b   : > { %v3179_v9 = vrot.slane %v3127_v59, 1  ;;  %v6768_v53 = vpop.permute.xlu1 %3145  ;;  %v2374_v63 = vadd.f32 %v7527_v62, %v2354_v16  ;;  %v2399_v13 = vadd.f32 %v7528_v31, %v2379_v37  ;;  %v2398_v0 = vadd.f32 %v7529_v61, %v2378_v54  ;;  %v7533_v40 = vld [vmem:[#allocation235_spill] sm:$0xff]  ;;  %v7534_v33 = vld [vmem:[#allocation234_spill] sm:$0xff] }
 0x58c   : > { %v3234_v29 = vmul.f32 %v6182_v4, %v3232_v57  ;;  %v6774_v22 = vpop.permute.xlu0 %3143  ;;  %v2372_v5 = vadd.f32 %v7530_v58, %v2352_v11  ;;  %v2397_v42 = vadd.f32 %v7531_v25, %v2377_v51  ;;  %v3233_v1 = vmul.f32 %v6140_v7, %v3232_v57  ;;  %v7535_v7 = vld [vmem:[#allocation233_spill] sm:$0xff] }
 0x58d   : > { %v6780_v35 = vsel %vm449_vm4, %v3177_v8, %v3179_v9  ;;  %v2282_v59 = vadd.f32 %v2277_v15, %v2180_v45  ;;  %v2373_v16 = vadd.f32 %v7532_v18, %v2353_v3  ;;  %v2419_v37 = vadd.f32 %v7533_v40, %v2399_v13  ;;  %v7539_v40 = vld [vmem:[#allocation185_spill] sm:$0xff] }
 0x58e   : > { %v3254_v50 = vadd.f32 %v3247_v32, %v3234_v29  ;;  %v2279_v54 = vsel %vm449_vm4, %v2276_v20, %v2278_v27  ;;  %v2287_v4 = vrot.slane %v2269_v30, 2  ;;  %v2417_v62 = vadd.f32 %v7534_v33, %v2397_v42  ;;  %v7536_v32 = vld [vmem:[#allocation219_spill] sm:$0xff] }
 0x58f   : > { %v3253_v11 = vadd.f32 %v6678_v44, %v3233_v1  ;;  %v3267_v31 = vpop.permute.xlu1 %3266  ;;  %v2290_v51 = vrot.slane %v2271_v28, 2  ;;  %v2426_v61 = vrot.slane %v2374_v63, 1  ;;  %v2418_v58 = vadd.f32 %v7535_v7, %v2398_v0  ;;  %v7537_v44 = vld [vmem:[#allocation222_spill] sm:$0xff]  ;;  %v7538_v1 = vld [vmem:[#allocation224_spill] sm:$0xff] }
 0x590   : > { %v3265_v8 = vpop.permute.xlu0 %3264  ;;  %v3274_v9 = vadd.f32 %v3267_v31, %v3254_v50  ;;  %v2288_v45 = vrot.slane %v2270_v24, 2  ;;  %v2423_v15 = vrot.slane %v2372_v5, 1  ;;  %v3235_v3 = vmul.f32 %v6224_v48, %v3232_v57 }
 0x591   : > { %v3273_v13 = vadd.f32 %v3265_v8, %v3253_v11  ;;  %v2314_v20 = vadd.f32 %v7536_v32, %v6719_v52  ;;  %v2424_v27 = vrot.slane %v2373_v16, 1  ;;  %v2438_v30 = vrot.slane %v2419_v37, 2 }
 0x592   : > { %v3325_v29 = vrot.slane %v3274_v9, 1  ;;  %v2315_v25 = vadd.f32 %v7537_v44, %v6735_v14  ;;  %v2435_v28 = vrot.slane %v2417_v62, 2  ;;  %v3255_v63 = vadd.f32 %v6715_v34, %v3235_v3  ;;  %v7542_v9 = vld [vmem:[#allocation173_spill] sm:$0xff]  ;;  %v7547_v44 = vld [vmem:[#allocation191_spill] sm:$0xff] }
 0x593   : > { %v3324_v0 = vrot.slane %v3273_v13, 1  ;;  %v6794_v42 = vpop.permute.xlu1 %3289  ;;  %v2289_v24 = vsel %vm462_vm5, %v2287_v4, %v2288_v45  ;;  %v2291_v48 = vsel %vm462_vm5, %v2288_v45, %v2290_v51  ;;  %v2427_v57 = vsel %vm449_vm4, %v2424_v27, %v2426_v61  ;;  %v7540_v4 = vld [vmem:[#allocation221_spill] sm:$0xff] }
 0x594   : > { %v2436_v5 = vrot.slane %v2418_v58, 2  ;;  %v3269_v52 = vpop.permute.xlu0 %3268  ;;  %v2329_v18 = vadd.f32 %v7538_v1, %v2315_v25  ;;  %v2425_v16 = vsel %vm449_vm4, %v2423_v15, %v2424_v27  ;;  %v1959_v37 = vadd.f32 %v7539_v40, %v6706_v12  ;;  %v7541_v58 = vld [vmem:[#allocation170_spill] sm:$0xff]  ;;  %v7553_v1 = vld [vmem:[#allocation192_spill] sm:$0xff] }
 0x595   : > { %v3275_v14 = vadd.f32 %v3269_v52, %v3255_v63  ;;  %v6804_v34 = vsel %vm449_vm4, %v3324_v0, %v3325_v29  ;;  %v2283_v50 = vadd.f32 %v2279_v54, %v6753_v49  ;;  %v2328_v33 = vadd.f32 %v7540_v4, %v2314_v20 }
 0x596   : > { %v2439_v62 = vsel %vm462_vm5, %v2436_v5, %v2438_v30  ;;  %v2294_v11 = vadd.f32 %v2289_v24, %v2282_v59  ;;  %v2431_v31 = vadd.f32 %v2427_v57, %v2329_v18  ;;  %v2437_v51 = vsel %vm462_vm5, %v2435_v28, %v2436_v5  ;;  %v7548_v24 = vld [vmem:[#allocation184_spill] sm:$0xff]  ;;  %v7551_v57 = vld [vmem:[#allocation26_spill] sm:$0xff] }
 0x597   : > { %v3327_v61 = vrot.slane %v3275_v14, 1  ;;  %v6812_v7 = vpop.permute.xlu1 %3293  ;;  %v1868_v8 = vadd.f32 %v7541_v58, %v6684_v21  ;;  %v1869_v45 = vadd.f32 %v7542_v9, %v6688_v26  ;;  %v2295_v12 = vadd.f32 %v2291_v48, %v2283_v50  ;;  %v7555_v14 = vld [vmem:[#allocation186_spill] sm:$0xff]  ;;  %v7561_v58 = vld [vmem:[#allocation240_spill] sm:$0xff] }
 0x598   : > { %v2430_v15 = vadd.f32 %v2425_v16, %v2328_v33  ;;  %v6818_v49 = vpop.permute.xlu0 %3291  ;;  %v7543_v54 = vrot.slane %v6667_v55, 1  ;;  %v7544_v59 = vrot.slane %v6655_v41, 1  ;;  %v7545_v13 = vrot.slane %v6670_v60, 2  ;;  %v7557_v50 = vld [vmem:[#allocation190_spill] sm:$0xff]  ;;  %v7558_v33 = vld [vmem:[#allocation193_spill] sm:$0xff]  ;;  %v7560_v60 = vld [vmem:[#allocation27_spill] sm:$0xff] }
 0x599   : > { %v7546_v32 = vrot.slane %v6674_v38, 2  ;;  %v2443_v21 = vadd.f32 %v2439_v62, %v2431_v31  ;;  %v6831_v27 = vsel %vm449_vm4, %v3325_v29, %v3327_v61  ;;  %v1970_v26 = vadd.f32 %v6701_v19, %v1868_v8  ;;  %v7562_v8 = vld [vmem:[#allocation187_spill] sm:$0xff] }
 0x59a   : > { %v1967_v3 = vsel %vm449_vm4, %v7544_v59, %v7543_v54  ;;  %v1978_v30 = vrot.slane %v1959_v37, 2  ;;  %v2041_v55 = vadd.f32 %v7547_v44, %v6571_v56  ;;  %v2442_v41 = vadd.f32 %v2437_v51, %v2430_v15  ;;  %v7556_v37 = vld [vmem:[#allocation31_spill] sm:$0xff]  ;;  %v6878_v15 = vld [vmem:[#allocation4 + $0x8] sm:$0xff]  ;;  %v7565_v44 = vld [vmem:[#allocation197_spill] sm:$0xff] }
 0x59b   : > { %v1977_v20 = vsel %vm462_vm5, %v7546_v32, %v7545_v13  ;;  %v1836_v25 = vadd.f32 %v6680_v2, %v6379_v46  ;;  %v1837_v38 = vadd.f32 %v6691_v47, %v6382_v17  ;;  %v2066_v28 = vmul.f32 %v6372_v43, %v7441_v10  ;;  %v6843_v63 = vpop.permute.xlu1 %3063  ;;  %v7549_v2 = vld [vmem:[#allocation28_spill] sm:$0xff] }
 0x59c   : > { %v2296_v29 = vadd.f32 %v2294_v11, %v6585_v23  ;;  %v1971_v19 = vadd.f32 %v1967_v3, %v1869_v45  ;;  %v1982_v0 = vadd.f32 %v1977_v20, %v1970_v26  ;;  %v2002_v56 = vadd.f32 %v7548_v24, %v6545_v39  ;;  %v6850_v46 = vpop.permute.xlu0 %3061  ;;  %v7550_v17 = vld [vmem:[#allocation188_spill] sm:$0xff]  ;;  %v7554_v39 = vld [vmem:[#allocation23_spill] sm:$0xff]  ;;  %v7559_v11 = vld [vmem:[#allocation241_spill] sm:$0xff] }
 0x59d   : > { %v2297_v48 = vadd.f32 %v2295_v12, %v6588_v36  ;;  %v2040_v47 = vadd.f32 %v7550_v17, %v7549_v2  ;;  %v2445_v10 = vadd.f32 %v2443_v21, %v1837_v38  ;;  %v3129_v23 = vstv %s6801_s23  ;;  %v7563_v45 = vld [vmem:[#allocation30_spill] sm:$0xff]  ;;  %v6886_v21 = vld [vmem:[#allocation4] sm:$0xff]  ;;  %v7569_v17 = vld [vmem:[#allocation24_spill] sm:$0xff] }
 0x59e   : > { %v2901_v43 = vadd.f32 %v7551_v57, %v2296_v29  ;;  %v7552_v5 = vmov %v7545_v13  ;;  %v2061_v18 = vadd.f32 %v7553_v1, %v2041_v55  ;;  %v2444_v36 = vadd.f32 %v2442_v41, %v1836_v25  ;;  %v7564_v13 = vld [vmem:[#allocation195_spill] sm:$0xff] }
 0x59f   : > { %v1979_v52 = vsel %vm462_vm5, %v7552_v5, %v1978_v30  ;;  %v2902_v16 = vadd.f32 %v7554_v39, %v2297_v48  ;;  %v6862_v40 = vadd.f32 %v7555_v14, %v2002_v56  ;;  %v2042_v4 = vadd.f32 %v7557_v50, %v7556_v37  ;;  %v6868_v51 = vpop.permute.xlu1 %3211  ;;  %v7566_v29 = vld [vmem:[#allocation239_spill] sm:$0xff]  ;;  %v7571_v39 = vld [vmem:[#allocation198_spill] sm:$0xff] }
 0x5a0   : > { %v2060_v62 = vadd.f32 %v7558_v33, %v2040_v47  ;;  %v3050_v31 = vadd.f32 %v7559_v11, %v2445_v10  ;;  %v6871_v61 = vadd.f32 %v1982_v0, %v7560_v60  ;;  %v6875_v9 = vadd.f32 %v7562_v8, %v7561_v58  ;;  %v6883_v59 = vpop.permute.xlu0 %3209  ;;  %v7567_v0 = vld [vmem:[#allocation194_spill] sm:$0xff]  ;;  %v7570_v47 = vld [vmem:[#allocation196_spill] sm:$0xff]  ;;  %v7573_v11 = vld [vmem:[#allocation199_spill] sm:$0xff] }
 0x5a1   : > { %v3049_v12 = vadd.f32 %v7563_v45, %v2444_v36  ;;  %v3131_v54 = vmul.f32 %v6878_v15, %v3129_v23  ;;  %v1983_v3 = vadd.f32 %v1979_v52, %v1971_v19  ;;  %v2062_v32 = vadd.f32 %v7564_v13, %v2042_v4  ;;  %v7568_v19 = vld [vmem:[#allocation33_spill] sm:$0xff]  ;;  %v7572_v36 = vld [vmem:[#allocation200_spill] sm:$0xff] }
 0x5a2   : > { %v3787_v20 = vmul.f32 -1.442695, %v2901_v43  ;;  %v3130_v26 = vmul.f32 %v6886_v21, %v3129_v23  ;;  %v2112_v30 = vrot.slane %v2061_v18, 1  ;;  %v2086_v55 = vadd.f32 %v7565_v44, %v2066_v28  ;;  %v3967_v28 = vld [vmem:[#allocation4 + $0x10] sm:$0x3] }
 0x5a3   : > { %v3788_v41 = vmul.f32 -1.442695, %v2902_v16  ;;  %v3151_v25 = vadd.f32 %v6774_v22, %v3131_v54  ;;  %v2111_v38 = vrot.slane %v2060_v62, 1  ;;  %v2085_v24 = vadd.f32 %v7567_v0, %v7566_v29  ;;  %v3164_v2 = vpop.permute.xlu1 %3163  ;;  %v7574_v13 = vld [vmem:[#allocation29_spill] sm:$0xff] }
 0x5a4   : > { %v3790_v56 = vmul.f32 -1.442695, %v3050_v31  ;;  %v3150_v48 = vadd.f32 %v7568_v19, %v3130_v26  ;;  %v2087_v57 = vadd.f32 %v7570_v47, %v7569_v17  ;;  %v3789_v43 = vmul.f32 -1.442695, %v3049_v12  ;;  %v3162_v5 = vpop.permute.xlu0 %3161 }
 0x5a5   : > { %v3277_v10 = vstv %s6848_s9  ;;  %v3171_v52 = vadd.f32 %v3164_v2, %v3151_v25  ;;  %v2114_v1 = vrot.slane %v2062_v32, 1  ;;  %3930 = vpow2.f32 %v3787_v20 }
 0x5a6   : > { %v3132_v22 = vmul.f32 %v3967_v28, %v3129_v23  ;;  %v3170_v18 = vadd.f32 %v3162_v5, %v3150_v48  ;;  %v2106_v16 = vadd.f32 %v7571_v39, %v2086_v55  ;;  %v2107_v14 = vadd.f32 %v7572_v36, %v2087_v57 }
 0x5a7   : > { %3932 = vpow2.f32 %v3788_v41  ;;  %v3189_v37 = vrot.slane %v3171_v52, 2  ;;  %v3278_v4 = vmul.f32 %v6886_v21, %v3277_v10  ;;  %v3310_v62 = vpop.permute.xlu1 %3309  ;;  %v2105_v31 = vadd.f32 %v7573_v11, %v2085_v24 }
 0x5a8   : > { %3934 = vpow2.f32 %v3790_v56  ;;  %v3152_v50 = vadd.f32 %v6768_v53, %v3132_v22  ;;  %v3188_v33 = vrot.slane %v3170_v18, 2  ;;  %v3280_v23 = vmul.f32 %v3967_v28, %v3277_v10  ;;  %v3166_v58 = vpop.permute.xlu0 %3165 }
 0x5a9   : > { %3936 = vpow2.f32 %v3789_v43  ;;  %v3052_v60 = vstv %s6881_s6  ;;  %v3298_v8 = vadd.f32 %v6794_v42, %v3278_v4  ;;  %v3279_v45 = vmul.f32 %v6878_v15, %v3277_v10 }
 0x5aa   : > { %v3172_v12 = vadd.f32 %v3166_v58, %v3152_v50  ;;  %v3190_v54 = vsel %vm462_vm5, %v3188_v33, %v3189_v37  ;;  %v1985_v53 = vadd.f32 %v1983_v3, %v7574_v13  ;;  %v2113_v32 = vsel %vm449_vm4, %v2111_v38, %v2112_v30  ;;  %v7576_v58 = vld [vmem:[#allocation237_spill] sm:$0xff] }
 0x5ab   : > { %v2115_v20 = vsel %vm449_vm4, %v2112_v30, %v2114_v1  ;;  %v3300_v26 = vadd.f32 %v6812_v7, %v3280_v23  ;;  %v2126_v44 = vrot.slane %v2107_v14, 2  ;;  %v3299_v55 = vadd.f32 %v6818_v49, %v3279_v45  ;;  %v3314_v42 = vpop.permute.xlu1 %3313  ;;  %v7575_v7 = vld [vmem:[#allocation189_spill] sm:$0xff] }
 0x5ac   : > { %v3191_v41 = vrot.slane %v3172_v12, 2  ;;  %v3318_v25 = vadd.f32 %v3310_v62, %v3298_v8  ;;  %v2124_v29 = vrot.slane %v2106_v16, 2  ;;  %v2123_v0 = vrot.slane %v2105_v31, 2  ;;  %v3312_v56 = vpop.permute.xlu0 %3311 }
 0x5ad   : > { %v3054_v24 = vmul.f32 %v6878_v15, %v3052_v60  ;;  %v3320_v19 = vadd.f32 %v3314_v42, %v3300_v26  ;;  %v3053_v3 = vmul.f32 %v6886_v21, %v3052_v60  ;;  %v3200_v48 = vstv %s6897_s5 }
 0x5ae   : > { %v3319_v38 = vadd.f32 %v3312_v56, %v3299_v55  ;;  %v3192_v30 = vsel %vm462_vm5, %v3189_v37, %v3191_v41  ;;  %v2017_v2 = vadd.f32 %v7575_v7, %v6875_v9  ;;  %v2118_v49 = vadd.f32 %v2113_v32, %v6862_v40 }
 0x5af   : > { %v3068_v17 = vadd.f32 %v6843_v63, %v3054_v24  ;;  %v3339_v47 = vrot.slane %v3320_v19, 2  ;;  %v3931_v57 = vpop.eup %3930  ;;  %v2127_v43 = vsel %vm462_vm5, %v2124_v29, %v2126_v44  ;;  %v3067_v10 = vadd.f32 %v6850_v46, %v3053_v3  ;;  %v3078_v1 = vpop.permute.xlu1 %3077 }
 0x5b0   : > { %v3336_v5 = vrot.slane %v3318_v25, 2  ;;  %v3337_v52 = vrot.slane %v3319_v38, 2  ;;  %v2119_v22 = vadd.f32 %v2115_v20, %v2017_v2  ;;  %v2125_v18 = vsel %vm462_vm5, %v2123_v0, %v2124_v29  ;;  %v3076_v9 = vpop.permute.xlu0 %3075  ;;  %v7577_v20 = vld [vmem:[#allocation236_spill] sm:$0xff]  ;;  %v7580_v0 = vld [vmem:[#allocation246_spill] sm:$0xff] }
 0x5b1   : > { %v3933_v28 = vpop.eup %3932  ;;  %v3202_v39 = vmul.f32 %v6878_v15, %v3200_v48  ;;  %v3082_v16 = vadd.f32 %v3078_v1, %v3068_v17  ;;  %v3201_v63 = vmul.f32 %v6886_v21, %v3200_v48  ;;  %v3081_v36 = vadd.f32 %v3076_v9, %v3067_v10 }
 0x5b2   : > { %v3935_v40 = vpop.eup %3934  ;;  %v3338_v14 = vsel %vm462_vm5, %v3336_v5, %v3337_v52  ;;  %v3340_v37 = vsel %vm462_vm5, %v3337_v52, %v3339_v47  ;;  %v2131_v50 = vadd.f32 %v2127_v43, %v2119_v22  ;;  %v3353_v4 = vadd.f32 1.0, %v3931_v57  ;;  %v298_v57 = vld [vmem:[#allocation3] sm:$0xff] }
 0x5b3   : > { %v3937_v46 = vpop.eup %3936  ;;  %v3216_v33 = vadd.f32 %v6868_v51, %v3202_v39  ;;  %v3184_v62 = vadd.f32 %v6780_v35, %v3082_v16  ;;  %v2130_v11 = vadd.f32 %v2125_v18, %v2118_v49  ;;  %v3354_v31 = vadd.f32 1.0, %v3933_v28  ;;  %v3226_v60 = vpop.permute.xlu1 %3225  ;;  %v7578_v35 = vld [vmem:[#allocation22_spill] sm:$0xff] }
 0x5b4   : > { %v3215_v15 = vadd.f32 %v6883_v59, %v3201_v63  ;;  %v3183_v23 = vadd.f32 %v6760_v6, %v3081_v36  ;;  %v3366_v21 = vadd.f32 1.0, %v3935_v40  ;;  %v2593_v8 = vadd.f32 %v7576_v58, %v1985_v53  ;;  %v3224_v12 = vpop.permute.xlu0 %3223  ;;  %v7579_v6 = vld [vmem:[#allocation238_spill] sm:$0xff] }
 0x5b5   : > { %v3196_v45 = vadd.f32 %v3192_v30, %v3184_v62  ;;  %v3230_v13 = vadd.f32 %v3226_v60, %v3216_v33  ;;  %v3365_v32 = vadd.f32 1.0, %v3937_v46  ;;  %v2592_v26 = vadd.f32 %v7577_v20, %v6871_v61  ;;  %v299_v49 = vld [vmem:[#allocation3 + $0x8] sm:$0xff] }
 0x5b6   : > { %v3195_v51 = vadd.f32 %v3190_v54, %v3183_v23  ;;  %v3229_v44 = vadd.f32 %v3224_v12, %v3215_v15  ;;  %v2133_v55 = vadd.f32 %v2131_v50, %v7578_v35  ;;  %3938 = vrcp.f32 %v3353_v4  ;;  %v7581_v54 = vld [vmem:[#allocation245_spill] sm:$0xff] }
 0x5b7   : > { %v3198_v41 = vadd.f32 %v3196_v45, %v2593_v8  ;;  %v3332_v59 = vadd.f32 %v6831_v27, %v3230_v13  ;;  %v2132_v25 = vadd.f32 %v2130_v11, %v7579_v6  ;;  %3940 = vrcp.f32 %v3354_v31 }
 0x5b8   : > { %v3197_v42 = vadd.f32 %v3195_v51, %v2592_v26  ;;  %v3331_v53 = vadd.f32 %v6804_v34, %v3229_v44  ;;  %3942 = vrcp.f32 %v3366_v21  ;;  %v2741_v24 = vadd.f32 %v7580_v0, %v2133_v55 }
 0x5b9   : > { %v3792_v29 = vmul.f32 -1.442695, %v3198_v41  ;;  %v3344_v56 = vadd.f32 %v3340_v37, %v3332_v59  ;;  %3944 = vrcp.f32 %v3365_v32  ;;  %v2740_v19 = vadd.f32 %v7581_v54, %v2132_v25 }
 0x5ba   : > { %v3791_v61 = vmul.f32 -1.442695, %v3197_v42  ;;  %v3343_v3 = vadd.f32 %v3338_v14, %v3331_v53 }
 0x5bb   : > { %3946 = vpow2.f32 %v3792_v29  ;;  %v3346_v48 = vadd.f32 %v3344_v56, %v2741_v24 }
 0x5bc   : > { %3948 = vpow2.f32 %v3791_v61  ;;  %v3345_v27 = vadd.f32 %v3343_v3, %v2740_v19 }
 0x5bd   : > { %3950 = vtanh.f32 %v3346_v48 }
 0x5be   : > { %3952 = vtanh.f32 %v3345_v27 }
 0x5c0   : > { %v3939_v38 = vpop.eup %3938 }
 0x5c1   : > { %v3941_v34 = vpop.eup %3940 }
 0x5c2   : > { %v3943_v30 = vpop.eup %3942 }
 0x5c3   : > { %v3945_v7 = vpop.eup %3944  ;;  %v3386_v1 = vmul.f32 %v3943_v30, %v299_v49 }
 0x5c4   : > { %v3385_v22 = vmul.f32 %v3945_v7, %v298_v57 }
 0x5c5   : > { %v3947_v2 = vpop.eup %3946 }
 0x5c6   : > { %v3949_v17 = vpop.eup %3948  ;;  %v3378_v47 = vadd.f32 1.0, %v3947_v2 }
 0x5c7   : > { %v3951_v43 = vpop.eup %3950  ;;  %v3377_v10 = vadd.f32 1.0, %v3949_v17 }
 0x5c8   : > { %v3953_v5 = vpop.eup %3952  ;;  %v3388_v52 = vmul.f32 %v3951_v43, %v3941_v34  ;;  %3954 = vrcp.f32 %v3378_v47 }
 0x5c9   : > { %v3387_v28 = vmul.f32 %v3953_v5, %v3939_v38  ;;  %3956 = vrcp.f32 %v3377_v10 }
 0x5ca   : > { %v3390_v18 = vadd.f32 %v3388_v52, %v3386_v1 }
 0x5cb   : > { %v3389_v39 = vadd.f32 %v3387_v28, %v3385_v22 }
 0x5cc   : > { %3958 = vtanh.f32 %v3390_v18  ;;  %3399 = vst.msk [vmem:[#allocation3 + $0x8] sm:$0xff] %vm3395_vm6, %v3390_v18  ;;  %3403 = vst.msk [vmem:[%s4405_s13 + $0x8] sm:$0xff] %vm3395_vm6, %v3390_v18 }
 0x5cd   : > { %3960 = vtanh.f32 %v3389_v39  ;;  %3398 = vst.msk [vmem:[#allocation3] sm:$0xff] %vm3395_vm6, %v3389_v39  ;;  %3402 = vst.msk [vmem:[%s4405_s13] sm:$0xff] %vm3395_vm6, %v3389_v39 }
 0x5ce   : > { %4041 = shalt.err (!%p4038_p4)
}
 0x5cf   : > { %s4042_s13 = scalar_lea.hbm %s6946_s8, 256  ;;  %s4046_s23 = scalar_lea.hbm %s7582_s26, 512 }
 0x5d0   : > { %p4043_p7 = scmp.ne.s32.totalorder %s6946_s8, %s4042_s13  ;;  %p4047_p2 = scmp.lt.u32.totalorder %s6946_s8, %s7582_s26 }
 0x5d1   : > { %p4048_p8 = scmp.lt.u32.totalorder %s4046_s23, %s4042_s13  ;;  %p4050_p6 = scmp.lt.u32.totalorder %s4042_s13, %s6946_s8 }
 0x5d2   : > { %p4044_p13 = pnand %p4043_p7, %p7584_p3 }
 0x5d3   : > { %p4049_p11 = por %p4048_p8, %p4047_p2 }
 0x5d4   : > { %p4045_p5 = pneg %p4044_p13 }
 0x5d5   : > { %p4051_p10 = por %p4050_p6, %p4049_p11 }
 0x5d7   : > { %p4052_p12 = pnand %p4051_p10, %p4045_p5 }
 0x5d9   : > { %4055 = shalt.err (!%p4052_p12)
}
 0x5da   : > { %s4170_s5 = smov 128   ;;  %s4171_s27 = smov 8   ;;  %v3955_v9 = vpop.eup %3954 }
 0x5db   : > { %3809 = dma.vmem_to_hbm [thread:$0]  (%p7584_p3), %s6948_s21, 256, %s6946_s8, %s6958_s11, %s4170_s5, %s4170_s5, %s4171_s27   ;;  %v3957_v16 = vpop.eup %3956 }
 0x5dc   : > { %v3959_v40 = vpop.eup %3958 }
 0x5dd   : > { %v3961_v63 = vpop.eup %3960  ;;  %v3394_v36 = vmul.f32 %v3959_v40, %v3955_v9 }
 0x5de   : > { %v3393_v14 = vmul.f32 %v3961_v63, %v3957_v16 }
 0x5df   : > { %3397 = vst.msk [vmem:[#allocation2 + $0x8] sm:$0xff] %vm3395_vm6, %v3394_v36  ;;  %3401 = vst.msk [vmem:[%s4403_s18 + $0x8] sm:$0xff] %vm3395_vm6, %v3394_v36 }
 0x5e0   : > { %3396 = vst.msk [vmem:[#allocation2] sm:$0xff] %vm3395_vm6, %v3393_v14  ;;  %3400 = vst.msk [vmem:[%s4403_s18] sm:$0xff] %vm3395_vm6, %v3393_v14 }
 0x5e1 PF: > { %s7585_s25 = sld [smem:[#allocation19_spill]]  ;;  %s7586_s29 = sld [smem:[#allocation17_spill]] }
 0x5e2   : > { %s7587_s22 = sld [smem:[#allocation20_spill]] }
 0x5e7   : > { %p3831_p0 = scmp.ge.s32.totalorder %s7585_s25, 2  ;;  %s3457_s7 = sand.u32 1, %s7586_s29  }
 0x5e8   : > { %p7588_p3 = scmp.ne.s32.totalorder %s7587_s22, 0  ;;  %s3458_s21 = scalar_lea.sflag [#allocation7], %s3457_s7 }
 0x5ea   : > { %p3823_p9 = pnand %p3831_p0, %p7588_p3 }
 0x5ec   : > { %4113 = dma.done.wait (!%p3823_p9), %s3458_s21, 256  }
 0x5ed   : > { %4115 = vsyncadd (!%p3823_p9), %s3458_s21, 4294967040  ;;  %s23_s25 = sadd.s32 1, %s7585_s25   ;;  %s7589_s21 = sld [smem:[#allocation18_spill]] }
 0x5ee   : > { %p20_p1 = scmp.ge.s32.totalorder %s23_s25, 10   ;;  %s7590_s23 = sld [smem:[#allocation21_spill]] }
 0x5ef   : > { %s7591_s15 = smov %s4122_s16  ;;  %s7592_s16 = smov %s4126_s17 }
 0x5f0   : > { %s7593_s17 = smov %s4339_s4  ;;  %s7594_s18 = smov %s4134_s19 }
 0x5f1   : > { %s7595_s19 = smov %s4138_s20  ;;  %s7596_s20 = smov %s4344_s10 }
 0x5f2   : > { %s7597_s22 = smov %s4154_s24  ;;  %s7598_s24 = smov %s7604_s14 }
 0x5f3   :  { %22 = sbr.rel (!%p20_p1) target bundleno = 15 (0xf), region = 105 }
 0x5fa   :  { %3463 = vsyncpa [#allocation6], 1 }
 0x5fb   :  { %3465 = vsyncpa [#allocation6 + $0x1], 1 }
 0x5fc   :  { %3466 = vsyncpa [#allocation7], 1 }
 0x5fd   :  { %3468 = vsyncpa [#allocation7 + $0x1], 1 }
 0x5fe   :  { %3469 = vsyncpa [#allocation8], 1 }
 0x5ff   :  { %3471 = vsyncpa [#allocation8 + $0x1], 1 }
 0x600   :  { %3472 = vsyncpa [#allocation10], 1 }

</bundles_post_ra>
